<compile_context>
chip_gen: v7x
topology: tpu7x:2x2x1
jax: 0.10.0
libtpu: 0.0.40
codegen_flags: <defaults>
</compile_context>

<pallas_src>
import functools
import math

import jax
import jax.numpy as jnp
from jax.experimental import pallas as pl
from jax.experimental.pallas import tpu as pltpu


CFG = [64, "M", 128, "M", 256, "M", 512, "M"]
NUM_CLASSES = 10            # parser_args.set == 'CIFAR10'
OUT_PAD = 128               # classifier output padded to a full lane group
IN_SPATIAL = 16
IN_CH = 3
K0_PAD = 32                 # layer-0 im2col K (9*3 = 27) zero-padded to 32
MAX_BATCH_BLOCK = 32        # per-grid-step batch block (v7x-safe; 64 ok on v5e/v6e)


# ---------------------------------------------------------------------------
# In-kernel helpers
# ---------------------------------------------------------------------------
def _pool2x2_then_bias_relu(y, b, nb, h, w, cout):
    """(nb*h*w, cout) pre-bias conv output -> (nb, h//2, w//2, cout).

    Maxpool FIRST, then bias + ReLU on the pooled tensor (4x fewer rows for the
    VPU epilogue). Valid because the bias is per-channel and ReLU is monotone:
    max(relu(a+b), relu(c+b)) == relu(max(a, c) + b).
    """
    y = y.reshape(nb, h // 2, 2, w, cout)
    y = jnp.maximum(y[:, :, 0], y[:, :, 1])                 # pool along H
    y = y.reshape(nb, h // 2, w // 2, 2, cout)
    y = jnp.maximum(y[:, :, :, 0, :], y[:, :, :, 1, :])     # pool along W
    return jnp.maximum(y + b, 0.0)


def _fill_padded(pad_ref, x, nb, h, w):
    """Write x into the interior of pad_ref; zero ONLY the 1-pixel halo."""
    c = pad_ref.shape[-1]
    zrow = jnp.zeros((nb, 1, w + 2, c), pad_ref.dtype)
    zcol = jnp.zeros((nb, h, 1, c), pad_ref.dtype)
    pad_ref[:, 0:1, :, :] = zrow                            # top halo row
    pad_ref[:, h + 1:h + 2, :, :] = zrow                    # bottom halo row
    pad_ref[:, 1:h + 1, 0:1, :] = zcol                      # left halo col
    pad_ref[:, 1:h + 1, w + 1:w + 2, :] = zcol              # right halo col
    pad_ref[:, 1:h + 1, 1:w + 1, :] = x                     # interior


def _conv_im2col(pad_ref, patch_ref, w_ref, nb, h, w, cin):
    """3x3 conv via one MXU matmul on a bf16 im2col patch matrix (K = 9*cin)."""
    m = nb * h * w
    for dy in range(3):
        for dx in range(3):
            t = dy * 3 + dx
            tap = pad_ref[:, dy:dy + h, dx:dx + w, :].reshape(m, cin)
            patch_ref[:, t * cin:(t + 1) * cin] = tap.astype(jnp.bfloat16)
    return jnp.dot(patch_ref[...], w_ref[...], preferred_element_type=jnp.float32)


def _conv_taps(pad_ref, w_ref, nb, h, w, cin, cout):
    """3x3 conv via 9 accumulated MXU matmuls over shifted windows (K = cin)."""
    m = nb * h * w
    acc = None
    for dy in range(3):
        for dx in range(3):
            t = dy * 3 + dx
            tap = pad_ref[:, dy:dy + h, dx:dx + w, :].reshape(m, cin)
            part = jnp.dot(tap.astype(jnp.bfloat16),
                           w_ref[t * cin:(t + 1) * cin, :],
                           preferred_element_type=jnp.float32)
            acc = part if acc is None else acc + part
    return acc


# ---------------------------------------------------------------------------
# Fused whole-network kernel
# ---------------------------------------------------------------------------
def _vgg_kernel(nb,
                x_ref,              # (NB, 256, 32)  bf16 pre-im2col layer-0 patches
                w0_ref, b0_ref,     # (32, 64) bf16, (1, 64) f32
                w1_ref, b1_ref,     # (576, 128) bf16, (1, 128) f32
                w2_ref, b2_ref,     # (1152, 256) bf16, (1, 256) f32
                w3_ref, b3_ref,     # (2304, 512) bf16, (1, 512) f32
                wfc_ref, bfc_ref,   # (512, 128) bf16, (1, 128) f32
                o_ref,              # (NB, 128) f32
                pad1_ref, patch1_ref, pad2_ref, pad3_ref):
    # ---- layer 0: conv 3->64 on pre-im2col'ed patches, pool 16x16 -> 8x8 ----
    y0 = jnp.dot(x_ref[...].reshape(nb * 256, K0_PAD), w0_ref[...],
                 preferred_element_type=jnp.float32)
    x1 = _pool2x2_then_bias_relu(y0, b0_ref[...], nb, 16, 16, 64)   # (NB,8,8,64)

    # ---- layer 1: conv 64->128 (im2col, K=576), pool 8x8 -> 4x4 ----
    _fill_padded(pad1_ref, x1, nb, 8, 8)
    y1 = _conv_im2col(pad1_ref, patch1_ref, w1_ref, nb, 8, 8, 64)
    x2 = _pool2x2_then_bias_relu(y1, b1_ref[...], nb, 8, 8, 128)    # (NB,4,4,128)

    # ---- layer 2: conv 128->256 (9 accumulated matmuls), pool 4x4 -> 2x2 ----
    _fill_padded(pad2_ref, x2, nb, 4, 4)
    y2 = _conv_taps(pad2_ref, w2_ref, nb, 4, 4, 128, 256)
    x3 = _pool2x2_then_bias_relu(y2, b2_ref[...], nb, 4, 4, 256)    # (NB,2,2,256)

    # ---- layer 3: conv 256->512 (9 accumulated matmuls), pool 2x2 -> 1x1 ----
    _fill_padded(pad3_ref, x3, nb, 2, 2)
    y3 = _conv_taps(pad3_ref, w3_ref, nb, 2, 2, 256, 512)
    x4 = _pool2x2_then_bias_relu(y3, b3_ref[...], nb, 2, 2, 512)    # (NB,1,1,512)

    # ---- classifier: Linear(512, num_classes), lane-dense padded output ----
    feat = x4.reshape(nb, 512).astype(jnp.bfloat16)
    o_ref[...] = jnp.dot(feat, wfc_ref[...],
                         preferred_element_type=jnp.float32) + bfc_ref[...]


# ---------------------------------------------------------------------------
# Wrapper
# ---------------------------------------------------------------------------
def _choose_batch_block(n):
    """Pick the per-step batch block NB and the zero-padded batch size."""
    if n >= 2 * MAX_BATCH_BLOCK:
        nb = MAX_BATCH_BLOCK                    # fat M, grid_n >= 2 for megacore
    elif n > 8:
        nb = -(-((n + 1) // 2) // 8) * 8        # two ~equal 8-aligned steps
    else:
        nb = n                                  # tiny batch: one grid step
    n_pad = -(-n // nb) * nb
    return nb, n_pad


def _pre_im2col_layer0(x_nhwc):
    """Zero-pad spatially and build (N, H*W, K0_PAD) bf16 layer-0 patches."""
    n, h, w, c = x_nhwc.shape
    xp = jnp.pad(x_nhwc, ((0, 0), (1, 1), (1, 1), (0, 0)))
    taps = [xp[:, dy:dy + h, dx:dx + w, :] for dy in range(3) for dx in range(3)]
    patches = jnp.concatenate(taps, axis=-1)                       # (N,H,W,9*C)
    patches = jnp.pad(patches, ((0, 0), (0, 0), (0, 0), (0, K0_PAD - 9 * c)))
    return patches.reshape(n, h * w, K0_PAD).astype(jnp.bfloat16)


def vgg_forward_pallas(x_nchw, conv_params, w_fc, b_fc):
    (w0, b0), (w1, b1), (w2, b2), (w3, b3) = conv_params
    x = jnp.transpose(x_nchw, (0, 2, 3, 1)).astype(jnp.float32)    # NHWC
    n, h, w, cin = x.shape
    assert (h, w, cin) == (IN_SPATIAL, IN_SPATIAL, IN_CH), (h, w, cin)

    nb, n_pad = _choose_batch_block(n)
    if n_pad != n:                                                 # remainder handling
        x = jnp.pad(x, ((0, n_pad - n), (0, 0), (0, 0), (0, 0)))
    grid_n = n_pad // nb

    patches0 = _pre_im2col_layer0(x)                               # (n_pad,256,32) bf16

    def w_im2col(wk, cin_k, pad_rows=0):
        co = wk.shape[-1]
        wm = wk.reshape(9 * cin_k, co)                             # rows: (dy, dx, cin)
        if pad_rows:
            wm = jnp.pad(wm, ((0, pad_rows), (0, 0)))
        return wm.astype(jnp.bfloat16)

    def bias2d(bk):
        return bk.reshape(1, -1).astype(jnp.float32)

    w0m = w_im2col(w0, IN_CH, K0_PAD - 9 * IN_CH)                  # (32, 64)
    w1m = w_im2col(w1, 64)                                         # (576, 128)
    w2m = w_im2col(w2, 128)                                        # (1152, 256)
    w3m = w_im2col(w3, 256)                                        # (2304, 512)

    assert w_fc.shape == (512, NUM_CLASSES), w_fc.shape
    wfc = jnp.pad(w_fc, ((0, 0), (0, OUT_PAD - NUM_CLASSES))).astype(jnp.bfloat16)
    bfc = jnp.pad(b_fc, (0, OUT_PAD - NUM_CLASSES)).reshape(1, OUT_PAD)
    bfc = bfc.astype(jnp.float32)

    const2 = lambda i: (0, 0)
    in_specs = [
        pl.BlockSpec((nb, h * w, K0_PAD), lambda i: (i, 0, 0)),
        pl.BlockSpec(w0m.shape, const2), pl.BlockSpec((1, 64), const2),
        pl.BlockSpec(w1m.shape, const2), pl.BlockSpec((1, 128), const2),
        pl.BlockSpec(w2m.shape, const2), pl.BlockSpec((1, 256), const2),
        pl.BlockSpec(w3m.shape, const2), pl.BlockSpec((1, 512), const2),
        pl.BlockSpec(wfc.shape, const2), pl.BlockSpec((1, OUT_PAD), const2),
    ]
    scratch_shapes = [
        pltpu.VMEM((nb, 10, 10, 64), jnp.float32),    # pad1 (f32 on purpose, see header)
        pltpu.VMEM((nb * 64, 576), jnp.bfloat16),     # patch1 (bf16, feeds MXU directly)
        pltpu.VMEM((nb, 6, 6, 128), jnp.float32),     # pad2
        pltpu.VMEM((nb, 4, 4, 256), jnp.float32),     # pad3
    ]

    out = pl.pallas_call(
        functools.partial(_vgg_kernel, nb),
        out_shape=jax.ShapeDtypeStruct((n_pad, OUT_PAD), jnp.float32),
        grid=(grid_n,),
        in_specs=in_specs,
        out_specs=pl.BlockSpec((nb, OUT_PAD), lambda i: (i, 0)),
        scratch_shapes=scratch_shapes,
        compiler_params=pltpu.CompilerParams(
            dimension_semantics=("parallel",),
            # ~25 MiB used at NB=32; 48 MiB keeps headroom and stays inside the
            # v7x 64 MiB/TC budget (v5e/v6e have 128 MiB physical).
            vmem_limit_bytes=48 * 1024 * 1024),
    )(patches0, w0m, bias2d(b0), w1m, bias2d(b1), w2m, bias2d(b2),
      w3m, bias2d(b3), wfc, bfc)
    return out[:n, :NUM_CLASSES]


# ---------------------------------------------------------------------------
# Parameter init (matches the torch module's init: n = k*k*in_channels, bias=0,
# classifier ~ N(0, 0.01)), deterministic.
# ---------------------------------------------------------------------------
def init_params(key):
    conv_params = []
    c = IN_CH
    for v in CFG:
        if v == "M":
            continue
        n_fan = 3 * 3 * c
        key, kw = jax.random.split(key)
        wk = jax.random.normal(kw, (3, 3, c, v), jnp.float32) * math.sqrt(2.0 / n_fan)
        bk = jnp.zeros((v,), jnp.float32)
        conv_params.append((wk, bk))
        c = v
    key, kfc = jax.random.split(key)
    w_fc = jax.random.normal(kfc, (512, NUM_CLASSES), jnp.float32) * 0.01
    b_fc = jnp.zeros((NUM_CLASSES,), jnp.float32)
    return conv_params, w_fc, b_fc


# Pure-JAX f32 reference (same semantics as the torch forward) for a parity check.
def vgg_forward_reference(x_nchw, conv_params, w_fc, b_fc):
    x = jnp.transpose(x_nchw, (0, 2, 3, 1)).astype(jnp.float32)
    for wk, bk in conv_params:
        x = jax.lax.conv_general_dilated(
            x, wk, window_strides=(1, 1), padding="SAME",
            dimension_numbers=("NHWC", "HWIO", "NHWC"))
        x = jnp.maximum(x + bk, 0.0)
        x = jax.lax.reduce_window(x, -jnp.inf, jax.lax.max,
                                  (1, 2, 2, 1), (1, 2, 2, 1), "VALID")
    feat = x.reshape(x.shape[0], -1)
    return feat @ w_fc + b_fc


if __name__ == "__main__":
    key = jax.random.PRNGKey(0)
    key, kx = jax.random.split(key)
    # small CIFAR-like input: batch=2, channels=3, spatial=16
    x = jax.random.normal(kx, (2, IN_CH, IN_SPATIAL, IN_SPATIAL), jnp.float32)

    conv_params, w_fc, b_fc = init_params(jax.random.PRNGKey(0))

    fwd = jax.jit(vgg_forward_pallas)
    out = jax.block_until_ready(fwd(x, conv_params, w_fc, b_fc))
    assert out.shape == (2, NUM_CLASSES), out.shape
    assert bool(jnp.all(jnp.isfinite(out)))

    # bf16-matmul vs f32 reference parity (loose tolerance; accumulation is f32).
    ref = vgg_forward_reference(x, conv_params, w_fc, b_fc)
    assert bool(jnp.allclose(out, ref, rtol=1e-1, atol=1e-1)), (
        "max abs diff vs reference: %f" % float(jnp.max(jnp.abs(out - ref))))

    print("KERNEL_OK")
</pallas_src>

<mosaic_0001>
module attributes {stable_mosaic.version = 11 : i64} {
  func.func @_vgg_kernel(%arg0: i32, %arg1: memref<2x256x32xbf16, #tpu.memory_space<vmem>>, %arg2: memref<32x64xbf16, #tpu.memory_space<vmem>>, %arg3: memref<1x64xf32, #tpu.memory_space<vmem>>, %arg4: memref<576x128xbf16, #tpu.memory_space<vmem>>, %arg5: memref<1x128xf32, #tpu.memory_space<vmem>>, %arg6: memref<1152x256xbf16, #tpu.memory_space<vmem>>, %arg7: memref<1x256xf32, #tpu.memory_space<vmem>>, %arg8: memref<2304x512xbf16, #tpu.memory_space<vmem>>, %arg9: memref<1x512xf32, #tpu.memory_space<vmem>>, %arg10: memref<512x128xbf16, #tpu.memory_space<vmem>>, %arg11: memref<1x128xf32, #tpu.memory_space<vmem>>, %arg12: memref<2x128xf32, #tpu.memory_space<vmem>>, %arg13: memref<2x10x10x64xf32, #tpu.memory_space<vmem>>, %arg14: memref<128x576xbf16, #tpu.memory_space<vmem>>, %arg15: memref<2x6x6x128xf32, #tpu.memory_space<vmem>>, %arg16: memref<2x4x4x256xf32, #tpu.memory_space<vmem>>) attributes {dimension_semantics = [#tpu.dimension_semantics<parallel>], iteration_bounds = array<i64: 1>, scalar_prefetch = 0 : i64, scratch_operands = 4 : i64, tpu.core_type = #tpu.core_type<tc>, window_params = [{transform_indices = @transform_0, window_bounds = array<i64: 2, 256, 32>}, {pipeline_mode = #tpu.pipeline_mode<synchronous>, transform_indices = @transform_1, window_bounds = array<i64: 32, 64>}, {pipeline_mode = #tpu.pipeline_mode<synchronous>, transform_indices = @transform_2, window_bounds = array<i64: 1, 64>}, {pipeline_mode = #tpu.pipeline_mode<synchronous>, transform_indices = @transform_3, window_bounds = array<i64: 576, 128>}, {pipeline_mode = #tpu.pipeline_mode<synchronous>, transform_indices = @transform_4, window_bounds = array<i64: 1, 128>}, {pipeline_mode = #tpu.pipeline_mode<synchronous>, transform_indices = @transform_5, window_bounds = array<i64: 1152, 256>}, {pipeline_mode = #tpu.pipeline_mode<synchronous>, transform_indices = @transform_6, window_bounds = array<i64: 1, 256>}, {pipeline_mode = #tpu.pipeline_mode<synchronous>, transform_indices = @transform_7, window_bounds = array<i64: 2304, 512>}, {pipeline_mode = #tpu.pipeline_mode<synchronous>, transform_indices = @transform_8, window_bounds = array<i64: 1, 512>}, {pipeline_mode = #tpu.pipeline_mode<synchronous>, transform_indices = @transform_9, window_bounds = array<i64: 512, 128>}, {pipeline_mode = #tpu.pipeline_mode<synchronous>, transform_indices = @transform_10, window_bounds = array<i64: 1, 128>}, {transform_indices = @transform_11, window_bounds = array<i64: 2, 128>}]} {
    %c0 = arith.constant 0 : index
    %c0_0 = arith.constant 0 : index
    %c0_1 = arith.constant 0 : index
    %0 = vector.load %arg1[%c0, %c0_0, %c0_1] : memref<2x256x32xbf16, #tpu.memory_space<vmem>>, vector<2x256x32xbf16>
    %1 = vector.shape_cast %0 : vector<2x256x32xbf16> to vector<512x32xbf16>
    %c0_2 = arith.constant 0 : index
    %c0_3 = arith.constant 0 : index
    %2 = vector.load %arg2[%c0_2, %c0_3] : memref<32x64xbf16, #tpu.memory_space<vmem>>, vector<32x64xbf16>
    %cst = arith.constant dense<0.000000e+00> : vector<512x64xf32>
    %3 = tpu.matmul %1, %2, %cst {dimension_numbers = #tpu.dot_dimension_numbers<[1], [0], [0], [1], [0, 0, 1, 1], [], []>} : vector<512x32xbf16>, vector<32x64xbf16>, vector<512x64xf32> -> vector<512x64xf32>
    %c0_4 = arith.constant 0 : index
    %c0_5 = arith.constant 0 : index
    %4 = vector.load %arg3[%c0_4, %c0_5] : memref<1x64xf32, #tpu.memory_space<vmem>>, vector<1x64xf32>
    %5 = vector.shape_cast %3 : vector<512x64xf32> to vector<2x8x2x16x64xf32>
    %6 = vector.extract_strided_slice %5 {offsets = [0, 0, 0, 0, 0], sizes = [2, 8, 1, 16, 64], strides = [1, 1, 1, 1, 1]} : vector<2x8x2x16x64xf32> to vector<2x8x1x16x64xf32>
    %7 = vector.shape_cast %6 : vector<2x8x1x16x64xf32> to vector<2x8x16x64xf32>
    %8 = vector.extract_strided_slice %5 {offsets = [0, 0, 1, 0, 0], sizes = [2, 8, 1, 16, 64], strides = [1, 1, 1, 1, 1]} : vector<2x8x2x16x64xf32> to vector<2x8x1x16x64xf32>
    %9 = vector.shape_cast %8 : vector<2x8x1x16x64xf32> to vector<2x8x16x64xf32>
    %10 = arith.maximumf %7, %9 : vector<2x8x16x64xf32>
    %11 = vector.shape_cast %10 : vector<2x8x16x64xf32> to vector<2x8x8x2x64xf32>
    %12 = vector.extract_strided_slice %11 {offsets = [0, 0, 0, 0, 0], sizes = [2, 8, 8, 1, 64], strides = [1, 1, 1, 1, 1]} : vector<2x8x8x2x64xf32> to vector<2x8x8x1x64xf32>
    %13 = vector.shape_cast %12 : vector<2x8x8x1x64xf32> to vector<2x8x8x64xf32>
    %14 = vector.extract_strided_slice %11 {offsets = [0, 0, 0, 1, 0], sizes = [2, 8, 8, 1, 64], strides = [1, 1, 1, 1, 1]} : vector<2x8x8x2x64xf32> to vector<2x8x8x1x64xf32>
    %15 = vector.shape_cast %14 : vector<2x8x8x1x64xf32> to vector<2x8x8x64xf32>
    %16 = arith.maximumf %13, %15 : vector<2x8x8x64xf32>
    %17 = vector.shape_cast %4 : vector<1x64xf32> to vector<1x1x1x64xf32>
    %18 = vector.broadcast %17 : vector<1x1x1x64xf32> to vector<2x8x8x64xf32>
    %19 = arith.addf %16, %18 : vector<2x8x8x64xf32>
    %cst_6 = arith.constant 0.000000e+00 : f32
    %20 = vector.broadcast %cst_6 : f32 to vector<2x8x8x64xf32>
    %21 = arith.maximumf %19, %20 : vector<2x8x8x64xf32>
    %cst_7 = arith.constant 0.000000e+00 : f32
    %22 = vector.broadcast %cst_7 : f32 to vector<2x1x10x64xf32>
    %cst_8 = arith.constant 0.000000e+00 : f32
    %23 = vector.broadcast %cst_8 : f32 to vector<2x8x1x64xf32>
    %c0_9 = arith.constant 0 : index
    %c0_10 = arith.constant 0 : index
    %c0_11 = arith.constant 0 : index
    %c0_12 = arith.constant 0 : index
    %24 = vector.load %arg13[%c0_9, %c0_10, %c0_11, %c0_12] : memref<2x10x10x64xf32, #tpu.memory_space<vmem>>, vector<2x1x10x64xf32>
    tpu.vector_store %arg13[%c0_9, %c0_10, %c0_11, %c0_12], %22 {strides = array<i32>} : memref<2x10x10x64xf32, #tpu.memory_space<vmem>>, vector<2x1x10x64xf32>,
    %c0_13 = arith.constant 0 : index
    %c9 = arith.constant 9 : index
    %c0_14 = arith.constant 0 : index
    %c0_15 = arith.constant 0 : index
    %25 = vector.load %arg13[%c0_13, %c9, %c0_14, %c0_15] : memref<2x10x10x64xf32, #tpu.memory_space<vmem>>, vector<2x1x10x64xf32>
    tpu.vector_store %arg13[%c0_13, %c9, %c0_14, %c0_15], %22 {strides = array<i32>} : memref<2x10x10x64xf32, #tpu.memory_space<vmem>>, vector<2x1x10x64xf32>,
    %c0_16 = arith.constant 0 : index
    %c1 = arith.constant 1 : index
    %c0_17 = arith.constant 0 : index
    %c0_18 = arith.constant 0 : index
    %26 = vector.load %arg13[%c0_16, %c1, %c0_17, %c0_18] : memref<2x10x10x64xf32, #tpu.memory_space<vmem>>, vector<2x8x1x64xf32>
    tpu.vector_store %arg13[%c0_16, %c1, %c0_17, %c0_18], %23 {strides = array<i32>} : memref<2x10x10x64xf32, #tpu.memory_space<vmem>>, vector<2x8x1x64xf32>,
    %c0_19 = arith.constant 0 : index
    %c1_20 = arith.constant 1 : index
    %c9_21 = arith.constant 9 : index
    %c0_22 = arith.constant 0 : index
    %27 = vector.load %arg13[%c0_19, %c1_20, %c9_21, %c0_22] : memref<2x10x10x64xf32, #tpu.memory_space<vmem>>, vector<2x8x1x64xf32>
    tpu.vector_store %arg13[%c0_19, %c1_20, %c9_21, %c0_22], %23 {strides = array<i32>} : memref<2x10x10x64xf32, #tpu.memory_space<vmem>>, vector<2x8x1x64xf32>,
    %c0_23 = arith.constant 0 : index
    %c1_24 = arith.constant 1 : index
    %c1_25 = arith.constant 1 : index
    %c0_26 = arith.constant 0 : index
    %28 = vector.load %arg13[%c0_23, %c1_24, %c1_25, %c0_26] : memref<2x10x10x64xf32, #tpu.memory_space<vmem>>, vector<2x8x8x64xf32>
    tpu.vector_store %arg13[%c0_23, %c1_24, %c1_25, %c0_26], %21 {strides = array<i32>} : memref<2x10x10x64xf32, #tpu.memory_space<vmem>>, vector<2x8x8x64xf32>,
    %c0_27 = arith.constant 0 : index
    %c0_28 = arith.constant 0 : index
    %c0_29 = arith.constant 0 : index
    %c0_30 = arith.constant 0 : index
    %29 = vector.load %arg13[%c0_27, %c0_28, %c0_29, %c0_30] : memref<2x10x10x64xf32, #tpu.memory_space<vmem>>, vector<2x8x8x64xf32>
    %30 = vector.shape_cast %29 : vector<2x8x8x64xf32> to vector<128x64xf32>
    %31 = arith.truncf %30 : vector<128x64xf32> to vector<128x64xbf16>
    %c0_31 = arith.constant 0 : index
    %c0_32 = arith.constant 0 : index
    %32 = vector.load %arg14[%c0_31, %c0_32] : memref<128x576xbf16, #tpu.memory_space<vmem>>, vector<128x64xbf16>
    tpu.vector_store %arg14[%c0_31, %c0_32], %31 {strides = array<i32>} : memref<128x576xbf16, #tpu.memory_space<vmem>>, vector<128x64xbf16>,
    %c0_33 = arith.constant 0 : index
    %c0_34 = arith.constant 0 : index
    %c1_35 = arith.constant 1 : index
    %c0_36 = arith.constant 0 : index
    %33 = vector.load %arg13[%c0_33, %c0_34, %c1_35, %c0_36] : memref<2x10x10x64xf32, #tpu.memory_space<vmem>>, vector<2x8x8x64xf32>
    %34 = vector.shape_cast %33 : vector<2x8x8x64xf32> to vector<128x64xf32>
    %35 = arith.truncf %34 : vector<128x64xf32> to vector<128x64xbf16>
    %c0_37 = arith.constant 0 : index
    %c64 = arith.constant 64 : index
    %36 = vector.load %arg14[%c0_37, %c64] : memref<128x576xbf16, #tpu.memory_space<vmem>>, vector<128x64xbf16>
    tpu.vector_store %arg14[%c0_37, %c64], %35 {strides = array<i32>} : memref<128x576xbf16, #tpu.memory_space<vmem>>, vector<128x64xbf16>,
    %c0_38 = arith.constant 0 : index
    %c0_39 = arith.constant 0 : index
    %c2 = arith.constant 2 : index
    %c0_40 = arith.constant 0 : index
    %37 = vector.load %arg13[%c0_38, %c0_39, %c2, %c0_40] : memref<2x10x10x64xf32, #tpu.memory_space<vmem>>, vector<2x8x8x64xf32>
    %38 = vector.shape_cast %37 : vector<2x8x8x64xf32> to vector<128x64xf32>
    %39 = arith.truncf %38 : vector<128x64xf32> to vector<128x64xbf16>
    %c0_41 = arith.constant 0 : index
    %c128 = arith.constant 128 : index
    %40 = vector.load %arg14[%c0_41, %c128] : memref<128x576xbf16, #tpu.memory_space<vmem>>, vector<128x64xbf16>
    tpu.vector_store %arg14[%c0_41, %c128], %39 {strides = array<i32>} : memref<128x576xbf16, #tpu.memory_space<vmem>>, vector<128x64xbf16>,
    %c0_42 = arith.constant 0 : index
    %c1_43 = arith.constant 1 : index
    %c0_44 = arith.constant 0 : index
    %c0_45 = arith.constant 0 : index
    %41 = vector.load %arg13[%c0_42, %c1_43, %c0_44, %c0_45] : memref<2x10x10x64xf32, #tpu.memory_space<vmem>>, vector<2x8x8x64xf32>
    %42 = vector.shape_cast %41 : vector<2x8x8x64xf32> to vector<128x64xf32>
    %43 = arith.truncf %42 : vector<128x64xf32> to vector<128x64xbf16>
    %c0_46 = arith.constant 0 : index
    %c192 = arith.constant 192 : index
    %44 = vector.load %arg14[%c0_46, %c192] : memref<128x576xbf16, #tpu.memory_space<vmem>>, vector<128x64xbf16>
    tpu.vector_store %arg14[%c0_46, %c192], %43 {strides = array<i32>} : memref<128x576xbf16, #tpu.memory_space<vmem>>, vector<128x64xbf16>,
    %c0_47 = arith.constant 0 : index
    %c1_48 = arith.constant 1 : index
    %c1_49 = arith.constant 1 : index
    %c0_50 = arith.constant 0 : index
    %45 = vector.load %arg13[%c0_47, %c1_48, %c1_49, %c0_50] : memref<2x10x10x64xf32, #tpu.memory_space<vmem>>, vector<2x8x8x64xf32>
    %46 = vector.shape_cast %45 : vector<2x8x8x64xf32> to vector<128x64xf32>
    %47 = arith.truncf %46 : vector<128x64xf32> to vector<128x64xbf16>
    %c0_51 = arith.constant 0 : index
    %c256 = arith.constant 256 : index
    %48 = vector.load %arg14[%c0_51, %c256] : memref<128x576xbf16, #tpu.memory_space<vmem>>, vector<128x64xbf16>
    tpu.vector_store %arg14[%c0_51, %c256], %47 {strides = array<i32>} : memref<128x576xbf16, #tpu.memory_space<vmem>>, vector<128x64xbf16>,
    %c0_52 = arith.constant 0 : index
    %c1_53 = arith.constant 1 : index
    %c2_54 = arith.constant 2 : index
    %c0_55 = arith.constant 0 : index
    %49 = vector.load %arg13[%c0_52, %c1_53, %c2_54, %c0_55] : memref<2x10x10x64xf32, #tpu.memory_space<vmem>>, vector<2x8x8x64xf32>
    %50 = vector.shape_cast %49 : vector<2x8x8x64xf32> to vector<128x64xf32>
    %51 = arith.truncf %50 : vector<128x64xf32> to vector<128x64xbf16>
    %c0_56 = arith.constant 0 : index
    %c320 = arith.constant 320 : index
    %52 = vector.load %arg14[%c0_56, %c320] : memref<128x576xbf16, #tpu.memory_space<vmem>>, vector<128x64xbf16>
    tpu.vector_store %arg14[%c0_56, %c320], %51 {strides = array<i32>} : memref<128x576xbf16, #tpu.memory_space<vmem>>, vector<128x64xbf16>,
    %c0_57 = arith.constant 0 : index
    %c2_58 = arith.constant 2 : index
    %c0_59 = arith.constant 0 : index
    %c0_60 = arith.constant 0 : index
    %53 = vector.load %arg13[%c0_57, %c2_58, %c0_59, %c0_60] : memref<2x10x10x64xf32, #tpu.memory_space<vmem>>, vector<2x8x8x64xf32>
    %54 = vector.shape_cast %53 : vector<2x8x8x64xf32> to vector<128x64xf32>
    %55 = arith.truncf %54 : vector<128x64xf32> to vector<128x64xbf16>
    %c0_61 = arith.constant 0 : index
    %c384 = arith.constant 384 : index
    %56 = vector.load %arg14[%c0_61, %c384] : memref<128x576xbf16, #tpu.memory_space<vmem>>, vector<128x64xbf16>
    tpu.vector_store %arg14[%c0_61, %c384], %55 {strides = array<i32>} : memref<128x576xbf16, #tpu.memory_space<vmem>>, vector<128x64xbf16>,
    %c0_62 = arith.constant 0 : index
    %c2_63 = arith.constant 2 : index
    %c1_64 = arith.constant 1 : index
    %c0_65 = arith.constant 0 : index
    %57 = vector.load %arg13[%c0_62, %c2_63, %c1_64, %c0_65] : memref<2x10x10x64xf32, #tpu.memory_space<vmem>>, vector<2x8x8x64xf32>
    %58 = vector.shape_cast %57 : vector<2x8x8x64xf32> to vector<128x64xf32>
    %59 = arith.truncf %58 : vector<128x64xf32> to vector<128x64xbf16>
    %c0_66 = arith.constant 0 : index
    %c448 = arith.constant 448 : index
    %60 = vector.load %arg14[%c0_66, %c448] : memref<128x576xbf16, #tpu.memory_space<vmem>>, vector<128x64xbf16>
    tpu.vector_store %arg14[%c0_66, %c448], %59 {strides = array<i32>} : memref<128x576xbf16, #tpu.memory_space<vmem>>, vector<128x64xbf16>,
    %c0_67 = arith.constant 0 : index
    %c2_68 = arith.constant 2 : index
    %c2_69 = arith.constant 2 : index
    %c0_70 = arith.constant 0 : index
    %61 = vector.load %arg13[%c0_67, %c2_68, %c2_69, %c0_70] : memref<2x10x10x64xf32, #tpu.memory_space<vmem>>, vector<2x8x8x64xf32>
    %62 = vector.shape_cast %61 : vector<2x8x8x64xf32> to vector<128x64xf32>
    %63 = arith.truncf %62 : vector<128x64xf32> to vector<128x64xbf16>
    %c0_71 = arith.constant 0 : index
    %c512 = arith.constant 512 : index
    %64 = vector.load %arg14[%c0_71, %c512] : memref<128x576xbf16, #tpu.memory_space<vmem>>, vector<128x64xbf16>
    tpu.vector_store %arg14[%c0_71, %c512], %63 {strides = array<i32>} : memref<128x576xbf16, #tpu.memory_space<vmem>>, vector<128x64xbf16>,
    %c0_72 = arith.constant 0 : index
    %c0_73 = arith.constant 0 : index
    %65 = vector.load %arg14[%c0_72, %c0_73] : memref<128x576xbf16, #tpu.memory_space<vmem>>, vector<128x576xbf16>
    %c0_74 = arith.constant 0 : index
    %c0_75 = arith.constant 0 : index
    %66 = vector.load %arg4[%c0_74, %c0_75] : memref<576x128xbf16, #tpu.memory_space<vmem>>, vector<576x128xbf16>
    %cst_76 = arith.constant dense<0.000000e+00> : vector<128x128xf32>
    %67 = tpu.matmul %65, %66, %cst_76 {dimension_numbers = #tpu.dot_dimension_numbers<[1], [0], [0], [1], [0, 0, 1, 1], [], []>} : vector<128x576xbf16>, vector<576x128xbf16>, vector<128x128xf32> -> vector<128x128xf32>
    %c0_77 = arith.constant 0 : index
    %c0_78 = arith.constant 0 : index
    %68 = vector.load %arg5[%c0_77, %c0_78] : memref<1x128xf32, #tpu.memory_space<vmem>>, vector<1x128xf32>
    %69 = vector.shape_cast %67 : vector<128x128xf32> to vector<2x4x2x8x128xf32>
    %70 = vector.extract_strided_slice %69 {offsets = [0, 0, 0, 0, 0], sizes = [2, 4, 1, 8, 128], strides = [1, 1, 1, 1, 1]} : vector<2x4x2x8x128xf32> to vector<2x4x1x8x128xf32>
    %71 = vector.shape_cast %70 : vector<2x4x1x8x128xf32> to vector<2x4x8x128xf32>
    %72 = vector.extract_strided_slice %69 {offsets = [0, 0, 1, 0, 0], sizes = [2, 4, 1, 8, 128], strides = [1, 1, 1, 1, 1]} : vector<2x4x2x8x128xf32> to vector<2x4x1x8x128xf32>
    %73 = vector.shape_cast %72 : vector<2x4x1x8x128xf32> to vector<2x4x8x128xf32>
    %74 = arith.maximumf %71, %73 : vector<2x4x8x128xf32>
    %75 = vector.shape_cast %74 : vector<2x4x8x128xf32> to vector<2x4x4x2x128xf32>
    %76 = vector.extract_strided_slice %75 {offsets = [0, 0, 0, 0, 0], sizes = [2, 4, 4, 1, 128], strides = [1, 1, 1, 1, 1]} : vector<2x4x4x2x128xf32> to vector<2x4x4x1x128xf32>
    %77 = vector.shape_cast %76 : vector<2x4x4x1x128xf32> to vector<2x4x4x128xf32>
    %78 = vector.extract_strided_slice %75 {offsets = [0, 0, 0, 1, 0], sizes = [2, 4, 4, 1, 128], strides = [1, 1, 1, 1, 1]} : vector<2x4x4x2x128xf32> to vector<2x4x4x1x128xf32>
    %79 = vector.shape_cast %78 : vector<2x4x4x1x128xf32> to vector<2x4x4x128xf32>
    %80 = arith.maximumf %77, %79 : vector<2x4x4x128xf32>
    %81 = vector.shape_cast %68 : vector<1x128xf32> to vector<1x1x1x128xf32>
    %82 = vector.broadcast %81 : vector<1x1x1x128xf32> to vector<2x4x4x128xf32>
    %83 = arith.addf %80, %82 : vector<2x4x4x128xf32>
    %cst_79 = arith.constant 0.000000e+00 : f32
    %84 = vector.broadcast %cst_79 : f32 to vector<2x4x4x128xf32>
    %85 = arith.maximumf %83, %84 : vector<2x4x4x128xf32>
    %cst_80 = arith.constant 0.000000e+00 : f32
    %86 = vector.broadcast %cst_80 : f32 to vector<2x1x6x128xf32>
    %cst_81 = arith.constant 0.000000e+00 : f32
    %87 = vector.broadcast %cst_81 : f32 to vector<2x4x1x128xf32>
    %c0_82 = arith.constant 0 : index
    %c0_83 = arith.constant 0 : index
    %c0_84 = arith.constant 0 : index
    %c0_85 = arith.constant 0 : index
    %88 = vector.load %arg15[%c0_82, %c0_83, %c0_84, %c0_85] : memref<2x6x6x128xf32, #tpu.memory_space<vmem>>, vector<2x1x6x128xf32>
    tpu.vector_store %arg15[%c0_82, %c0_83, %c0_84, %c0_85], %86 {strides = array<i32>} : memref<2x6x6x128xf32, #tpu.memory_space<vmem>>, vector<2x1x6x128xf32>,
    %c0_86 = arith.constant 0 : index
    %c5 = arith.constant 5 : index
    %c0_87 = arith.constant 0 : index
    %c0_88 = arith.constant 0 : index
    %89 = vector.load %arg15[%c0_86, %c5, %c0_87, %c0_88] : memref<2x6x6x128xf32, #tpu.memory_space<vmem>>, vector<2x1x6x128xf32>
    tpu.vector_store %arg15[%c0_86, %c5, %c0_87, %c0_88], %86 {strides = array<i32>} : memref<2x6x6x128xf32, #tpu.memory_space<vmem>>, vector<2x1x6x128xf32>,
    %c0_89 = arith.constant 0 : index
    %c1_90 = arith.constant 1 : index
    %c0_91 = arith.constant 0 : index
    %c0_92 = arith.constant 0 : index
    %90 = vector.load %arg15[%c0_89, %c1_90, %c0_91, %c0_92] : memref<2x6x6x128xf32, #tpu.memory_space<vmem>>, vector<2x4x1x128xf32>
    tpu.vector_store %arg15[%c0_89, %c1_90, %c0_91, %c0_92], %87 {strides = array<i32>} : memref<2x6x6x128xf32, #tpu.memory_space<vmem>>, vector<2x4x1x128xf32>,
    %c0_93 = arith.constant 0 : index
    %c1_94 = arith.constant 1 : index
    %c5_95 = arith.constant 5 : index
    %c0_96 = arith.constant 0 : index
    %91 = vector.load %arg15[%c0_93, %c1_94, %c5_95, %c0_96] : memref<2x6x6x128xf32, #tpu.memory_space<vmem>>, vector<2x4x1x128xf32>
    tpu.vector_store %arg15[%c0_93, %c1_94, %c5_95, %c0_96], %87 {strides = array<i32>} : memref<2x6x6x128xf32, #tpu.memory_space<vmem>>, vector<2x4x1x128xf32>,
    %c0_97 = arith.constant 0 : index
    %c1_98 = arith.constant 1 : index
    %c1_99 = arith.constant 1 : index
    %c0_100 = arith.constant 0 : index
    %92 = vector.load %arg15[%c0_97, %c1_98, %c1_99, %c0_100] : memref<2x6x6x128xf32, #tpu.memory_space<vmem>>, vector<2x4x4x128xf32>
    tpu.vector_store %arg15[%c0_97, %c1_98, %c1_99, %c0_100], %85 {strides = array<i32>} : memref<2x6x6x128xf32, #tpu.memory_space<vmem>>, vector<2x4x4x128xf32>,
    %c0_101 = arith.constant 0 : index
    %c0_102 = arith.constant 0 : index
    %c0_103 = arith.constant 0 : index
    %c0_104 = arith.constant 0 : index
    %93 = vector.load %arg15[%c0_101, %c0_102, %c0_103, %c0_104] : memref<2x6x6x128xf32, #tpu.memory_space<vmem>>, vector<2x4x4x128xf32>
    %94 = vector.shape_cast %93 : vector<2x4x4x128xf32> to vector<32x128xf32>
    %95 = arith.truncf %94 : vector<32x128xf32> to vector<32x128xbf16>
    %c0_105 = arith.constant 0 : index
    %c0_106 = arith.constant 0 : index
    %96 = vector.load %arg6[%c0_105, %c0_106] : memref<1152x256xbf16, #tpu.memory_space<vmem>>, vector<128x256xbf16>
    %cst_107 = arith.constant dense<0.000000e+00> : vector<32x256xf32>
    %97 = tpu.matmul %95, %96, %cst_107 {dimension_numbers = #tpu.dot_dimension_numbers<[1], [0], [0], [1], [0, 0, 1, 1], [], []>} : vector<32x128xbf16>, vector<128x256xbf16>, vector<32x256xf32> -> vector<32x256xf32>
    %c0_108 = arith.constant 0 : index
    %c0_109 = arith.constant 0 : index
    %c1_110 = arith.constant 1 : index
    %c0_111 = arith.constant 0 : index
    %98 = vector.load %arg15[%c0_108, %c0_109, %c1_110, %c0_111] : memref<2x6x6x128xf32, #tpu.memory_space<vmem>>, vector<2x4x4x128xf32>
    %99 = vector.shape_cast %98 : vector<2x4x4x128xf32> to vector<32x128xf32>
    %100 = arith.truncf %99 : vector<32x128xf32> to vector<32x128xbf16>
    %c128_112 = arith.constant 128 : index
    %c0_113 = arith.constant 0 : index
    %101 = vector.load %arg6[%c128_112, %c0_113] : memref<1152x256xbf16, #tpu.memory_space<vmem>>, vector<128x256xbf16>
    %cst_114 = arith.constant dense<0.000000e+00> : vector<32x256xf32>
    %102 = tpu.matmul %100, %101, %cst_114 {dimension_numbers = #tpu.dot_dimension_numbers<[1], [0], [0], [1], [0, 0, 1, 1], [], []>} : vector<32x128xbf16>, vector<128x256xbf16>, vector<32x256xf32> -> vector<32x256xf32>
    %103 = arith.addf %97, %102 : vector<32x256xf32>
    %c0_115 = arith.constant 0 : index
    %c0_116 = arith.constant 0 : index
    %c2_117 = arith.constant 2 : index
    %c0_118 = arith.constant 0 : index
    %104 = vector.load %arg15[%c0_115, %c0_116, %c2_117, %c0_118] : memref<2x6x6x128xf32, #tpu.memory_space<vmem>>, vector<2x4x4x128xf32>
    %105 = vector.shape_cast %104 : vector<2x4x4x128xf32> to vector<32x128xf32>
    %106 = arith.truncf %105 : vector<32x128xf32> to vector<32x128xbf16>
    %c256_119 = arith.constant 256 : index
    %c0_120 = arith.constant 0 : index
    %107 = vector.load %arg6[%c256_119, %c0_120] : memref<1152x256xbf16, #tpu.memory_space<vmem>>, vector<128x256xbf16>
    %cst_121 = arith.constant dense<0.000000e+00> : vector<32x256xf32>
    %108 = tpu.matmul %106, %107, %cst_121 {dimension_numbers = #tpu.dot_dimension_numbers<[1], [0], [0], [1], [0, 0, 1, 1], [], []>} : vector<32x128xbf16>, vector<128x256xbf16>, vector<32x256xf32> -> vector<32x256xf32>
    %109 = arith.addf %103, %108 : vector<32x256xf32>
    %c0_122 = arith.constant 0 : index
    %c1_123 = arith.constant 1 : index
    %c0_124 = arith.constant 0 : index
    %c0_125 = arith.constant 0 : index
    %110 = vector.load %arg15[%c0_122, %c1_123, %c0_124, %c0_125] : memref<2x6x6x128xf32, #tpu.memory_space<vmem>>, vector<2x4x4x128xf32>
    %111 = vector.shape_cast %110 : vector<2x4x4x128xf32> to vector<32x128xf32>
    %112 = arith.truncf %111 : vector<32x128xf32> to vector<32x128xbf16>
    %c384_126 = arith.constant 384 : index
    %c0_127 = arith.constant 0 : index
    %113 = vector.load %arg6[%c384_126, %c0_127] : memref<1152x256xbf16, #tpu.memory_space<vmem>>, vector<128x256xbf16>
    %cst_128 = arith.constant dense<0.000000e+00> : vector<32x256xf32>
    %114 = tpu.matmul %112, %113, %cst_128 {dimension_numbers = #tpu.dot_dimension_numbers<[1], [0], [0], [1], [0, 0, 1, 1], [], []>} : vector<32x128xbf16>, vector<128x256xbf16>, vector<32x256xf32> -> vector<32x256xf32>
    %115 = arith.addf %109, %114 : vector<32x256xf32>
    %c0_129 = arith.constant 0 : index
    %c1_130 = arith.constant 1 : index
    %c1_131 = arith.constant 1 : index
    %c0_132 = arith.constant 0 : index
    %116 = vector.load %arg15[%c0_129, %c1_130, %c1_131, %c0_132] : memref<2x6x6x128xf32, #tpu.memory_space<vmem>>, vector<2x4x4x128xf32>
    %117 = vector.shape_cast %116 : vector<2x4x4x128xf32> to vector<32x128xf32>
    %118 = arith.truncf %117 : vector<32x128xf32> to vector<32x128xbf16>
    %c512_133 = arith.constant 512 : index
    %c0_134 = arith.constant 0 : index
    %119 = vector.load %arg6[%c512_133, %c0_134] : memref<1152x256xbf16, #tpu.memory_space<vmem>>, vector<128x256xbf16>
    %cst_135 = arith.constant dense<0.000000e+00> : vector<32x256xf32>
    %120 = tpu.matmul %118, %119, %cst_135 {dimension_numbers = #tpu.dot_dimension_numbers<[1], [0], [0], [1], [0, 0, 1, 1], [], []>} : vector<32x128xbf16>, vector<128x256xbf16>, vector<32x256xf32> -> vector<32x256xf32>
    %121 = arith.addf %115, %120 : vector<32x256xf32>
    %c0_136 = arith.constant 0 : index
    %c1_137 = arith.constant 1 : index
    %c2_138 = arith.constant 2 : index
    %c0_139 = arith.constant 0 : index
    %122 = vector.load %arg15[%c0_136, %c1_137, %c2_138, %c0_139] : memref<2x6x6x128xf32, #tpu.memory_space<vmem>>, vector<2x4x4x128xf32>
    %123 = vector.shape_cast %122 : vector<2x4x4x128xf32> to vector<32x128xf32>
    %124 = arith.truncf %123 : vector<32x128xf32> to vector<32x128xbf16>
    %c640 = arith.constant 640 : index
    %c0_140 = arith.constant 0 : index
    %125 = vector.load %arg6[%c640, %c0_140] : memref<1152x256xbf16, #tpu.memory_space<vmem>>, vector<128x256xbf16>
    %cst_141 = arith.constant dense<0.000000e+00> : vector<32x256xf32>
    %126 = tpu.matmul %124, %125, %cst_141 {dimension_numbers = #tpu.dot_dimension_numbers<[1], [0], [0], [1], [0, 0, 1, 1], [], []>} : vector<32x128xbf16>, vector<128x256xbf16>, vector<32x256xf32> -> vector<32x256xf32>
    %127 = arith.addf %121, %126 : vector<32x256xf32>
    %c0_142 = arith.constant 0 : index
    %c2_143 = arith.constant 2 : index
    %c0_144 = arith.constant 0 : index
    %c0_145 = arith.constant 0 : index
    %128 = vector.load %arg15[%c0_142, %c2_143, %c0_144, %c0_145] : memref<2x6x6x128xf32, #tpu.memory_space<vmem>>, vector<2x4x4x128xf32>
    %129 = vector.shape_cast %128 : vector<2x4x4x128xf32> to vector<32x128xf32>
    %130 = arith.truncf %129 : vector<32x128xf32> to vector<32x128xbf16>
    %c768 = arith.constant 768 : index
    %c0_146 = arith.constant 0 : index
    %131 = vector.load %arg6[%c768, %c0_146] : memref<1152x256xbf16, #tpu.memory_space<vmem>>, vector<128x256xbf16>
    %cst_147 = arith.constant dense<0.000000e+00> : vector<32x256xf32>
    %132 = tpu.matmul %130, %131, %cst_147 {dimension_numbers = #tpu.dot_dimension_numbers<[1], [0], [0], [1], [0, 0, 1, 1], [], []>} : vector<32x128xbf16>, vector<128x256xbf16>, vector<32x256xf32> -> vector<32x256xf32>
    %133 = arith.addf %127, %132 : vector<32x256xf32>
    %c0_148 = arith.constant 0 : index
    %c2_149 = arith.constant 2 : index
    %c1_150 = arith.constant 1 : index
    %c0_151 = arith.constant 0 : index
    %134 = vector.load %arg15[%c0_148, %c2_149, %c1_150, %c0_151] : memref<2x6x6x128xf32, #tpu.memory_space<vmem>>, vector<2x4x4x128xf32>
    %135 = vector.shape_cast %134 : vector<2x4x4x128xf32> to vector<32x128xf32>
    %136 = arith.truncf %135 : vector<32x128xf32> to vector<32x128xbf16>
    %c896 = arith.constant 896 : index
    %c0_152 = arith.constant 0 : index
    %137 = vector.load %arg6[%c896, %c0_152] : memref<1152x256xbf16, #tpu.memory_space<vmem>>, vector<128x256xbf16>
    %cst_153 = arith.constant dense<0.000000e+00> : vector<32x256xf32>
    %138 = tpu.matmul %136, %137, %cst_153 {dimension_numbers = #tpu.dot_dimension_numbers<[1], [0], [0], [1], [0, 0, 1, 1], [], []>} : vector<32x128xbf16>, vector<128x256xbf16>, vector<32x256xf32> -> vector<32x256xf32>
    %139 = arith.addf %133, %138 : vector<32x256xf32>
    %c0_154 = arith.constant 0 : index
    %c2_155 = arith.constant 2 : index
    %c2_156 = arith.constant 2 : index
    %c0_157 = arith.constant 0 : index
    %140 = vector.load %arg15[%c0_154, %c2_155, %c2_156, %c0_157] : memref<2x6x6x128xf32, #tpu.memory_space<vmem>>, vector<2x4x4x128xf32>
    %141 = vector.shape_cast %140 : vector<2x4x4x128xf32> to vector<32x128xf32>
    %142 = arith.truncf %141 : vector<32x128xf32> to vector<32x128xbf16>
    %c1024 = arith.constant 1024 : index
    %c0_158 = arith.constant 0 : index
    %143 = vector.load %arg6[%c1024, %c0_158] : memref<1152x256xbf16, #tpu.memory_space<vmem>>, vector<128x256xbf16>
    %cst_159 = arith.constant dense<0.000000e+00> : vector<32x256xf32>
    %144 = tpu.matmul %142, %143, %cst_159 {dimension_numbers = #tpu.dot_dimension_numbers<[1], [0], [0], [1], [0, 0, 1, 1], [], []>} : vector<32x128xbf16>, vector<128x256xbf16>, vector<32x256xf32> -> vector<32x256xf32>
    %145 = arith.addf %139, %144 : vector<32x256xf32>
    %c0_160 = arith.constant 0 : index
    %c0_161 = arith.constant 0 : index
    %146 = vector.load %arg7[%c0_160, %c0_161] : memref<1x256xf32, #tpu.memory_space<vmem>>, vector<1x256xf32>
    %147 = vector.shape_cast %145 : vector<32x256xf32> to vector<2x2x2x4x256xf32>
    %148 = vector.extract_strided_slice %147 {offsets = [0, 0, 0, 0, 0], sizes = [2, 2, 1, 4, 256], strides = [1, 1, 1, 1, 1]} : vector<2x2x2x4x256xf32> to vector<2x2x1x4x256xf32>
    %149 = vector.shape_cast %148 : vector<2x2x1x4x256xf32> to vector<2x2x4x256xf32>
    %150 = vector.extract_strided_slice %147 {offsets = [0, 0, 1, 0, 0], sizes = [2, 2, 1, 4, 256], strides = [1, 1, 1, 1, 1]} : vector<2x2x2x4x256xf32> to vector<2x2x1x4x256xf32>
    %151 = vector.shape_cast %150 : vector<2x2x1x4x256xf32> to vector<2x2x4x256xf32>
    %152 = arith.maximumf %149, %151 : vector<2x2x4x256xf32>
    %153 = vector.shape_cast %152 : vector<2x2x4x256xf32> to vector<2x2x2x2x256xf32>
    %154 = vector.extract_strided_slice %153 {offsets = [0, 0, 0, 0, 0], sizes = [2, 2, 2, 1, 256], strides = [1, 1, 1, 1, 1]} : vector<2x2x2x2x256xf32> to vector<2x2x2x1x256xf32>
    %155 = vector.shape_cast %154 : vector<2x2x2x1x256xf32> to vector<2x2x2x256xf32>
    %156 = vector.extract_strided_slice %153 {offsets = [0, 0, 0, 1, 0], sizes = [2, 2, 2, 1, 256], strides = [1, 1, 1, 1, 1]} : vector<2x2x2x2x256xf32> to vector<2x2x2x1x256xf32>
    %157 = vector.shape_cast %156 : vector<2x2x2x1x256xf32> to vector<2x2x2x256xf32>
    %158 = arith.maximumf %155, %157 : vector<2x2x2x256xf32>
    %159 = vector.shape_cast %146 : vector<1x256xf32> to vector<1x1x1x256xf32>
    %160 = vector.broadcast %159 : vector<1x1x1x256xf32> to vector<2x2x2x256xf32>
    %161 = arith.addf %158, %160 : vector<2x2x2x256xf32>
    %cst_162 = arith.constant 0.000000e+00 : f32
    %162 = vector.broadcast %cst_162 : f32 to vector<2x2x2x256xf32>
    %163 = arith.maximumf %161, %162 : vector<2x2x2x256xf32>
    %cst_163 = arith.constant 0.000000e+00 : f32
    %164 = vector.broadcast %cst_163 : f32 to vector<2x1x4x256xf32>
    %cst_164 = arith.constant 0.000000e+00 : f32
    %165 = vector.broadcast %cst_164 : f32 to vector<2x2x1x256xf32>
    %c0_165 = arith.constant 0 : index
    %c0_166 = arith.constant 0 : index
    %c0_167 = arith.constant 0 : index
    %c0_168 = arith.constant 0 : index
    %166 = vector.load %arg16[%c0_165, %c0_166, %c0_167, %c0_168] : memref<2x4x4x256xf32, #tpu.memory_space<vmem>>, vector<2x1x4x256xf32>
    tpu.vector_store %arg16[%c0_165, %c0_166, %c0_167, %c0_168], %164 {strides = array<i32>} : memref<2x4x4x256xf32, #tpu.memory_space<vmem>>, vector<2x1x4x256xf32>,
    %c0_169 = arith.constant 0 : index
    %c3 = arith.constant 3 : index
    %c0_170 = arith.constant 0 : index
    %c0_171 = arith.constant 0 : index
    %167 = vector.load %arg16[%c0_169, %c3, %c0_170, %c0_171] : memref<2x4x4x256xf32, #tpu.memory_space<vmem>>, vector<2x1x4x256xf32>
    tpu.vector_store %arg16[%c0_169, %c3, %c0_170, %c0_171], %164 {strides = array<i32>} : memref<2x4x4x256xf32, #tpu.memory_space<vmem>>, vector<2x1x4x256xf32>,
    %c0_172 = arith.constant 0 : index
    %c1_173 = arith.constant 1 : index
    %c0_174 = arith.constant 0 : index
    %c0_175 = arith.constant 0 : index
    %168 = vector.load %arg16[%c0_172, %c1_173, %c0_174, %c0_175] : memref<2x4x4x256xf32, #tpu.memory_space<vmem>>, vector<2x2x1x256xf32>
    tpu.vector_store %arg16[%c0_172, %c1_173, %c0_174, %c0_175], %165 {strides = array<i32>} : memref<2x4x4x256xf32, #tpu.memory_space<vmem>>, vector<2x2x1x256xf32>,
    %c0_176 = arith.constant 0 : index
    %c1_177 = arith.constant 1 : index
    %c3_178 = arith.constant 3 : index
    %c0_179 = arith.constant 0 : index
    %169 = vector.load %arg16[%c0_176, %c1_177, %c3_178, %c0_179] : memref<2x4x4x256xf32, #tpu.memory_space<vmem>>, vector<2x2x1x256xf32>
    tpu.vector_store %arg16[%c0_176, %c1_177, %c3_178, %c0_179], %165 {strides = array<i32>} : memref<2x4x4x256xf32, #tpu.memory_space<vmem>>, vector<2x2x1x256xf32>,
    %c0_180 = arith.constant 0 : index
    %c1_181 = arith.constant 1 : index
    %c1_182 = arith.constant 1 : index
    %c0_183 = arith.constant 0 : index
    %170 = vector.load %arg16[%c0_180, %c1_181, %c1_182, %c0_183] : memref<2x4x4x256xf32, #tpu.memory_space<vmem>>, vector<2x2x2x256xf32>
    tpu.vector_store %arg16[%c0_180, %c1_181, %c1_182, %c0_183], %163 {strides = array<i32>} : memref<2x4x4x256xf32, #tpu.memory_space<vmem>>, vector<2x2x2x256xf32>,
    %c0_184 = arith.constant 0 : index
    %c0_185 = arith.constant 0 : index
    %c0_186 = arith.constant 0 : index
    %c0_187 = arith.constant 0 : index
    %171 = vector.load %arg16[%c0_184, %c0_185, %c0_186, %c0_187] : memref<2x4x4x256xf32, #tpu.memory_space<vmem>>, vector<2x2x2x256xf32>
    %172 = vector.shape_cast %171 : vector<2x2x2x256xf32> to vector<8x256xf32>
    %173 = arith.truncf %172 : vector<8x256xf32> to vector<8x256xbf16>
    %c0_188 = arith.constant 0 : index
    %c0_189 = arith.constant 0 : index
    %174 = vector.load %arg8[%c0_188, %c0_189] : memref<2304x512xbf16, #tpu.memory_space<vmem>>, vector<256x512xbf16>
    %cst_190 = arith.constant dense<0.000000e+00> : vector<8x512xf32>
    %175 = tpu.matmul %173, %174, %cst_190 {dimension_numbers = #tpu.dot_dimension_numbers<[1], [0], [0], [1], [0, 0, 1, 1], [], []>} : vector<8x256xbf16>, vector<256x512xbf16>, vector<8x512xf32> -> vector<8x512xf32>
    %c0_191 = arith.constant 0 : index
    %c0_192 = arith.constant 0 : index
    %c1_193 = arith.constant 1 : index
    %c0_194 = arith.constant 0 : index
    %176 = vector.load %arg16[%c0_191, %c0_192, %c1_193, %c0_194] : memref<2x4x4x256xf32, #tpu.memory_space<vmem>>, vector<2x2x2x256xf32>
    %177 = vector.shape_cast %176 : vector<2x2x2x256xf32> to vector<8x256xf32>
    %178 = arith.truncf %177 : vector<8x256xf32> to vector<8x256xbf16>
    %c256_195 = arith.constant 256 : index
    %c0_196 = arith.constant 0 : index
    %179 = vector.load %arg8[%c256_195, %c0_196] : memref<2304x512xbf16, #tpu.memory_space<vmem>>, vector<256x512xbf16>
    %cst_197 = arith.constant dense<0.000000e+00> : vector<8x512xf32>
    %180 = tpu.matmul %178, %179, %cst_197 {dimension_numbers = #tpu.dot_dimension_numbers<[1], [0], [0], [1], [0, 0, 1, 1], [], []>} : vector<8x256xbf16>, vector<256x512xbf16>, vector<8x512xf32> -> vector<8x512xf32>
    %181 = arith.addf %175, %180 : vector<8x512xf32>
    %c0_198 = arith.constant 0 : index
    %c0_199 = arith.constant 0 : index
    %c2_200 = arith.constant 2 : index
    %c0_201 = arith.constant 0 : index
    %182 = vector.load %arg16[%c0_198, %c0_199, %c2_200, %c0_201] : memref<2x4x4x256xf32, #tpu.memory_space<vmem>>, vector<2x2x2x256xf32>
    %183 = vector.shape_cast %182 : vector<2x2x2x256xf32> to vector<8x256xf32>
    %184 = arith.truncf %183 : vector<8x256xf32> to vector<8x256xbf16>
    %c512_202 = arith.constant 512 : index
    %c0_203 = arith.constant 0 : index
    %185 = vector.load %arg8[%c512_202, %c0_203] : memref<2304x512xbf16, #tpu.memory_space<vmem>>, vector<256x512xbf16>
    %cst_204 = arith.constant dense<0.000000e+00> : vector<8x512xf32>
    %186 = tpu.matmul %184, %185, %cst_204 {dimension_numbers = #tpu.dot_dimension_numbers<[1], [0], [0], [1], [0, 0, 1, 1], [], []>} : vector<8x256xbf16>, vector<256x512xbf16>, vector<8x512xf32> -> vector<8x512xf32>
    %187 = arith.addf %181, %186 : vector<8x512xf32>
    %c0_205 = arith.constant 0 : index
    %c1_206 = arith.constant 1 : index
    %c0_207 = arith.constant 0 : index
    %c0_208 = arith.constant 0 : index
    %188 = vector.load %arg16[%c0_205, %c1_206, %c0_207, %c0_208] : memref<2x4x4x256xf32, #tpu.memory_space<vmem>>, vector<2x2x2x256xf32>
    %189 = vector.shape_cast %188 : vector<2x2x2x256xf32> to vector<8x256xf32>
    %190 = arith.truncf %189 : vector<8x256xf32> to vector<8x256xbf16>
    %c768_209 = arith.constant 768 : index
    %c0_210 = arith.constant 0 : index
    %191 = vector.load %arg8[%c768_209, %c0_210] : memref<2304x512xbf16, #tpu.memory_space<vmem>>, vector<256x512xbf16>
    %cst_211 = arith.constant dense<0.000000e+00> : vector<8x512xf32>
    %192 = tpu.matmul %190, %191, %cst_211 {dimension_numbers = #tpu.dot_dimension_numbers<[1], [0], [0], [1], [0, 0, 1, 1], [], []>} : vector<8x256xbf16>, vector<256x512xbf16>, vector<8x512xf32> -> vector<8x512xf32>
    %193 = arith.addf %187, %192 : vector<8x512xf32>
    %c0_212 = arith.constant 0 : index
    %c1_213 = arith.constant 1 : index
    %c1_214 = arith.constant 1 : index
    %c0_215 = arith.constant 0 : index
    %194 = vector.load %arg16[%c0_212, %c1_213, %c1_214, %c0_215] : memref<2x4x4x256xf32, #tpu.memory_space<vmem>>, vector<2x2x2x256xf32>
    %195 = vector.shape_cast %194 : vector<2x2x2x256xf32> to vector<8x256xf32>
    %196 = arith.truncf %195 : vector<8x256xf32> to vector<8x256xbf16>
    %c1024_216 = arith.constant 1024 : index
    %c0_217 = arith.constant 0 : index
    %197 = vector.load %arg8[%c1024_216, %c0_217] : memref<2304x512xbf16, #tpu.memory_space<vmem>>, vector<256x512xbf16>
    %cst_218 = arith.constant dense<0.000000e+00> : vector<8x512xf32>
    %198 = tpu.matmul %196, %197, %cst_218 {dimension_numbers = #tpu.dot_dimension_numbers<[1], [0], [0], [1], [0, 0, 1, 1], [], []>} : vector<8x256xbf16>, vector<256x512xbf16>, vector<8x512xf32> -> vector<8x512xf32>
    %199 = arith.addf %193, %198 : vector<8x512xf32>
    %c0_219 = arith.constant 0 : index
    %c1_220 = arith.constant 1 : index
    %c2_221 = arith.constant 2 : index
    %c0_222 = arith.constant 0 : index
    %200 = vector.load %arg16[%c0_219, %c1_220, %c2_221, %c0_222] : memref<2x4x4x256xf32, #tpu.memory_space<vmem>>, vector<2x2x2x256xf32>
    %201 = vector.shape_cast %200 : vector<2x2x2x256xf32> to vector<8x256xf32>
    %202 = arith.truncf %201 : vector<8x256xf32> to vector<8x256xbf16>
    %c1280 = arith.constant 1280 : index
    %c0_223 = arith.constant 0 : index
    %203 = vector.load %arg8[%c1280, %c0_223] : memref<2304x512xbf16, #tpu.memory_space<vmem>>, vector<256x512xbf16>
    %cst_224 = arith.constant dense<0.000000e+00> : vector<8x512xf32>
    %204 = tpu.matmul %202, %203, %cst_224 {dimension_numbers = #tpu.dot_dimension_numbers<[1], [0], [0], [1], [0, 0, 1, 1], [], []>} : vector<8x256xbf16>, vector<256x512xbf16>, vector<8x512xf32> -> vector<8x512xf32>
    %205 = arith.addf %199, %204 : vector<8x512xf32>
    %c0_225 = arith.constant 0 : index
    %c2_226 = arith.constant 2 : index
    %c0_227 = arith.constant 0 : index
    %c0_228 = arith.constant 0 : index
    %206 = vector.load %arg16[%c0_225, %c2_226, %c0_227, %c0_228] : memref<2x4x4x256xf32, #tpu.memory_space<vmem>>, vector<2x2x2x256xf32>
    %207 = vector.shape_cast %206 : vector<2x2x2x256xf32> to vector<8x256xf32>
    %208 = arith.truncf %207 : vector<8x256xf32> to vector<8x256xbf16>
    %c1536 = arith.constant 1536 : index
    %c0_229 = arith.constant 0 : index
    %209 = vector.load %arg8[%c1536, %c0_229] : memref<2304x512xbf16, #tpu.memory_space<vmem>>, vector<256x512xbf16>
    %cst_230 = arith.constant dense<0.000000e+00> : vector<8x512xf32>
    %210 = tpu.matmul %208, %209, %cst_230 {dimension_numbers = #tpu.dot_dimension_numbers<[1], [0], [0], [1], [0, 0, 1, 1], [], []>} : vector<8x256xbf16>, vector<256x512xbf16>, vector<8x512xf32> -> vector<8x512xf32>
    %211 = arith.addf %205, %210 : vector<8x512xf32>
    %c0_231 = arith.constant 0 : index
    %c2_232 = arith.constant 2 : index
    %c1_233 = arith.constant 1 : index
    %c0_234 = arith.constant 0 : index
    %212 = vector.load %arg16[%c0_231, %c2_232, %c1_233, %c0_234] : memref<2x4x4x256xf32, #tpu.memory_space<vmem>>, vector<2x2x2x256xf32>
    %213 = vector.shape_cast %212 : vector<2x2x2x256xf32> to vector<8x256xf32>
    %214 = arith.truncf %213 : vector<8x256xf32> to vector<8x256xbf16>
    %c1792 = arith.constant 1792 : index
    %c0_235 = arith.constant 0 : index
    %215 = vector.load %arg8[%c1792, %c0_235] : memref<2304x512xbf16, #tpu.memory_space<vmem>>, vector<256x512xbf16>
    %cst_236 = arith.constant dense<0.000000e+00> : vector<8x512xf32>
    %216 = tpu.matmul %214, %215, %cst_236 {dimension_numbers = #tpu.dot_dimension_numbers<[1], [0], [0], [1], [0, 0, 1, 1], [], []>} : vector<8x256xbf16>, vector<256x512xbf16>, vector<8x512xf32> -> vector<8x512xf32>
    %217 = arith.addf %211, %216 : vector<8x512xf32>
    %c0_237 = arith.constant 0 : index
    %c2_238 = arith.constant 2 : index
    %c2_239 = arith.constant 2 : index
    %c0_240 = arith.constant 0 : index
    %218 = vector.load %arg16[%c0_237, %c2_238, %c2_239, %c0_240] : memref<2x4x4x256xf32, #tpu.memory_space<vmem>>, vector<2x2x2x256xf32>
    %219 = vector.shape_cast %218 : vector<2x2x2x256xf32> to vector<8x256xf32>
    %220 = arith.truncf %219 : vector<8x256xf32> to vector<8x256xbf16>
    %c2048 = arith.constant 2048 : index
    %c0_241 = arith.constant 0 : index
    %221 = vector.load %arg8[%c2048, %c0_241] : memref<2304x512xbf16, #tpu.memory_space<vmem>>, vector<256x512xbf16>
    %cst_242 = arith.constant dense<0.000000e+00> : vector<8x512xf32>
    %222 = tpu.matmul %220, %221, %cst_242 {dimension_numbers = #tpu.dot_dimension_numbers<[1], [0], [0], [1], [0, 0, 1, 1], [], []>} : vector<8x256xbf16>, vector<256x512xbf16>, vector<8x512xf32> -> vector<8x512xf32>
    %223 = arith.addf %217, %222 : vector<8x512xf32>
    %c0_243 = arith.constant 0 : index
    %c0_244 = arith.constant 0 : index
    %224 = vector.load %arg9[%c0_243, %c0_244] : memref<1x512xf32, #tpu.memory_space<vmem>>, vector<1x512xf32>
    %225 = vector.shape_cast %223 : vector<8x512xf32> to vector<2x1x2x2x512xf32>
    %226 = vector.extract_strided_slice %225 {offsets = [0, 0, 0, 0, 0], sizes = [2, 1, 1, 2, 512], strides = [1, 1, 1, 1, 1]} : vector<2x1x2x2x512xf32> to vector<2x1x1x2x512xf32>
    %227 = vector.shape_cast %226 : vector<2x1x1x2x512xf32> to vector<2x1x2x512xf32>
    %228 = vector.extract_strided_slice %225 {offsets = [0, 0, 1, 0, 0], sizes = [2, 1, 1, 2, 512], strides = [1, 1, 1, 1, 1]} : vector<2x1x2x2x512xf32> to vector<2x1x1x2x512xf32>
    %229 = vector.shape_cast %228 : vector<2x1x1x2x512xf32> to vector<2x1x2x512xf32>
    %230 = arith.maximumf %227, %229 : vector<2x1x2x512xf32>
    %231 = vector.shape_cast %230 : vector<2x1x2x512xf32> to vector<2x1x1x2x512xf32>
    %232 = vector.extract_strided_slice %231 {offsets = [0, 0, 0, 0, 0], sizes = [2, 1, 1, 1, 512], strides = [1, 1, 1, 1, 1]} : vector<2x1x1x2x512xf32> to vector<2x1x1x1x512xf32>
    %233 = vector.shape_cast %232 : vector<2x1x1x1x512xf32> to vector<2x1x1x512xf32>
    %234 = vector.extract_strided_slice %231 {offsets = [0, 0, 0, 1, 0], sizes = [2, 1, 1, 1, 512], strides = [1, 1, 1, 1, 1]} : vector<2x1x1x2x512xf32> to vector<2x1x1x1x512xf32>
    %235 = vector.shape_cast %234 : vector<2x1x1x1x512xf32> to vector<2x1x1x512xf32>
    %236 = arith.maximumf %233, %235 : vector<2x1x1x512xf32>
    %237 = vector.shape_cast %224 : vector<1x512xf32> to vector<1x1x1x512xf32>
    %238 = vector.broadcast %237 : vector<1x1x1x512xf32> to vector<2x1x1x512xf32>
    %239 = arith.addf %236, %238 : vector<2x1x1x512xf32>
    %cst_245 = arith.constant 0.000000e+00 : f32
    %240 = vector.broadcast %cst_245 : f32 to vector<2x1x1x512xf32>
    %241 = arith.maximumf %239, %240 : vector<2x1x1x512xf32>
    %242 = vector.shape_cast %241 : vector<2x1x1x512xf32> to vector<2x512xf32>
    %243 = arith.truncf %242 : vector<2x512xf32> to vector<2x512xbf16>
    %c0_246 = arith.constant 0 : index
    %c0_247 = arith.constant 0 : index
    %244 = vector.load %arg10[%c0_246, %c0_247] : memref<512x128xbf16, #tpu.memory_space<vmem>>, vector<512x128xbf16>
    %cst_248 = arith.constant dense<0.000000e+00> : vector<2x128xf32>
    %245 = tpu.matmul %243, %244, %cst_248 {dimension_numbers = #tpu.dot_dimension_numbers<[1], [0], [0], [1], [0, 0, 1, 1], [], []>} : vector<2x512xbf16>, vector<512x128xbf16>, vector<2x128xf32> -> vector<2x128xf32>
    %c0_249 = arith.constant 0 : index
    %c0_250 = arith.constant 0 : index
    %246 = vector.load %arg11[%c0_249, %c0_250] : memref<1x128xf32, #tpu.memory_space<vmem>>, vector<1x128xf32>
    %247 = vector.broadcast %246 : vector<1x128xf32> to vector<2x128xf32>
    %248 = arith.addf %245, %247 : vector<2x128xf32>
    %c0_251 = arith.constant 0 : index
    %c0_252 = arith.constant 0 : index
    %249 = vector.load %arg12[%c0_251, %c0_252] : memref<2x128xf32, #tpu.memory_space<vmem>>, vector<2x128xf32>
    tpu.vector_store %arg12[%c0_251, %c0_252], %248 {strides = array<i32>} : memref<2x128xf32, #tpu.memory_space<vmem>>, vector<2x128xf32>,
    return
  }
  func.func @transform_0(%arg0: i32) -> (i32, i32, i32) {
    %c0_i32 = arith.constant 0 : i32
    %c0_i32_0 = arith.constant 0 : i32
    %c0_i32_1 = arith.constant 0 : i32
    return %arg0, %c0_i32, %c0_i32_0 : i32, i32, i32
  }
  func.func @transform_1(%arg0: i32) -> (i32, i32) {
    %c0_i32 = arith.constant 0 : i32
    %c0_i32_0 = arith.constant 0 : i32
    %c0_i32_1 = arith.constant 0 : i32
    return %c0_i32, %c0_i32_0 : i32, i32
  }
  func.func @transform_2(%arg0: i32) -> (i32, i32) {
    %c0_i32 = arith.constant 0 : i32
    %c0_i32_0 = arith.constant 0 : i32
    %c0_i32_1 = arith.constant 0 : i32
    return %c0_i32, %c0_i32_0 : i32, i32
  }
  func.func @transform_3(%arg0: i32) -> (i32, i32) {
    %c0_i32 = arith.constant 0 : i32
    %c0_i32_0 = arith.constant 0 : i32
    %c0_i32_1 = arith.constant 0 : i32
    return %c0_i32, %c0_i32_0 : i32, i32
  }
  func.func @transform_4(%arg0: i32) -> (i32, i32) {
    %c0_i32 = arith.constant 0 : i32
    %c0_i32_0 = arith.constant 0 : i32
    %c0_i32_1 = arith.constant 0 : i32
    return %c0_i32, %c0_i32_0 : i32, i32
  }
  func.func @transform_5(%arg0: i32) -> (i32, i32) {
    %c0_i32 = arith.constant 0 : i32
    %c0_i32_0 = arith.constant 0 : i32
    %c0_i32_1 = arith.constant 0 : i32
    return %c0_i32, %c0_i32_0 : i32, i32
  }
  func.func @transform_6(%arg0: i32) -> (i32, i32) {
    %c0_i32 = arith.constant 0 : i32
    %c0_i32_0 = arith.constant 0 : i32
    %c0_i32_1 = arith.constant 0 : i32
    return %c0_i32, %c0_i32_0 : i32, i32
  }
  func.func @transform_7(%arg0: i32) -> (i32, i32) {
    %c0_i32 = arith.constant 0 : i32
    %c0_i32_0 = arith.constant 0 : i32
    %c0_i32_1 = arith.constant 0 : i32
    return %c0_i32, %c0_i32_0 : i32, i32
  }
  func.func @transform_8(%arg0: i32) -> (i32, i32) {
    %c0_i32 = arith.constant 0 : i32
    %c0_i32_0 = arith.constant 0 : i32
    %c0_i32_1 = arith.constant 0 : i32
    return %c0_i32, %c0_i32_0 : i32, i32
  }
  func.func @transform_9(%arg0: i32) -> (i32, i32) {
    %c0_i32 = arith.constant 0 : i32
    %c0_i32_0 = arith.constant 0 : i32
    %c0_i32_1 = arith.constant 0 : i32
    return %c0_i32, %c0_i32_0 : i32, i32
  }
  func.func @transform_10(%arg0: i32) -> (i32, i32) {
    %c0_i32 = arith.constant 0 : i32
    %c0_i32_0 = arith.constant 0 : i32
    %c0_i32_1 = arith.constant 0 : i32
    return %c0_i32, %c0_i32_0 : i32, i32
  }
  func.func @transform_11(%arg0: i32) -> (i32, i32) {
    %c0_i32 = arith.constant 0 : i32
    %c0_i32_0 = arith.constant 0 : i32
    return %arg0, %c0_i32 : i32, i32
  }
}

</mosaic_0001>

<bundles_post_ra>
// kernel: vgg_forward_pallas.1
= control target key start
LH: loop header
LB: loop body
LE: loop exit
PB: predicated region body
PF: predicated region fallthrough
CT: control target
= control target key end

     0   :  { %vm280_vm0 = vcmask 261120   ;;  %vm2205_vm1 = vcmask 523264   ;;  %vm2217_vm2 = vcmask 516096   ;;  %v14709_v34 = vmov 0.0   ;;  %s14711_s28 = smov 64   ;;  %s18839_s0 = inlined_call_operand.vmem [shape: bf16[2,256,32], index: 0, kind: input, shape index: {}]   ;;  %s18840_s1 = inlined_call_operand.vmem [shape: bf16[32,64], index: 1, kind: input, shape index: {}]   ;;  %s18841_s2 = inlined_call_operand.vmem [shape: f32[1,64], index: 2, kind: input, shape index: {}]   ;;  %s18842_s3 = inlined_call_operand.vmem [shape: bf16[576,128], index: 3, kind: input, shape index: {}]   ;;  %s18843_s4 = inlined_call_operand.vmem [shape: f32[1,128], index: 4, kind: input, shape index: {}]   ;;  %s18844_s5 = inlined_call_operand.vmem [shape: bf16[1152,256], index: 5, kind: input, shape index: {}]   ;;  %s18845_s6 = inlined_call_operand.vmem [shape: f32[1,256], index: 6, kind: input, shape index: {}]   ;;  %s18846_s7 = inlined_call_operand.vmem [shape: bf16[2304,512], index: 7, kind: input, shape index: {}]   ;;  %s18847_s8 = inlined_call_operand.vmem [shape: f32[1,512], index: 8, kind: input, shape index: {}]   ;;  %s18848_s9 = inlined_call_operand.vmem [shape: bf16[512,128], index: 9, kind: input, shape index: {}]   ;;  %s18849_s10 = inlined_call_operand.vmem [shape: f32[1,128], index: 10, kind: input, shape index: {}]   ;;  %s18850_s11 = inlined_call_operand.hbm [shape: f32[2,128], index: 11, kind: output, shape index: {}]  }
   0x1   :  { %v13466_v0 = vld [vmem:[%s18840_s1] sm:$0xff]   ;;  %v13467_v1 = vld [vmem:[%s18840_s1 + $0x8] sm:$0xff]   ;;  %v13470_v4 = vld [vmem:[%s18839_s0 + $0x10] sm:$0xff]   ;;  %2218 = vst.msk [vmem:[#allocation2 + $0x10] sm:$0x1] %vm2217_vm2, %v14709_v34  ;;  %vm2207_vm3 = vcmask 517120   ;;  %v18851_v37 = vlaneseq }
   0x2   :  { %13243 = vmatprep.subr.bf16.mxu1 %v13466_v0  ;;  %v13468_v2 = vld [vmem:[%s18839_s0] sm:$0xff]   ;;  %v13469_v3 = vld [vmem:[%s18839_s0 + $0x8] sm:$0xff]   ;;  %v13471_v5 = vld [vmem:[%s18839_s0 + $0x18] sm:$0xff]   ;;  %2219 = vst.msk [vmem:[#allocation2 + $0x20] sm:$0x1] %vm2217_vm2, %v14709_v34  ;;  %vm2890_vm4 = vcmask 1041409  }
   0x3   :  { %13244 = vmatpush3.bf16.msra.mxu1 %v13466_v0  ;;  %13247 = vmatprep.mubr.msk.bf16.mxu1 %vm280_vm0, %v13468_v2  ;;  %v13472_v6 = vld [vmem:[%s18839_s0 + $0x20] sm:$0xff]   ;;  %v13473_v7 = vld [vmem:[%s18839_s0 + $0x28] sm:$0xff]   ;;  %v13474_v8 = vld [vmem:[%s18839_s0 + $0x30] sm:$0xff]   ;;  %2206 = vst.msk [vmem:[#allocation2] sm:$0xff] %vm2205_vm1, %v14709_v34  ;;  %v14710_v35 = vmov 1983009808  }
   0x4   :  { %13245 = vmatprep.subr.bf16.mxu1 %v13467_v1  ;;  %v13475_v9 = vld [vmem:[%s18839_s0 + $0x38] sm:$0xff]   ;;  %v13476_v10 = vld [vmem:[%s18839_s0 + $0x40] sm:$0xff]   ;;  %v13477_v11 = vld [vmem:[%s18839_s0 + $0x48] sm:$0xff]   ;;  %2209 = vst.msk [vmem:[#allocation2 + $0xa0] sm:$0xff] %vm2205_vm1, %v14709_v34  ;;  %v733_v36 = vunpack.c.l.s4 %v14710_v35  ;;  %v15014_v40 = vshrl.u32 %v18851_v37, 7  ;;  %vm2892_vm5 = vcmask 1042434  }
   0x5   :  { %v13478_v12 = vld [vmem:[%s18839_s0 + $0x50] sm:$0xff]   ;;  %v13479_v13 = vld [vmem:[%s18839_s0 + $0x58] sm:$0xff]   ;;  %v13480_v14 = vld [vmem:[%s18839_s0 + $0x60] sm:$0xff]   ;;  %2212 = vst.msk [vmem:[#allocation2 + $0x90] sm:$0xff] %vm2205_vm1, %v14709_v34  ;;  %vm2894_vm6 = vcmask 1043459   ;;  %vm2896_vm7 = vcmask 1044484  }
   0x6   :  { %v13481_v15 = vld [vmem:[%s18839_s0 + $0x68] sm:$0xff]   ;;  %v13482_v16 = vld [vmem:[%s18839_s0 + $0x70] sm:$0xff]   ;;  %v13483_v17 = vld [vmem:[%s18839_s0 + $0x78] sm:$0xff]   ;;  %2214 = vst.msk [vmem:[#allocation2 + $0x130] sm:$0xff] %vm2205_vm1, %v14709_v34  ;;  %v734_v39 = vunpack.c.0.s8 %v733_v36  ;;  %v15041_v57 = vsub.s32 0, %v15014_v40  ;;  %vm2898_vm8 = vcmask 1045509  }
   0x7   :  { %13246 = vmatpush3.bf16.msra.mxu1 %v13467_v1  ;;  %v13484_v18 = vld [vmem:[%s18839_s0 + $0x80] sm:$0xff]   ;;  %v13485_v19 = vld [vmem:[%s18839_s0 + $0x88] sm:$0xff]   ;;  %v13486_v20 = vld [vmem:[%s18839_s0 + $0x90] sm:$0xff]   ;;  %2220 = vst.msk [vmem:[#allocation2 + $0x30] sm:$0x1] %vm2217_vm2, %v14709_v34  ;;  %vm2900_vm9 = vcmask 1046534  }
   0x8   :  { %v13487_v21 = vld [vmem:[%s18839_s0 + $0x98] sm:$0xff]   ;;  %v13488_v22 = vld [vmem:[%s18839_s0 + $0xa0] sm:$0xff]   ;;  %v13489_v23 = vld [vmem:[%s18839_s0 + $0xa8] sm:$0xff]   ;;  %2221 = vst.msk [vmem:[#allocation2 + $0x40] sm:$0x1] %vm2217_vm2, %v14709_v34  ;;  %v15017_v41 = vsub.s32 %v734_v39, %v15014_v40  ;;  %vm2902_vm10 = vcmask 1047559  }
   0x9   :  { %v13490_v24 = vld [vmem:[%s18839_s0 + $0xb0] sm:$0xff]   ;;  %v13491_v25 = vld [vmem:[%s18839_s0 + $0xb8] sm:$0xff]   ;;  %v13492_v26 = vld [vmem:[%s18839_s0 + $0xc0] sm:$0xff]   ;;  %2222 = vst.msk [vmem:[#allocation2 + $0x50] sm:$0x1] %vm2217_vm2, %v14709_v34 }
   0xa   :  { %13248 = vmatmul.mubr.msk.bf16.vlgmr.msra.gmra.mrb[0].mxu1 %vm280_vm0, %v13469_v3  ;;  %v13493_v27 = vld [vmem:[%s18839_s0 + $0xc8] sm:$0xff]   ;;  %v13494_v28 = vld [vmem:[%s18839_s0 + $0xd0] sm:$0xff]   ;;  %v13495_v29 = vld [vmem:[%s18839_s0 + $0xd8] sm:$0xff]   ;;  %2223 = vst.msk [vmem:[#allocation2 + $0x60] sm:$0x1] %vm2217_vm2, %v14709_v34 }
   0xb   :  { %13251 = vmatprep.mubr.msk.bf16.mxu1 %vm280_vm0, %v13470_v4  ;;  %v13496_v30 = vld [vmem:[%s18839_s0 + $0xe0] sm:$0xff]   ;;  %v13497_v31 = vld [vmem:[%s18839_s0 + $0xe8] sm:$0xff]   ;;  %v13498_v32 = vld [vmem:[%s18839_s0 + $0xf0] sm:$0xff]   ;;  %2224 = vst.msk [vmem:[#allocation2 + $0x70] sm:$0x1] %vm2217_vm2, %v14709_v34 }
   0xc   :  { %v13499_v33 = vld [vmem:[%s18839_s0 + $0xf8] sm:$0xff]   ;;  %2225 = vst.msk [vmem:[#allocation2 + $0x80] sm:$0x1] %vm2217_vm2, %v14709_v34  ;;  %2226 = vst.msk [vmem:[#allocation2 + $0xb0] sm:$0x1] %vm2217_vm2, %v14709_v34 }
   0xd   :  { %2227 = vst.msk [vmem:[#allocation2 + $0xc0] sm:$0x1] %vm2217_vm2, %v14709_v34  ;;  %2228 = vst.msk [vmem:[#allocation2 + $0xd0] sm:$0x1] %vm2217_vm2, %v14709_v34  ;;  %v12130_v38 = vld [vmem:[%s18841_s2] ss:$0 sm:$0xff] }
   0xe   :  { %2229 = vst.msk [vmem:[#allocation2 + $0xe0] sm:$0x1] %vm2217_vm2, %v14709_v34  ;;  %2230 = vst.msk [vmem:[#allocation2 + $0xf0] sm:$0x1] %vm2217_vm2, %v14709_v34  ;;  %v1920_v42 = vcombine.high %v12130_v38, %v12130_v38  ;;  %v15020_v43 = vrot.slane %v12130_v38, %v15017_v41 }
   0xf   :  { %2231 = vst.msk [vmem:[#allocation2 + $0x100] sm:$0x1] %vm2217_vm2, %v14709_v34  ;;  %2232 = vst.msk [vmem:[#allocation2 + $0x110] sm:$0x1] %vm2217_vm2, %v14709_v34 }
  0x10   :  { %2233 = vst.msk [vmem:[#allocation2 + $0x120] sm:$0x1] %vm2217_vm2, %v14709_v34  ;;  %2234 = vst.msk [vmem:[#allocation2 + $0x19] sm:$0x1] %vm2217_vm2, %v14709_v34  ;;  %v15023_v44 = vrot.slane %v1920_v42, %v15017_v41  ;;  %v15027_v47 = vcombine.high %v15020_v43, %v15020_v43  ;;  %v15035_v55 = vrot.slane %v15020_v43, 1 }
  0x11   :  { %2235 = vst.msk [vmem:[#allocation2 + $0x29] sm:$0x1] %vm2217_vm2, %v14709_v34  ;;  %2236 = vst.msk [vmem:[#allocation2 + $0x39] sm:$0x1] %vm2217_vm2, %v14709_v34 }
  0x12   :  { %13252 = vmatmul.mubr.msk.bf16.gmra.mrb[4].mxu1 %vm280_vm0, %v13471_v5  ;;  %2237 = vst.msk [vmem:[#allocation2 + $0x49] sm:$0x1] %vm2217_vm2, %v14709_v34  ;;  %2238 = vst.msk [vmem:[#allocation2 + $0x59] sm:$0x1] %vm2217_vm2, %v14709_v34  ;;  %v15031_v51 = vcombine.high %v15023_v44, %v15023_v44  ;;  %v15038_v56 = vrot.slane %v15027_v47, 1  ;;  %v15046_v63 = vrot.slane %v15023_v44, 1 }
  0x13   :  { %13255 = vmatprep.mubr.msk.bf16.mxu1 %vm280_vm0, %v13472_v6  ;;  %2239 = vst.msk [vmem:[#allocation2 + $0x69] sm:$0x1] %vm2217_vm2, %v14709_v34  ;;  %2240 = vst.msk [vmem:[#allocation2 + $0x79] sm:$0x1] %vm2217_vm2, %v14709_v34 }
  0x14   :  { %2241 = vst.msk [vmem:[#allocation2 + $0x89] sm:$0x1] %vm2217_vm2, %v14709_v34  ;;  %2242 = vst.msk [vmem:[#allocation2 + $0xb9] sm:$0x1] %vm2217_vm2, %v14709_v34  ;;  %v15049_v0 = vrot.slane %v15031_v51, 1 }
  0x15   :  { %2243 = vst.msk [vmem:[#allocation2 + $0xc9] sm:$0x1] %vm2217_vm2, %v14709_v34  ;;  %2244 = vst.msk [vmem:[#allocation2 + $0xd9] sm:$0x1] %vm2217_vm2, %v14709_v34 }
  0x16   :  { %2245 = vst.msk [vmem:[#allocation2 + $0xe9] sm:$0x1] %vm2217_vm2, %v14709_v34  ;;  %2246 = vst.msk [vmem:[#allocation2 + $0xf9] sm:$0x1] %vm2217_vm2, %v14709_v34 }
  0x17   :  { %2247 = vst.msk [vmem:[#allocation2 + $0x109] sm:$0x1] %vm2217_vm2, %v14709_v34  ;;  %2248 = vst.msk [vmem:[#allocation2 + $0x119] sm:$0x1] %vm2217_vm2, %v14709_v34 }
  0x18   :  { %2249 = vst.msk [vmem:[#allocation2 + $0x129] sm:$0x1] %vm2217_vm2, %v14709_v34  ;;  %4498 = vst [vmem:[#allocation4] sm:$0x3f] %v14709_v34 }
  0x19   :  { %4499 = vst [vmem:[#allocation4 + $0x30] sm:$0x3f] %v14709_v34  ;;  %4501 = vst [vmem:[#allocation4 + $0x28] sm:$0x3f] %v14709_v34 }
  0x1a   :  { %13256 = vmatmul.mubr.msk.bf16.gmra.mrb[8].mxu1 %vm280_vm0, %v13473_v7  ;;  %4502 = vst [vmem:[#allocation4 + $0x58] sm:$0x3f] %v14709_v34  ;;  %4504 = vst [vmem:[#allocation4 + $0x8] sm:$0x1] %v14709_v34 }
  0x1b   :  { %13259 = vmatprep.mubr.msk.bf16.mxu1 %vm280_vm0, %v13474_v8  ;;  %4505 = vst [vmem:[#allocation4 + $0x10] sm:$0x1] %v14709_v34  ;;  %4506 = vst [vmem:[#allocation4 + $0x18] sm:$0x1] %v14709_v34 }
  0x1c   :  { %4507 = vst [vmem:[#allocation4 + $0x20] sm:$0x1] %v14709_v34  ;;  %4508 = vst [vmem:[#allocation4 + $0x38] sm:$0x1] %v14709_v34 }
  0x1d   :  { %4509 = vst [vmem:[#allocation4 + $0x40] sm:$0x1] %v14709_v34  ;;  %4510 = vst [vmem:[#allocation4 + $0x48] sm:$0x1] %v14709_v34 }
  0x1e   :  { %4511 = vst [vmem:[#allocation4 + $0x50] sm:$0x1] %v14709_v34  ;;  %4512 = vst [vmem:[#allocation4 + $0xd] sm:$0x1] %v14709_v34 }
  0x1f   :  { %4513 = vst [vmem:[#allocation4 + $0x15] sm:$0x1] %v14709_v34  ;;  %4514 = vst [vmem:[#allocation4 + $0x1d] sm:$0x1] %v14709_v34 }
  0x20   :  { %4515 = vst [vmem:[#allocation4 + $0x25] sm:$0x1] %v14709_v34  ;;  %4516 = vst [vmem:[#allocation4 + $0x3d] sm:$0x1] %v14709_v34 }
  0x21   :  { %4517 = vst [vmem:[#allocation4 + $0x45] sm:$0x1] %v14709_v34  ;;  %4518 = vst [vmem:[#allocation4 + $0x4d] sm:$0x1] %v14709_v34 }
  0x22   :  { %13260 = vmatmul.mubr.msk.bf16.gmra.mrb[12].mxu1 %vm280_vm0, %v13475_v9  ;;  %4519 = vst [vmem:[#allocation4 + $0x55] sm:$0x1] %v14709_v34  ;;  %6493 = vst [vmem:[#allocation5] sm:$0xff] %v14709_v34 }
  0x23   :  { %13263 = vmatprep.mubr.msk.bf16.mxu1 %vm280_vm0, %v13476_v10  ;;  %6494 = vst [vmem:[#allocation5 + $0x20] sm:$0xff] %v14709_v34  ;;  %6496 = vst [vmem:[#allocation5 + $0x18] sm:$0xff] %v14709_v34 }
  0x24   :  { %6497 = vst [vmem:[#allocation5 + $0x38] sm:$0xff] %v14709_v34  ;;  %2208 = vst.msk [vmem:[#allocation2 + $0x8] sm:$0x3] %vm2207_vm3, %v14709_v34 }
  0x25   :  { %2210 = vst.msk [vmem:[#allocation2 + $0xa8] sm:$0x3] %vm2207_vm3, %v14709_v34  ;;  %2213 = vst.msk [vmem:[#allocation2 + $0x98] sm:$0x3] %vm2207_vm3, %v14709_v34 }
  0x26   :  { %2215 = vst.msk [vmem:[#allocation2 + $0x138] sm:$0x3] %vm2207_vm3, %v14709_v34  ;;  %18854 = vst [vmem:[#allocation9_spill] sm:$0xff] %v15014_v40 }
  0x2a   :  { %13264 = vmatmul.mubr.msk.bf16.gmra.mrb[16].mxu1 %vm280_vm0, %v13477_v11 }
  0x2b   :  { %13267 = vmatprep.mubr.msk.bf16.mxu1 %vm280_vm0, %v13478_v12 }
  0x32   :  { %13268 = vmatmul.mubr.msk.bf16.gmra.mrb[20].mxu1 %vm280_vm0, %v13479_v13 }
  0x33   :  { %13271 = vmatprep.mubr.msk.bf16.mxu1 %vm280_vm0, %v13480_v14 }
  0x3a   :  { %13272 = vmatmul.mubr.msk.bf16.gmra.mrb[24].mxu1 %vm280_vm0, %v13481_v15 }
  0x3b   :  { %13275 = vmatprep.mubr.msk.bf16.mxu1 %vm280_vm0, %v13482_v16 }
  0x42   :  { %13276 = vmatmul.mubr.msk.bf16.gmra.mrb[28].mxu1 %vm280_vm0, %v13483_v17 }
  0x43   :  { %13279 = vmatprep.mubr.msk.bf16.mxu1 %vm280_vm0, %v13484_v18 }
  0x4a   :  { %13280 = vmatmul.mubr.msk.bf16.gmra.mrb[32].mxu1 %vm280_vm0, %v13485_v19 }
  0x4b   :  { %13283 = vmatprep.mubr.msk.bf16.mxu1 %vm280_vm0, %v13486_v20 }
  0x52   :  { %13284 = vmatmul.mubr.msk.bf16.gmra.mrb[36].mxu1 %vm280_vm0, %v13487_v21 }
  0x53   :  { %13287 = vmatprep.mubr.msk.bf16.mxu1 %vm280_vm0, %v13488_v22 }
  0x5a   :  { %13288 = vmatmul.mubr.msk.bf16.gmra.mrb[40].mxu1 %vm280_vm0, %v13489_v23 }
  0x5b   :  { %13291 = vmatprep.mubr.msk.bf16.mxu1 %vm280_vm0, %v13490_v24 }
  0x62   :  { %13292 = vmatmul.mubr.msk.bf16.gmra.mrb[44].mxu1 %vm280_vm0, %v13491_v25 }
  0x63   :  { %13295 = vmatprep.mubr.msk.bf16.mxu1 %vm280_vm0, %v13492_v26 }
  0x6a   :  { %13296 = vmatmul.mubr.msk.bf16.gmra.mrb[48].mxu1 %vm280_vm0, %v13493_v27 }
  0x6b   :  { %13299 = vmatprep.mubr.msk.bf16.mxu1 %vm280_vm0, %v13494_v28 }
  0x72   :  { %13300 = vmatmul.mubr.msk.bf16.gmra.mrb[52].mxu1 %vm280_vm0, %v13495_v29 }
  0x73   :  { %13303 = vmatprep.mubr.msk.bf16.mxu1 %vm280_vm0, %v13496_v30 }
  0x7a   :  { %13304 = vmatmul.mubr.msk.bf16.gmra.mrb[56].mxu1 %vm280_vm0, %v13497_v31 }
  0x7b   :  { %13307 = vmatprep.mubr.msk.bf16.mxu1 %vm280_vm0, %v13498_v32 }
  0x82   :  { %13308 = vmatmul.mubr.msk.bf16.gmra.mrb[60].mxu1 %vm280_vm0, %v13499_v33 }
  0xdd   :  { %v13249_v45 = vpop.f32.mrb[0].mxu1 }
  0xde   :  { %v411_v46 = vpop.f32.mrb[1].mxu1 }
  0xdf   :  { %v667_v48 = vmax.f32 %v411_v46, %v13249_v45  ;;  %v13250_v49 = vpop.f32.mrb[2].mxu1 }
  0xe0   :  { %v414_v50 = vpop.f32.mrb[3].mxu1 }
  0xe1   :  { %v731_v52 = vcombine.high %v667_v48, %v667_v48  ;;  %v738_v53 = vrot.slane %v667_v48, %v15017_v41  ;;  %v668_v54 = vmax.f32 %v414_v50, %v13250_v49 }
  0xe3   :  { %v745_v58 = vrot.slane %v731_v52, %v15017_v41  ;;  %v746_v59 = vcombine.high %v738_v53, %v738_v53  ;;  %v12002_v60 = vrot.slane %v738_v53, 9  ;;  %v748_v61 = vcombine.high %v668_v54, %v668_v54 }
  0xe4   :  { %v755_v62 = vrot.slane %v668_v54, %v15017_v41 }
  0xe5   :  { %v747_v1 = vcombine.high %v745_v58, %v745_v58  ;;  %v12003_v2 = vrot.slane %v746_v59, 9  ;;  %v12004_v3 = vrot.slane %v745_v58, 9  ;;  %v1787_v4 = vmax.f32 %v738_v53, %v12002_v60  ;;  %v13253_v5 = vpop.f32.mrb[4].mxu1 }
  0xe6   :  { %v762_v6 = vrot.slane %v748_v61, %v15017_v41  ;;  %v763_v7 = vcombine.high %v755_v62, %v755_v62  ;;  %v12006_v8 = vrot.slane %v755_v62, 9  ;;  %v427_v9 = vpop.f32.mrb[5].mxu1 }
  0xe7   :  { %v12005_v10 = vrot.slane %v747_v1, 9  ;;  %v1788_v11 = vmax.f32 %v746_v59, %v12003_v2  ;;  %v1789_v12 = vmax.f32 %v745_v58, %v12004_v3  ;;  %v1949_v13 = vadd.f32 %v15020_v43, %v1787_v4  ;;  %v13254_v14 = vpop.f32.mrb[6].mxu1 }
  0xe8   :  { %v764_v15 = vcombine.high %v762_v6, %v762_v6  ;;  %v12007_v16 = vrot.slane %v763_v7, 9  ;;  %v12008_v17 = vrot.slane %v762_v6, 9  ;;  %v1791_v18 = vmax.f32 %v755_v62, %v12006_v8  ;;  %v430_v19 = vpop.f32.mrb[7].mxu1 }
  0xe9   :  { %v1790_v20 = vmax.f32 %v747_v1, %v12005_v10  ;;  %v1950_v21 = vadd.f32 %v15035_v55, %v1788_v11  ;;  %v1951_v22 = vadd.f32 %v15027_v47, %v1789_v12  ;;  %v2077_v23 = vmax.f32 %v1949_v13, 0.0 }
  0xea   :  { %v12009_v24 = vrot.slane %v764_v15, 9  ;;  %v1792_v25 = vmax.f32 %v763_v7, %v12007_v16  ;;  %v1793_v26 = vmax.f32 %v762_v6, %v12008_v17  ;;  %v1953_v27 = vadd.f32 %v15023_v44, %v1791_v18 }
  0xeb   :  { %v1952_v28 = vadd.f32 %v15038_v56, %v1790_v20  ;;  %v2078_v29 = vmax.f32 %v1950_v21, 0.0  ;;  %v2079_v30 = vmax.f32 %v1951_v22, 0.0  ;;  %v2381_v31 = vrot.slane %v2077_v23, %v15041_v57 }
  0xec   :  { %v1794_v32 = vmax.f32 %v764_v15, %v12009_v24  ;;  %v1954_v33 = vadd.f32 %v15046_v63, %v1792_v25  ;;  %v1955_v34 = vadd.f32 %v15031_v51, %v1793_v26  ;;  %v2081_v35 = vmax.f32 %v1953_v27, 0.0 }
  0xed   :  { %v2080_v36 = vmax.f32 %v1952_v28, 0.0  ;;  %v2385_v38 = vrot.slane %v2078_v29, %v15041_v57  ;;  %v2389_v39 = vrot.slane %v2079_v30, %v15041_v57  ;;  %v669_v42 = vmax.f32 %v427_v9, %v13253_v5  ;;  %v13257_v45 = vpop.f32.mrb[8].mxu1 }
  0xee   :  { %v1956_v46 = vadd.f32 %v15049_v0, %v1794_v32  ;;  %v2082_v48 = vmax.f32 %v1954_v33, 0.0  ;;  %v2083_v49 = vmax.f32 %v1955_v34, 0.0  ;;  %v2397_v50 = vrot.slane %v2081_v35, %v15041_v57  ;;  %v443_v52 = vpop.f32.mrb[9].mxu1 }
  0xef   :  { %v2393_v53 = vrot.slane %v2080_v36, %v15041_v57  ;;  %v2891_v54 = vsel %vm2890_vm4, %v2385_v38, %v2381_v31  ;;  %v765_v58 = vcombine.high %v669_v42, %v669_v42  ;;  %v772_v59 = vrot.slane %v669_v42, %v15017_v41  ;;  %v15067_v60 = vpop.f32.mrb[10].mxu1 }
  0xf0   :  { %v2893_v61 = vsel %vm2892_vm5, %v2389_v39, %v2891_v54  ;;  %v2084_v62 = vmax.f32 %v1956_v46, 0.0  ;;  %v2401_v1 = vrot.slane %v2082_v48, %v15041_v57  ;;  %v2405_v2 = vrot.slane %v2083_v49, %v15041_v57  ;;  %v15072_v3 = vpop.f32.mrb[11].mxu1 }
  0xf1   :  { %v2895_v4 = vsel %vm2894_vm6, %v2393_v53, %v2893_v61  ;;  %v779_v5 = vrot.slane %v765_v58, %v15017_v41  ;;  %v780_v6 = vcombine.high %v772_v59, %v772_v59  ;;  %v12010_v7 = vrot.slane %v772_v59, 9 }
  0xf2   :  { %v2409_v8 = vrot.slane %v2084_v62, %v15041_v57  ;;  %v2897_v9 = vsel %vm2896_vm7, %v2397_v50, %v2895_v4  ;;  %v670_v10 = vmax.f32 %v430_v19, %v13254_v14  ;;  %v671_v11 = vmax.f32 %v443_v52, %v13257_v45 }
  0xf3   :  { %v2899_v12 = vsel %vm2898_vm8, %v2401_v1, %v2897_v9  ;;  %v781_v13 = vcombine.high %v779_v5, %v779_v5  ;;  %v12011_v15 = vrot.slane %v780_v6, 9  ;;  %v12012_v16 = vrot.slane %v779_v5, 9 }
  0xf4   :  { %v2901_v17 = vsel %vm2900_vm9, %v2405_v2, %v2899_v12  ;;  %v1795_v18 = vmax.f32 %v772_v59, %v12010_v7  ;;  %v782_v20 = vcombine.high %v670_v10, %v670_v10  ;;  %v789_v21 = vrot.slane %v670_v10, %v15017_v41 }
  0xf5   :  { %v2903_v22 = vsel %vm2902_vm10, %v2409_v8, %v2901_v17  ;;  %v12013_v23 = vrot.slane %v781_v13, 9  ;;  %v1796_v24 = vmax.f32 %v780_v6, %v12011_v15  ;;  %v1797_v25 = vmax.f32 %v779_v5, %v12012_v16  ;;  %v15082_v26 = vpop.f32.mrb[12].mxu1 }
  0xf6   :  { %3025 = vst.msk [vmem:[#allocation2 + $0x11] sm:$0xff] %vm2205_vm1, %v2903_v22  ;;  %v1957_v14 = vadd.f32 %v15020_v43, %v1795_v18  ;;  %v796_v19 = vrot.slane %v782_v20, %v15017_v41  ;;  %v797_v27 = vcombine.high %v789_v21, %v789_v21  ;;  %v12014_v28 = vrot.slane %v789_v21, 9  ;;  %v15087_v29 = vpop.f32.mrb[13].mxu1 }
  0xf7   :  { %v1798_v30 = vmax.f32 %v781_v13, %v12013_v23  ;;  %v1958_v31 = vadd.f32 %v15035_v55, %v1796_v24  ;;  %v1959_v32 = vadd.f32 %v15027_v47, %v1797_v25  ;;  %v799_v33 = vcombine.high %v671_v11, %v671_v11  ;;  %v15091_v34 = vpop.f32.mrb[14].mxu1 }
  0xf8   :  { %v2085_v35 = vmax.f32 %v1957_v14, 0.0  ;;  %v798_v36 = vcombine.high %v796_v19, %v796_v19  ;;  %v12015_v38 = vrot.slane %v797_v27, 9  ;;  %v12016_v39 = vrot.slane %v796_v19, 9  ;;  %v15093_v42 = vpop.f32.mrb[15].mxu1 }
  0xf9   :  { %v1960_v45 = vadd.f32 %v15038_v56, %v1798_v30  ;;  %v2086_v46 = vmax.f32 %v1958_v31, 0.0  ;;  %v2087_v48 = vmax.f32 %v1959_v32, 0.0  ;;  %v1799_v49 = vmax.f32 %v789_v21, %v12014_v28 }
  0xfa   :  { %v2413_v50 = vrot.slane %v2085_v35, %v15041_v57  ;;  %v12017_v52 = vrot.slane %v798_v36, 9  ;;  %v1800_v53 = vmax.f32 %v797_v27, %v12015_v38  ;;  %v1801_v54 = vmax.f32 %v796_v19, %v12016_v39 }
  0xfb   :  { %v2088_v58 = vmax.f32 %v1960_v45, 0.0  ;;  %v2417_v59 = vrot.slane %v2086_v46, %v15041_v57  ;;  %v2421_v61 = vrot.slane %v2087_v48, %v15041_v57  ;;  %v1961_v62 = vadd.f32 %v15023_v44, %v1799_v49 }
  0xfc   :  { %v1802_v1 = vmax.f32 %v798_v36, %v12017_v52  ;;  %v1962_v2 = vadd.f32 %v15046_v63, %v1800_v53  ;;  %v1963_v4 = vadd.f32 %v15031_v51, %v1801_v54  ;;  %v806_v5 = vrot.slane %v671_v11, %v15017_v41 }
  0xfd   :  { %v2425_v6 = vrot.slane %v2088_v58, %v15041_v57  ;;  %v2904_v7 = vsel %vm2890_vm4, %v2417_v59, %v2413_v50  ;;  %v2089_v8 = vmax.f32 %v1961_v62, 0.0  ;;  %v813_v9 = vrot.slane %v799_v33, %v15017_v41  ;;  %v15106_v10 = vpop.f32.mrb[16].mxu1 }
  0xfe   :  { %v2905_v12 = vsel %vm2892_vm5, %v2421_v61, %v2904_v7  ;;  %v1964_v13 = vadd.f32 %v15049_v0, %v1802_v1  ;;  %v2090_v15 = vmax.f32 %v1962_v2, 0.0  ;;  %v2091_v16 = vmax.f32 %v1963_v4, 0.0  ;;  %v15110_v17 = vpop.f32.mrb[17].mxu1 }
  0xff   :  { %v2429_v18 = vrot.slane %v2089_v8, %v15041_v57  ;;  %v2906_v11 = vsel %vm2894_vm6, %v2425_v6, %v2905_v12  ;;  %v814_v20 = vcombine.high %v806_v5, %v806_v5  ;;  %v815_v21 = vcombine.high %v813_v9, %v813_v9  ;;  %v15114_v22 = vpop.f32.mrb[18].mxu1 }
 0x100   :  { %v2092_v23 = vmax.f32 %v1964_v13, 0.0  ;;  %v2433_v24 = vrot.slane %v2090_v15, %v15041_v57  ;;  %v2437_v25 = vrot.slane %v2091_v16, %v15041_v57  ;;  %v12018_v14 = vrot.slane %v806_v5, 9  ;;  %v15118_v19 = vpop.f32.mrb[19].mxu1 }
 0x101   :  { %v2907_v27 = vsel %vm2896_vm7, %v2429_v18, %v2906_v11  ;;  %v12019_v28 = vrot.slane %v814_v20, 9  ;;  %v12020_v30 = vrot.slane %v813_v9, 9  ;;  %v12021_v31 = vrot.slane %v815_v21, 9 }
 0x102   :  { %v2441_v32 = vrot.slane %v2092_v23, %v15041_v57  ;;  %v2908_v33 = vsel %vm2898_vm8, %v2433_v24, %v2907_v27  ;;  %v1803_v35 = vmax.f32 %v806_v5, %v12018_v14  ;;  %v672_v36 = vmax.f32 %v15072_v3, %v15067_v60 }
 0x103   :  { %v2909_v38 = vsel %vm2900_vm9, %v2437_v25, %v2908_v33  ;;  %v1804_v39 = vmax.f32 %v814_v20, %v12019_v28  ;;  %v1805_v45 = vmax.f32 %v813_v9, %v12020_v30  ;;  %v1806_v46 = vmax.f32 %v815_v21, %v12021_v31 }
 0x104   :  { %v2910_v48 = vsel %vm2902_vm10, %v2441_v32, %v2909_v38  ;;  %v1965_v49 = vadd.f32 %v15020_v43, %v1803_v35  ;;  %v816_v50 = vcombine.high %v672_v36, %v672_v36  ;;  %v823_v52 = vrot.slane %v672_v36, %v15017_v41 }
 0x105   :  { %3026 = vst.msk [vmem:[#allocation2 + $0x21] sm:$0xff] %vm2205_vm1, %v2910_v48  ;;  %v1966_v53 = vadd.f32 %v15035_v55, %v1804_v39  ;;  %v1967_v54 = vadd.f32 %v15027_v47, %v1805_v45  ;;  %v1968_v60 = vadd.f32 %v15038_v56, %v1806_v46  ;;  %v673_v3 = vmax.f32 %v15087_v29, %v15082_v26  ;;  %v15135_v58 = vpop.f32.mrb[20].mxu1 }
 0x106   :  { %v2093_v59 = vmax.f32 %v1965_v49, 0.0  ;;  %v830_v61 = vrot.slane %v816_v50, %v15017_v41  ;;  %v831_v62 = vcombine.high %v823_v52, %v823_v52  ;;  %v12022_v1 = vrot.slane %v823_v52, 9  ;;  %v15138_v2 = vpop.f32.mrb[21].mxu1 }
 0x107   :  { %v2094_v4 = vmax.f32 %v1966_v53, 0.0  ;;  %v2095_v5 = vmax.f32 %v1967_v54, 0.0  ;;  %v2096_v6 = vmax.f32 %v1968_v60, 0.0  ;;  %v833_v7 = vcombine.high %v673_v3, %v673_v3  ;;  %v15140_v8 = vpop.f32.mrb[22].mxu1 }
 0x108   :  { %v2445_v9 = vrot.slane %v2093_v59, %v15041_v57  ;;  %v832_v12 = vcombine.high %v830_v61, %v830_v61  ;;  %v12023_v13 = vrot.slane %v831_v62, 9  ;;  %v12024_v26 = vrot.slane %v830_v61, 9  ;;  %v15143_v29 = vpop.f32.mrb[23].mxu1 }
 0x109   :  { %v2449_v15 = vrot.slane %v2094_v4, %v15041_v57  ;;  %v2453_v16 = vrot.slane %v2095_v5, %v15041_v57  ;;  %v2457_v18 = vrot.slane %v2096_v6, %v15041_v57  ;;  %v1807_v11 = vmax.f32 %v823_v52, %v12022_v1 }
 0x10a   :  { %v12025_v20 = vrot.slane %v832_v12, 9  ;;  %v1808_v21 = vmax.f32 %v831_v62, %v12023_v13  ;;  %v1809_v23 = vmax.f32 %v830_v61, %v12024_v26  ;;  %v840_v24 = vrot.slane %v673_v3, %v15017_v41 }
 0x10b   :  { %v2911_v25 = vsel %vm2890_vm4, %v2449_v15, %v2445_v9  ;;  %v1969_v14 = vadd.f32 %v15023_v44, %v1807_v11  ;;  %v847_v27 = vrot.slane %v833_v7, %v15017_v41  ;;  %v674_v28 = vmax.f32 %v15093_v42, %v15091_v34 }
 0x10c   :  { %v2912_v30 = vsel %vm2892_vm5, %v2453_v16, %v2911_v25  ;;  %v1810_v31 = vmax.f32 %v832_v12, %v12025_v20  ;;  %v1970_v32 = vadd.f32 %v15046_v63, %v1808_v21  ;;  %v1971_v33 = vadd.f32 %v15031_v51, %v1809_v23 }
 0x10d   :  { %v2097_v35 = vmax.f32 %v1969_v14, 0.0  ;;  %v2913_v36 = vsel %vm2894_vm6, %v2457_v18, %v2912_v30  ;;  %v848_v38 = vcombine.high %v840_v24, %v840_v24  ;;  %v849_v39 = vcombine.high %v847_v27, %v847_v27  ;;  %v15158_v45 = vpop.f32.mrb[24].mxu1 }
 0x10e   :  { %v1972_v46 = vadd.f32 %v15049_v0, %v1810_v31  ;;  %v2098_v48 = vmax.f32 %v1970_v32, 0.0  ;;  %v2099_v49 = vmax.f32 %v1971_v33, 0.0  ;;  %v12026_v50 = vrot.slane %v840_v24, 9  ;;  %v15161_v34 = vpop.f32.mrb[25].mxu1 }
 0x10f   :  { %v2461_v42 = vrot.slane %v2097_v35, %v15041_v57  ;;  %v12027_v52 = vrot.slane %v848_v38, 9  ;;  %v12028_v53 = vrot.slane %v847_v27, 9  ;;  %v12029_v54 = vrot.slane %v849_v39, 9  ;;  %v15164_v60 = vpop.f32.mrb[26].mxu1 }
 0x110   :  { %v2100_v3 = vmax.f32 %v1972_v46, 0.0  ;;  %v2465_v59 = vrot.slane %v2098_v48, %v15041_v57  ;;  %v2469_v61 = vrot.slane %v2099_v49, %v15041_v57  ;;  %v1811_v62 = vmax.f32 %v840_v24, %v12026_v50  ;;  %v15168_v1 = vpop.f32.mrb[27].mxu1 }
 0x111   :  { %v2914_v4 = vsel %vm2896_vm7, %v2461_v42, %v2913_v36  ;;  %v1812_v5 = vmax.f32 %v848_v38, %v12027_v52  ;;  %v1813_v6 = vmax.f32 %v847_v27, %v12028_v53  ;;  %v1814_v7 = vmax.f32 %v849_v39, %v12029_v54 }
 0x112   :  { %v2473_v9 = vrot.slane %v2100_v3, %v15041_v57  ;;  %v2915_v12 = vsel %vm2898_vm8, %v2465_v59, %v2914_v4  ;;  %v1973_v13 = vadd.f32 %v15020_v43, %v1811_v62  ;;  %v850_v26 = vcombine.high %v674_v28, %v674_v28 }
 0x113   :  { %v2916_v15 = vsel %vm2900_vm9, %v2469_v61, %v2915_v12  ;;  %v1974_v16 = vadd.f32 %v15035_v55, %v1812_v5  ;;  %v1975_v18 = vadd.f32 %v15027_v47, %v1813_v6  ;;  %v1976_v11 = vadd.f32 %v15038_v56, %v1814_v7  ;;  %v13500_v6 = vld [vmem:[%s18842_s3 + $0x40] sm:$0xff]  }
 0x114   :  { %v2917_v20 = vsel %vm2902_vm10, %v2473_v9, %v2916_v15  ;;  %v2101_v21 = vmax.f32 %v1973_v13, 0.0  ;;  %v857_v23 = vrot.slane %v674_v28, %v15017_v41  ;;  %v864_v24 = vrot.slane %v850_v26, %v15017_v41  ;;  %v13501_v7 = vld [vmem:[%s18842_s3] sm:$0xff]   ;;  %13059 = vmatprep.subr.bf16.mxu1 %v13500_v6 }
 0x115   :  { %3027 = vst.msk [vmem:[#allocation2 + $0x31] sm:$0xff] %vm2205_vm1, %v2917_v20  ;;  %v2102_v25 = vmax.f32 %v1974_v16, 0.0  ;;  %v2103_v14 = vmax.f32 %v1975_v18, 0.0  ;;  %v2104_v27 = vmax.f32 %v1976_v11, 0.0  ;;  %v675_v30 = vmax.f32 %v15110_v17, %v15106_v10  ;;  %v15184_v31 = vpop.f32.mrb[28].mxu1  ;;  %13060 = vmatpush3.bf16.msra.mxu1 %v13501_v7 }
 0x116   :  { %v2477_v32 = vrot.slane %v2101_v21, %v15041_v57  ;;  %v865_v33 = vcombine.high %v857_v23, %v857_v23  ;;  %v866_v35 = vcombine.high %v864_v24, %v864_v24  ;;  %v12030_v36 = vrot.slane %v857_v23, 9  ;;  %v15187_v38 = vpop.f32.mrb[29].mxu1 }
 0x117   :  { %v2481_v28 = vrot.slane %v2102_v25, %v15041_v57  ;;  %v2485_v39 = vrot.slane %v2103_v14, %v15041_v57  ;;  %v2489_v46 = vrot.slane %v2104_v27, %v15041_v57  ;;  %v12032_v48 = vrot.slane %v864_v24, 9  ;;  %v15192_v49 = vpop.f32.mrb[30].mxu1 }
 0x118   :  { %v12031_v50 = vrot.slane %v865_v33, 9  ;;  %v12033_v10 = vrot.slane %v866_v35, 9  ;;  %v1815_v17 = vmax.f32 %v857_v23, %v12030_v36  ;;  %v867_v42 = vcombine.high %v675_v30, %v675_v30  ;;  %v15194_v52 = vpop.f32.mrb[31].mxu1 }
 0x119   :  { %v2918_v53 = vsel %vm2890_vm4, %v2481_v28, %v2477_v32  ;;  %v1817_v54 = vmax.f32 %v864_v24, %v12032_v48  ;;  %v874_v3 = vrot.slane %v675_v30, %v15017_v41  ;;  %v676_v59 = vmax.f32 %v15118_v19, %v15114_v22 }
 0x11a   :  { %v2919_v61 = vsel %vm2892_vm5, %v2485_v39, %v2918_v53  ;;  %v1816_v62 = vmax.f32 %v865_v33, %v12031_v50  ;;  %v1818_v4 = vmax.f32 %v866_v35, %v12033_v10  ;;  %v1977_v5 = vadd.f32 %v15023_v44, %v1815_v17 }
 0x11b   :  { %v1979_v9 = vadd.f32 %v15031_v51, %v1817_v54  ;;  %v2920_v12 = vsel %vm2894_vm6, %v2489_v46, %v2919_v61  ;;  %v881_v22 = vrot.slane %v867_v42, %v15017_v41  ;;  %v882_v19 = vcombine.high %v874_v3, %v874_v3 }
 0x11c   :  { %v1978_v13 = vadd.f32 %v15046_v63, %v1816_v62  ;;  %v1980_v26 = vadd.f32 %v15049_v0, %v1818_v4  ;;  %v2105_v15 = vmax.f32 %v1977_v5, 0.0  ;;  %v12034_v16 = vrot.slane %v874_v3, 9 }
 0x11d   :  { %v2107_v18 = vmax.f32 %v1979_v9, 0.0  ;;  %v883_v11 = vcombine.high %v881_v22, %v881_v22  ;;  %v12035_v20 = vrot.slane %v882_v19, 9  ;;  %v12036_v21 = vrot.slane %v881_v22, 9  ;;  %v15213_v23 = vpop.f32.mrb[32].mxu1 }
 0x11e   :  { %v2106_v24 = vmax.f32 %v1978_v13, 0.0  ;;  %v2108_v25 = vmax.f32 %v1980_v26, 0.0  ;;  %v2493_v14 = vrot.slane %v2105_v15, %v15041_v57  ;;  %v1819_v27 = vmax.f32 %v874_v3, %v12034_v16  ;;  %v15216_v30 = vpop.f32.mrb[33].mxu1 }
 0x11f   :  { %v2501_v32 = vrot.slane %v2107_v18, %v15041_v57  ;;  %v12037_v33 = vrot.slane %v883_v11, 9  ;;  %v1820_v35 = vmax.f32 %v882_v19, %v12035_v20  ;;  %v1821_v36 = vmax.f32 %v881_v22, %v12036_v21  ;;  %v15219_v28 = vpop.f32.mrb[34].mxu1 }
 0x120   :  { %v2497_v39 = vrot.slane %v2106_v24, %v15041_v57  ;;  %v2505_v46 = vrot.slane %v2108_v25, %v15041_v57  ;;  %v2921_v48 = vsel %vm2896_vm7, %v2493_v14, %v2920_v12  ;;  %v1981_v50 = vadd.f32 %v15020_v43, %v1819_v27  ;;  %v15225_v10 = vpop.f32.mrb[35].mxu1 }
 0x121   :  { %v1822_v17 = vmax.f32 %v883_v11, %v12037_v33  ;;  %v1982_v42 = vadd.f32 %v15035_v55, %v1820_v35  ;;  %v1983_v53 = vadd.f32 %v15027_v47, %v1821_v36  ;;  %v884_v54 = vcombine.high %v676_v59, %v676_v59 }
 0x122   :  { %v2922_v3 = vsel %vm2898_vm8, %v2497_v39, %v2921_v48  ;;  %v2109_v61 = vmax.f32 %v1981_v50, 0.0  ;;  %v891_v62 = vrot.slane %v676_v59, %v15017_v41  ;;  %v677_v4 = vmax.f32 %v15138_v2, %v15135_v58 }
 0x123   :  { %v2923_v5 = vsel %vm2900_vm9, %v2501_v32, %v2922_v3  ;;  %v1984_v6 = vadd.f32 %v15038_v56, %v1822_v17  ;;  %v2110_v7 = vmax.f32 %v1982_v42, 0.0  ;;  %v2111_v9 = vmax.f32 %v1983_v53, 0.0 }
 0x124   :  { %v2924_v12 = vsel %vm2902_vm10, %v2505_v46, %v2923_v5  ;;  %v2509_v22 = vrot.slane %v2109_v61, %v15041_v57  ;;  %v898_v19 = vrot.slane %v884_v54, %v15017_v41  ;;  %v899_v13 = vcombine.high %v891_v62, %v891_v62 }
 0x125   :  { %3028 = vst.msk [vmem:[#allocation2 + $0x41] sm:$0xff] %vm2205_vm1, %v2924_v12  ;;  %v2112_v26 = vmax.f32 %v1984_v6, 0.0  ;;  %v2513_v59 = vrot.slane %v2110_v7, %v15041_v57  ;;  %v2517_v58 = vrot.slane %v2111_v9, %v15041_v57  ;;  %v12038_v2 = vrot.slane %v891_v62, 9  ;;  %v15241_v15 = vpop.f32.mrb[36].mxu1 }
 0x126   :  { %v900_v16 = vcombine.high %v898_v19, %v898_v19  ;;  %v12039_v18 = vrot.slane %v899_v13, 9  ;;  %v12040_v11 = vrot.slane %v898_v19, 9  ;;  %v901_v20 = vcombine.high %v677_v4, %v677_v4  ;;  %v15243_v21 = vpop.f32.mrb[37].mxu1 }
 0x127   :  { %v2521_v24 = vrot.slane %v2112_v26, %v15041_v57  ;;  %v2925_v25 = vsel %vm2890_vm4, %v2513_v59, %v2509_v22  ;;  %v1823_v14 = vmax.f32 %v891_v62, %v12038_v2  ;;  %v908_v27 = vrot.slane %v677_v4, %v15017_v41  ;;  %v15248_v32 = vpop.f32.mrb[38].mxu1  ;;  %v3170_v2 = vld [vmem:[#allocation2 + $0x10] sm:$0xff] }
 0x128   :  { %v2926_v33 = vsel %vm2892_vm5, %v2517_v58, %v2925_v25  ;;  %v12041_v35 = vrot.slane %v900_v16, 9  ;;  %v1824_v36 = vmax.f32 %v899_v13, %v12039_v18  ;;  %v1825_v39 = vmax.f32 %v898_v19, %v12040_v11  ;;  %v15251_v46 = vpop.f32.mrb[39].mxu1  ;;  %v3171_v19 = vld [vmem:[#allocation2 + $0x20] sm:$0xff]  ;;  %v3074_v18 = vld [vmem:[#allocation2 + $0x11] sm:$0xff] }
 0x129   :  { %v1985_v48 = vadd.f32 %v15023_v44, %v1823_v14  ;;  %v2927_v50 = vsel %vm2894_vm6, %v2521_v24, %v2926_v33  ;;  %v915_v17 = vrot.slane %v901_v20, %v15017_v41  ;;  %v916_v42 = vcombine.high %v908_v27, %v908_v27 }
 0x12a   :  { %v1826_v53 = vmax.f32 %v900_v16, %v12041_v35  ;;  %v1986_v54 = vadd.f32 %v15046_v63, %v1824_v36  ;;  %v1987_v3 = vadd.f32 %v15031_v51, %v1825_v39  ;;  %v12042_v61 = vrot.slane %v908_v27, 9  ;;  %v3073_v16 = vld [vmem:[#allocation2 + $0x1] sm:$0xff] }
 0x12b   :  { %v2113_v62 = vmax.f32 %v1985_v48, 0.0  ;;  %v917_v4 = vcombine.high %v915_v17, %v915_v17  ;;  %v12043_v5 = vrot.slane %v916_v42, 9  ;;  %v12044_v6 = vrot.slane %v915_v17, 9 }
 0x12c   :  { %v1988_v7 = vadd.f32 %v15049_v0, %v1826_v53  ;;  %v2114_v9 = vmax.f32 %v1986_v54, 0.0  ;;  %v2115_v12 = vmax.f32 %v1987_v3, 0.0  ;;  %v1827_v22 = vmax.f32 %v908_v27, %v12042_v61 }
 0x12d   :  { %v2525_v13 = vrot.slane %v2113_v62, %v15041_v57  ;;  %v12045_v26 = vrot.slane %v917_v4, 9  ;;  %v1828_v59 = vmax.f32 %v916_v42, %v12043_v5  ;;  %v1829_v58 = vmax.f32 %v915_v17, %v12044_v6  ;;  %v15260_v11 = vpop.f32.mrb[40].mxu1 }
 0x12e   :  { %v2116_v20 = vmax.f32 %v1988_v7, 0.0  ;;  %v2529_v24 = vrot.slane %v2114_v9, %v15041_v57  ;;  %v2533_v25 = vrot.slane %v2115_v12, %v15041_v57  ;;  %v1989_v14 = vadd.f32 %v15020_v43, %v1827_v22  ;;  %v15265_v33 = vpop.f32.mrb[41].mxu1 }
 0x12f   :  { %v2928_v27 = vsel %vm2896_vm7, %v2525_v13, %v2927_v50  ;;  %v1830_v35 = vmax.f32 %v917_v4, %v12045_v26  ;;  %v1990_v36 = vadd.f32 %v15035_v55, %v1828_v59  ;;  %v1991_v39 = vadd.f32 %v15027_v47, %v1829_v58  ;;  %v15270_v48 = vpop.f32.mrb[42].mxu1 }
 0x130   :  { %v2537_v17 = vrot.slane %v2116_v20, %v15041_v57  ;;  %v2929_v42 = vsel %vm2898_vm8, %v2529_v24, %v2928_v27  ;;  %v2117_v53 = vmax.f32 %v1989_v14, 0.0  ;;  %v3186_v54 = vpack.c.bf16 %v3171_v19, %v3170_v2  ;;  %v15274_v3 = vpop.f32.mrb[43].mxu1 }
 0x131   :  { %v2930_v61 = vsel %vm2900_vm9, %v2533_v25, %v2929_v42  ;;  %v1992_v62 = vadd.f32 %v15038_v56, %v1830_v35  ;;  %v2118_v50 = vmax.f32 %v1990_v36, 0.0  ;;  %v2119_v4 = vmax.f32 %v1991_v39, 0.0 }
 0x132   :  { %v2931_v5 = vsel %vm2902_vm10, %v2537_v17, %v2930_v61  ;;  %v2541_v6 = vrot.slane %v2117_v53, %v15041_v57  ;;  %3202 = vrot.lane.b32.xlu0 %v3186_v54, %s14711_s28  ;;  %v678_v7 = vmax.f32 %v15143_v29, %v15140_v8  ;;  %v3089_v9 = vpack.c.bf16 %v3074_v18, %v3073_v16 }
 0x133   :  { %3029 = vst.msk [vmem:[#allocation2 + $0x51] sm:$0xff] %vm2205_vm1, %v2931_v5  ;;  %v2120_v12 = vmax.f32 %v1992_v62, 0.0  ;;  %v2545_v22 = vrot.slane %v2118_v50, %v15041_v57  ;;  %v2549_v19 = vrot.slane %v2119_v4, %v15041_v57  ;;  %v679_v13 = vmax.f32 %v15161_v34, %v15158_v45  ;;  %v13502_v50 = vld [vmem:[%s18842_s3 + $0x48] sm:$0xff]  }
 0x134   :  { %v918_v26 = vcombine.high %v678_v7, %v678_v7  ;;  %v925_v59 = vrot.slane %v678_v7, %v15017_v41  ;;  %v15291_v58 = vmax.f32 %v15168_v1, %v15164_v60  ;;  %v15295_v8 = vmax.f32 %v15187_v38, %v15184_v31  ;;  %v13503_v4 = vld [vmem:[%s18842_s3 + $0x8] sm:$0xff]   ;;  %13061 = vmatprep.subr.bf16.mxu1 %v13502_v50 }
 0x135   :  { %v2553_v29 = vrot.slane %v2120_v12, %v15041_v57  ;;  %v2932_v2 = vsel %vm2890_vm4, %v2545_v22, %v2541_v6  ;;  %v935_v16 = vcombine.high %v679_v13, %v679_v13  ;;  %v942_v18 = vrot.slane %v679_v13, %v15017_v41  ;;  %v15300_v20 = vpop.f32.mrb[44].mxu1  ;;  %13062 = vmatpush3.bf16.msra.mxu1 %v13503_v4 }
 0x136   :  { %v2933_v45 = vsel %vm2892_vm5, %v2549_v19, %v2932_v2  ;;  %v932_v34 = vrot.slane %v918_v26, %v15017_v41  ;;  %v933_v24 = vcombine.high %v925_v59, %v925_v59  ;;  %v12046_v60 = vrot.slane %v925_v59, 9  ;;  %3105 = vrot.lane.b32.xlu0 %v3089_v9, %s14711_s28  ;;  %v15305_v1 = vpop.f32.mrb[45].mxu1 }
 0x137   :  { %v2934_v31 = vsel %vm2894_vm6, %v2553_v29, %v2933_v45  ;;  %v949_v38 = vrot.slane %v935_v16, %v15017_v41  ;;  %v950_v25 = vcombine.high %v942_v18, %v942_v18  ;;  %v12050_v14 = vrot.slane %v942_v18, 9  ;;  %v15309_v27 = vpop.f32.mrb[46].mxu1 }
 0x138   :  { %v934_v35 = vcombine.high %v932_v34, %v932_v34  ;;  %v12047_v36 = vrot.slane %v933_v24, 9  ;;  %v12048_v39 = vrot.slane %v932_v34, 9  ;;  %v1831_v17 = vmax.f32 %v925_v59, %v12046_v60  ;;  %v15311_v42 = vpop.f32.mrb[47].mxu1 }
 0x139   :  { %v951_v53 = vcombine.high %v949_v38, %v949_v38  ;;  %v12051_v54 = vrot.slane %v950_v25, 9  ;;  %v12052_v61 = vrot.slane %v949_v38, 9  ;;  %v1835_v62 = vmax.f32 %v942_v18, %v12050_v14 }
 0x13a   :  { %v12049_v5 = vrot.slane %v934_v35, 9  ;;  %v1832_v6 = vmax.f32 %v933_v24, %v12047_v36  ;;  %v1833_v7 = vmax.f32 %v932_v34, %v12048_v39  ;;  %v1993_v9 = vadd.f32 %v15023_v44, %v1831_v17 }
 0x13b   :  { %v12053_v12 = vrot.slane %v951_v53, 9  ;;  %v1836_v22 = vmax.f32 %v950_v25, %v12051_v54  ;;  %v1837_v19 = vmax.f32 %v949_v38, %v12052_v61  ;;  %v1997_v13 = vadd.f32 %v15020_v43, %v1835_v62 }
 0x13c   :  { %v1834_v26 = vmax.f32 %v934_v35, %v12049_v5  ;;  %v1994_v59 = vadd.f32 %v15046_v63, %v1832_v6  ;;  %v1995_v29 = vadd.f32 %v15031_v51, %v1833_v7  ;;  %v2121_v2 = vmax.f32 %v1993_v9, 0.0 }
 0x13d   :  { %v1838_v16 = vmax.f32 %v951_v53, %v12053_v12  ;;  %v1998_v18 = vadd.f32 %v15035_v55, %v1836_v22  ;;  %v1999_v45 = vadd.f32 %v15027_v47, %v1837_v19  ;;  %v2125_v34 = vmax.f32 %v1997_v13, 0.0  ;;  %v15325_v24 = vpop.f32.mrb[48].mxu1 }
 0x13e   :  { %v1996_v60 = vadd.f32 %v15049_v0, %v1834_v26  ;;  %v2122_v38 = vmax.f32 %v1994_v59, 0.0  ;;  %v2123_v25 = vmax.f32 %v1995_v29, 0.0  ;;  %v2557_v14 = vrot.slane %v2121_v2, %v15041_v57  ;;  %v15329_v35 = vpop.f32.mrb[49].mxu1 }
 0x13f   :  { %v2000_v36 = vadd.f32 %v15038_v56, %v1838_v16  ;;  %v2126_v39 = vmax.f32 %v1998_v18, 0.0  ;;  %v2127_v17 = vmax.f32 %v1999_v45, 0.0  ;;  %v2573_v53 = vrot.slane %v2125_v34, %v15041_v57  ;;  %v15333_v54 = vpop.f32.mrb[50].mxu1  ;;  %v3173_v16 = vld [vmem:[#allocation2 + $0x40] sm:$0xff] }
 0x140   :  { %v2124_v61 = vmax.f32 %v1996_v60, 0.0  ;;  %v2561_v62 = vrot.slane %v2122_v38, %v15041_v57  ;;  %v2565_v50 = vrot.slane %v2123_v25, %v15041_v57  ;;  %v2935_v4 = vsel %vm2896_vm7, %v2557_v14, %v2934_v31  ;;  %v15338_v5 = vpop.f32.mrb[51].mxu1  ;;  %v3172_v38 = vld [vmem:[#allocation2 + $0x30] sm:$0xff] }
 0x141   :  { %v2128_v6 = vmax.f32 %v2000_v36, 0.0  ;;  %v2577_v7 = vrot.slane %v2126_v39, %v15041_v57  ;;  %v2581_v9 = vrot.slane %v2127_v17, %v15041_v57  ;;  %v952_v12 = vcombine.high %v15291_v58, %v15291_v58 }
 0x142   :  { %v2569_v22 = vrot.slane %v2124_v61, %v15041_v57  ;;  %v2936_v19 = vsel %vm2898_vm8, %v2561_v62, %v2935_v4  ;;  %v959_v13 = vrot.slane %v15291_v58, %v15017_v41  ;;  %v969_v31 = vcombine.high %v15295_v8, %v15295_v8 }
 0x143   :  { %v2937_v26 = vsel %vm2900_vm9, %v2565_v50, %v2936_v19  ;;  %v2585_v59 = vrot.slane %v2128_v6, %v15041_v57  ;;  %v2939_v29 = vsel %vm2890_vm4, %v2577_v7, %v2573_v53  ;;  %v966_v2 = vrot.slane %v952_v12, %v15017_v41 }
 0x144   :  { %v2938_v18 = vsel %vm2902_vm10, %v2569_v22, %v2937_v26  ;;  %v2940_v45 = vsel %vm2892_vm5, %v2581_v9, %v2939_v29  ;;  %v967_v34 = vcombine.high %v959_v13, %v959_v13  ;;  %v12054_v60 = vrot.slane %v959_v13, 9 }
 0x145   :  { %3030 = vst.msk [vmem:[#allocation2 + $0x61] sm:$0xff] %vm2205_vm1, %v2938_v18  ;;  %v968_v58 = vcombine.high %v966_v2, %v966_v2  ;;  %v12056_v25 = vrot.slane %v966_v2, 9  ;;  %v2941_v14 = vsel %vm2894_vm6, %v2585_v59, %v2940_v45  ;;  %v976_v36 = vrot.slane %v15295_v8, %v15017_v41  ;;  %v15360_v39 = vpop.f32.mrb[52].mxu1 }
 0x146   :  { %v12055_v17 = vrot.slane %v967_v34, 9  ;;  %v1839_v53 = vmax.f32 %v959_v13, %v12054_v60  ;;  %v983_v61 = vrot.slane %v969_v31, %v15017_v41  ;;  %v3187_v62 = vpack.c.bf16 %v3173_v16, %v3172_v38  ;;  %v15363_v50 = vpop.f32.mrb[53].mxu1 }
 0x147   :  { %v12057_v4 = vrot.slane %v968_v58, 9  ;;  %v1841_v6 = vmax.f32 %v966_v2, %v12056_v25  ;;  %v984_v7 = vcombine.high %v976_v36, %v976_v36  ;;  %v12058_v9 = vrot.slane %v976_v36, 9  ;;  %v15365_v12 = vpop.f32.mrb[54].mxu1 }
 0x148   :  { %v1840_v22 = vmax.f32 %v967_v34, %v12055_v17  ;;  %v2001_v19 = vadd.f32 %v15023_v44, %v1839_v53  ;;  %v985_v26 = vcombine.high %v983_v61, %v983_v61  ;;  %v12060_v8 = vrot.slane %v983_v61, 9  ;;  %3204 = vrot.lane.b32.xlu1 %v3187_v62, %s14711_s28  ;;  %v15369_v59 = vpop.f32.mrb[55].mxu1 }
 0x149   :  { %v1842_v13 = vmax.f32 %v968_v58, %v12057_v4  ;;  %v2003_v31 = vadd.f32 %v15031_v51, %v1841_v6  ;;  %v12059_v29 = vrot.slane %v984_v7, 9  ;;  %v1843_v16 = vmax.f32 %v976_v36, %v12058_v9 }
 0x14a   :  { %v2002_v2 = vadd.f32 %v15046_v63, %v1840_v22  ;;  %v2129_v18 = vmax.f32 %v2001_v19, 0.0  ;;  %v12061_v45 = vrot.slane %v985_v26, 9  ;;  %v1845_v60 = vmax.f32 %v983_v61, %v12060_v8  ;;  %v3075_v22 = vld [vmem:[#allocation2 + $0x21] sm:$0xff]  ;;  %v3076_v61 = vld [vmem:[#allocation2 + $0x31] sm:$0xff] }
 0x14b   :  { %v2004_v34 = vadd.f32 %v15049_v0, %v1842_v13  ;;  %v2131_v38 = vmax.f32 %v2003_v31, 0.0  ;;  %v1844_v25 = vmax.f32 %v984_v7, %v12059_v29  ;;  %v2005_v17 = vadd.f32 %v15020_v43, %v1843_v16  ;;  %v3078_v19 = vld [vmem:[#allocation2 + $0x51] sm:$0xff] }
 0x14c   :  { %v2130_v53 = vmax.f32 %v2002_v2, 0.0  ;;  %v2589_v62 = vrot.slane %v2129_v18, %v15041_v57  ;;  %v1846_v37 = vmax.f32 %v985_v26, %v12061_v45  ;;  %v2007_v58 = vadd.f32 %v15027_v47, %v1845_v60 }
 0x14d   :  { %v2132_v4 = vmax.f32 %v2004_v34, 0.0  ;;  %v2597_v36 = vrot.slane %v2131_v38, %v15041_v57  ;;  %v2006_v6 = vadd.f32 %v15035_v55, %v1844_v25  ;;  %v2133_v9 = vmax.f32 %v2005_v17, 0.0  ;;  %v15379_v8 = vpop.f32.mrb[56].mxu1 }
 0x14e   :  { %v2593_v7 = vrot.slane %v2130_v53, %v15041_v57  ;;  %v2942_v13 = vsel %vm2896_vm7, %v2589_v62, %v2941_v14  ;;  %v2008_v31 = vadd.f32 %v15038_v56, %v1846_v37  ;;  %v2135_v26 = vmax.f32 %v2007_v58, 0.0  ;;  %v15384_v29 = vpop.f32.mrb[57].mxu1 }
 0x14f   :  { %v2601_v16 = vrot.slane %v2132_v4, %v15041_v57  ;;  %v2134_v2 = vmax.f32 %v2006_v6, 0.0  ;;  %v2605_v18 = vrot.slane %v2133_v9, %v15041_v57  ;;  %v682_v45 = vmax.f32 %v15194_v52, %v15192_v49  ;;  %v15390_v60 = vpop.f32.mrb[58].mxu1  ;;  %v3077_v4 = vld [vmem:[#allocation2 + $0x41] sm:$0xff] }
 0x150   :  { %v2943_v34 = vsel %vm2898_vm8, %v2593_v7, %v2942_v13  ;;  %v2136_v38 = vmax.f32 %v2008_v31, 0.0  ;;  %v2613_v14 = vrot.slane %v2135_v26, %v15041_v57  ;;  %v3090_v25 = vpack.c.bf16 %v3076_v61, %v3075_v22  ;;  %v15394_v37 = vpop.f32.mrb[59].mxu1 }
 0x151   :  { %v2944_v17 = vsel %vm2900_vm9, %v2597_v36, %v2943_v34  ;;  %v2609_v53 = vrot.slane %v2134_v2, %v15041_v57  ;;  %v986_v62 = vcombine.high %v682_v45, %v682_v45  ;;  %v993_v58 = vrot.slane %v682_v45, %v15017_v41 }
 0x152   :  { %v2945_v49 = vsel %vm2902_vm10, %v2601_v16, %v2944_v17  ;;  %v2617_v52 = vrot.slane %v2136_v38, %v15041_v57  ;;  %3107 = vrot.lane.b32.xlu1 %v3090_v25, %s14711_s28  ;;  %v683_v6 = vmax.f32 %v15216_v30, %v15213_v23  ;;  %v3091_v9 = vpack.c.bf16 %v3078_v19, %v3077_v4 }
 0x153   :  { %3031 = vst.msk [vmem:[#allocation2 + $0x71] sm:$0xff] %vm2205_vm1, %v2945_v49  ;;  %v2946_v36 = vsel %vm2890_vm4, %v2609_v53, %v2605_v18  ;;  %v1000_v22 = vrot.slane %v986_v62, %v15017_v41  ;;  %v1001_v61 = vcombine.high %v993_v58, %v993_v58  ;;  %v12062_v7 = vrot.slane %v993_v58, 9 }
 0x154   :  { %v2947_v13 = vsel %vm2892_vm5, %v2613_v14, %v2946_v36  ;;  %v1003_v31 = vcombine.high %v683_v6, %v683_v6  ;;  %v1010_v26 = vrot.slane %v683_v6, %v15017_v41  ;;  %v15411_v16 = vmax.f32 %v15225_v10, %v15219_v28  ;;  %v13504_v36 = vld [vmem:[%s18842_s3 + $0x50] sm:$0xff]  }
 0x155   :  { %v1002_v2 = vcombine.high %v1000_v22, %v1000_v22  ;;  %v12063_v23 = vrot.slane %v1001_v61, 9  ;;  %v12064_v30 = vrot.slane %v1000_v22, 9  ;;  %v1847_v19 = vmax.f32 %v993_v58, %v12062_v7  ;;  %v15413_v45 = vpop.f32.mrb[60].mxu1  ;;  %13063 = vmatprep.subr.bf16.mxu1 %v13504_v36 }
 0x156   :  { %v2948_v18 = vsel %vm2894_vm6, %v2617_v52, %v2947_v13  ;;  %v1017_v34 = vrot.slane %v1003_v31, %v15017_v41  ;;  %v1018_v38 = vcombine.high %v1010_v26, %v1010_v26  ;;  %v12066_v25 = vrot.slane %v1010_v26, 9  ;;  %3109 = vrot.lane.b32.xlu1 %v3091_v9, %s14711_s28  ;;  %v15418_v14 = vpop.f32.mrb[61].mxu1  ;;  %v13505_v9 = vld [vmem:[%s18842_s3 + $0x10] sm:$0xff]  }
 0x157   :  { %v12065_v17 = vrot.slane %v1002_v2, 9  ;;  %v1848_v53 = vmax.f32 %v1001_v61, %v12063_v23  ;;  %v1849_v28 = vmax.f32 %v1000_v22, %v12064_v30  ;;  %v2009_v10 = vadd.f32 %v15023_v44, %v1847_v19  ;;  %v15421_v62 = vpop.f32.mrb[62].mxu1  ;;  %v13506_v22 = vld [vmem:[%s18842_s3 + $0x58] sm:$0xff]   ;;  %13064 = vmatpush3.bf16.msra.mxu1 %v13505_v9 }
 0x158   :  { %18855 = vst [vmem:[#allocation10_spill] sm:$0xff] %v15421_v62  ;;  %v1019_v58 = vcombine.high %v1017_v34, %v1017_v34  ;;  %v12067_v4 = vrot.slane %v1018_v38, 9  ;;  %v12068_v49 = vrot.slane %v1017_v34, 9  ;;  %v1851_v6 = vmax.f32 %v1010_v26, %v12066_v25  ;;  %v15423_v52 = vpop.f32.mrb[63].mxu1  ;;  %13065 = vmatprep.subr.bf16.mxu1 %v13506_v22 }
 0x159   :  { %18856 = vst [vmem:[#allocation11_spill] sm:$0xff] %v15423_v52  ;;  %v1850_v61 = vmax.f32 %v1002_v2, %v12065_v17  ;;  %v2010_v7 = vadd.f32 %v15046_v63, %v1848_v53  ;;  %v2011_v13 = vadd.f32 %v15031_v51, %v1849_v28  ;;  %v2137_v31 = vmax.f32 %v2009_v10, 0.0  ;;  %v13507_v2 = vld [vmem:[%s18842_s3 + $0x18] sm:$0xff]   ;;  %v13508_v28 = vld [vmem:[%s18842_s3 + $0x60] sm:$0xff]  }
 0x15a   :  { %v12069_v26 = vrot.slane %v1019_v58, 9  ;;  %v1852_v23 = vmax.f32 %v1018_v38, %v12067_v4  ;;  %v1853_v30 = vmax.f32 %v1017_v34, %v12068_v49  ;;  %v2013_v19 = vadd.f32 %v15020_v43, %v1851_v6 }
 0x15b   :  { %v2012_v25 = vadd.f32 %v15049_v0, %v1850_v61  ;;  %v2138_v40 = vmax.f32 %v2010_v7, 0.0  ;;  %v2139_v52 = vmax.f32 %v2011_v13, 0.0  ;;  %v2621_v62 = vrot.slane %v2137_v31, %v15041_v57 }
 0x15c   :  { %v1854_v17 = vmax.f32 %v1019_v58, %v12069_v26  ;;  %v2014_v53 = vadd.f32 %v15035_v55, %v1852_v23  ;;  %v2015_v38 = vadd.f32 %v15027_v47, %v1853_v30  ;;  %v2141_v34 = vmax.f32 %v2013_v19, 0.0 }
 0x15d   :  { %16 = vsyncpa [#allocation7], 0  ;;  %v2140_v10 = vmax.f32 %v2012_v25, 0.0  ;;  %v2625_v4 = vrot.slane %v2138_v40, %v15041_v57  ;;  %v2629_v49 = vrot.slane %v2139_v52, %v15041_v57  ;;  %v2949_v6 = vsel %vm2896_vm7, %v2621_v62, %v2948_v18  ;;  %v3175_v31 = vld [vmem:[#allocation2 + $0x60] sm:$0xff]  ;;  %13066 = vmatpush3.bf16.msra.mxu1 %v13507_v2  ;;  %s14715_s17 = smov [#allocation6]  }
 0x15e   :  { %v2016_v58 = vadd.f32 %v15038_v56, %v1854_v17  ;;  %v2142_v36 = vmax.f32 %v2014_v53, 0.0  ;;  %v2143_v9 = vmax.f32 %v2015_v38, 0.0  ;;  %v2637_v61 = vrot.slane %v2141_v34, %v15041_v57  ;;  %v13509_v18 = vld [vmem:[%s18842_s3 + $0x20] sm:$0xff]   ;;  %13067 = vmatprep.subr.bf16.mxu1 %v13508_v28  ;;  %v3174_v17 = vld [vmem:[#allocation2 + $0x50] sm:$0xff]  ;;  %v13510_v28 = vld [vmem:[%s18842_s3 + $0x68] sm:$0xff]  }
 0x15f   :  { %v2633_v22 = vrot.slane %v2140_v10, %v15041_v57  ;;  %v2950_v7 = vsel %vm2898_vm8, %v2625_v4, %v2949_v6  ;;  %v1020_v13 = vcombine.high %v15411_v16, %v15411_v16  ;;  %v1027_v40 = vrot.slane %v15411_v16, %v15017_v41 }
 0x160   :  { %v2951_v62 = vsel %vm2900_vm9, %v2629_v49, %v2950_v7  ;;  %v2144_v52 = vmax.f32 %v2016_v58, 0.0  ;;  %v2641_v26 = vrot.slane %v2142_v36, %v15041_v57  ;;  %v2645_v23 = vrot.slane %v2143_v9, %v15041_v57  ;;  %v13511_v58 = vld [vmem:[%s18842_s3 + $0x28] sm:$0xff]  }
 0x161   :  { %v2952_v30 = vsel %vm2902_vm10, %v2633_v22, %v2951_v62  ;;  %v1034_v19 = vrot.slane %v1020_v13, %v15017_v41  ;;  %v1035_v25 = vcombine.high %v1027_v40, %v1027_v40  ;;  %v12070_v16 = vrot.slane %v1027_v40, 9  ;;  %13068 = vmatpush3.bf16.msra.mxu1 %v13509_v18 }
 0x162   :  { %3032 = vst.msk [vmem:[#allocation2 + $0x81] sm:$0xff] %vm2205_vm1, %v2952_v30  ;;  %v2649_v2 = vrot.slane %v2144_v52, %v15041_v57  ;;  %v2953_v53 = vsel %vm2890_vm4, %v2641_v26, %v2637_v61  ;;  %v685_v38 = vmax.f32 %v15243_v21, %v15241_v15  ;;  %v3188_v34 = vpack.c.bf16 %v3175_v31, %v3174_v17  ;;  %v13512_v52 = vld [vmem:[%s18842_s3 + $0x70] sm:$0xff]  }
 0x163   :  { %v2954_v10 = vsel %vm2892_vm5, %v2645_v23, %v2953_v53  ;;  %v1036_v4 = vcombine.high %v1034_v19, %v1034_v19  ;;  %v12071_v49 = vrot.slane %v1035_v25, 9  ;;  %v12072_v6 = vrot.slane %v1034_v19, 9  ;;  %13069 = vmatprep.subr.bf16.mxu1 %v13510_v28 }
 0x164   :  { %v1855_v36 = vmax.f32 %v1027_v40, %v12070_v16  ;;  %v2955_v9 = vsel %vm2894_vm6, %v2649_v2, %v2954_v10  ;;  %v1037_v61 = vcombine.high %v685_v38, %v685_v38  ;;  %v1044_v15 = vrot.slane %v685_v38, %v15017_v41  ;;  %3206 = vrot.lane.b32.xlu0 %v3188_v34, %s14711_s28 }
 0x165   :  { %v12073_v21 = vrot.slane %v1036_v4, 9  ;;  %v1856_v22 = vmax.f32 %v1035_v25, %v12071_v49  ;;  %v1857_v7 = vmax.f32 %v1034_v19, %v12072_v6  ;;  %v686_v13 = vmax.f32 %v15251_v46, %v15248_v32  ;;  %13070 = vmatpush3.bf16.msra.mxu1 %v13511_v58  ;;  %v13513_v32 = vld [vmem:[%s18842_s3 + $0x30] sm:$0xff]   ;;  %v13514_v6 = vld [vmem:[%s18842_s3 + $0x78] sm:$0xff]  }
 0x166   :  { %v2017_v31 = vadd.f32 %v15023_v44, %v1855_v36  ;;  %v1051_v18 = vrot.slane %v1037_v61, %v15017_v41  ;;  %v1052_v62 = vcombine.high %v1044_v15, %v1044_v15  ;;  %v12074_v40 = vrot.slane %v1044_v15, 9  ;;  %13071 = vmatprep.subr.bf16.mxu1 %v13512_v52 }
 0x167   :  { %v1858_v26 = vmax.f32 %v1036_v4, %v12073_v21  ;;  %v2018_v23 = vadd.f32 %v15046_v63, %v1856_v22  ;;  %v2019_v30 = vadd.f32 %v15031_v51, %v1857_v7  ;;  %v1054_v19 = vcombine.high %v686_v13, %v686_v13 }
 0x168   :  { %v2145_v46 = vmax.f32 %v2017_v31, 0.0  ;;  %v1053_v25 = vcombine.high %v1051_v18, %v1051_v18  ;;  %v12075_v16 = vrot.slane %v1052_v62, 9  ;;  %v12076_v17 = vrot.slane %v1051_v18, 9 }
 0x169   :  { %v2020_v2 = vadd.f32 %v15049_v0, %v1858_v26  ;;  %v2146_v53 = vmax.f32 %v2018_v23, 0.0  ;;  %v2147_v38 = vmax.f32 %v2019_v30, 0.0  ;;  %v1859_v34 = vmax.f32 %v1044_v15, %v12074_v40  ;;  %13072 = vmatpush3.bf16.msra.mxu1 %v13513_v32  ;;  %v13515_v15 = vld [vmem:[%s18842_s3 + $0x38] sm:$0xff]  }
 0x16a   :  { %v2653_v28 = vrot.slane %v2145_v46, %v15041_v57  ;;  %v12077_v10 = vrot.slane %v1053_v25, 9  ;;  %v1860_v4 = vmax.f32 %v1052_v62, %v12075_v16  ;;  %v1861_v49 = vmax.f32 %v1051_v18, %v12076_v17  ;;  %13073 = vmatprep.subr.bf16.mxu1 %v13514_v6  ;;  %v3079_v6 = vld [vmem:[#allocation2 + $0x61] sm:$0xff] }
 0x16b   :  { %v2148_v58 = vmax.f32 %v2020_v2, 0.0  ;;  %v2657_v36 = vrot.slane %v2146_v53, %v15041_v57  ;;  %v2661_v61 = vrot.slane %v2147_v38, %v15041_v57  ;;  %v2021_v21 = vadd.f32 %v15020_v43, %v1859_v34  ;;  %v3080_v2 = vld [vmem:[#allocation2 + $0x71] sm:$0xff] }
 0x16c   :  { %v2956_v22 = vsel %vm2896_vm7, %v2653_v28, %v2955_v9  ;;  %v1862_v7 = vmax.f32 %v1053_v25, %v12077_v10  ;;  %v2022_v31 = vadd.f32 %v15035_v55, %v1860_v4  ;;  %v2023_v18 = vadd.f32 %v15027_v47, %v1861_v49 }
 0x16d   :  { %v2665_v62 = vrot.slane %v2148_v58, %v15041_v57  ;;  %v2957_v40 = vsel %vm2898_vm8, %v2657_v36, %v2956_v22  ;;  %v2149_v52 = vmax.f32 %v2021_v21, 0.0  ;;  %v1061_v26 = vrot.slane %v686_v13, %v15017_v41  ;;  %13074 = vmatpush3.bf16.msra.mxu1 %v13515_v15 }
 0x16e   :  { %v2958_v23 = vsel %vm2900_vm9, %v2661_v61, %v2957_v40  ;;  %v2024_v30 = vadd.f32 %v15038_v56, %v1862_v7  ;;  %v2150_v32 = vmax.f32 %v2022_v31, 0.0  ;;  %v2151_v46 = vmax.f32 %v2023_v18, 0.0 }
 0x16f   :  { %v2959_v9 = vsel %vm2902_vm10, %v2665_v62, %v2958_v23  ;;  %v2669_v25 = vrot.slane %v2149_v52, %v15041_v57  ;;  %v1068_v16 = vrot.slane %v1054_v19, %v15017_v41  ;;  %v1069_v17 = vcombine.high %v1061_v26, %v1061_v26 }
 0x170   :  { %3033 = vst.msk [vmem:[#allocation2 + $0xb1] sm:$0xff] %vm2205_vm1, %v2959_v9  ;;  %v2152_v53 = vmax.f32 %v2024_v30, 0.0  ;;  %v2673_v13 = vrot.slane %v2150_v32, %v15041_v57  ;;  %v2677_v38 = vrot.slane %v2151_v46, %v15041_v57  ;;  %v12078_v34 = vrot.slane %v1061_v26, 9 }
 0x171   :  { %v1070_v28 = vcombine.high %v1068_v16, %v1068_v16  ;;  %v12079_v10 = vrot.slane %v1069_v17, 9  ;;  %v12080_v4 = vrot.slane %v1068_v16, 9  ;;  %v687_v49 = vmax.f32 %v15265_v33, %v15260_v11 }
 0x172   :  { %v2681_v19 = vrot.slane %v2152_v53, %v15041_v57  ;;  %v2960_v58 = vsel %vm2890_vm4, %v2673_v13, %v2669_v25  ;;  %v1863_v36 = vmax.f32 %v1061_v26, %v12078_v34  ;;  %v15522_v61 = vpack.c.bf16 %v3080_v2, %v3079_v6 }
 0x173   :  { %v2961_v21 = vsel %vm2892_vm5, %v2677_v38, %v2960_v58  ;;  %v12081_v15 = vrot.slane %v1070_v28, 9  ;;  %v1864_v22 = vmax.f32 %v1069_v17, %v12079_v10  ;;  %v1865_v7 = vmax.f32 %v1068_v16, %v12080_v4 }
 0x174   :  { %v2025_v31 = vadd.f32 %v15023_v44, %v1863_v36  ;;  %v2962_v18 = vsel %vm2894_vm6, %v2681_v19, %v2961_v21  ;;  %v1071_v62 = vcombine.high %v687_v49, %v687_v49  ;;  %v1078_v11 = vrot.slane %v687_v49, %v15017_v41  ;;  %3111 = vrot.lane.b32.xlu1 %v15522_v61, %s14711_s28 }
 0x175   :  { %v1866_v33 = vmax.f32 %v1070_v28, %v12081_v15  ;;  %v2026_v40 = vadd.f32 %v15046_v63, %v1864_v22  ;;  %v2027_v52 = vadd.f32 %v15031_v51, %v1865_v7  ;;  %v688_v26 = vmax.f32 %v15274_v3, %v15270_v48 }
 0x176   :  { %v2153_v23 = vmax.f32 %v2025_v31, 0.0  ;;  %v1085_v30 = vrot.slane %v1071_v62, %v15017_v41  ;;  %v1086_v32 = vcombine.high %v1078_v11, %v1078_v11  ;;  %v12082_v46 = vrot.slane %v1078_v11, 9 }
 0x177   :  { %v2028_v9 = vadd.f32 %v15049_v0, %v1866_v33  ;;  %v2154_v25 = vmax.f32 %v2026_v40, 0.0  ;;  %v2155_v16 = vmax.f32 %v2027_v52, 0.0  ;;  %v1088_v17 = vcombine.high %v688_v26, %v688_v26 }
 0x178   :  { %v2685_v2 = vrot.slane %v2153_v23, %v15041_v57  ;;  %v1087_v53 = vcombine.high %v1085_v30, %v1085_v30  ;;  %v12083_v13 = vrot.slane %v1086_v32, 9  ;;  %v12084_v38 = vrot.slane %v1085_v30, 9 }
 0x179   :  { %v2156_v34 = vmax.f32 %v2028_v9, 0.0  ;;  %v2689_v28 = vrot.slane %v2154_v25, %v15041_v57  ;;  %v2693_v48 = vrot.slane %v2155_v16, %v15041_v57  ;;  %v1867_v3 = vmax.f32 %v1078_v11, %v12082_v46  ;;  %v3177_v25 = vld [vmem:[#allocation2 + $0x80] sm:$0xff] }
 0x17a   :  { %v2963_v10 = vsel %vm2896_vm7, %v2685_v2, %v2962_v18  ;;  %v12085_v4 = vrot.slane %v1087_v53, 9  ;;  %v1868_v49 = vmax.f32 %v1086_v32, %v12083_v13  ;;  %v1869_v6 = vmax.f32 %v1085_v30, %v12084_v38 }
 0x17b   :  { %v2697_v19 = vrot.slane %v2156_v34, %v15041_v57  ;;  %v2964_v58 = vsel %vm2898_vm8, %v2689_v28, %v2963_v10  ;;  %v2029_v36 = vadd.f32 %v15020_v43, %v1867_v3  ;;  %v1095_v21 = vrot.slane %v688_v26, %v15017_v41 }
 0x17c   :  { %v2965_v15 = vsel %vm2900_vm9, %v2693_v48, %v2964_v58  ;;  %v1870_v22 = vmax.f32 %v1087_v53, %v12085_v4  ;;  %v2030_v7 = vadd.f32 %v15035_v55, %v1868_v49  ;;  %v2031_v31 = vadd.f32 %v15027_v47, %v1869_v6  ;;  %v15556_v48 = vld [vmem:[#allocation2 + $0x70] sm:$0xff] }
 0x17d   :  { %v2966_v18 = vsel %vm2902_vm10, %v2697_v19, %v2965_v15  ;;  %v2157_v62 = vmax.f32 %v2029_v36, 0.0  ;;  %v1102_v11 = vrot.slane %v1088_v17, %v15017_v41  ;;  %v1103_v33 = vcombine.high %v1095_v21, %v1095_v21 }
 0x17e   :  { %3034 = vst.msk [vmem:[#allocation2 + $0xc1] sm:$0xff] %vm2205_vm1, %v2966_v18  ;;  %v2032_v40 = vadd.f32 %v15038_v56, %v1870_v22  ;;  %v2158_v52 = vmax.f32 %v2030_v7, 0.0  ;;  %v2159_v23 = vmax.f32 %v2031_v31, 0.0  ;;  %v12086_v26 = vrot.slane %v1095_v21, 9 }
 0x17f   :  { %v2701_v30 = vrot.slane %v2157_v62, %v15041_v57  ;;  %v1104_v32 = vcombine.high %v1102_v11, %v1102_v11  ;;  %v12087_v46 = vrot.slane %v1103_v33, 9  ;;  %v12088_v9 = vrot.slane %v1102_v11, 9 }
 0x180   :  { %v2160_v16 = vmax.f32 %v2032_v40, 0.0  ;;  %v2705_v2 = vrot.slane %v2158_v52, %v15041_v57  ;;  %v2709_v53 = vrot.slane %v2159_v23, %v15041_v57  ;;  %v1871_v17 = vmax.f32 %v1095_v21, %v12086_v26 }
 0x181   :  { %v12089_v13 = vrot.slane %v1104_v32, 9  ;;  %v1872_v38 = vmax.f32 %v1103_v33, %v12087_v46  ;;  %v1873_v34 = vmax.f32 %v1102_v11, %v12088_v9  ;;  %v689_v28 = vmax.f32 %v15305_v1, %v15300_v20 }
 0x182   :  { %v2713_v3 = vrot.slane %v2160_v16, %v15041_v57  ;;  %v2967_v10 = vsel %vm2890_vm4, %v2705_v2, %v2701_v30  ;;  %v2033_v4 = vadd.f32 %v15023_v44, %v1871_v17  ;;  %v3189_v49 = vpack.c.bf16 %v3177_v25, %v15556_v48 }
 0x183   :  { %v2968_v6 = vsel %vm2892_vm5, %v2709_v53, %v2967_v10  ;;  %v1874_v19 = vmax.f32 %v1104_v32, %v12089_v13  ;;  %v2034_v58 = vadd.f32 %v15046_v63, %v1872_v38  ;;  %v2035_v36 = vadd.f32 %v15031_v51, %v1873_v34 }
 0x184   :  { %v2161_v21 = vmax.f32 %v2033_v4, 0.0  ;;  %v2969_v20 = vsel %vm2894_vm6, %v2713_v3, %v2968_v6  ;;  %v1105_v1 = vcombine.high %v689_v28, %v689_v28  ;;  %v1112_v15 = vrot.slane %v689_v28, %v15017_v41  ;;  %3208 = vrot.lane.b32.xlu0 %v3189_v49, %s14711_s28 }
 0x185   :  { %v2036_v22 = vadd.f32 %v15049_v0, %v1874_v19  ;;  %v2162_v7 = vmax.f32 %v2034_v58, 0.0  ;;  %v2163_v31 = vmax.f32 %v2035_v36, 0.0  ;;  %v690_v18 = vmax.f32 %v15311_v42, %v15309_v27 }
 0x186   :  { %v2717_v62 = vrot.slane %v2161_v21, %v15041_v57  ;;  %v1119_v11 = vrot.slane %v1105_v1, %v15017_v41  ;;  %v1120_v33 = vcombine.high %v1112_v15, %v1112_v15  ;;  %v12090_v40 = vrot.slane %v1112_v15, 9 }
 0x187   :  { %v2164_v52 = vmax.f32 %v2036_v22, 0.0  ;;  %v2721_v23 = vrot.slane %v2162_v7, %v15041_v57  ;;  %v2725_v26 = vrot.slane %v2163_v31, %v15041_v57  ;;  %v1122_v30 = vcombine.high %v690_v18, %v690_v18 }
 0x188   :  { %v2970_v32 = vsel %vm2896_vm7, %v2717_v62, %v2969_v20  ;;  %v1121_v46 = vcombine.high %v1119_v11, %v1119_v11  ;;  %v12091_v9 = vrot.slane %v1120_v33, 9  ;;  %v12092_v25 = vrot.slane %v1119_v11, 9 }
 0x189   :  { %v2729_v16 = vrot.slane %v2164_v52, %v15041_v57  ;;  %v2971_v27 = vsel %vm2898_vm8, %v2721_v23, %v2970_v32  ;;  %v1875_v42 = vmax.f32 %v1112_v15, %v12090_v40  ;;  %v1129_v2 = vrot.slane %v690_v18, %v15017_v41  ;;  %v3082_v40 = vld [vmem:[#allocation2 + $0xb1] sm:$0xff] }
 0x18a   :  { %v2972_v53 = vsel %vm2900_vm9, %v2725_v26, %v2971_v27  ;;  %v12093_v17 = vrot.slane %v1121_v46, 9  ;;  %v1876_v13 = vmax.f32 %v1120_v33, %v12091_v9  ;;  %v1877_v38 = vmax.f32 %v1119_v11, %v12092_v25  ;;  %v3081_v33 = vld [vmem:[#allocation2 + $0xa1] sm:$0xff] }
 0x18b   :  { %v2973_v34 = vsel %vm2902_vm10, %v2729_v16, %v2972_v53  ;;  %v2037_v28 = vadd.f32 %v15020_v43, %v1875_v42  ;;  %v1136_v3 = vrot.slane %v1122_v30, %v15017_v41  ;;  %v1137_v10 = vcombine.high %v1129_v2, %v1129_v2 }
 0x18c   :  { %3035 = vst.msk [vmem:[#allocation2 + $0xd1] sm:$0xff] %vm2205_vm1, %v2973_v34  ;;  %v1878_v4 = vmax.f32 %v1121_v46, %v12093_v17  ;;  %v2038_v49 = vadd.f32 %v15035_v55, %v1876_v13  ;;  %v2039_v6 = vadd.f32 %v15027_v47, %v1877_v38  ;;  %v12094_v19 = vrot.slane %v1129_v2, 9 }
 0x18d   :  { %v2165_v58 = vmax.f32 %v2037_v28, 0.0  ;;  %v1138_v36 = vcombine.high %v1136_v3, %v1136_v3  ;;  %v12095_v21 = vrot.slane %v1137_v10, 9  ;;  %v12096_v20 = vrot.slane %v1136_v3, 9 }
 0x18e   :  { %v2040_v1 = vadd.f32 %v15038_v56, %v1878_v4  ;;  %v2166_v15 = vmax.f32 %v2038_v49, 0.0  ;;  %v2167_v22 = vmax.f32 %v2039_v6, 0.0  ;;  %v1879_v7 = vmax.f32 %v1129_v2, %v12094_v19 }
 0x18f   :  { %v2733_v31 = vrot.slane %v2165_v58, %v15041_v57  ;;  %v12097_v18 = vrot.slane %v1138_v36, 9  ;;  %v1880_v62 = vmax.f32 %v1137_v10, %v12095_v21  ;;  %v1881_v11 = vmax.f32 %v1136_v3, %v12096_v20 }
 0x190   :  { %v2168_v52 = vmax.f32 %v2040_v1, 0.0  ;;  %v2737_v23 = vrot.slane %v2166_v15, %v15041_v57  ;;  %v2741_v26 = vrot.slane %v2167_v22, %v15041_v57  ;;  %v2041_v30 = vadd.f32 %v15023_v44, %v1879_v7  ;;  %v13516_v22 = vld [vmem:[%s18842_s3 + $0xc0] sm:$0xff]  }
 0x191   :  { %v1882_v32 = vmax.f32 %v1138_v36, %v12097_v18  ;;  %v2042_v46 = vadd.f32 %v15046_v63, %v1880_v62  ;;  %v2043_v9 = vadd.f32 %v15031_v51, %v1881_v11  ;;  %v691_v25 = vmax.f32 %v15329_v35, %v15325_v24  ;;  %13123 = vmatprep.subr.bf16.mxu1 %v13516_v22  ;;  %v15634_v22 = vld [vmem:[#allocation2 + $0xb0] sm:$0xff] }
 0x192   :  { %v2745_v16 = vrot.slane %v2168_v52, %v15041_v57  ;;  %v2974_v27 = vsel %vm2890_vm4, %v2737_v23, %v2733_v31  ;;  %v2169_v42 = vmax.f32 %v2041_v30, 0.0  ;;  %v3093_v2 = vpack.c.bf16 %v3082_v40, %v3081_v33 }
 0x193   :  { %v2975_v53 = vsel %vm2892_vm5, %v2741_v26, %v2974_v27  ;;  %v2044_v17 = vadd.f32 %v15049_v0, %v1882_v32  ;;  %v2170_v13 = vmax.f32 %v2042_v46, 0.0  ;;  %v2171_v38 = vmax.f32 %v2043_v9, 0.0 }
 0x194   :  { %v2749_v34 = vrot.slane %v2169_v42, %v15041_v57  ;;  %v2976_v28 = vsel %vm2894_vm6, %v2745_v16, %v2975_v53  ;;  %v1139_v3 = vcombine.high %v691_v25, %v691_v25  ;;  %v1146_v10 = vrot.slane %v691_v25, %v15017_v41  ;;  %3113 = vrot.lane.b32.xlu1 %v3093_v2, %s14711_s28 }
 0x195   :  { %v2172_v24 = vmax.f32 %v2044_v17, 0.0  ;;  %v2753_v35 = vrot.slane %v2170_v13, %v15041_v57  ;;  %v2757_v4 = vrot.slane %v2171_v38, %v15041_v57  ;;  %v692_v49 = vmax.f32 %v15338_v5, %v15333_v54 }
 0x196   :  { %v2977_v6 = vsel %vm2896_vm7, %v2749_v34, %v2976_v28  ;;  %v1153_v19 = vrot.slane %v1139_v3, %v15017_v41  ;;  %v1154_v58 = vcombine.high %v1146_v10, %v1146_v10  ;;  %v12098_v36 = vrot.slane %v1146_v10, 9 }
 0x197   :  { %v2761_v21 = vrot.slane %v2172_v24, %v15041_v57  ;;  %v2978_v20 = vsel %vm2898_vm8, %v2753_v35, %v2977_v6  ;;  %v1156_v1 = vcombine.high %v692_v49, %v692_v49  ;;  %v1163_v15 = vrot.slane %v692_v49, %v15017_v41  ;;  %v15627_v49 = vld [vmem:[#allocation2 + $0xc0] sm:$0xff] }
 0x198   :  { %v2979_v7 = vsel %vm2900_vm9, %v2757_v4, %v2978_v20  ;;  %v1155_v54 = vcombine.high %v1153_v19, %v1153_v19  ;;  %v12099_v5 = vrot.slane %v1154_v58, 9  ;;  %v12100_v31 = vrot.slane %v1153_v19, 9 }
 0x199   :  { %v2980_v18 = vsel %vm2902_vm10, %v2761_v21, %v2979_v7  ;;  %v1883_v62 = vmax.f32 %v1146_v10, %v12098_v36  ;;  %v1170_v11 = vrot.slane %v1156_v1, %v15017_v41  ;;  %v1171_v33 = vcombine.high %v1163_v15, %v1163_v15 }
 0x19a   :  { %3036 = vst.msk [vmem:[#allocation2 + $0xe1] sm:$0xff] %vm2205_vm1, %v2980_v18  ;;  %v12101_v40 = vrot.slane %v1155_v54, 9  ;;  %v1884_v52 = vmax.f32 %v1154_v58, %v12099_v5  ;;  %v1885_v23 = vmax.f32 %v1153_v19, %v12100_v31  ;;  %v12102_v26 = vrot.slane %v1163_v15, 9  ;;  %v15641_v18 = vld [vmem:[#allocation2 + $0xd1] sm:$0xff] }
 0x19b   :  { %v2045_v30 = vadd.f32 %v15020_v43, %v1883_v62  ;;  %v1172_v32 = vcombine.high %v1170_v11, %v1170_v11  ;;  %v12103_v46 = vrot.slane %v1171_v33, 9  ;;  %v12104_v9 = vrot.slane %v1170_v11, 9 }
 0x19c   :  { %v1886_v25 = vmax.f32 %v1155_v54, %v12101_v40  ;;  %v2046_v16 = vadd.f32 %v15035_v55, %v1884_v52  ;;  %v2047_v27 = vadd.f32 %v15027_v47, %v1885_v23  ;;  %v1887_v42 = vmax.f32 %v1163_v15, %v12102_v26  ;;  %v15651_v26 = vld [vmem:[#allocation2 + $0xc1] sm:$0xff] }
 0x19d   :  { %v2173_v2 = vmax.f32 %v2045_v30, 0.0  ;;  %v12105_v53 = vrot.slane %v1172_v32, 9  ;;  %v1888_v17 = vmax.f32 %v1171_v33, %v12103_v46  ;;  %v1889_v13 = vmax.f32 %v1170_v11, %v12104_v9 }
 0x19e   :  { %v2048_v38 = vadd.f32 %v15038_v56, %v1886_v25  ;;  %v2174_v34 = vmax.f32 %v2046_v16, 0.0  ;;  %v2175_v28 = vmax.f32 %v2047_v27, 0.0  ;;  %v2049_v3 = vadd.f32 %v15023_v44, %v1887_v42 }
 0x19f   :  { %v2765_v10 = vrot.slane %v2173_v2, %v15041_v57  ;;  %v1890_v24 = vmax.f32 %v1172_v32, %v12105_v53  ;;  %v2050_v35 = vadd.f32 %v15046_v63, %v1888_v17  ;;  %v2051_v4 = vadd.f32 %v15031_v51, %v1889_v13 }
 0x1a0   :  { %v2176_v6 = vmax.f32 %v2048_v38, 0.0  ;;  %v2769_v19 = vrot.slane %v2174_v34, %v15041_v57  ;;  %v2773_v58 = vrot.slane %v2175_v28, %v15041_v57  ;;  %v2177_v36 = vmax.f32 %v2049_v3, 0.0 }
 0x1a1   :  { %v2052_v21 = vadd.f32 %v15049_v0, %v1890_v24  ;;  %v2178_v20 = vmax.f32 %v2050_v35, 0.0  ;;  %v2179_v1 = vmax.f32 %v2051_v4, 0.0  ;;  %v693_v15 = vmax.f32 %v15363_v50, %v15360_v39 }
 0x1a2   :  { %v2777_v7 = vrot.slane %v2176_v6, %v15041_v57  ;;  %v2981_v54 = vsel %vm2890_vm4, %v2769_v19, %v2765_v10  ;;  %v2781_v5 = vrot.slane %v2177_v36, %v15041_v57  ;;  %v3190_v31 = vpack.c.bf16 %v15627_v49, %v15634_v22 }
 0x1a3   :  { %v2982_v62 = vsel %vm2892_vm5, %v2773_v58, %v2981_v54  ;;  %v2180_v11 = vmax.f32 %v2052_v21, 0.0  ;;  %v2785_v33 = vrot.slane %v2178_v20, %v15041_v57  ;;  %v2789_v39 = vrot.slane %v2179_v1, %v15041_v57 }
 0x1a4   :  { %v2983_v50 = vsel %vm2894_vm6, %v2777_v7, %v2982_v62  ;;  %v1173_v40 = vcombine.high %v693_v15, %v693_v15  ;;  %v1180_v52 = vrot.slane %v693_v15, %v15017_v41  ;;  %3210 = vrot.lane.b32.xlu0 %v3190_v31, %s14711_s28  ;;  %v694_v23 = vmax.f32 %v15369_v59, %v15365_v12 }
 0x1a5   :  { %v2793_v30 = vrot.slane %v2180_v11, %v15041_v57  ;;  %v2984_v32 = vsel %vm2896_vm7, %v2781_v5, %v2983_v50  ;;  %v695_v46 = vmax.f32 %v15384_v29, %v15379_v8  ;;  %v15659_v9 = vpack.c.bf16 %v15641_v18, %v15651_v26 }
 0x1a6   :  { %v2985_v25 = vsel %vm2898_vm8, %v2785_v33, %v2984_v32  ;;  %v1187_v16 = vrot.slane %v1173_v40, %v15017_v41  ;;  %v1188_v27 = vcombine.high %v1180_v52, %v1180_v52  ;;  %v12106_v42 = vrot.slane %v1180_v52, 9 }
 0x1a7   :  { %v2986_v12 = vsel %vm2900_vm9, %v2789_v39, %v2985_v25  ;;  %v1190_v59 = vcombine.high %v694_v23, %v694_v23  ;;  %v1197_v2 = vrot.slane %v694_v23, %v15017_v41  ;;  %v1207_v53 = vcombine.high %v695_v46, %v695_v46  ;;  %3115 = vrot.lane.b32.xlu1 %v15659_v9, %s14711_s28 }
 0x1a8   :  { %v2987_v8 = vsel %vm2902_vm10, %v2793_v30, %v2986_v12  ;;  %v1189_v29 = vcombine.high %v1187_v16, %v1187_v16  ;;  %v12107_v17 = vrot.slane %v1188_v27, 9  ;;  %v12108_v13 = vrot.slane %v1187_v16, 9 }
 0x1a9   :  { %3037 = vst.msk [vmem:[#allocation2 + $0xf1] sm:$0xff] %vm2205_vm1, %v2987_v8  ;;  %v1891_v38 = vmax.f32 %v1180_v52, %v12106_v42  ;;  %v1204_v34 = vrot.slane %v1190_v59, %v15017_v41  ;;  %v1205_v28 = vcombine.high %v1197_v2, %v1197_v2  ;;  %v12110_v3 = vrot.slane %v1197_v2, 9 }
 0x1aa   :  { %v12109_v10 = vrot.slane %v1189_v29, 9  ;;  %v1892_v24 = vmax.f32 %v1188_v27, %v12107_v17  ;;  %v1893_v35 = vmax.f32 %v1187_v16, %v12108_v13  ;;  %v1214_v4 = vrot.slane %v695_v46, %v15017_v41 }
 0x1ab   :  { %v2053_v6 = vadd.f32 %v15020_v43, %v1891_v38  ;;  %v1206_v19 = vcombine.high %v1204_v34, %v1204_v34  ;;  %v12111_v58 = vrot.slane %v1205_v28, 9  ;;  %v12112_v36 = vrot.slane %v1204_v34, 9 }
 0x1ac   :  { %v1894_v21 = vmax.f32 %v1189_v29, %v12109_v10  ;;  %v2054_v20 = vadd.f32 %v15035_v55, %v1892_v24  ;;  %v2055_v1 = vadd.f32 %v15027_v47, %v1893_v35  ;;  %v1895_v15 = vmax.f32 %v1197_v2, %v12110_v3 }
 0x1ad   :  { %v2181_v7 = vmax.f32 %v2053_v6, 0.0  ;;  %v12113_v54 = vrot.slane %v1206_v19, 9  ;;  %v1896_v5 = vmax.f32 %v1205_v28, %v12111_v58  ;;  %v1897_v31 = vmax.f32 %v1204_v34, %v12112_v36 }
 0x1ae   :  { %v2056_v62 = vadd.f32 %v15038_v56, %v1894_v21  ;;  %v2182_v11 = vmax.f32 %v2054_v20, 0.0  ;;  %v2183_v33 = vmax.f32 %v2055_v1, 0.0  ;;  %v2057_v39 = vadd.f32 %v15023_v44, %v1895_v15 }
 0x1af   :  { %v2797_v50 = vrot.slane %v2181_v7, %v15041_v57  ;;  %v1898_v40 = vmax.f32 %v1206_v19, %v12113_v54  ;;  %v2058_v52 = vadd.f32 %v15046_v63, %v1896_v5  ;;  %v2059_v23 = vadd.f32 %v15031_v51, %v1897_v31 }
 0x1b0   :  { %v2184_v30 = vmax.f32 %v2056_v62, 0.0  ;;  %v2801_v32 = vrot.slane %v2182_v11, %v15041_v57  ;;  %v2805_v46 = vrot.slane %v2183_v33, %v15041_v57  ;;  %v2185_v25 = vmax.f32 %v2057_v39, 0.0 }
 0x1b1   :  { %v2060_v16 = vadd.f32 %v15049_v0, %v1898_v40  ;;  %v2186_v27 = vmax.f32 %v2058_v52, 0.0  ;;  %v2187_v42 = vmax.f32 %v2059_v23, 0.0  ;;  %v1221_v12 = vrot.slane %v1207_v53, %v15017_v41 }
 0x1b2   :  { %v2809_v59 = vrot.slane %v2184_v30, %v15041_v57  ;;  %v2988_v2 = vsel %vm2890_vm4, %v2801_v32, %v2797_v50  ;;  %v2813_v8 = vrot.slane %v2185_v25, %v15041_v57  ;;  %v1222_v29 = vcombine.high %v1214_v4, %v1214_v4 }
 0x1b3   :  { %v2989_v17 = vsel %vm2892_vm5, %v2805_v46, %v2988_v2  ;;  %v2188_v13 = vmax.f32 %v2060_v16, 0.0  ;;  %v2817_v38 = vrot.slane %v2186_v27, %v15041_v57  ;;  %v2821_v34 = vrot.slane %v2187_v42, %v15041_v57 }
 0x1b4   :  { %v2990_v28 = vsel %vm2894_vm6, %v2809_v59, %v2989_v17  ;;  %v1223_v3 = vcombine.high %v1221_v12, %v1221_v12  ;;  %v12114_v10 = vrot.slane %v1214_v4, 9  ;;  %v12115_v24 = vrot.slane %v1222_v29, 9 }
 0x1b5   :  { %v2825_v53 = vrot.slane %v2188_v13, %v15041_v57  ;;  %v2991_v35 = vsel %vm2896_vm7, %v2813_v8, %v2990_v28  ;;  %v12116_v6 = vrot.slane %v1221_v12, 9  ;;  %v696_v19 = vmax.f32 %v15394_v37, %v15390_v60  ;;  %v15712_v13 = vld [vmem:[#allocation2 + $0xe0] sm:$0xff] }
 0x1b6   :  { %v2992_v58 = vsel %vm2898_vm8, %v2817_v38, %v2991_v35  ;;  %v12117_v36 = vrot.slane %v1223_v3, 9  ;;  %v1899_v21 = vmax.f32 %v1214_v4, %v12114_v10  ;;  %v1900_v20 = vmax.f32 %v1222_v29, %v12115_v24 }
 0x1b7   :  { %v2993_v1 = vsel %vm2900_vm9, %v2821_v34, %v2992_v58  ;;  %v1901_v15 = vmax.f32 %v1221_v12, %v12116_v6  ;;  %v1224_v7 = vcombine.high %v696_v19, %v696_v19  ;;  %v1231_v54 = vrot.slane %v696_v19, %v15017_v41  ;;  %v15720_v6 = vld [vmem:[#allocation2 + $0xd0] sm:$0xff] }
 0x1b8   :  { %v2994_v5 = vsel %vm2902_vm10, %v2825_v53, %v2993_v1  ;;  %v1902_v31 = vmax.f32 %v1223_v3, %v12117_v36  ;;  %v2061_v62 = vadd.f32 %v15020_v43, %v1899_v21  ;;  %v2062_v11 = vadd.f32 %v15035_v55, %v1900_v20 }
 0x1b9   :  { %3038 = vst.msk [vmem:[#allocation2 + $0x101] sm:$0xff] %vm2205_vm1, %v2994_v5  ;;  %v2063_v60 = vadd.f32 %v15027_v47, %v1901_v15  ;;  %v1238_v37 = vrot.slane %v1224_v7, %v15017_v41  ;;  %v1239_v4 = vcombine.high %v1231_v54, %v1231_v54  ;;  %v12118_v33 = vrot.slane %v1231_v54, 9 }
 0x1ba   :  { %v2064_v39 = vadd.f32 %v15038_v56, %v1902_v31  ;;  %v2189_v50 = vmax.f32 %v2061_v62, 0.0  ;;  %v2190_v40 = vmax.f32 %v2062_v11, 0.0  ;;  %v697_v52 = vmax.f32 %v15418_v14, %v15413_v45 }
 0x1bb   :  { %v2191_v23 = vmax.f32 %v2063_v60, 0.0  ;;  %v1240_v30 = vcombine.high %v1238_v37, %v1238_v37  ;;  %v12119_v32 = vrot.slane %v1239_v4, 9  ;;  %v12120_v46 = vrot.slane %v1238_v37, 9 }
 0x1bc   :  { %v2192_v25 = vmax.f32 %v2064_v39, 0.0  ;;  %v2829_v16 = vrot.slane %v2189_v50, %v15041_v57  ;;  %v2833_v27 = vrot.slane %v2190_v40, %v15041_v57  ;;  %v1903_v42 = vmax.f32 %v1231_v54, %v12118_v33  ;;  %v18857_v40 = vld [vmem:[#allocation10_spill] sm:$0xff] }
 0x1bd   :  { %v2837_v12 = vrot.slane %v2191_v23, %v15041_v57  ;;  %v12121_v59 = vrot.slane %v1240_v30, 9  ;;  %v1904_v2 = vmax.f32 %v1239_v4, %v12119_v32  ;;  %v1905_v8 = vmax.f32 %v1238_v37, %v12120_v46 }
 0x1be   :  { %v2841_v29 = vrot.slane %v2192_v25, %v15041_v57  ;;  %v2995_v17 = vsel %vm2890_vm4, %v2833_v27, %v2829_v16  ;;  %v2065_v45 = vadd.f32 %v15023_v44, %v1903_v42  ;;  %v1241_v14 = vcombine.high %v697_v52, %v697_v52 }
 0x1bf   :  { %v2996_v38 = vsel %vm2892_vm5, %v2837_v12, %v2995_v17  ;;  %v1906_v34 = vmax.f32 %v1240_v30, %v12121_v59  ;;  %v2066_v28 = vadd.f32 %v15046_v63, %v1904_v2  ;;  %v2067_v3 = vadd.f32 %v15031_v51, %v1905_v8  ;;  %v15734_v30 = vld [vmem:[#allocation2 + $0xf1] sm:$0xff]  ;;  %v15741_v2 = vld [vmem:[#allocation2 + $0xe1] sm:$0xff] }
 0x1c0   :  { %v2193_v10 = vmax.f32 %v2065_v45, 0.0  ;;  %v2997_v24 = vsel %vm2894_vm6, %v2841_v29, %v2996_v38  ;;  %v1248_v53 = vrot.slane %v697_v52, %v15017_v41  ;;  %v1255_v35 = vrot.slane %v1241_v14, %v15017_v41  ;;  %v18858_v52 = vld [vmem:[#allocation11_spill] sm:$0xff]  ;;  %v15743_v8 = vld [vmem:[#allocation2 + $0x100] sm:$0xff] }
 0x1c1   :  { %v2068_v19 = vadd.f32 %v15049_v0, %v1906_v34  ;;  %v2194_v58 = vmax.f32 %v2066_v28, 0.0  ;;  %v2195_v36 = vmax.f32 %v2067_v3, 0.0  ;;  %v3191_v21 = vpack.c.bf16 %v15712_v13, %v15720_v6  ;;  %v15753_v28 = vld [vmem:[#allocation2 + $0xf0] sm:$0xff] }
 0x1c2   :  { %v2845_v20 = vrot.slane %v2193_v10, %v15041_v57  ;;  %v1256_v1 = vcombine.high %v1248_v53, %v1248_v53  ;;  %v1257_v15 = vcombine.high %v1255_v35, %v1255_v35  ;;  %v12122_v7 = vrot.slane %v1248_v53, 9 }
 0x1c3   :  { %v2196_v54 = vmax.f32 %v2068_v19, 0.0  ;;  %v2849_v5 = vrot.slane %v2194_v58, %v15041_v57  ;;  %v2853_v31 = vrot.slane %v2195_v36, %v15041_v57  ;;  %v12124_v62 = vrot.slane %v1255_v35, 9  ;;  %3212 = vrot.lane.b32.xlu0 %v3191_v21, %s14711_s28  ;;  %v15762_v58 = vld [vmem:[#allocation2 + $0x12] sm:$0xff]  ;;  %v3138_v36 = vld [vmem:[#allocation2 + $0x2] sm:$0xff] }
 0x1c4   :  { %v2998_v11 = vsel %vm2896_vm7, %v2845_v20, %v2997_v24  ;;  %v12123_v60 = vrot.slane %v1256_v1, 9  ;;  %v12125_v37 = vrot.slane %v1257_v15, 9  ;;  %v1907_v4 = vmax.f32 %v1248_v53, %v12122_v7 }
 0x1c5   :  { %v2857_v33 = vrot.slane %v2196_v54, %v15041_v57  ;;  %v2999_v39 = vsel %vm2898_vm8, %v2849_v5, %v2998_v11  ;;  %v1909_v50 = vmax.f32 %v1255_v35, %v12124_v62  ;;  %v698_v23 = vmax.f32 %v18858_v52, %v18857_v40  ;;  %v15774_v40 = vld [vmem:[#allocation2 + $0x101] sm:$0xff] }
 0x1c6   :  { %v3000_v32 = vsel %vm2900_vm9, %v2853_v31, %v2999_v39  ;;  %v1908_v46 = vmax.f32 %v1256_v1, %v12123_v60  ;;  %v1910_v25 = vmax.f32 %v1257_v15, %v12125_v37  ;;  %v2069_v16 = vadd.f32 %v15020_v43, %v1907_v4  ;;  %v3203_v15 = vpop.permute.xlu0 %3202  ;;  %v3041_v37 = vld [vmem:[#allocation2] sm:$0xff] }
 0x1c7   :  { %v3001_v27 = vsel %vm2902_vm10, %v2857_v33, %v3000_v32  ;;  %v2071_v42 = vadd.f32 %v15027_v47, %v1909_v50  ;;  %v1258_v12 = vcombine.high %v698_v23, %v698_v23  ;;  %v1265_v59 = vrot.slane %v698_v23, %v15017_v41  ;;  %v3042_v23 = vld [vmem:[#allocation2 + $0x10] sm:$0xff] }
 0x1c8   :  { %3039 = vst.msk [vmem:[#allocation2 + $0x111] sm:$0xff] %vm2205_vm1, %v3001_v27  ;;  %v2070_v29 = vadd.f32 %v15035_v55, %v1908_v46  ;;  %v2072_v17 = vadd.f32 %v15038_v56, %v1910_v25  ;;  %v2197_v45 = vmax.f32 %v2069_v16, 0.0  ;;  %v15750_v43 = vpack.c.bf16 %v15734_v30, %v15741_v2  ;;  %v15759_v56 = vpop.permute.xlu1 %3204  ;;  %v3267_v27 = vld [vmem:[#allocation2 + $0x22] sm:$0xff] }
 0x1c9   :  { %v2199_v14 = vmax.f32 %v2071_v42, 0.0  ;;  %v1272_v47 = vrot.slane %v1258_v12, %v15017_v41  ;;  %v1273_v38 = vcombine.high %v1265_v59, %v1265_v59  ;;  %v12126_v34 = vrot.slane %v1265_v59, 9  ;;  %v15787_v42 = vld [vmem:[#allocation2 + $0x32] sm:$0xff]  ;;  %v15789_v12 = vld [vmem:[#allocation2 + $0x42] sm:$0xff] }
 0x1ca   :  { %v2198_v3 = vmax.f32 %v2070_v29, 0.0  ;;  %v2200_v10 = vmax.f32 %v2072_v17, 0.0  ;;  %3117 = vrot.lane.b32.xlu1 %v15750_v43, %s14711_s28  ;;  %v3192_v55 = vpack.c.bf16 %v15743_v8, %v15753_v28  ;;  %v2861_v21 = vrot.slane %v2197_v45, %v15041_v57  ;;  %v15795_v29 = vld [vmem:[#allocation2 + $0x52] sm:$0xff] }
 0x1cb   :  { %v2869_v24 = vrot.slane %v2199_v14, %v15041_v57  ;;  %v1274_v53 = vcombine.high %v1272_v47, %v1272_v47  ;;  %v12127_v35 = vrot.slane %v1273_v38, 9  ;;  %v12128_v19 = vrot.slane %v1272_v47, 9  ;;  %v15797_v45 = vld [vmem:[#allocation2 + $0x72] sm:$0xff]  ;;  %v3043_v14 = vld [vmem:[#allocation2 + $0x20] sm:$0xff] }
 0x1cc   :  { %v2865_v20 = vrot.slane %v2198_v3, %v15041_v57  ;;  %v1911_v1 = vmax.f32 %v1265_v59, %v12126_v34  ;;  %3214 = vrot.lane.b32.xlu0 %v3192_v55, %s14711_s28  ;;  %v2873_v7 = vrot.slane %v2200_v10, %v15041_v57  ;;  %vm3129_vm11 = vcmask 1048064   ;;  %v15783_v46 = vpop.permute.xlu1 %3107  ;;  %v15800_v3 = vld [vmem:[#allocation2 + $0xb2] sm:$0xff]  ;;  %v3045_v10 = vld [vmem:[#allocation2 + $0x40] sm:$0xff] }
 0x1cd   :  { %v12129_v54 = vrot.slane %v1274_v53, 9  ;;  %v1912_v5 = vmax.f32 %v1273_v38, %v12127_v35  ;;  %v1913_v31 = vmax.f32 %v1272_v47, %v12128_v19  ;;  %v3154_v60 = vpack.c.bf16 %v15762_v58, %v3138_v36  ;;  %v3044_v47 = vld [vmem:[#allocation2 + $0x30] sm:$0xff]  ;;  %v15805_v19 = vld [vmem:[#allocation2 + $0x62] sm:$0xff] }
 0x1ce   :  { %v3002_v62 = vsel %vm2890_vm4, %v2865_v20, %v2861_v21  ;;  %v2073_v11 = vadd.f32 %v15023_v44, %v1911_v1  ;;  %v3057_v17 = vpack.c.bf16 %v3042_v23, %v3041_v37  ;;  %v3046_v55 = vld [vmem:[#allocation2 + $0x50] sm:$0xff]  ;;  %v3282_v35 = vpack.c.bf16 %v3267_v27, %v15762_v58  ;;  %v15807_v36 = vld [vmem:[#allocation2 + $0x21] sm:$0xff] }
 0x1cf   :  { %v3003_v4 = vsel %vm2892_vm5, %v2869_v24, %v3002_v62  ;;  %v1914_v33 = vmax.f32 %v1274_v53, %v12129_v54  ;;  %v2074_v39 = vadd.f32 %v15046_v63, %v1912_v5  ;;  %v2075_v50 = vadd.f32 %v15031_v51, %v1913_v31  ;;  %v15776_v52 = vld [vmem:[#allocation2 + $0x111] sm:$0xff]  ;;  %3162 = vst.msk [vmem:[#allocation3 + $0x8] sm:$0xff] %vm2205_vm1, %v3154_v60  ;;  %v15810_v21 = vld [vmem:[#allocation2 + $0x41] sm:$0xff] }
 0x1d0   :  { %v2201_v32 = vmax.f32 %v2073_v11, 0.0  ;;  %v15780_v44 = vpack.c.bf16 %v15776_v52, %v15774_v40  ;;  %v3004_v51 = vsel %vm2894_vm6, %v2873_v7, %v3003_v4  ;;  %3226 = vst.msk [vmem:[#allocation3 + $0x8] sm:$0xff] %vm3129_vm11, %v3203_v15  ;;  %v3155_v20 = vpack.c.bf16 %v15787_v42, %v3267_v27  ;;  %v15813_v1 = vld [vmem:[#allocation2 + $0x60] sm:$0xff]  ;;  %v15820_v31 = vld [vmem:[#allocation2 + $0xd2] sm:$0xff]  ;;  %v3110_v23 = vpop.permute.xlu1 %3109 }
 0x1d1   :  { %v2076_v25 = vadd.f32 %v15049_v0, %v1914_v33  ;;  %v2202_v16 = vmax.f32 %v2074_v39, 0.0  ;;  %v2203_v63 = vmax.f32 %v2075_v50, 0.0  ;;  %v3106_v0 = vpop.permute.xlu0 %3105  ;;  %3065 = vst.msk [vmem:[#allocation3] sm:$0xff] %vm2205_vm1, %v3057_v17  ;;  %v3049_v15 = vld [vmem:[#allocation2 + $0xa0] sm:$0xff]  ;;  %v3283_v58 = vpack.c.bf16 %v15789_v12, %v15787_v42  ;;  %v15824_v11 = vld [vmem:[#allocation2 + $0xf2] sm:$0xff] }
 0x1d2   :  { %v2877_v59 = vrot.slane %v2201_v32, %v15041_v57  ;;  %3119 = vrot.lane.b32.xlu1 %v15780_v44, %s14711_s28  ;;  %v3146_v7 = vld [vmem:[#allocation2 + $0xa2] sm:$0xff]  ;;  %3130 = vst.msk [vmem:[#allocation3] sm:$0xff] %vm3129_vm11, %v3106_v0  ;;  %v3058_v60 = vpack.c.bf16 %v3044_v47, %v3043_v14  ;;  %v15830_v33 = vld [vmem:[#allocation2 + $0x110] sm:$0xff]  ;;  %v3059_v32 = vpack.c.bf16 %v3046_v55, %v3045_v10  ;;  %vm6760_vm13 = vcmask 1040384  }
 0x1d3   :  { %v2204_v38 = vmax.f32 %v2076_v25, 0.0  ;;  %v2881_v34 = vrot.slane %v2202_v16, %v15041_v57  ;;  %v2885_v24 = vrot.slane %v2203_v63, %v15041_v57  ;;  %v15822_v62 = vld [vmem:[#allocation2 + $0x81] sm:$0xff]  ;;  %v15832_v39 = vld [vmem:[#allocation2 + $0x31] sm:$0xff]  ;;  %3163 = vst.msk [vmem:[#allocation3 + $0x30] sm:$0xff] %vm2205_vm1, %v3155_v20  ;;  %v3156_v25 = vpack.c.bf16 %v15795_v29, %v15789_v12  ;;  %3451 = vst.msk [vmem:[#allocation3 + $0x20] sm:$0xff] %vm2205_vm1, %v3155_v20 }
 0x1d4   :  { %v3005_v53 = vsel %vm2896_vm7, %v2877_v59, %v3004_v51  ;;  %v15826_v37 = vld [vmem:[#allocation2 + $0x61] sm:$0xff]  ;;  %v15835_v50 = vld [vmem:[#allocation2 + $0x112] sm:$0xff]  ;;  %v3060_v63 = vpack.c.bf16 %v15556_v48, %v15813_v1  ;;  %3227 = vst.msk [vmem:[#allocation3 + $0x30] sm:$0xff] %vm3129_vm11, %v15759_v56  ;;  %v3157_v48 = vpack.c.bf16 %v15797_v45, %v15805_v19  ;;  %v3061_v12 = vpack.c.bf16 %v15634_v22, %v3049_v15  ;;  %vm6761_vm14 = vmor %vm6760_vm13, %vm2892_vm5 }
 0x1d5   :  { %v2889_v54 = vrot.slane %v2204_v38, %v15041_v57  ;;  %v3006_v5 = vsel %vm2898_vm8, %v2881_v34, %v3005_v53  ;;  %v3234_v51 = vld [vmem:[#allocation2 + $0x11] sm:$0xff]  ;;  %v15845_v59 = vld [vmem:[#allocation2 + $0x82] sm:$0xff]  ;;  %3066 = vst.msk [vmem:[#allocation3 + $0x28] sm:$0xff] %vm2205_vm1, %v3058_v60  ;;  %v3158_v47 = vpack.c.bf16 %v15800_v3, %v3146_v7  ;;  %3355 = vst.msk [vmem:[#allocation3 + $0x18] sm:$0xff] %vm2205_vm1, %v3058_v60 }
 0x1d6   :  { %v3007_v4 = vsel %vm2900_vm9, %v2885_v24, %v3006_v5  ;;  %3298 = vrot.lane.b32.xlu1 %v3282_v35, %s14711_s28  ;;  %v3207_v16 = vpop.permute.xlu0 %3206  ;;  %v15841_v27 = vld [vmem:[#allocation2 + $0x70] sm:$0xff]  ;;  %v15849_v0 = vld [vmem:[#allocation2 + $0xc2] sm:$0xff]  ;;  %3131 = vst.msk [vmem:[#allocation3 + $0x28] sm:$0xff] %vm3129_vm11, %v15783_v46  ;;  %v3062_v22 = vpack.c.bf16 %v15720_v6, %v15627_v49  ;;  %v3063_v55 = vpack.c.bf16 %v15753_v28, %v15712_v13  ;;  %vm6762_vm15 = vmor %vm6761_vm14, %vm2896_vm7 }
 0x1d7   :  { %v3008_v42 = vsel %vm2902_vm10, %v2889_v54, %v3007_v4  ;;  %v15847_v17 = vld [vmem:[#allocation2 + $0x51] sm:$0xff]  ;;  %v15851_v14 = vld [vmem:[#allocation2 + $0xe2] sm:$0xff]  ;;  %3067 = vst.msk [vmem:[#allocation3 + $0x50] sm:$0xff] %vm2205_vm1, %v3059_v32  ;;  %3164 = vst.msk [vmem:[#allocation3 + $0x58] sm:$0xff] %vm2205_vm1, %v3156_v25  ;;  %v3159_v56 = vpack.c.bf16 %v15820_v31, %v15849_v0  ;;  %v3064_v49 = vpack.c.bf16 %v15830_v33, %v15743_v8 }
 0x1d8   :  { %v15861_v38 = vld [vmem:[#allocation2 + $0x80] sm:$0xff]  ;;  %3040 = vst.msk [vmem:[#allocation2 + $0x121] sm:$0xff] %vm2205_vm1, %v3008_v42  ;;  %v3460_v34 = vld [vmem:[#allocation3 + $0x8] sm:$0xff]  ;;  %3068 = vst.msk [vmem:[#allocation3 + $0x78] sm:$0xff] %vm2205_vm1, %v3060_v63  ;;  %v3160_v24 = vpack.c.bf16 %v15824_v11, %v15851_v14  ;;  %v3250_v13 = vpack.c.bf16 %v15807_v36, %v3234_v51  ;;  %v3251_v28 = vpack.c.bf16 %v15810_v21, %v15832_v39 }
 0x1d9   :  { %v15864_v10 = vld [vmem:[#allocation2 + $0x102] sm:$0xff]  ;;  %3356 = vst.msk [vmem:[#allocation3 + $0x40] sm:$0xff] %vm2205_vm1, %v3059_v32  ;;  %v3338_v46 = vld [vmem:[#allocation2 + $0x90] sm:$0xff]  ;;  %3452 = vst.msk [vmem:[#allocation3 + $0x48] sm:$0xff] %vm2205_vm1, %v3156_v25  ;;  %3843 = vmatprep.mubr.bf16.mxu1 %v3460_v34  ;;  %v3252_v8 = vpack.c.bf16 %v15826_v37, %v15847_v17  ;;  %v3256_v37 = vpack.c.bf16 %v15774_v40, %v15734_v30  ;;  %v3284_v32 = vpack.c.bf16 %v15805_v19, %v15795_v29 }
 0x1da   :  { %3132 = vst.msk [vmem:[#allocation3 + $0x50] sm:$0xff] %vm3129_vm11, %v3110_v23  ;;  %3228 = vst.msk [vmem:[#allocation3 + $0x58] sm:$0xff] %vm3129_vm11, %v3207_v16  ;;  %v3161_v53 = vpack.c.bf16 %v15835_v50, %v15864_v10  ;;  %v3240_v35 = vld [vmem:[#allocation2 + $0x71] sm:$0xff]  ;;  %3300 = vrot.lane.b32.xlu1 %v3283_v58, %s14711_s28  ;;  %v13517_v7 = vld [vmem:[%s18842_s3 + $0x80] sm:$0xff]   ;;  %v3349_v58 = vpack.c.bf16 %v15841_v27, %v15813_v1  ;;  %v3350_v1 = vpack.c.bf16 %v3338_v46, %v15861_v38 }
 0x1db   :  { %3165 = vst.msk [vmem:[#allocation3 + $0x80] sm:$0xff] %vm2205_vm1, %v3157_v48  ;;  %3069 = vst.msk [vmem:[#allocation3 + $0xa0] sm:$0xff] %vm2205_vm1, %v3061_v12  ;;  %v3242_v20 = vld [vmem:[#allocation2 + $0xb1] sm:$0xff]  ;;  %v3253_v54 = vpack.c.bf16 %v15822_v62, %v3240_v35  ;;  %v3339_v60 = vld [vmem:[#allocation2 + $0xc0] sm:$0xff]  ;;  %v3285_v63 = vpack.c.bf16 %v15845_v59, %v15797_v45 }
 0x1dc   :  { %3166 = vst.msk [vmem:[#allocation3 + $0xa8] sm:$0xff] %vm2205_vm1, %v3158_v47  ;;  %3453 = vst.msk [vmem:[#allocation3 + $0x70] sm:$0xff] %vm2205_vm1, %v3157_v48  ;;  %v3434_v15 = vld [vmem:[#allocation2 + $0x92] sm:$0xff]  ;;  %v3254_v5 = vpack.c.bf16 %v15651_v26, %v3242_v20  ;;  %v13518_v4 = vld [vmem:[%s18842_s3 + $0xc8] sm:$0xff]   ;;  %v3255_v26 = vpack.c.bf16 %v15741_v2, %v15641_v18  ;;  %v3351_v23 = vpack.c.bf16 %v15720_v6, %v3339_v60 }
 0x1dd   :  { %3070 = vst.msk [vmem:[#allocation3 + $0xc8] sm:$0xff] %vm2205_vm1, %v3062_v22  ;;  %3167 = vst.msk [vmem:[#allocation3 + $0xd0] sm:$0xff] %vm2205_vm1, %v3159_v56  ;;  %v3459_v25 = vld [vmem:[#allocation3] sm:$0xff]  ;;  %v3446_v18 = vpack.c.bf16 %v3434_v15, %v15845_v59  ;;  %v3346_v6 = vld [vmem:[#allocation2 + $0x130] sm:$0xff] }
 0x1de   :  { %3071 = vst.msk [vmem:[#allocation3 + $0xf0] sm:$0xff] %vm2205_vm1, %v3063_v55  ;;  %3168 = vst.msk [vmem:[#allocation3 + $0xf8] sm:$0xff] %vm2205_vm1, %v3160_v24  ;;  %3844 = vmatmul.mubr.bf16.vlgmr.msra.gmra.mrb[64].mxu1 %v3459_v25  ;;  %v3442_v30 = vld [vmem:[#allocation2 + $0x132] sm:$0xff]  ;;  %3302 = vrot.lane.b32.xlu1 %v3284_v32, %s14711_s28  ;;  %v13519_v19 = vld [vmem:[%s18842_s3 + $0x88] sm:$0xff]  }
 0x1df   :  { %3360 = vst.msk [vmem:[#allocation3 + $0xe0] sm:$0xff] %vm2205_vm1, %v3063_v55  ;;  %3455 = vst.msk [vmem:[#allocation3 + $0xc0] sm:$0xff] %vm2205_vm1, %v3159_v56  ;;  %v3465_v2 = vld [vmem:[#allocation3 + $0x30] sm:$0xff]  ;;  %13124 = vmatpush3.bf16.msra.mxu1 %v13517_v7  ;;  %v3185_v40 = vld [vmem:[#allocation2 + $0x120] sm:$0xff] }
 0x1e0   :  { %3456 = vst.msk [vmem:[#allocation3 + $0xe8] sm:$0xff] %vm2205_vm1, %v3160_v24  ;;  %3072 = vst.msk [vmem:[#allocation3 + $0x118] sm:$0xff] %vm2205_vm1, %v3064_v49  ;;  %v3281_v29 = vld [vmem:[#allocation2 + $0x122] sm:$0xff]  ;;  %3851 = vmatprep.mubr.bf16.mxu1 %v3465_v2  ;;  %13125 = vmatprep.subr.bf16.mxu1 %v13518_v4  ;;  %v3193_v16 = vpack.c.bf16 %v3185_v40, %v15830_v33  ;;  %v13520_v27 = vld [vmem:[%s18842_s3 + $0xd0] sm:$0xff]   ;;  %v3354_v42 = vpack.c.bf16 %v3346_v6, %v3185_v40 }
 0x1e1   :  { %3258 = vst.msk [vmem:[#allocation3 + $0x10] sm:$0xff] %vm2205_vm1, %v3250_v13  ;;  %3259 = vst.msk [vmem:[#allocation3 + $0x38] sm:$0xff] %vm2205_vm1, %v3251_v28  ;;  %v15945_v51 = vld [vmem:[#allocation2 + $0x121] sm:$0xff]  ;;  %v3450_v48 = vpack.c.bf16 %v3442_v30, %v3281_v29  ;;  %v13521_v45 = vld [vmem:[%s18842_s3 + $0x90] sm:$0xff]   ;;  %v3379_v33 = vpack.c.bf16 %v15832_v39, %v15807_v36  ;;  %v3380_v36 = vpack.c.bf16 %v15847_v17, %v15810_v21 }
 0x1e2   :  { %3169 = vst.msk [vmem:[#allocation3 + $0x120] sm:$0xff] %vm2205_vm1, %v3161_v53  ;;  %3361 = vst.msk [vmem:[#allocation3 + $0x108] sm:$0xff] %vm2205_vm1, %v3064_v49  ;;  %v3257_v12 = vpack.c.bf16 %v15945_v51, %v15776_v52  ;;  %3216 = vrot.lane.b32.xlu0 %v3193_v16, %s14711_s28  ;;  %3304 = vrot.lane.b32.xlu1 %v3285_v63, %s14711_s28  ;;  %v3464_v47 = vld [vmem:[#allocation3 + $0x28] sm:$0xff]  ;;  %v3286_v52 = vpack.c.bf16 %v15849_v0, %v15800_v3  ;;  %v3470_v59 = vld [vmem:[#allocation3 + $0x58] sm:$0xff] }
 0x1e3   :  { %3457 = vst.msk [vmem:[#allocation3 + $0x110] sm:$0xff] %vm2205_vm1, %v3161_v53  ;;  %3260 = vst.msk [vmem:[#allocation3 + $0x60] sm:$0xff] %vm2205_vm1, %v3252_v8  ;;  %13126 = vmatpush3.bf16.msra.mxu1 %v13519_v19  ;;  %v13522_v38 = vld [vmem:[%s18842_s3 + $0xd8] sm:$0xff]   ;;  %v3287_v39 = vpack.c.bf16 %v15851_v14, %v15820_v31  ;;  %v13524_v0 = vld [vmem:[%s18842_s3 + $0xe0] sm:$0xff]   ;;  %v3288_v21 = vpack.c.bf16 %v15864_v10, %v15824_v11  ;;  %v3289_v10 = vpack.c.bf16 %v3281_v29, %v15835_v50 }
 0x1e4   :  { %3261 = vst.msk [vmem:[#allocation3 + $0x88] sm:$0xff] %vm2205_vm1, %v3253_v54  ;;  %3262 = vst.msk [vmem:[#allocation3 + $0xb0] sm:$0xff] %vm2205_vm1, %v3254_v5  ;;  %13127 = vmatprep.subr.bf16.mxu1 %v13520_v27  ;;  %v13523_v3 = vld [vmem:[%s18842_s3 + $0x98] sm:$0xff]   ;;  %v13525_v22 = vld [vmem:[%s18842_s3 + $0xa0] sm:$0xff]  }
 0x1e5   :  { %3357 = vst.msk [vmem:[#allocation3 + $0x68] sm:$0xff] %vm2205_vm1, %v3349_v58  ;;  %3263 = vst.msk [vmem:[#allocation3 + $0xd8] sm:$0xff] %vm2205_vm1, %v3255_v26  ;;  %v3469_v17 = vld [vmem:[#allocation3 + $0x50] sm:$0xff]  ;;  %v13526_v31 = vld [vmem:[%s18842_s3 + $0xe8] sm:$0xff]  }
 0x1e6   :  { %3358 = vst.msk [vmem:[#allocation3 + $0x90] sm:$0xff] %vm2205_vm1, %v3350_v1  ;;  %3264 = vst.msk [vmem:[#allocation3 + $0x100] sm:$0xff] %vm2205_vm1, %v3256_v37  ;;  %3852 = vmatmul.mubr.bf16.gmra.mrb[68].mxu1 %v3464_v47  ;;  %3395 = vrot.lane.b32.xlu0 %v3379_v33, %s14711_s28  ;;  %v3112_v34 = vpop.permute.xlu1 %3111  ;;  %v3370_v14 = vld [vmem:[#allocation2 + $0x91] sm:$0xff]  ;;  %v13527_v56 = vld [vmem:[%s18842_s3 + $0xa8] sm:$0xff]  }
 0x1e7   :  { %3359 = vst.msk [vmem:[#allocation3 + $0xb8] sm:$0xff] %vm2205_vm1, %v3351_v23  ;;  %3454 = vst.msk [vmem:[#allocation3 + $0x98] sm:$0xff] %vm2205_vm1, %v3446_v18  ;;  %3306 = vrot.lane.b32.xlu1 %v3286_v52, %s14711_s28  ;;  %3859 = vmatprep.mubr.bf16.mxu1 %v3470_v59  ;;  %v3382_v11 = vpack.c.bf16 %v3370_v14, %v15822_v62  ;;  %v13528_v55 = vld [vmem:[%s18842_s3 + $0xf0] sm:$0xff]   ;;  %v13530_v62 = vld [vmem:[%s18842_s3 + $0xf8] sm:$0xff]  }
 0x1e8   :  { %3362 = vst.msk [vmem:[#allocation3 + $0x130] sm:$0xff] %vm2205_vm1, %v3354_v42  ;;  %3458 = vst.msk [vmem:[#allocation3 + $0x138] sm:$0xff] %vm2205_vm1, %v3450_v48  ;;  %13128 = vmatpush3.bf16.msra.mxu1 %v13521_v45  ;;  %v13531_v24 = vld [vmem:[%s18842_s3 + $0xb8] sm:$0xff]   ;;  %v16018_v46 = vld [vmem:[%s18842_s3 + $0x100] sm:$0xff]  }
 0x1e9   :  { %3265 = vst.msk [vmem:[#allocation3 + $0x128] sm:$0xff] %vm2205_vm1, %v3257_v12  ;;  %13129 = vmatprep.subr.bf16.mxu1 %v13522_v38  ;;  %v13533_v27 = vld [vmem:[%s18842_s3 + $0x108] sm:$0xff]   ;;  %v13534_v47 = vld [vmem:[%s18842_s3 + $0x110] sm:$0xff]   ;;  %v13535_v33 = vld [vmem:[%s18842_s3 + $0x118] sm:$0xff]  }
 0x1ea   :  { %3133 = vst.msk [vmem:[#allocation3 + $0x78] sm:$0xff] %vm3129_vm11, %v3112_v34  ;;  %3397 = vrot.lane.b32.xlu0 %v3380_v36, %s14711_s28  ;;  %vm16965_vm0 = vmor %vm6762_vm15, %vm2900_vm9 }
 0x1eb   :  { %3308 = vrot.lane.b32.xlu1 %v3287_v39, %s14711_s28 }
 0x1ec   :  { %13130 = vmatpush3.bf16.msra.mxu1 %v13523_v3 }
 0x1ed   :  { %13131 = vmatprep.subr.bf16.mxu1 %v13524_v0 }
 0x1ee   :  { %3860 = vmatmul.mubr.bf16.gmra.mrb[72].mxu1 %v3469_v17  ;;  %3399 = vrot.lane.b32.xlu0 %v15522_v61, %s14711_s28  ;;  %v13529_v61 = vld [vmem:[%s18842_s3 + $0xb0] sm:$0xff]  }
 0x1ef   :  { %3310 = vrot.lane.b32.xlu1 %v3288_v21, %s14711_s28 }
 0x1f0   :  { %13132 = vmatpush3.bf16.msra.mxu1 %v13525_v22 }
 0x1f1   :  { %13133 = vmatprep.subr.bf16.mxu1 %v13526_v31  ;;  %v3474_v13 = vld [vmem:[#allocation3 + $0x78] sm:$0xff] }
 0x1f2   :  { %3401 = vrot.lane.b32.xlu0 %v3382_v11, %s14711_s28 }
 0x1f3   :  { %3312 = vrot.lane.b32.xlu1 %v3289_v10, %s14711_s28  ;;  %v3463_v10 = vld [vmem:[#allocation3 + $0x20] sm:$0xff] }
 0x1f4   :  { %13134 = vmatpush3.bf16.msra.mxu1 %v13527_v56 }
 0x1f5   :  { %13135 = vmatprep.subr.bf16.mxu1 %v13528_v55  ;;  %v3468_v55 = vld [vmem:[#allocation3 + $0x48] sm:$0xff] }
 0x1f6   :  { %3403 = vrot.lane.b32.xlu0 %v15659_v9, %s14711_s28  ;;  %v3209_v50 = vpop.permute.xlu0 %3208  ;;  %v3378_v9 = vld [vmem:[#allocation2 + $0x131] sm:$0xff] }
 0x1f7   :  { %3229 = vst.msk [vmem:[#allocation3 + $0x80] sm:$0xff] %vm3129_vm11, %v3209_v50  ;;  %v3386_v28 = vpack.c.bf16 %v3378_v9, %v15945_v51  ;;  %v3483_v50 = vld [vmem:[#allocation3 + $0xc0] sm:$0xff] }
 0x1f8   :  { %13136 = vmatpush3.bf16.msra.mxu1 %v13529_v61  ;;  %v3473_v61 = vld [vmem:[#allocation3 + $0x70] sm:$0xff] }
 0x1f9   :  { %13137 = vmatprep.subr.bf16.mxu1 %v13530_v62  ;;  %v3478_v62 = vld [vmem:[#allocation3 + $0x98] sm:$0xff] }
 0x1fa   :  { %3405 = vrot.lane.b32.xlu0 %v15750_v43, %s14711_s28 }
 0x1fc   :  { %13138 = vmatpush3.bf16.msra.mxu1 %v13531_v24 }
 0x1fd   :  { %13311 = vmatprep.subr.bf16.mxu1 %v16018_v46 }
 0x1fe   :  { %3407 = vrot.lane.b32.xlu0 %v15780_v44, %s14711_s28  ;;  %v3475_v49 = vld [vmem:[#allocation3 + $0x80] sm:$0xff] }
 0x1ff   :  { %3867 = vmatprep.mubr.bf16.mxu1 %v3475_v49 }
 0x200   :  { %3868 = vmatmul.mubr.bf16.gmra.mrb[76].mxu1 %v3474_v13 }
 0x202   :  { %3409 = vrot.lane.b32.xlu0 %v3386_v28, %s14711_s28 }
 0x206   :  { %v3114_v53 = vpop.permute.xlu1 %3113 }
 0x207   :  { %3134 = vst.msk [vmem:[#allocation3 + $0xa0] sm:$0xff] %vm3129_vm11, %v3114_v53  ;;  %v3488_v53 = vld [vmem:[#allocation3 + $0xe8] sm:$0xff] }
 0x20e   :  { %v3479_v44 = vld [vmem:[#allocation3 + $0xa0] sm:$0xff] }
 0x216   :  { %v3211_v35 = vpop.permute.xlu0 %3210 }
 0x217   :  { %3230 = vst.msk [vmem:[#allocation3 + $0xa8] sm:$0xff] %vm3129_vm11, %v3211_v35  ;;  %v3493_v35 = vld [vmem:[#allocation3 + $0x110] sm:$0xff] }
 0x219   :  { %v3116_v43 = vpop.permute.xlu1 %3115 }
 0x21a   :  { %3135 = vst.msk [vmem:[#allocation3 + $0xc8] sm:$0xff] %vm3129_vm11, %v3116_v43 }
 0x21e   :  { %v3480_v20 = vld [vmem:[#allocation3 + $0xa8] sm:$0xff] }
 0x21f   :  { %3875 = vmatprep.mubr.bf16.mxu1 %v3480_v20 }
 0x220   :  { %3876 = vmatmul.mubr.bf16.gmra.mrb[80].mxu1 %v3479_v44 }
 0x221   :  { %v3484_v54 = vld [vmem:[#allocation3 + $0xc8] sm:$0xff] }
 0x235   :  { %v3213_v15 = vpop.permute.xlu0 %3212 }
 0x236   :  { %3231 = vst.msk [vmem:[#allocation3 + $0xd0] sm:$0xff] %vm3129_vm11, %v3213_v15 }
 0x23c   :  { %v3118_v7 = vpop.permute.xlu1 %3117 }
 0x23d   :  { %3136 = vst.msk [vmem:[#allocation3 + $0xf0] sm:$0xff] %vm3129_vm11, %v3118_v7  ;;  %v3485_v8 = vld [vmem:[#allocation3 + $0xd0] sm:$0xff] }
 0x23e   :  { %3883 = vmatprep.mubr.bf16.mxu1 %v3485_v8  ;;  %v3215_v5 = vpop.permute.xlu0 %3214 }
 0x23f   :  { %3884 = vmatmul.mubr.bf16.gmra.mrb[84].mxu1 %v3484_v54  ;;  %3232 = vst.msk [vmem:[#allocation3 + $0xf8] sm:$0xff] %vm3129_vm11, %v3215_v5  ;;  %v3498_v54 = vld [vmem:[#allocation3 + $0x138] sm:$0xff] }
 0x244   :  { %v3120_v58 = vpop.permute.xlu1 %3119  ;;  %v3489_v4 = vld [vmem:[#allocation3 + $0xf0] sm:$0xff] }
 0x245   :  { %3137 = vst.msk [vmem:[#allocation3 + $0x118] sm:$0xff] %vm3129_vm11, %v3120_v58 }
 0x246   :  { %v3490_v60 = vld [vmem:[#allocation3 + $0xf8] sm:$0xff] }
 0x247   :  { %3891 = vmatprep.mubr.bf16.mxu1 %v3490_v60 }
 0x248   :  { %3892 = vmatmul.mubr.bf16.gmra.mrb[88].mxu1 %v3489_v4  ;;  %v3299_v26 = vpop.permute.xlu1 %3298 }
 0x249   :  { %3322 = vst.msk [vmem:[#allocation3 + $0x10] sm:$0xff] %vm3129_vm11, %v3299_v26 }
 0x24c   :  { %v3301_v1 = vpop.permute.xlu1 %3300  ;;  %v3494_v40 = vld [vmem:[#allocation3 + $0x118] sm:$0xff] }
 0x24d   :  { %3323 = vst.msk [vmem:[#allocation3 + $0x38] sm:$0xff] %vm3129_vm11, %v3301_v1 }
 0x250   :  { %v3303_v37 = vpop.permute.xlu1 %3302  ;;  %v3461_v42 = vld [vmem:[#allocation3 + $0x10] sm:$0xff] }
 0x251   :  { %3324 = vst.msk [vmem:[#allocation3 + $0x60] sm:$0xff] %vm3129_vm11, %v3303_v37 }
 0x254   :  { %v3217_v23 = vpop.permute.xlu0 %3216  ;;  %v3305_v32 = vpop.permute.xlu1 %3304  ;;  %v3466_v52 = vld [vmem:[#allocation3 + $0x38] sm:$0xff] }
 0x255   :  { %3233 = vst.msk [vmem:[#allocation3 + $0x120] sm:$0xff] %vm3129_vm11, %v3217_v23  ;;  %3325 = vst.msk [vmem:[#allocation3 + $0x88] sm:$0xff] %vm3129_vm11, %v3305_v32 }
 0x258   :  { %v3396_v25 = vpop.permute.xlu0 %3395  ;;  %v3471_v3 = vld [vmem:[#allocation3 + $0x60] sm:$0xff] }
 0x259   :  { %v3307_v18 = vpop.permute.xlu1 %3306  ;;  %3419 = vst.msk [vmem:[#allocation3 + $0x18] sm:$0xff] %vm3129_vm11, %v3396_v25 }
 0x25a   :  { %3326 = vst.msk [vmem:[#allocation3 + $0xb0] sm:$0xff] %vm3129_vm11, %v3307_v18 }
 0x25c   :  { %v3398_v6 = vpop.permute.xlu0 %3397  ;;  %v3495_v30 = vld [vmem:[#allocation3 + $0x120] sm:$0xff]  ;;  %v3476_v39 = vld [vmem:[#allocation3 + $0x88] sm:$0xff] }
 0x25d   :  { %v3309_v2 = vpop.permute.xlu1 %3308  ;;  %3420 = vst.msk [vmem:[#allocation3 + $0x40] sm:$0xff] %vm3129_vm11, %v3398_v6  ;;  %3899 = vmatprep.mubr.bf16.mxu1 %v3495_v30 }
 0x25e   :  { %3327 = vst.msk [vmem:[#allocation3 + $0xd8] sm:$0xff] %vm3129_vm11, %v3309_v2  ;;  %3900 = vmatmul.mubr.bf16.gmra.mrb[92].mxu1 %v3494_v40 }
 0x260   :  { %v3400_v29 = vpop.permute.xlu0 %3399  ;;  %v3462_v19 = vld [vmem:[#allocation3 + $0x18] sm:$0xff] }
 0x261   :  { %v3311_v16 = vpop.permute.xlu1 %3310  ;;  %3421 = vst.msk [vmem:[#allocation3 + $0x68] sm:$0xff] %vm3129_vm11, %v3400_v29  ;;  %3940 = vmatprep.mubr.bf16.mxu1 %v3462_v19  ;;  %v3481_v22 = vld [vmem:[#allocation3 + $0xb0] sm:$0xff] }
 0x262   :  { %3328 = vst.msk [vmem:[#allocation3 + $0x100] sm:$0xff] %vm3129_vm11, %v3311_v16 }
 0x264   :  { %v3402_v63 = vpop.permute.xlu0 %3401  ;;  %v3467_v48 = vld [vmem:[#allocation3 + $0x40] sm:$0xff] }
 0x265   :  { %v3313_v51 = vpop.permute.xlu1 %3312  ;;  %3422 = vst.msk [vmem:[#allocation3 + $0x90] sm:$0xff] %vm3129_vm11, %v3402_v63  ;;  %v3486_v17 = vld [vmem:[#allocation3 + $0xd8] sm:$0xff] }
 0x266   :  { %3329 = vst.msk [vmem:[#allocation3 + $0x128] sm:$0xff] %vm3129_vm11, %v3313_v51  ;;  %3941 = vmatmul.mubr.bf16.vlgmr.msra.gmra.mrb[96].mxu1 %v3461_v42 }
 0x267   :  { %13312 = vmatpush3.bf16.msra.mxu1 %v16018_v46  ;;  %3948 = vmatprep.mubr.bf16.mxu1 %v3467_v48 }
 0x268   :  { %v3404_v12 = vpop.permute.xlu0 %3403  ;;  %13313 = vmatprep.subr.bf16.mxu1 %v13533_v27  ;;  %v3472_v59 = vld [vmem:[#allocation3 + $0x68] sm:$0xff] }
 0x269   :  { %3423 = vst.msk [vmem:[#allocation3 + $0xb8] sm:$0xff] %vm3129_vm11, %v3404_v12  ;;  %v3491_v14 = vld [vmem:[#allocation3 + $0x100] sm:$0xff] }
 0x26b   :  { %13314 = vmatpush3.bf16.msra.mxu1 %v13533_v27 }
 0x26c   :  { %v3406_v45 = vpop.permute.xlu0 %3405  ;;  %13315 = vmatprep.subr.bf16.mxu1 %v13534_v47  ;;  %v3477_v36 = vld [vmem:[#allocation3 + $0x90] sm:$0xff] }
 0x26d   :  { %3424 = vst.msk [vmem:[#allocation3 + $0xe0] sm:$0xff] %vm3129_vm11, %v3406_v45  ;;  %v3496_v11 = vld [vmem:[#allocation3 + $0x128] sm:$0xff] }
 0x26e   :  { %3949 = vmatmul.mubr.bf16.gmra.mrb[100].mxu1 %v3466_v52 }
 0x26f   :  { %3956 = vmatprep.mubr.bf16.mxu1 %v3472_v59  ;;  %13316 = vmatpush3.bf16.msra.mxu1 %v13534_v47 }
 0x270   :  { %v3408_v38 = vpop.permute.xlu0 %3407  ;;  %13317 = vmatprep.subr.bf16.mxu1 %v13535_v33  ;;  %v3482_v0 = vld [vmem:[#allocation3 + $0xb8] sm:$0xff] }
 0x271   :  { %3425 = vst.msk [vmem:[#allocation3 + $0x108] sm:$0xff] %vm3129_vm11, %v3408_v38 }
 0x273   :  { %13318 = vmatpush3.bf16.msra.mxu1 %v13535_v33 }
 0x274   :  { %v3410_v34 = vpop.permute.xlu0 %3409  ;;  %v3487_v21 = vld [vmem:[#allocation3 + $0xe0] sm:$0xff] }
 0x275   :  { %3426 = vst.msk [vmem:[#allocation3 + $0x130] sm:$0xff] %vm3129_vm11, %v3410_v34  ;;  %v13536_v34 = vld [vmem:[%s18844_s5 + $0x80] ss:$8 sps:$4 sm:$0xff]  }
 0x276   :  { %3957 = vmatmul.mubr.bf16.gmra.mrb[104].mxu1 %v3471_v3  ;;  %v13538_v3 = vld [vmem:[%s18844_s5 + $0x84] ss:$8 sps:$4 sm:$0xff]  }
 0x277   :  { %3964 = vmatprep.mubr.bf16.mxu1 %v3477_v36  ;;  %v13541_v36 = vld [vmem:[%s18844_s5 + $0x94] ss:$8 sps:$4 sm:$0xff]   ;;  %4884 = vmatprep.subr.bf16.mxu1 %v13538_v3 }
 0x278   :  { %v3492_v31 = vld [vmem:[#allocation3 + $0x108] sm:$0xff] }
 0x27c   :  { %v3497_v56 = vld [vmem:[#allocation3 + $0x130] sm:$0xff] }
 0x27e   :  { %3965 = vmatmul.mubr.bf16.gmra.mrb[108].mxu1 %v3476_v39  ;;  %v13539_v39 = vld [vmem:[%s18844_s5 + $0x90] ss:$8 sps:$4 sm:$0xff]  }
 0x27f   :  { %3972 = vmatprep.mubr.bf16.mxu1 %v3482_v0 }
 0x286   :  { %3973 = vmatmul.mubr.bf16.gmra.mrb[112].mxu1 %v3481_v22 }
 0x287   :  { %3980 = vmatprep.mubr.bf16.mxu1 %v3487_v21  ;;  %v13542_v21 = vld [vmem:[%s18844_s5 + $0xa0] ss:$8 sps:$4 sm:$0xff]  }
 0x28e   :  { %3981 = vmatmul.mubr.bf16.gmra.mrb[116].mxu1 %v3486_v17  ;;  %v13544_v17 = vld [vmem:[%s18844_s5 + $0xa4] ss:$8 sps:$4 sm:$0xff]  }
 0x28f   :  { %3988 = vmatprep.mubr.bf16.mxu1 %v3492_v31 }
 0x296   :  { %3989 = vmatmul.mubr.bf16.gmra.mrb[120].mxu1 %v3491_v14 }
 0x297   :  { %3996 = vmatprep.mubr.bf16.mxu1 %v3497_v56  ;;  %v13547_v56 = vld [vmem:[%s18844_s5 + $0xb4] ss:$8 sps:$4 sm:$0xff]  }
 0x29e   :  { %3997 = vmatmul.mubr.bf16.gmra.mrb[124].mxu1 %v3496_v11 }
 0x29f   :  { %13319 = vmatprep.mubr.msk.bf16.mxu1 %vm2205_vm1, %v3463_v10 }
 0x2a6   :  { %13320 = vmatmul.mubr.msk.bf16.vlgmr.msra.gmra.mrb[128].mxu1 %vm2205_vm1, %v3468_v55  ;;  %v13545_v55 = vld [vmem:[%s18844_s5 + $0xb0] ss:$8 sps:$4 sm:$0xff]  }
 0x2a7   :  { %13323 = vmatprep.mubr.msk.bf16.mxu1 %vm2205_vm1, %v3473_v61  ;;  %4885 = vmatpush1.bf16.msra.mxu1 %v13536_v34 }
 0x2a8   :  { %4886 = vmatprep.subr.bf16.mxu1 %v13541_v36 }
 0x2ab   :  { %4887 = vmatpush1.bf16.msra.mxu1 %v13539_v39 }
 0x2ac   :  { %4888 = vmatprep.subr.bf16.mxu1 %v13544_v17 }
 0x2ae   :  { %13324 = vmatmul.mubr.msk.bf16.gmra.mrb[132].mxu1 %vm2205_vm1, %v3478_v62 }
 0x2af   :  { %13327 = vmatprep.mubr.msk.bf16.mxu1 %vm2205_vm1, %v3483_v50  ;;  %4889 = vmatpush1.bf16.msra.mxu1 %v13542_v21 }
 0x2b0   :  { %4890 = vmatprep.subr.bf16.mxu1 %v13547_v56 }
 0x2b1   :  { %v13075_v24 = vpop.f32.mrb[64].mxu1 }
 0x2b2   :  { %v13076_v46 = vpop.f32.mrb[65].mxu1 }
 0x2b3   :  { %v16066_v9 = vadd.f32 %v13076_v46, %v13075_v24  ;;  %v13078_v49 = vpop.f32.mrb[66].mxu1  ;;  %4891 = vmatpush1.bf16.msra.mxu1 %v13545_v55 }
 0x2b4   :  { %v13079_v13 = vpop.f32.mrb[67].mxu1 }
 0x2b5   :  { %v16068_v28 = vadd.f32 %v13079_v13, %v13078_v49 }
 0x2b6   :  { %13328 = vmatmul.mubr.msk.bf16.gmra.mrb[136].mxu1 %vm2205_vm1, %v3488_v53 }
 0x2b7   :  { %13331 = vmatprep.mubr.msk.bf16.mxu1 %vm2205_vm1, %v3493_v35 }
 0x2b9   :  { %v13081_v43 = vpop.f32.mrb[68].mxu1 }
 0x2ba   :  { %v13082_v20 = vpop.f32.mrb[69].mxu1 }
 0x2bb   :  { %v16072_v44 = vadd.f32 %v13082_v20, %v13081_v43  ;;  %v13084_v15 = vpop.f32.mrb[70].mxu1  ;;  %v13548_v20 = vld [vmem:[%s18844_s5 + $0xc0] ss:$8 sps:$4 sm:$0xff]  }
 0x2bc   :  { %v13085_v7 = vpop.f32.mrb[71].mxu1 }
 0x2bd   :  { %v16074_v8 = vadd.f32 %v13085_v7, %v13084_v15  ;;  %v13550_v15 = vld [vmem:[%s18844_s5 + $0xc4] ss:$8 sps:$4 sm:$0xff]  }
 0x2be   :  { %13332 = vmatmul.mubr.msk.bf16.gmra.mrb[140].mxu1 %vm2205_vm1, %v3498_v54  ;;  %4892 = vmatprep.subr.bf16.mxu1 %v13550_v15 }
 0x2bf   :  { %4893 = vmatpush1.bf16.msra.mxu1 %v13548_v20 }
 0x2c1   :  { %v13087_v5 = vpop.f32.mrb[72].mxu1 }
 0x2c2   :  { %v13088_v58 = vpop.f32.mrb[73].mxu1 }
 0x2c3   :  { %v16077_v60 = vadd.f32 %v13088_v58, %v13087_v5  ;;  %v13090_v4 = vpop.f32.mrb[74].mxu1  ;;  %v14712_v5 = vmov 0  }
 0x2c4   :  { %v13091_v26 = vpop.f32.mrb[75].mxu1  ;;  %4916 = vmatprep.mubr.bf16.mxu1 %v14712_v5 }
 0x2c5   :  { %v16079_v1 = vadd.f32 %v13091_v26, %v13090_v4  ;;  %v13551_v26 = vld [vmem:[%s18844_s5 + $0xd0] ss:$8 sps:$4 sm:$0xff]  }
 0x2d3   :  { %v13093_v37 = vpop.f32.mrb[76].mxu1 }
 0x2d4   :  { %v13094_v23 = vpop.f32.mrb[77].mxu1 }
 0x2d5   :  { %v16081_v32 = vadd.f32 %v13094_v23, %v13093_v37  ;;  %v13096_v25 = vpop.f32.mrb[78].mxu1  ;;  %v13556_v37 = vld [vmem:[%s18844_s5 + $0xe4] ss:$8 sps:$4 sm:$0xff]  }
 0x2d6   :  { %v13097_v18 = vpop.f32.mrb[79].mxu1 }
 0x2d7   :  { %v16083_v6 = vadd.f32 %v13097_v18, %v13096_v25 }
 0x2f3   :  { %v13099_v30 = vpop.f32.mrb[80].mxu1 }
 0x2f4   :  { %v13100_v2 = vpop.f32.mrb[81].mxu1 }
 0x2f5   :  { %v16085_v40 = vadd.f32 %v13100_v2, %v13099_v30  ;;  %v13102_v29 = vpop.f32.mrb[82].mxu1  ;;  %v13559_v30 = vld [vmem:[%s18844_s5 + $0xf4] ss:$8 sps:$4 sm:$0xff]  }
 0x2f6   :  { %v13103_v19 = vpop.f32.mrb[83].mxu1 }
 0x2f7   :  { %v16087_v16 = vadd.f32 %v13103_v19, %v13102_v29 }
 0x312   :  { %v13105_v63 = vpop.f32.mrb[84].mxu1 }
 0x313   :  { %v13106_v51 = vpop.f32.mrb[85].mxu1 }
 0x314   :  { %v16089_v27 = vadd.f32 %v13106_v51, %v13105_v63  ;;  %v13108_v42 = vpop.f32.mrb[86].mxu1 }
 0x315   :  { %v13109_v48 = vpop.f32.mrb[87].mxu1 }
 0x316   :  { %v16091_v12 = vadd.f32 %v13109_v48, %v13108_v42  ;;  %v13562_v42 = vld [vmem:[%s18844_s5 + $0x4] ss:$8 sps:$4 sm:$0xff]  }
 0x31b   :  { %v13111_v47 = vpop.f32.mrb[88].mxu1 }
 0x31c   :  { %v13112_v45 = vpop.f32.mrb[89].mxu1 }
 0x31d   :  { %v16093_v33 = vadd.f32 %v13112_v45, %v13111_v47  ;;  %v13114_v52 = vpop.f32.mrb[90].mxu1 }
 0x31e   :  { %v13115_v59 = vpop.f32.mrb[91].mxu1 }
 0x31f   :  { %v16095_v38 = vadd.f32 %v13115_v59, %v13114_v52 }
 0x331   :  { %v13117_v0 = vpop.f32.mrb[92].mxu1 }
 0x332   :  { %v13118_v22 = vpop.f32.mrb[93].mxu1 }
 0x333   :  { %v16115_v31 = vadd.f32 %v13118_v22, %v13117_v0  ;;  %v13120_v14 = vpop.f32.mrb[94].mxu1 }
 0x334   :  { %v13121_v11 = vpop.f32.mrb[95].mxu1 }
 0x335   :  { %v16120_v10 = vadd.f32 %v13121_v11, %v13120_v14 }
 0x339   :  { %v13139_v61 = vpop.f32.mrb[96].mxu1 }
 0x33a   :  { %v13140_v62 = vpop.f32.mrb[97].mxu1 }
 0x33b   :  { %v13141_v50 = vadd.f32 %v13140_v62, %v13139_v61  ;;  %v13142_v24 = vpop.f32.mrb[98].mxu1 }
 0x33c   :  { %v13143_v46 = vpop.f32.mrb[99].mxu1 }
 0x33d   :  { %v13144_v49 = vadd.f32 %v13143_v46, %v13142_v24  ;;  %v16126_v13 = vadd.f32 %v13141_v50, %v16066_v9  ;;  %v13553_v9 = vld [vmem:[%s18844_s5 + $0xd4] ss:$8 sps:$4 sm:$0xff]  }
 0x33e   :  { %4894 = vmatprep.subr.bf16.mxu1 %v13553_v9 }
 0x33f   :  { %v16129_v53 = vadd.f32 %v13144_v49, %v16068_v28  ;;  %4895 = vmatpush1.bf16.msra.mxu1 %v13551_v26  ;;  %v12207_v26 = vld [vmem:[%s18843_s4] ss:$0 sm:$0xff] }
 0x340   :  { %4896 = vmatprep.subr.bf16.mxu1 %v13556_v37 }
 0x341   :  { %v13145_v35 = vpop.f32.mrb[100].mxu1 }
 0x342   :  { %v13146_v43 = vpop.f32.mrb[101].mxu1 }
 0x343   :  { %v13147_v7 = vadd.f32 %v13146_v43, %v13145_v35  ;;  %v13148_v54 = vpop.f32.mrb[102].mxu1 }
 0x344   :  { %v13149_v28 = vpop.f32.mrb[103].mxu1 }
 0x345   :  { %v13150_v58 = vadd.f32 %v13149_v28, %v13148_v54  ;;  %v16142_v4 = vadd.f32 %v13147_v7, %v16072_v44  ;;  %v13554_v44 = vld [vmem:[%s18844_s5 + $0xe0] ss:$8 sps:$4 sm:$0xff]  }
 0x346   :  { %4897 = vmatpush1.bf16.msra.mxu1 %v13554_v44 }
 0x347   :  { %v16151_v23 = vadd.f32 %v13150_v58, %v16074_v8  ;;  %v13557_v8 = vld [vmem:[%s18844_s5 + $0xf0] ss:$8 sps:$4 sm:$0xff]   ;;  %4898 = vmatprep.subr.bf16.mxu1 %v13559_v30 }
 0x349   :  { %v13151_v25 = vpop.f32.mrb[104].mxu1 }
 0x34a   :  { %v13152_v18 = vpop.f32.mrb[105].mxu1  ;;  %4899 = vmatpush1.bf16.msra.mxu1 %v13557_v8 }
 0x34b   :  { %v13153_v2 = vadd.f32 %v13152_v18, %v13151_v25  ;;  %v13154_v29 = vpop.f32.mrb[106].mxu1  ;;  %5017 = vmatprep.subr.bf16.mxu1 %v13562_v42 }
 0x34c   :  { %v13155_v19 = vpop.f32.mrb[107].mxu1 }
 0x34d   :  { %v13156_v63 = vadd.f32 %v13155_v19, %v13154_v29  ;;  %v16160_v51 = vadd.f32 %v13153_v2, %v16077_v60 }
 0x34f   :  { %v16169_v48 = vadd.f32 %v13156_v63, %v16079_v1 }
 0x351   :  { %v13157_v47 = vpop.f32.mrb[108].mxu1 }
 0x352   :  { %v13158_v45 = vpop.f32.mrb[109].mxu1 }
 0x353   :  { %v13159_v52 = vadd.f32 %v13158_v45, %v13157_v47  ;;  %v13160_v60 = vpop.f32.mrb[110].mxu1 }
 0x354   :  { %v13161_v59 = vpop.f32.mrb[111].mxu1 }
 0x355   :  { %v13162_v34 = vadd.f32 %v13161_v59, %v13160_v60  ;;  %v3967_v3 = vadd.f32 %v13159_v52, %v16081_v32 }
 0x357   :  { %v16173_v36 = vadd.f32 %v13162_v34, %v16083_v6 }
 0x359   :  { %v13163_v39 = vpop.f32.mrb[112].mxu1 }
 0x35a   :  { %v13164_v0 = vpop.f32.mrb[113].mxu1 }
 0x35b   :  { %v13165_v22 = vadd.f32 %v13164_v0, %v13163_v39  ;;  %v13166_v21 = vpop.f32.mrb[114].mxu1 }
 0x35c   :  { %v13167_v17 = vpop.f32.mrb[115].mxu1 }
 0x35d   :  { %v13168_v1 = vadd.f32 %v13167_v17, %v13166_v21  ;;  %v16176_v14 = vadd.f32 %v13165_v22, %v16085_v40 }
 0x35f   :  { %v16179_v56 = vadd.f32 %v13168_v1, %v16087_v16 }
 0x361   :  { %v13169_v11 = vpop.f32.mrb[116].mxu1 }
 0x362   :  { %v13170_v55 = vpop.f32.mrb[117].mxu1 }
 0x363   :  { %v13171_v61 = vadd.f32 %v13170_v55, %v13169_v11  ;;  %v13172_v62 = vpop.f32.mrb[118].mxu1 }
 0x364   :  { %v13173_v32 = vpop.f32.mrb[119].mxu1 }
 0x365   :  { %v13174_v50 = vadd.f32 %v13173_v32, %v13172_v62  ;;  %v16182_v6 = vadd.f32 %v13171_v61, %v16089_v27 }
 0x367   :  { %v16185_v24 = vadd.f32 %v13174_v50, %v16091_v12 }
 0x369   :  { %v13175_v46 = vpop.f32.mrb[120].mxu1 }
 0x36a   :  { %v13176_v49 = vpop.f32.mrb[121].mxu1 }
 0x36b   :  { %v13177_v35 = vadd.f32 %v13176_v49, %v13175_v46  ;;  %v13178_v40 = vpop.f32.mrb[122].mxu1 }
 0x36c   :  { %v13179_v43 = vpop.f32.mrb[123].mxu1 }
 0x36d   :  { %v13180_v20 = vadd.f32 %v13179_v43, %v13178_v40  ;;  %v16188_v16 = vadd.f32 %v13177_v35, %v16093_v33 }
 0x36f   :  { %v16191_v15 = vadd.f32 %v13180_v20, %v16095_v38  ;;  %v16203_v38 = vrot.slane %v12207_v26, %v15017_v41 }
 0x371   :  { %v13181_v7 = vpop.f32.mrb[124].mxu1  ;;  %v16210_v29 = vcombine.high %v16203_v38, %v16203_v38 }
 0x372   :  { %v13182_v54 = vpop.f32.mrb[125].mxu1 }
 0x373   :  { %v13183_v9 = vadd.f32 %v13182_v54, %v13181_v7  ;;  %v13184_v27 = vpop.f32.mrb[126].mxu1 }
 0x374   :  { %v13185_v28 = vpop.f32.mrb[127].mxu1 }
 0x375   :  { %v13186_v58 = vadd.f32 %v13185_v28, %v13184_v27  ;;  %v16194_v12 = vadd.f32 %v13183_v9, %v16115_v31 }
 0x377   :  { %v16200_v37 = vadd.f32 %v13186_v58, %v16120_v10 }
 0x379   :  { %v13321_v33 = vpop.f32.mrb[128].mxu1 }
 0x37a   :  { %v4048_v25 = vadd.f32 %v13321_v33, %v16142_v4  ;;  %v4039_v44 = vpop.f32.mrb[129].mxu1  ;;  %v16215_v4 = vrot.slane %v16203_v38, 1 }
 0x37b   :  { %v4040_v18 = vadd.f32 %v4039_v44, %v16126_v13  ;;  %v13322_v30 = vpop.f32.mrb[130].mxu1  ;;  %v16218_v13 = vrot.slane %v16210_v29, 1 }
 0x37c   :  { %v4051_v31 = vadd.f32 %v13322_v30, %v16151_v23  ;;  %v4042_v2 = vpop.f32.mrb[131].mxu1 }
 0x37d   :  { %v4043_v10 = vadd.f32 %v4042_v2, %v16129_v53 }
 0x37e   :  { %v4104_v19 = vmax.f32 %v4048_v25, %v4051_v31 }
 0x37f   :  { %v4103_v63 = vmax.f32 %v4040_v18, %v4043_v10 }
 0x380   :  { %v4136_v8 = vcombine.high %v4104_v19, %v4104_v19  ;;  %v4143_v42 = vrot.slane %v4104_v19, %v15017_v41 }
 0x381   :  { %v4119_v47 = vcombine.high %v4103_v63, %v4103_v63  ;;  %v4126_v23 = vrot.slane %v4103_v63, %v15017_v41  ;;  %v13325_v45 = vpop.f32.mrb[132].mxu1 }
 0x382   :  { %v4150_v52 = vrot.slane %v4136_v8, %v15017_v41  ;;  %v4151_v60 = vcombine.high %v4143_v42, %v4143_v42  ;;  %v12179_v59 = vrot.slane %v4143_v42, 9  ;;  %v4064_v53 = vadd.f32 %v13325_v45, %v3967_v3  ;;  %v4055_v34 = vpop.f32.mrb[133].mxu1 }
 0x383   :  { %v4133_v39 = vrot.slane %v4119_v47, %v15017_v41  ;;  %v4134_v0 = vcombine.high %v4126_v23, %v4126_v23  ;;  %v12175_v22 = vrot.slane %v4126_v23, 9  ;;  %v4056_v21 = vadd.f32 %v4055_v34, %v16160_v51  ;;  %v13326_v17 = vpop.f32.mrb[134].mxu1 }
 0x384   :  { %v4152_v1 = vcombine.high %v4150_v52, %v4150_v52  ;;  %v12180_v11 = vrot.slane %v4151_v60, 9  ;;  %v12181_v55 = vrot.slane %v4150_v52, 9  ;;  %v4387_v61 = vmax.f32 %v4143_v42, %v12179_v59  ;;  %v4058_v62 = vpop.f32.mrb[135].mxu1 }
 0x385   :  { %v4135_v32 = vcombine.high %v4133_v39, %v4133_v39  ;;  %v12176_v50 = vrot.slane %v4134_v0, 9  ;;  %v12177_v46 = vrot.slane %v4133_v39, 9  ;;  %v4383_v49 = vmax.f32 %v4126_v23, %v12175_v22 }
 0x386   :  { %v12182_v35 = vrot.slane %v4152_v1, 9  ;;  %v4388_v40 = vmax.f32 %v4151_v60, %v12180_v11  ;;  %v4389_v3 = vmax.f32 %v4150_v52, %v12181_v55  ;;  %v4438_v43 = vadd.f32 %v16203_v38, %v4387_v61 }
 0x387   :  { %v12178_v20 = vrot.slane %v4135_v32, 9  ;;  %v4384_v7 = vmax.f32 %v4134_v0, %v12176_v50  ;;  %v4385_v54 = vmax.f32 %v4133_v39, %v12177_v46  ;;  %v4434_v51 = vadd.f32 %v16203_v38, %v4383_v49 }
 0x388   :  { %v4390_v9 = vmax.f32 %v4152_v1, %v12182_v35  ;;  %v4439_v27 = vadd.f32 %v16215_v4, %v4388_v40  ;;  %v4440_v28 = vadd.f32 %v16210_v29, %v4389_v3  ;;  %v4470_v58 = vmax.f32 %v4438_v43, 0.0 }
 0x389   :  { %v4386_v26 = vmax.f32 %v4135_v32, %v12178_v20  ;;  %v4435_v33 = vadd.f32 %v16215_v4, %v4384_v7  ;;  %v4436_v25 = vadd.f32 %v16210_v29, %v4385_v54  ;;  %v4466_v44 = vmax.f32 %v4434_v51, 0.0  ;;  %v13329_v18 = vpop.f32.mrb[136].mxu1 }
 0x38a   :  { %v4441_v30 = vadd.f32 %v16218_v13, %v4390_v9  ;;  %v4471_v31 = vmax.f32 %v4439_v27, 0.0  ;;  %v4472_v2 = vmax.f32 %v4440_v28, 0.0  ;;  %v4571_v10 = vrot.slane %v4470_v58, %v15041_v57  ;;  %v4071_v19 = vpop.f32.mrb[137].mxu1 }
 0x38b   :  { %v4437_v63 = vadd.f32 %v16218_v13, %v4386_v26  ;;  %v4467_v8 = vmax.f32 %v4435_v33, 0.0  ;;  %v4468_v42 = vmax.f32 %v4436_v25, 0.0  ;;  %v4555_v47 = vrot.slane %v4466_v44, %v15041_v57  ;;  %v13330_v23 = vpop.f32.mrb[138].mxu1 }
 0x38c   :  { %v4473_v45 = vmax.f32 %v4441_v30, 0.0  ;;  %v4575_v52 = vrot.slane %v4471_v31, %v15041_v57  ;;  %v4579_v60 = vrot.slane %v4472_v2, %v15041_v57  ;;  %v4067_v59 = vadd.f32 %v13326_v17, %v16173_v36  ;;  %v4074_v34 = vpop.f32.mrb[139].mxu1 }
 0x38d   :  { %v4469_v39 = vmax.f32 %v4437_v63, 0.0  ;;  %v4559_v0 = vrot.slane %v4467_v8, %v15041_v57  ;;  %v4563_v22 = vrot.slane %v4468_v42, %v15041_v57  ;;  %v4059_v1 = vadd.f32 %v4058_v62, %v16169_v48 }
 0x38e   :  { %v4583_v11 = vrot.slane %v4473_v45, %v15041_v57  ;;  %v4683_v55 = vsel %vm2890_vm4, %v4575_v52, %v4571_v10  ;;  %v4106_v61 = vmax.f32 %v4064_v53, %v4067_v59  ;;  %v4080_v32 = vadd.f32 %v13329_v18, %v16182_v6 }
 0x38f   :  { %v4684_v50 = vsel %vm2892_vm5, %v4579_v60, %v4683_v55  ;;  %v4567_v46 = vrot.slane %v4469_v39, %v15041_v57  ;;  %v4680_v36 = vsel %vm2890_vm4, %v4559_v0, %v4555_v47  ;;  %v4105_v17 = vmax.f32 %v4056_v21, %v4059_v1 }
 0x390   :  { %v4685_v49 = vsel %vm2894_vm6, %v4583_v11, %v4684_v50  ;;  %v4681_v35 = vsel %vm2892_vm5, %v4563_v22, %v4680_v36  ;;  %v4170_v40 = vcombine.high %v4106_v61, %v4106_v61  ;;  %v4177_v48 = vrot.slane %v4106_v61, %v15017_v41 }
 0x391   :  { %4713 = vst [vmem:[#allocation4 + $0x11] sm:$0xf] %v4685_v49  ;;  %v4682_v62 = vsel %vm2894_vm6, %v4567_v46, %v4681_v35  ;;  %v4153_v53 = vcombine.high %v4105_v17, %v4105_v17  ;;  %v4160_v6 = vrot.slane %v4105_v17, %v15017_v41  ;;  %v4072_v3 = vadd.f32 %v4071_v19, %v16176_v14  ;;  %v16252_v43 = vpop.f32.mrb[140].mxu1 }
 0x392   :  { %4712 = vst [vmem:[#allocation4 + $0x9] sm:$0xf] %v4682_v62  ;;  %v4184_v21 = vrot.slane %v4170_v40, %v15017_v41  ;;  %v4185_v20 = vcombine.high %v4177_v48, %v4177_v48  ;;  %v12187_v7 = vrot.slane %v4177_v48, 9  ;;  %v4083_v54 = vadd.f32 %v13330_v23, %v16185_v24  ;;  %v16256_v51 = vpop.f32.mrb[141].mxu1 }
 0x393   :  { %v4167_v9 = vrot.slane %v4153_v53, %v15017_v41  ;;  %v4168_v27 = vcombine.high %v4160_v6, %v4160_v6  ;;  %v12183_v28 = vrot.slane %v4160_v6, 9  ;;  %v4075_v58 = vadd.f32 %v4074_v34, %v16179_v56  ;;  %v16260_v26 = vpop.f32.mrb[142].mxu1 }
 0x394   :  { %v4186_v14 = vcombine.high %v4184_v21, %v4184_v21  ;;  %v12188_v33 = vrot.slane %v4185_v20, 9  ;;  %v12189_v25 = vrot.slane %v4184_v21, 9  ;;  %v4395_v44 = vmax.f32 %v4177_v48, %v12187_v7  ;;  %v16262_v18 = vpop.f32.mrb[143].mxu1 }
 0x395   :  { %v4169_v30 = vcombine.high %v4167_v9, %v4167_v9  ;;  %v12184_v31 = vrot.slane %v4168_v27, 9  ;;  %v12185_v2 = vrot.slane %v4167_v9, 9  ;;  %v4391_v24 = vmax.f32 %v4160_v6, %v12183_v28 }
 0x396   :  { %v12190_v10 = vrot.slane %v4186_v14, 9  ;;  %v4396_v19 = vmax.f32 %v4185_v20, %v12188_v33  ;;  %v4397_v63 = vmax.f32 %v4184_v21, %v12189_v25  ;;  %v4446_v8 = vadd.f32 %v16203_v38, %v4395_v44 }
 0x397   :  { %v12186_v42 = vrot.slane %v4169_v30, 9  ;;  %v4392_v47 = vmax.f32 %v4168_v27, %v12184_v31  ;;  %v4393_v56 = vmax.f32 %v4167_v9, %v12185_v2  ;;  %v4442_v23 = vadd.f32 %v16203_v38, %v4391_v24 }
 0x398   :  { %v4398_v45 = vmax.f32 %v4186_v14, %v12190_v10  ;;  %v4447_v52 = vadd.f32 %v16215_v4, %v4396_v19  ;;  %v4448_v60 = vadd.f32 %v16210_v29, %v4397_v63  ;;  %v4478_v59 = vmax.f32 %v4446_v8, 0.0 }
 0x399   :  { %v4394_v34 = vmax.f32 %v4169_v30, %v12186_v42  ;;  %v4443_v39 = vadd.f32 %v16215_v4, %v4392_v47  ;;  %v4444_v0 = vadd.f32 %v16210_v29, %v4393_v56  ;;  %v4474_v22 = vmax.f32 %v4442_v23, 0.0 }
 0x39a   :  { %v4449_v1 = vadd.f32 %v16218_v13, %v4398_v45  ;;  %v4479_v11 = vmax.f32 %v4447_v52, 0.0  ;;  %v4480_v55 = vmax.f32 %v4448_v60, 0.0  ;;  %v4603_v61 = vrot.slane %v4478_v59, %v15041_v57 }
 0x39b   :  { %v4445_v50 = vadd.f32 %v16218_v13, %v4394_v34  ;;  %v4475_v46 = vmax.f32 %v4443_v39, 0.0  ;;  %v4476_v36 = vmax.f32 %v4444_v0, 0.0  ;;  %v4587_v17 = vrot.slane %v4474_v22, %v15041_v57 }
 0x39c   :  { %v4481_v49 = vmax.f32 %v4449_v1, 0.0  ;;  %v4607_v35 = vrot.slane %v4479_v11, %v15041_v57  ;;  %v4611_v40 = vrot.slane %v4480_v55, %v15041_v57  ;;  %v4108_v48 = vmax.f32 %v4080_v32, %v4083_v54 }
 0x39d   :  { %v4477_v62 = vmax.f32 %v4445_v50, 0.0  ;;  %v4591_v53 = vrot.slane %v4475_v46, %v15041_v57  ;;  %v4595_v6 = vrot.slane %v4476_v36, %v15041_v57  ;;  %v4107_v21 = vmax.f32 %v4072_v3, %v4075_v58 }
 0x39e   :  { %v4615_v20 = vrot.slane %v4481_v49, %v15041_v57  ;;  %v4689_v7 = vsel %vm2890_vm4, %v4607_v35, %v4603_v61  ;;  %v4204_v9 = vcombine.high %v4108_v48, %v4108_v48  ;;  %v4211_v27 = vrot.slane %v4108_v48, %v15017_v41 }
 0x39f   :  { %v4690_v28 = vsel %vm2892_vm5, %v4611_v40, %v4689_v7  ;;  %v4599_v14 = vrot.slane %v4477_v62, %v15041_v57  ;;  %v4686_v33 = vsel %vm2890_vm4, %v4591_v53, %v4587_v17  ;;  %v4187_v32 = vcombine.high %v4107_v21, %v4107_v21 }
 0x3a0   :  { %v4691_v54 = vsel %vm2894_vm6, %v4615_v20, %v4690_v28  ;;  %v4687_v25 = vsel %vm2892_vm5, %v4595_v6, %v4686_v33  ;;  %v4218_v3 = vrot.slane %v4204_v9, %v15017_v41  ;;  %v4219_v58 = vcombine.high %v4211_v27, %v4211_v27 }
 0x3a1   :  { %4715 = vst [vmem:[#allocation4 + $0x21] sm:$0xf] %v4691_v54  ;;  %v4688_v44 = vsel %vm2894_vm6, %v4599_v14, %v4687_v25  ;;  %v12195_v30 = vrot.slane %v4211_v27, 9  ;;  %v4194_v31 = vrot.slane %v4107_v21, %v15017_v41  ;;  %v4201_v2 = vrot.slane %v4187_v32, %v15017_v41 }
 0x3a2   :  { %4714 = vst [vmem:[#allocation4 + $0x19] sm:$0xf] %v4688_v44  ;;  %v4220_v24 = vcombine.high %v4218_v3, %v4218_v3  ;;  %v12196_v10 = vrot.slane %v4219_v58, 9  ;;  %v12197_v19 = vrot.slane %v4218_v3, 9  ;;  %v4096_v63 = vadd.f32 %v16252_v43, %v16194_v12 }
 0x3a3   :  { %v4403_v8 = vmax.f32 %v4211_v27, %v12195_v30  ;;  %v4202_v42 = vcombine.high %v4194_v31, %v4194_v31  ;;  %v4203_v47 = vcombine.high %v4201_v2, %v4201_v2  ;;  %v12191_v56 = vrot.slane %v4194_v31, 9 }
 0x3a4   :  { %v12198_v23 = vrot.slane %v4220_v24, 9  ;;  %v4404_v45 = vmax.f32 %v4219_v58, %v12196_v10  ;;  %v4405_v52 = vmax.f32 %v4218_v3, %v12197_v19  ;;  %v12193_v60 = vrot.slane %v4201_v2, 9  ;;  %v13563_v3 = vld [vmem:[#allocation4 + $0x1] ss:$8 sps:$4 sm:$0xff]  }
 0x3a5   :  { %v4454_v59 = vadd.f32 %v16203_v38, %v4403_v8  ;;  %v12192_v34 = vrot.slane %v4202_v42, 9  ;;  %v12194_v39 = vrot.slane %v4203_v47, 9  ;;  %v4399_v0 = vmax.f32 %v4194_v31, %v12191_v56 }
 0x3a6   :  { %v4406_v22 = vmax.f32 %v4220_v24, %v12198_v23  ;;  %v4455_v1 = vadd.f32 %v16215_v4, %v4404_v45  ;;  %v4456_v11 = vadd.f32 %v16210_v29, %v4405_v52  ;;  %v4401_v55 = vmax.f32 %v4201_v2, %v12193_v60  ;;  %v13570_v52 = vld [vmem:[%s18844_s5 + $0x24] ss:$8 sps:$4 sm:$0xff]  }
 0x3a7   :  { %v4486_v12 = vmax.f32 %v4454_v59, 0.0  ;;  %v4400_v43 = vmax.f32 %v4202_v42, %v12192_v34  ;;  %v4402_v61 = vmax.f32 %v4203_v47, %v12194_v39  ;;  %v4450_v50 = vadd.f32 %v16203_v38, %v4399_v0  ;;  %v13565_v47 = vld [vmem:[%s18844_s5 + $0x10] ss:$8 sps:$4 sm:$0xff]  }
 0x3a8   :  { %v4457_v46 = vadd.f32 %v16218_v13, %v4406_v22  ;;  %v4487_v36 = vmax.f32 %v4455_v1, 0.0  ;;  %v4488_v17 = vmax.f32 %v4456_v11, 0.0  ;;  %v4452_v49 = vadd.f32 %v16210_v29, %v4401_v55 }
 0x3a9   :  { %v4635_v35 = vrot.slane %v4486_v12, %v15041_v57  ;;  %v4451_v40 = vadd.f32 %v16215_v4, %v4400_v43  ;;  %v4453_v48 = vadd.f32 %v16218_v13, %v4402_v61  ;;  %v4482_v62 = vmax.f32 %v4450_v50, 0.0  ;;  %v13564_v7 = vld [vmem:[#allocation4 + $0x11] ss:$8 sps:$4 sm:$0xff]   ;;  %v13568_v61 = vld [vmem:[%s18844_s5 + $0x20] ss:$8 sps:$4 sm:$0xff]  }
 0x3aa   :  { %v4489_v53 = vmax.f32 %v4457_v46, 0.0  ;;  %v4639_v6 = vrot.slane %v4487_v36, %v15041_v57  ;;  %v4643_v21 = vrot.slane %v4488_v17, %v15041_v57  ;;  %v4484_v20 = vmax.f32 %v4452_v49, 0.0  ;;  %v13573_v50 = vld [vmem:[%s18844_s5 + $0x34] ss:$8 sps:$4 sm:$0xff]  }
 0x3ab   :  { %v4483_v9 = vmax.f32 %v4451_v40, 0.0  ;;  %v4485_v27 = vmax.f32 %v4453_v48, 0.0  ;;  %v4619_v28 = vrot.slane %v4482_v62, %v15041_v57  ;;  %v4088_v14 = vadd.f32 %v16256_v51, %v16188_v16  ;;  %v13560_v16 = vld [vmem:[%s18844_s5] ss:$8 sps:$4 sm:$0xff]  }
 0x3ac   :  { %v4647_v33 = vrot.slane %v4489_v53, %v15041_v57  ;;  %v4695_v32 = vsel %vm2890_vm4, %v4639_v6, %v4635_v35  ;;  %v4627_v54 = vrot.slane %v4484_v20, %v15041_v57  ;;  %v4099_v25 = vadd.f32 %v16260_v26, %v16200_v37  ;;  %v13567_v37 = vld [vmem:[%s18844_s5 + $0x14] ss:$8 sps:$4 sm:$0xff]  }
 0x3ad   :  { %v4696_v58 = vsel %vm2892_vm5, %v4643_v21, %v4695_v32  ;;  %v4623_v44 = vrot.slane %v4483_v9, %v15041_v57  ;;  %v4631_v30 = vrot.slane %v4485_v27, %v15041_v57  ;;  %v4091_v31 = vadd.f32 %v16262_v18, %v16191_v15 }
 0x3ae   :  { %v4697_v51 = vsel %vm2894_vm6, %v4647_v33, %v4696_v58  ;;  %v4110_v2 = vmax.f32 %v4096_v63, %v4099_v25  ;;  %v4786_v24 = vpack.c.bf16 %v13564_v7, %v13563_v3 }
 0x3af   :  { %4717 = vst [vmem:[#allocation4 + $0x41] sm:$0xf] %v4697_v51  ;;  %v4692_v26 = vsel %vm2890_vm4, %v4623_v44, %v4619_v28  ;;  %v4109_v10 = vmax.f32 %v4088_v14, %v4091_v31  ;;  %v13571_v14 = vld [vmem:[%s18844_s5 + $0x30] ss:$8 sps:$4 sm:$0xff]   ;;  %v13574_v31 = vld [vmem:[%s18844_s5 + $0x40] ss:$8 sps:$4 sm:$0xff]  }
 0x3b0   :  { %v4693_v19 = vsel %vm2892_vm5, %v4627_v54, %v4692_v26  ;;  %v4238_v8 = vcombine.high %v4110_v2, %v4110_v2  ;;  %v4245_v15 = vrot.slane %v4110_v2, %v15017_v41  ;;  %4917 = vmatmul.mubr.bf16.vlgmr.msra.gmra.mrb[144].mxu1 %v4786_v24  ;;  %v13576_v54 = vld [vmem:[%s18844_s5 + $0x44] ss:$8 sps:$4 sm:$0xff]   ;;  %v13581_v26 = vld [vmem:[%s18844_s5 + $0x54] ss:$8 sps:$4 sm:$0xff]  }
 0x3b1   :  { %v4694_v18 = vsel %vm2894_vm6, %v4631_v30, %v4693_v19  ;;  %v4221_v42 = vcombine.high %v4109_v10, %v4109_v10  ;;  %v4228_v63 = vrot.slane %v4109_v10, %v15017_v41  ;;  %5018 = vmatpush1.bf16.msra.mxu1 %v13560_v16  ;;  %4926 = vmatprep.mubr.bf16.mxu1 %v14712_v5 }
 0x3b2   :  { %4716 = vst [vmem:[#allocation4 + $0x39] sm:$0xf] %v4694_v18  ;;  %v4252_v56 = vrot.slane %v4238_v8, %v15017_v41  ;;  %v4253_v23 = vcombine.high %v4245_v15, %v4245_v15  ;;  %v12203_v45 = vrot.slane %v4245_v15, 9  ;;  %5019 = vmatprep.subr.bf16.mxu1 %v13567_v37 }
 0x3b3   :  { %v4235_v60 = vrot.slane %v4221_v42, %v15017_v41  ;;  %v4236_v59 = vcombine.high %v4228_v63, %v4228_v63  ;;  %v12199_v34 = vrot.slane %v4228_v63, 9 }
 0x3b4   :  { %v4254_v39 = vcombine.high %v4252_v56, %v4252_v56  ;;  %v12204_v0 = vrot.slane %v4253_v23, 9  ;;  %v12205_v22 = vrot.slane %v4252_v56, 9  ;;  %v4411_v1 = vmax.f32 %v4245_v15, %v12203_v45 }
 0x3b5   :  { %v4237_v11 = vcombine.high %v4235_v60, %v4235_v60  ;;  %v12200_v55 = vrot.slane %v4236_v59, 9  ;;  %v12201_v12 = vrot.slane %v4235_v60, 9  ;;  %v4407_v43 = vmax.f32 %v4228_v63, %v12199_v34  ;;  %5020 = vmatpush1.bf16.msra.mxu1 %v13565_v47  ;;  %v13579_v63 = vld [vmem:[%s18844_s5 + $0x50] ss:$8 sps:$4 sm:$0xff]   ;;  %v13584_v47 = vld [vmem:[%s18844_s5 + $0x64] ss:$8 sps:$4 sm:$0xff]  }
 0x3b6   :  { %v12206_v46 = vrot.slane %v4254_v39, 9  ;;  %v4412_v36 = vmax.f32 %v4253_v23, %v12204_v0  ;;  %v4413_v17 = vmax.f32 %v4252_v56, %v12205_v22  ;;  %v4462_v49 = vadd.f32 %v16203_v38, %v4411_v1  ;;  %5021 = vmatprep.subr.bf16.mxu1 %v13570_v52  ;;  %v13582_v56 = vld [vmem:[%s18844_s5 + $0x60] ss:$8 sps:$4 sm:$0xff]   ;;  %v13587_v23 = vld [vmem:[%s18844_s5 + $0x74] ss:$8 sps:$4 sm:$0xff]  }
 0x3b7   :  { %v12202_v35 = vrot.slane %v4237_v11, 9  ;;  %v4408_v40 = vmax.f32 %v4236_v59, %v12200_v55  ;;  %v4409_v48 = vmax.f32 %v4235_v60, %v12201_v12  ;;  %v4458_v62 = vadd.f32 %v16203_v38, %v4407_v43  ;;  %v13585_v60 = vld [vmem:[%s18844_s5 + $0x70] ss:$8 sps:$4 sm:$0xff]   ;;  %v13592_v34 = vld [vmem:[%s18844_s5 + $0x104] ss:$8 sps:$4 sm:$0xff]  }
 0x3b8   :  { %v4414_v53 = vmax.f32 %v4254_v39, %v12206_v46  ;;  %v4463_v6 = vadd.f32 %v16215_v4, %v4412_v36  ;;  %v4464_v21 = vadd.f32 %v16210_v29, %v4413_v17  ;;  %v4494_v20 = vmax.f32 %v4462_v49, 0.0  ;;  %v13589_v39 = vld [vmem:[#allocation4 + $0x10] ss:$8 sps:$4 sm:$0xff]   ;;  %v13588_v0 = vld [vmem:[#allocation4] ss:$8 sps:$4 sm:$0xff]  }
 0x3b9   :  { %v4410_v7 = vmax.f32 %v4237_v11, %v12202_v35  ;;  %v4459_v9 = vadd.f32 %v16215_v4, %v4408_v40  ;;  %v4460_v27 = vadd.f32 %v16210_v29, %v4409_v48  ;;  %v4490_v28 = vmax.f32 %v4458_v62, 0.0  ;;  %5022 = vmatpush1.bf16.msra.mxu1 %v13568_v61  ;;  %v13577_v45 = vld [vmem:[#allocation4 + $0x31] ss:$8 sps:$4 sm:$0xff]   ;;  %v13590_v22 = vld [vmem:[%s18844_s5 + $0x100] ss:$8 sps:$4 sm:$0xff]  }
 0x3ba   :  { %v4465_v33 = vadd.f32 %v16218_v13, %v4414_v53  ;;  %v4495_v38 = vmax.f32 %v4463_v6, 0.0  ;;  %v4496_v32 = vmax.f32 %v4464_v21, 0.0  ;;  %5023 = vmatprep.subr.bf16.mxu1 %v13573_v50  ;;  %v4667_v58 = vrot.slane %v4494_v20, %v15041_v57  ;;  %v13595_v11 = vld [vmem:[%s18844_s5 + $0x114] ss:$8 sps:$4 sm:$0xff]   ;;  %v13593_v55 = vld [vmem:[%s18844_s5 + $0x110] ss:$8 sps:$4 sm:$0xff]  }
 0x3bb   :  { %v4461_v25 = vadd.f32 %v16218_v13, %v4410_v7  ;;  %v4491_v4 = vmax.f32 %v4459_v9, 0.0  ;;  %v4492_v3 = vmax.f32 %v4460_v27, 0.0  ;;  %v4651_v51 = vrot.slane %v4490_v28, %v15041_v57  ;;  %v13600_v43 = vld [vmem:[%s18844_s5 + $0x124] ss:$8 sps:$4 sm:$0xff]   ;;  %v13596_v61 = vld [vmem:[#allocation4 + $0x30] ss:$8 sps:$4 sm:$0xff]  }
 0x3bc   :  { %v4497_v29 = vmax.f32 %v4465_v33, 0.0  ;;  %v4671_v44 = vrot.slane %v4495_v38, %v15041_v57  ;;  %v4675_v30 = vrot.slane %v4496_v32, %v15041_v57  ;;  %v4744_v1 = vpack.c.bf16 %v13589_v39, %v13588_v0  ;;  %v13598_v50 = vld [vmem:[%s18844_s5 + $0x120] ss:$8 sps:$4 sm:$0xff]   ;;  %v13603_v36 = vld [vmem:[%s18844_s5 + $0x134] ss:$8 sps:$4 sm:$0xff]  }
 0x3bd   :  { %v4493_v16 = vmax.f32 %v4461_v25, 0.0  ;;  %v4655_v2 = vrot.slane %v4491_v4, %v15041_v57  ;;  %v4659_v13 = vrot.slane %v4492_v3, %v15041_v57  ;;  %5024 = vmatpush1.bf16.msra.mxu1 %v13571_v14  ;;  %v13601_v17 = vld [vmem:[%s18844_s5 + $0x130] ss:$8 sps:$4 sm:$0xff]   ;;  %v13606_v49 = vld [vmem:[%s18844_s5 + $0x144] ss:$8 sps:$4 sm:$0xff]  }
 0x3be   :  { %v4679_v24 = vrot.slane %v4497_v29, %v15041_v57  ;;  %v4701_v37 = vsel %vm2890_vm4, %v4671_v44, %v4667_v58  ;;  %5025 = vmatprep.subr.bf16.mxu1 %v13576_v54  ;;  %v13604_v35 = vld [vmem:[%s18844_s5 + $0x140] ss:$8 sps:$4 sm:$0xff]   ;;  %v13609_v40 = vld [vmem:[%s18844_s5 + $0x154] ss:$8 sps:$4 sm:$0xff]   ;;  %v13607_v48 = vld [vmem:[%s18844_s5 + $0x150] ss:$8 sps:$4 sm:$0xff]  }
 0x3bf   :  { %v4702_v10 = vsel %vm2892_vm5, %v4675_v30, %v4701_v37  ;;  %v4663_v19 = vrot.slane %v4493_v16, %v15041_v57  ;;  %v4698_v8 = vsel %vm2890_vm4, %v4655_v2, %v4651_v51  ;;  %v13612_v62 = vld [vmem:[%s18844_s5 + $0x164] ss:$8 sps:$4 sm:$0xff]   ;;  %v13610_v53 = vld [vmem:[%s18844_s5 + $0x160] ss:$8 sps:$4 sm:$0xff]   ;;  %v13615_v6 = vld [vmem:[%s18844_s5 + $0x174] ss:$8 sps:$4 sm:$0xff]  }
 0x3c0   :  { %v4703_v15 = vsel %vm2894_vm6, %v4679_v24, %v4702_v10  ;;  %v4699_v18 = vsel %vm2892_vm5, %v4659_v13, %v4698_v8  ;;  %v13613_v21 = vld [vmem:[%s18844_s5 + $0x170] ss:$8 sps:$4 sm:$0xff]   ;;  %v13620_v7 = vld [vmem:[%s18844_s5 + $0x184] ss:$8 sps:$4 sm:$0xff]   ;;  %v13618_v27 = vld [vmem:[%s18844_s5 + $0x180] ss:$8 sps:$4 sm:$0xff]  }
 0x3c1   :  { %4719 = vst [vmem:[#allocation4 + $0x51] sm:$0xf] %v4703_v15  ;;  %v4700_v42 = vsel %vm2894_vm6, %v4663_v19, %v4699_v18  ;;  %5026 = vmatpush1.bf16.msra.mxu1 %v13574_v31  ;;  %v13617_v20 = vld [vmem:[#allocation4 + $0x12] ss:$8 sps:$4 sm:$0xff]   ;;  %v13616_v9 = vld [vmem:[#allocation4 + $0x2] ss:$8 sps:$4 sm:$0xff]  }
 0x3c2   :  { %4718 = vst [vmem:[#allocation4 + $0x49] sm:$0xf] %v4700_v42  ;;  %5027 = vmatprep.subr.bf16.mxu1 %v13581_v26  ;;  %v5094_v28 = vpack.c.bf16 %v13617_v20, %v13616_v9  ;;  %v13623_v14 = vld [vmem:[%s18844_s5 + $0x194] ss:$8 sps:$4 sm:$0xff]   ;;  %v13621_v33 = vld [vmem:[%s18844_s5 + $0x190] ss:$8 sps:$4 sm:$0xff]  }
 0x3c3   :  { %v13628_v32 = vld [vmem:[%s18844_s5 + $0x1a4] ss:$8 sps:$4 sm:$0xff]   ;;  %v13624_v54 = vld [vmem:[#allocation4 + $0x32] ss:$8 sps:$4 sm:$0xff]   ;;  %v13626_v25 = vld [vmem:[%s18844_s5 + $0x1a0] ss:$8 sps:$4 sm:$0xff]  }
 0x3c4   :  { %v13631_v3 = vld [vmem:[%s18844_s5 + $0x1b4] ss:$8 sps:$4 sm:$0xff]   ;;  %v13629_v29 = vld [vmem:[%s18844_s5 + $0x1b0] ss:$8 sps:$4 sm:$0xff]   ;;  %v13634_v58 = vld [vmem:[%s18844_s5 + $0x1c4] ss:$8 sps:$4 sm:$0xff]  }
 0x3c5   :  { %5028 = vmatpush1.bf16.msra.mxu1 %v13579_v63  ;;  %v13632_v44 = vld [vmem:[%s18844_s5 + $0x1c0] ss:$8 sps:$4 sm:$0xff]   ;;  %v13637_v30 = vld [vmem:[%s18844_s5 + $0x1d4] ss:$8 sps:$4 sm:$0xff]   ;;  %v13635_v31 = vld [vmem:[%s18844_s5 + $0x1d0] ss:$8 sps:$4 sm:$0xff]  }
 0x3c6   :  { %5029 = vmatprep.subr.bf16.mxu1 %v13584_v47  ;;  %v13640_v16 = vld [vmem:[%s18844_s5 + $0x1e4] ss:$8 sps:$4 sm:$0xff]   ;;  %v13638_v51 = vld [vmem:[%s18844_s5 + $0x1e0] ss:$8 sps:$4 sm:$0xff]   ;;  %v13643_v2 = vld [vmem:[%s18844_s5 + $0x1f4] ss:$8 sps:$4 sm:$0xff]  }
 0x3c7   :  { %v13641_v13 = vld [vmem:[%s18844_s5 + $0x1f0] ss:$8 sps:$4 sm:$0xff]   ;;  %v13648_v37 = vld [vmem:[%s18844_s5 + $0x204] ss:$8 sps:$4 sm:$0xff]   ;;  %v13646_v10 = vld [vmem:[%s18844_s5 + $0x200] ss:$8 sps:$4 sm:$0xff]  }
 0x3c8   :  { %v13645_v24 = vld [vmem:[#allocation4 + $0x18] ss:$8 sps:$4 sm:$0xff]   ;;  %v13644_v26 = vld [vmem:[#allocation4 + $0x8] ss:$8 sps:$4 sm:$0xff]   ;;  %v13651_v8 = vld [vmem:[%s18844_s5 + $0x214] ss:$8 sps:$4 sm:$0xff]  }
 0x3c9   :  { %v13578_v52 = vld [vmem:[#allocation4 + $0x41] ss:$8 sps:$4 sm:$0xff]   ;;  %5030 = vmatpush1.bf16.msra.mxu1 %v13582_v56  ;;  %v5277_v19 = vpack.c.bf16 %v13645_v24, %v13644_v26  ;;  %v13649_v15 = vld [vmem:[%s18844_s5 + $0x210] ss:$8 sps:$4 sm:$0xff]  }
 0x3ca   :  { %5031 = vmatprep.subr.bf16.mxu1 %v13587_v23  ;;  %v4787_v59 = vpack.c.bf16 %v13578_v52, %v13577_v45  ;;  %v13597_v12 = vld [vmem:[#allocation4 + $0x40] ss:$8 sps:$4 sm:$0xff]   ;;  %v13656_v42 = vld [vmem:[%s18844_s5 + $0x224] ss:$8 sps:$4 sm:$0xff]   ;;  %v13659_v23 = vld [vmem:[%s18844_s5 + $0x234] ss:$8 sps:$4 sm:$0xff]  }
 0x3cb   :  { %v4745_v46 = vpack.c.bf16 %v13597_v12, %v13596_v61  ;;  %v13625_v38 = vld [vmem:[#allocation4 + $0x42] ss:$8 sps:$4 sm:$0xff]   ;;  %v13657_v45 = vld [vmem:[%s18844_s5 + $0x230] ss:$8 sps:$4 sm:$0xff]  }
 0x3cc   :  { %4927 = vmatmul.mubr.bf16.gmra.mrb[148].mxu1 %v4787_v59  ;;  %v5095_v4 = vpack.c.bf16 %v13625_v38, %v13624_v54  ;;  %v13653_v18 = vld [vmem:[#allocation4 + $0x48] ss:$8 sps:$4 sm:$0xff]   ;;  %v13652_v63 = vld [vmem:[#allocation4 + $0x38] ss:$8 sps:$4 sm:$0xff]   ;;  %v13662_v52 = vld [vmem:[%s18844_s5 + $0x244] ss:$8 sps:$4 sm:$0xff]  }
 0x3cd   :  { %5032 = vmatpush1.bf16.msra.mxu1 %v13585_v60  ;;  %5049 = vmatprep.mubr.bf16.mxu1 %v14712_v5  ;;  %v13654_v47 = vld [vmem:[%s18844_s5 + $0x220] ss:$8 sps:$4 sm:$0xff]   ;;  %v5278_v56 = vpack.c.bf16 %v13653_v18, %v13652_v63  ;;  %v13665_v59 = vld [vmem:[%s18844_s5 + $0x254] ss:$8 sps:$4 sm:$0xff]   ;;  %v13668_v39 = vld [vmem:[%s18844_s5 + $0x264] ss:$8 sps:$4 sm:$0xff]  }
 0x3ce   :  { %5192 = vmatprep.subr.bf16.mxu1 %v13592_v34  ;;  %v13660_v60 = vld [vmem:[%s18844_s5 + $0x240] ss:$8 sps:$4 sm:$0xff]   ;;  %v13663_v34 = vld [vmem:[%s18844_s5 + $0x250] ss:$8 sps:$4 sm:$0xff]   ;;  %v13690_v20 = vld [vmem:[%s18844_s5 + $0x2c4] ss:$8 sps:$4 sm:$0xff]  }
 0x3cf   :  { %v13666_v0 = vld [vmem:[%s18844_s5 + $0x260] ss:$8 sps:$4 sm:$0xff]   ;;  %v13797_v9 = vld [vmem:[%s18846_s7 + $0x444] ss:$16 sps:$4 sm:$0xff]   ;;  %v13691_v38 = vld [vmem:[%s18844_s5 + $0x2d0] ss:$8 sps:$4 sm:$0xff]  }
 0x3d0   :  { %v13672_v12 = vld [vmem:[#allocation4 + $0x9] ss:$8 sps:$4 sm:$0xff]   ;;  %v13708_v26 = vld [vmem:[#allocation4 + $0x3a] ss:$8 sps:$4 sm:$0xff]  }
 0x3d1   :  { %v13808_v54 = vld [vmem:[%s18846_s7 + $0x460] ss:$16 sps:$4 sm:$0xff]   ;;  %v13718_v18 = vld [vmem:[%s18844_s5 + $0x344] ss:$8 sps:$4 sm:$0xff]   ;;  %v13721_v63 = vld [vmem:[%s18844_s5 + $0x354] ss:$8 sps:$4 sm:$0xff]  }
 0x3d2   :  { %v13709_v24 = vld [vmem:[#allocation4 + $0x4a] ss:$8 sps:$4 sm:$0xff]  }
 0x3d4   :  { %5050 = vmatmul.mubr.bf16.vlgmr.msra.gmra.mrb[144].mxu1 %v4744_v1  ;;  %v13669_v1 = vld [vmem:[%s18844_s5 + $0x270] ss:$8 sps:$4 sm:$0xff]  }
 0x3d5   :  { %5193 = vmatpush1.bf16.msra.mxu1 %v13590_v22  ;;  %5059 = vmatprep.mubr.bf16.mxu1 %v14712_v5  ;;  %v13671_v22 = vld [vmem:[%s18844_s5 + $0x274] ss:$8 sps:$4 sm:$0xff]  }
 0x3d6   :  { %5194 = vmatprep.subr.bf16.mxu1 %v13595_v11  ;;  %v13673_v11 = vld [vmem:[#allocation4 + $0x19] ss:$8 sps:$4 sm:$0xff]  }
 0x3d7   :  { %v5460_v61 = vpack.c.bf16 %v13673_v11, %v13672_v12  ;;  %v13736_v11 = vld [vmem:[#allocation4 + $0x40] ss:$8 sps:$4 sm:$0xff]   ;;  %v13740_v12 = vld [vmem:[%s18844_s5 + $0x3a4] ss:$8 sps:$4 sm:$0xff]  }
 0x3d9   :  { %5195 = vmatpush1.bf16.msra.mxu1 %v13593_v55  ;;  %v13676_v55 = vld [vmem:[%s18844_s5 + $0x284] ss:$8 sps:$4 sm:$0xff]  }
 0x3da   :  { %5196 = vmatprep.subr.bf16.mxu1 %v13600_v43  ;;  %v13674_v43 = vld [vmem:[%s18844_s5 + $0x280] ss:$8 sps:$4 sm:$0xff]  }
 0x3dc   :  { %5060 = vmatmul.mubr.bf16.gmra.mrb[148].mxu1 %v4745_v46  ;;  %v13677_v46 = vld [vmem:[%s18844_s5 + $0x290] ss:$8 sps:$4 sm:$0xff]  }
 0x3dd   :  { %5197 = vmatpush1.bf16.msra.mxu1 %v13598_v50  ;;  %5224 = vmatprep.mubr.bf16.mxu1 %v14712_v5  ;;  %v13679_v50 = vld [vmem:[%s18844_s5 + $0x294] ss:$8 sps:$4 sm:$0xff]  }
 0x3de   :  { %5198 = vmatprep.subr.bf16.mxu1 %v13603_v36  ;;  %v13681_v36 = vld [vmem:[#allocation4 + $0x49] ss:$8 sps:$4 sm:$0xff]  }
 0x3e1   :  { %5199 = vmatpush1.bf16.msra.mxu1 %v13601_v17  ;;  %v13684_v17 = vld [vmem:[%s18844_s5 + $0x2a4] ss:$8 sps:$4 sm:$0xff]  }
 0x3e2   :  { %5200 = vmatprep.subr.bf16.mxu1 %v13606_v49  ;;  %v13680_v49 = vld [vmem:[#allocation4 + $0x39] ss:$8 sps:$4 sm:$0xff]  }
 0x3e5   :  { %5201 = vmatpush1.bf16.msra.mxu1 %v13604_v35  ;;  %v13682_v35 = vld [vmem:[%s18844_s5 + $0x2a0] ss:$8 sps:$4 sm:$0xff]  }
 0x3e6   :  { %5202 = vmatprep.subr.bf16.mxu1 %v13609_v40  ;;  %v5461_v40 = vpack.c.bf16 %v13681_v36, %v13680_v49  ;;  %v13746_v36 = vld [vmem:[%s18844_s5 + $0x3c4] ss:$8 sps:$4 sm:$0xff]   ;;  %v13749_v49 = vld [vmem:[%s18844_s5 + $0x3d4] ss:$8 sps:$4 sm:$0xff]  }
 0x3e9   :  { %5203 = vmatpush1.bf16.msra.mxu1 %v13607_v48  ;;  %v13687_v48 = vld [vmem:[%s18844_s5 + $0x2b4] ss:$8 sps:$4 sm:$0xff]  }
 0x3ea   :  { %5204 = vmatprep.subr.bf16.mxu1 %v13612_v62  ;;  %v13788_v62 = vld [vmem:[%s18846_s7 + $0x404] ss:$16 sps:$4 sm:$0xff]  }
 0x3eb   :  { %8116 = vmatprep.subr.bf16.mxu0 %v13788_v62  ;;  %v13755_v62 = vld [vmem:[%s18844_s5 + $0x3f4] ss:$8 sps:$4 sm:$0xff]  }
 0x3ed   :  { %5205 = vmatpush1.bf16.msra.mxu1 %v13610_v53  ;;  %v13790_v53 = vld [vmem:[%s18846_s7 + $0x400] ss:$16 sps:$4 sm:$0xff]  }
 0x3ee   :  { %5206 = vmatprep.subr.bf16.mxu1 %v13615_v6  ;;  %v13791_v6 = vld [vmem:[%s18846_s7 + $0x424] ss:$16 sps:$4 sm:$0xff]   ;;  %8117 = vmatpush1.bf16.msra.mxu0 %v13790_v53  ;;  %v13753_v53 = vld [vmem:[%s18844_s5 + $0x3f0] ss:$8 sps:$4 sm:$0xff]  }
 0x3ef   :  { %8118 = vmatprep.subr.bf16.mxu0 %v13791_v6  ;;  %v13756_v6 = vld [vmem:[#allocation4 + $0x11] ss:$8 sps:$4 sm:$0xff]  }
 0x3f1   :  { %5207 = vmatpush1.bf16.msra.mxu1 %v13613_v21  ;;  %v13685_v21 = vld [vmem:[%s18844_s5 + $0x2b0] ss:$8 sps:$4 sm:$0xff]  }
 0x3f2   :  { %5375 = vmatprep.subr.bf16.mxu1 %v13620_v7  ;;  %v13796_v7 = vld [vmem:[%s18846_s7 + $0x420] ss:$16 sps:$4 sm:$0xff]  }
 0x3f3   :  { %8119 = vmatpush1.bf16.msra.mxu0 %v13796_v7  ;;  %v13758_v7 = vld [vmem:[%s18844_s5 + $0x400] ss:$8 sps:$4 sm:$0xff]  }
 0x3f4   :  { %5225 = vmatmul.mubr.bf16.vlgmr.msra.gmra.mrb[144].mxu1 %v5094_v28  ;;  %v13693_v28 = vld [vmem:[%s18844_s5 + $0x2d4] ss:$8 sps:$4 sm:$0xff]   ;;  %8120 = vmatprep.subr.bf16.mxu0 %v13797_v9 }
 0x3f5   :  { %5376 = vmatpush1.bf16.msra.mxu1 %v13618_v27  ;;  %5234 = vmatprep.mubr.bf16.mxu1 %v14712_v5  ;;  %v13688_v27 = vld [vmem:[%s18844_s5 + $0x2c0] ss:$8 sps:$4 sm:$0xff]  }
 0x3f6   :  { %5377 = vmatprep.subr.bf16.mxu1 %v13623_v14  ;;  %v13802_v14 = vld [vmem:[%s18846_s7 + $0x440] ss:$16 sps:$4 sm:$0xff]  }
 0x3f7   :  { %8121 = vmatpush1.bf16.msra.mxu0 %v13802_v14  ;;  %v13764_v14 = vld [vmem:[#allocation4 + $0x41] ss:$8 sps:$4 sm:$0xff]  }
 0x3f9   :  { %5378 = vmatpush1.bf16.msra.mxu1 %v13621_v33  ;;  %v13803_v33 = vld [vmem:[%s18846_s7 + $0x464] ss:$16 sps:$4 sm:$0xff]  }
 0x3fa   :  { %5379 = vmatprep.subr.bf16.mxu1 %v13628_v32  ;;  %v13696_v32 = vld [vmem:[%s18844_s5 + $0x2e4] ss:$8 sps:$4 sm:$0xff]   ;;  %8122 = vmatprep.subr.bf16.mxu0 %v13803_v33  ;;  %v13765_v33 = vld [vmem:[#allocation4 + $0x51] ss:$8 sps:$4 sm:$0xff]  }
 0x3fb   :  { %8123 = vmatpush1.bf16.msra.mxu0 %v13808_v54  ;;  %v6011_v54 = vpack.c.bf16 %v13765_v33, %v13764_v14  ;;  %v13859_v14 = vld [vmem:[%s18846_s7 + $0x360] ss:$16 sps:$4 sm:$0xff]   ;;  %v13863_v33 = vld [vmem:[%s18846_s7 + $0x5a4] ss:$16 sps:$4 sm:$0xff]  }
 0x3fc   :  { %5235 = vmatmul.mubr.bf16.gmra.mrb[148].mxu1 %v5095_v4  ;;  %v13694_v4 = vld [vmem:[%s18844_s5 + $0x2e0] ss:$8 sps:$4 sm:$0xff]  }
 0x3fd   :  { %5380 = vmatpush1.bf16.msra.mxu1 %v13626_v25  ;;  %5407 = vmatprep.mubr.bf16.mxu1 %v14712_v5  ;;  %v13809_v25 = vld [vmem:[%s18846_s7 + $0x484] ss:$16 sps:$4 sm:$0xff]  }
 0x3fe   :  { %5381 = vmatprep.subr.bf16.mxu1 %v13631_v3  ;;  %v13699_v3 = vld [vmem:[%s18844_s5 + $0x2f4] ss:$8 sps:$4 sm:$0xff]   ;;  %8124 = vmatprep.subr.bf16.mxu0 %v13809_v25 }
 0x3ff   :  { %v13771_v25 = vld [vmem:[%s18844_s5 + $0x434] ss:$8 sps:$4 sm:$0xff]  }
 0x401   :  { %5382 = vmatpush1.bf16.msra.mxu1 %v13629_v29  ;;  %v13814_v29 = vld [vmem:[%s18846_s7 + $0x480] ss:$16 sps:$4 sm:$0xff]  }
 0x402   :  { %5383 = vmatprep.subr.bf16.mxu1 %v13634_v58  ;;  %v13697_v58 = vld [vmem:[%s18844_s5 + $0x2f0] ss:$8 sps:$4 sm:$0xff]   ;;  %8125 = vmatpush1.bf16.msra.mxu0 %v13814_v29  ;;  %v13772_v29 = vld [vmem:[%s18844_s5 + $0x440] ss:$8 sps:$4 sm:$0xff]  }
 0x405   :  { %5384 = vmatpush1.bf16.msra.mxu1 %v13632_v44  ;;  %v13701_v44 = vld [vmem:[#allocation4 + $0x1a] ss:$8 sps:$4 sm:$0xff]  }
 0x406   :  { %5385 = vmatprep.subr.bf16.mxu1 %v13637_v30  ;;  %v13704_v30 = vld [vmem:[%s18844_s5 + $0x304] ss:$8 sps:$4 sm:$0xff]  }
 0x409   :  { %5386 = vmatpush1.bf16.msra.mxu1 %v13635_v31  ;;  %v13700_v31 = vld [vmem:[#allocation4 + $0xa] ss:$8 sps:$4 sm:$0xff]  }
 0x40a   :  { %5387 = vmatprep.subr.bf16.mxu1 %v13640_v16  ;;  %v13702_v16 = vld [vmem:[%s18844_s5 + $0x300] ss:$8 sps:$4 sm:$0xff]  }
 0x40d   :  { %5388 = vmatpush1.bf16.msra.mxu1 %v13638_v51  ;;  %v5643_v51 = vpack.c.bf16 %v13701_v44, %v13700_v31  ;;  %v13775_v44 = vld [vmem:[%s18844_s5 + $0x450] ss:$8 sps:$4 sm:$0xff]   ;;  %v13778_v31 = vld [vmem:[%s18844_s5 + $0x460] ss:$8 sps:$4 sm:$0xff]  }
 0x40e   :  { %5389 = vmatprep.subr.bf16.mxu1 %v13643_v2  ;;  %v13707_v2 = vld [vmem:[%s18844_s5 + $0x314] ss:$8 sps:$4 sm:$0xff]  }
 0x411   :  { %5390 = vmatpush1.bf16.msra.mxu1 %v13641_v13  ;;  %v13705_v13 = vld [vmem:[%s18844_s5 + $0x310] ss:$8 sps:$4 sm:$0xff]  }
 0x412   :  { %5558 = vmatprep.subr.bf16.mxu1 %v13648_v37  ;;  %v13712_v37 = vld [vmem:[%s18844_s5 + $0x324] ss:$8 sps:$4 sm:$0xff]  }
 0x414   :  { %5408 = vmatmul.mubr.bf16.vlgmr.msra.gmra.mrb[144].mxu1 %v5277_v19  ;;  %v5644_v19 = vpack.c.bf16 %v13709_v24, %v13708_v26  ;;  %v13795_v24 = vld [vmem:[%s18846_s7 + $0x204] ss:$16 sps:$4 sm:$0xff]  }
 0x415   :  { %5559 = vmatpush1.bf16.msra.mxu1 %v13646_v10  ;;  %5417 = vmatprep.mubr.bf16.mxu1 %v14712_v5  ;;  %v13710_v10 = vld [vmem:[%s18844_s5 + $0x320] ss:$8 sps:$4 sm:$0xff]  }
 0x416   :  { %5560 = vmatprep.subr.bf16.mxu1 %v13651_v8  ;;  %v13715_v8 = vld [vmem:[%s18844_s5 + $0x334] ss:$8 sps:$4 sm:$0xff]  }
 0x419   :  { %5561 = vmatpush1.bf16.msra.mxu1 %v13649_v15  ;;  %v13713_v15 = vld [vmem:[%s18844_s5 + $0x330] ss:$8 sps:$4 sm:$0xff]  }
 0x41a   :  { %5562 = vmatprep.subr.bf16.mxu1 %v13656_v42  ;;  %v13716_v42 = vld [vmem:[%s18844_s5 + $0x340] ss:$8 sps:$4 sm:$0xff]  }
 0x41c   :  { %5418 = vmatmul.mubr.bf16.gmra.mrb[148].mxu1 %v5278_v56  ;;  %v13724_v56 = vld [vmem:[%s18844_s5 + $0x364] ss:$8 sps:$4 sm:$0xff]  }
 0x41d   :  { %5563 = vmatpush1.bf16.msra.mxu1 %v13654_v47  ;;  %5590 = vmatprep.mubr.bf16.mxu1 %v14712_v5  ;;  %v13719_v47 = vld [vmem:[%s18844_s5 + $0x350] ss:$8 sps:$4 sm:$0xff]  }
 0x41e   :  { %5564 = vmatprep.subr.bf16.mxu1 %v13659_v23  ;;  %v13722_v23 = vld [vmem:[%s18844_s5 + $0x360] ss:$8 sps:$4 sm:$0xff]  }
 0x421   :  { %5565 = vmatpush1.bf16.msra.mxu1 %v13657_v45  ;;  %v13727_v45 = vld [vmem:[%s18844_s5 + $0x374] ss:$8 sps:$4 sm:$0xff]  }
 0x422   :  { %5566 = vmatprep.subr.bf16.mxu1 %v13662_v52  ;;  %v13725_v52 = vld [vmem:[%s18844_s5 + $0x370] ss:$8 sps:$4 sm:$0xff]  }
 0x425   :  { %5567 = vmatpush1.bf16.msra.mxu1 %v13660_v60  ;;  %v13728_v60 = vld [vmem:[#allocation4 + $0x10] ss:$8 sps:$4 sm:$0xff]  }
 0x426   :  { %5568 = vmatprep.subr.bf16.mxu1 %v13665_v59  ;;  %v13729_v59 = vld [vmem:[#allocation4 + $0x20] ss:$8 sps:$4 sm:$0xff]  }
 0x429   :  { %5569 = vmatpush1.bf16.msra.mxu1 %v13663_v34  ;;  %v13732_v34 = vld [vmem:[%s18844_s5 + $0x384] ss:$8 sps:$4 sm:$0xff]  }
 0x42a   :  { %5570 = vmatprep.subr.bf16.mxu1 %v13668_v39  ;;  %v13730_v39 = vld [vmem:[%s18844_s5 + $0x380] ss:$8 sps:$4 sm:$0xff]  }
 0x42d   :  { %5571 = vmatpush1.bf16.msra.mxu1 %v13666_v0  ;;  %v5827_v0 = vpack.c.bf16 %v13729_v59, %v13728_v60  ;;  %v13821_v60 = vld [vmem:[%s18846_s7 + $0x4c4] ss:$16 sps:$4 sm:$0xff]  }
 0x42e   :  { %5572 = vmatprep.subr.bf16.mxu1 %v13671_v22  ;;  %v13735_v22 = vld [vmem:[%s18844_s5 + $0x394] ss:$8 sps:$4 sm:$0xff]  }
 0x42f   :  { %v13825_v59 = vld [vmem:[%s18846_s7 + $0x2a4] ss:$16 sps:$4 sm:$0xff]  }
 0x431   :  { %5573 = vmatpush1.bf16.msra.mxu1 %v13669_v1  ;;  %v13733_v1 = vld [vmem:[%s18844_s5 + $0x390] ss:$8 sps:$4 sm:$0xff]  }
 0x432   :  { %5741 = vmatprep.subr.bf16.mxu1 %v13676_v55  ;;  %v13737_v55 = vld [vmem:[#allocation4 + $0x50] ss:$8 sps:$4 sm:$0xff]  }
 0x434   :  { %5591 = vmatmul.mubr.bf16.vlgmr.msra.gmra.mrb[144].mxu1 %v5460_v61  ;;  %v5828_v61 = vpack.c.bf16 %v13737_v55, %v13736_v11  ;;  %v13832_v11 = vld [vmem:[%s18846_s7 + $0x4e0] ss:$16 sps:$4 sm:$0xff]   ;;  %v13833_v55 = vld [vmem:[%s18846_s7 + $0x504] ss:$16 sps:$4 sm:$0xff]  }
 0x435   :  { %5742 = vmatpush1.bf16.msra.mxu1 %v13674_v43  ;;  %5600 = vmatprep.mubr.bf16.mxu1 %v14712_v5  ;;  %v13738_v43 = vld [vmem:[%s18844_s5 + $0x3a0] ss:$8 sps:$4 sm:$0xff]  }
 0x436   :  { %5743 = vmatprep.subr.bf16.mxu1 %v13679_v50  ;;  %v13743_v50 = vld [vmem:[%s18844_s5 + $0x3b4] ss:$8 sps:$4 sm:$0xff]  }
 0x439   :  { %5744 = vmatpush1.bf16.msra.mxu1 %v13677_v46  ;;  %v13741_v46 = vld [vmem:[%s18844_s5 + $0x3b0] ss:$8 sps:$4 sm:$0xff]  }
 0x43a   :  { %5745 = vmatprep.subr.bf16.mxu1 %v13684_v17  ;;  %v13744_v17 = vld [vmem:[%s18844_s5 + $0x3c0] ss:$8 sps:$4 sm:$0xff]  }
 0x43c   :  { %5601 = vmatmul.mubr.bf16.gmra.mrb[148].mxu1 %v5461_v40  ;;  %v13752_v40 = vld [vmem:[%s18844_s5 + $0x3e4] ss:$8 sps:$4 sm:$0xff]  }
 0x43d   :  { %5746 = vmatpush1.bf16.msra.mxu1 %v13682_v35  ;;  %5773 = vmatprep.mubr.bf16.mxu1 %v14712_v5  ;;  %v13747_v35 = vld [vmem:[%s18844_s5 + $0x3d0] ss:$8 sps:$4 sm:$0xff]  }
 0x43e   :  { %5747 = vmatprep.subr.bf16.mxu1 %v13687_v48  ;;  %v13750_v48 = vld [vmem:[%s18844_s5 + $0x3e0] ss:$8 sps:$4 sm:$0xff]  }
 0x441   :  { %5748 = vmatpush1.bf16.msra.mxu1 %v13685_v21  ;;  %v13757_v21 = vld [vmem:[#allocation4 + $0x21] ss:$8 sps:$4 sm:$0xff]  }
 0x442   :  { %5749 = vmatprep.subr.bf16.mxu1 %v13690_v20  ;;  %v13760_v20 = vld [vmem:[%s18844_s5 + $0x404] ss:$8 sps:$4 sm:$0xff]   ;;  %v6010_v9 = vpack.c.bf16 %v13757_v21, %v13756_v6 }
 0x443   :  { %v13855_v6 = vld [vmem:[%s18846_s7 + $0x344] ss:$16 sps:$4 sm:$0xff]  }
 0x444   :  { %v14684_v21 = vld [vmem:[#allocation5] sm:$0xff] }
 0x445   :  { %5750 = vmatpush1.bf16.msra.mxu1 %v13688_v27  ;;  %v13763_v27 = vld [vmem:[%s18844_s5 + $0x414] ss:$8 sps:$4 sm:$0xff]  }
 0x446   :  { %5751 = vmatprep.subr.bf16.mxu1 %v13693_v28  ;;  %v13761_v28 = vld [vmem:[%s18844_s5 + $0x410] ss:$8 sps:$4 sm:$0xff]  }
 0x449   :  { %5752 = vmatpush1.bf16.msra.mxu1 %v13691_v38  ;;  %v13768_v38 = vld [vmem:[%s18844_s5 + $0x424] ss:$8 sps:$4 sm:$0xff]  }
 0x44a   :  { %5753 = vmatprep.subr.bf16.mxu1 %v13696_v32  ;;  %v13766_v32 = vld [vmem:[%s18844_s5 + $0x420] ss:$8 sps:$4 sm:$0xff]  }
 0x44d   :  { %5754 = vmatpush1.bf16.msra.mxu1 %v13694_v4  ;;  %v13769_v4 = vld [vmem:[%s18844_s5 + $0x430] ss:$8 sps:$4 sm:$0xff]  }
 0x44e   :  { %5755 = vmatprep.subr.bf16.mxu1 %v13699_v3  ;;  %v13774_v3 = vld [vmem:[%s18844_s5 + $0x444] ss:$8 sps:$4 sm:$0xff]  }
 0x451   :  { %5756 = vmatpush1.bf16.msra.mxu1 %v13697_v58  ;;  %v13777_v58 = vld [vmem:[%s18844_s5 + $0x454] ss:$8 sps:$4 sm:$0xff]  }
 0x452   :  { %5925 = vmatprep.subr.bf16.mxu1 %v13704_v30  ;;  %v13780_v30 = vld [vmem:[%s18844_s5 + $0x464] ss:$8 sps:$4 sm:$0xff]  }
 0x454   :  { %5774 = vmatmul.mubr.bf16.vlgmr.msra.gmra.mrb[144].mxu1 %v5643_v51  ;;  %v13781_v51 = vld [vmem:[%s18844_s5 + $0x470] ss:$8 sps:$4 sm:$0xff]  }
 0x455   :  { %5926 = vmatpush1.bf16.msra.mxu1 %v13702_v16  ;;  %5783 = vmatprep.mubr.bf16.mxu1 %v14712_v5  ;;  %v13783_v16 = vld [vmem:[%s18844_s5 + $0x474] ss:$8 sps:$4 sm:$0xff]   ;;  %s11921_s5 = sshll.u32 %s14715_s17, 4  ;;  %s11922_s5 = int_to_ptr.vmem [resolvable:$true] %s11921_s5 }
 0x456   :  { %5927 = vmatprep.subr.bf16.mxu1 %v13707_v2  ;;  %v13784_v2 = vld [vmem:[#allocation4 + $0x12] ss:$8 sps:$4 sm:$0xff]   ;;  %p14690_p1 = scmp.lt.s32.totalorder %s11922_s5, %s11922_s5 }
 0x459   :  { %5928 = vmatpush1.bf16.msra.mxu1 %v13705_v13  ;;  %v13785_v13 = vld [vmem:[#allocation4 + $0x22] ss:$8 sps:$4 sm:$0xff]  }
 0x45a   :  { %5929 = vmatprep.subr.bf16.mxu1 %v13712_v37  ;;  %v13793_v37 = vld [vmem:[%s18846_s7 + $0x200] ss:$16 sps:$4 sm:$0xff]   ;;  %v6193_v26 = vpack.c.bf16 %v13785_v13, %v13784_v2  ;;  %v13892_v13 = vld [vmem:[%s18846_s7 + $0x20c] ss:$16 sps:$4 sm:$0xff]  }
 0x45b   :  { %v13884_v2 = vld [vmem:[%s18846_s7 + $0x3e0] ss:$16 sps:$4 sm:$0xff]  }
 0x45c   :  { %5784 = vmatmul.mubr.bf16.gmra.mrb[148].mxu1 %v5644_v19  ;;  %v13799_v19 = vld [vmem:[%s18846_s7 + $0x220] ss:$16 sps:$4 sm:$0xff]  }
 0x45d   :  { %5930 = vmatpush1.bf16.msra.mxu1 %v13710_v10  ;;  %5957 = vmatprep.mubr.bf16.mxu1 %v14712_v5  ;;  %v13801_v10 = vld [vmem:[%s18846_s7 + $0x224] ss:$16 sps:$4 sm:$0xff]  }
 0x45e   :  { %5931 = vmatprep.subr.bf16.mxu1 %v13715_v8  ;;  %v13786_v8 = vld [vmem:[#allocation4 + $0x42] ss:$8 sps:$4 sm:$0xff]  }
 0x461   :  { %5932 = vmatpush1.bf16.msra.mxu1 %v13713_v15  ;;  %v13787_v15 = vld [vmem:[#allocation4 + $0x52] ss:$8 sps:$4 sm:$0xff]  }
 0x462   :  { %5933 = vmatprep.subr.bf16.mxu1 %v13718_v18  ;;  %v13807_v18 = vld [vmem:[%s18846_s7 + $0x244] ss:$16 sps:$4 sm:$0xff]  }
 0x465   :  { %5934 = vmatpush1.bf16.msra.mxu1 %v13716_v42  ;;  %v13805_v42 = vld [vmem:[%s18846_s7 + $0x240] ss:$16 sps:$4 sm:$0xff]  }
 0x466   :  { %5935 = vmatprep.subr.bf16.mxu1 %v13721_v63  ;;  %v6194_v63 = vpack.c.bf16 %v13787_v15, %v13786_v8 }
 0x469   :  { %5936 = vmatpush1.bf16.msra.mxu1 %v13719_v47  ;;  %v13811_v47 = vld [vmem:[%s18846_s7 + $0x260] ss:$16 sps:$4 sm:$0xff]  }
 0x46a   :  { %5937 = vmatprep.subr.bf16.mxu1 %v13724_v56  ;;  %v13815_v56 = vld [vmem:[%s18846_s7 + $0x4a4] ss:$16 sps:$4 sm:$0xff]  }
 0x46b   :  { %8126 = vmatprep.subr.bf16.mxu0 %v13815_v56 }
 0x46d   :  { %5938 = vmatpush1.bf16.msra.mxu1 %v13722_v23  ;;  %v13817_v23 = vld [vmem:[%s18846_s7 + $0x280] ss:$16 sps:$4 sm:$0xff]  }
 0x46e   :  { %5939 = vmatprep.subr.bf16.mxu1 %v13727_v45  ;;  %v13819_v45 = vld [vmem:[%s18846_s7 + $0x284] ss:$16 sps:$4 sm:$0xff]  }
 0x471   :  { %5940 = vmatpush1.bf16.msra.mxu1 %v13725_v52  ;;  %v13820_v52 = vld [vmem:[%s18846_s7 + $0x4a0] ss:$16 sps:$4 sm:$0xff]  }
 0x472   :  { %6108 = vmatprep.subr.bf16.mxu1 %v13732_v34  ;;  %8127 = vmatpush1.bf16.msra.mxu0 %v13820_v52  ;;  %v13826_v34 = vld [vmem:[%s18846_s7 + $0x4c0] ss:$16 sps:$4 sm:$0xff]  }
 0x473   :  { %8128 = vmatprep.subr.bf16.mxu0 %v13821_v60  ;;  %v14713_v60 = vmov 572653568  }
 0x474   :  { %5958 = vmatmul.mubr.bf16.vlgmr.msra.gmra.mrb[144].mxu1 %v5827_v0  ;;  %v13827_v0 = vld [vmem:[%s18846_s7 + $0x4e4] ss:$16 sps:$4 sm:$0xff]  }
 0x475   :  { %6109 = vmatpush1.bf16.msra.mxu1 %v13730_v39  ;;  %5967 = vmatprep.mubr.bf16.mxu1 %v14712_v5  ;;  %v13823_v39 = vld [vmem:[%s18846_s7 + $0x2a0] ss:$16 sps:$4 sm:$0xff]  }
 0x476   :  { %6110 = vmatprep.subr.bf16.mxu1 %v13735_v22  ;;  %8129 = vmatpush1.bf16.msra.mxu0 %v13826_v34  ;;  %v13829_v22 = vld [vmem:[%s18846_s7 + $0x2c0] ss:$16 sps:$4 sm:$0xff]  }
 0x477   :  { %8130 = vmatprep.subr.bf16.mxu0 %v13827_v0 }
 0x479   :  { %6111 = vmatpush1.bf16.msra.mxu1 %v13733_v1  ;;  %v13831_v1 = vld [vmem:[%s18846_s7 + $0x2c4] ss:$16 sps:$4 sm:$0xff]  }
 0x47a   :  { %6112 = vmatprep.subr.bf16.mxu1 %v13740_v12  ;;  %v13837_v12 = vld [vmem:[%s18846_s7 + $0x2e4] ss:$16 sps:$4 sm:$0xff]   ;;  %8131 = vmatpush1.bf16.msra.mxu0 %v13832_v11 }
 0x47b   :  { %8132 = vmatprep.subr.bf16.mxu0 %v13833_v55 }
 0x47c   :  { %5968 = vmatmul.mubr.bf16.gmra.mrb[148].mxu1 %v5828_v61  ;;  %v13835_v61 = vld [vmem:[%s18846_s7 + $0x2e0] ss:$16 sps:$4 sm:$0xff]  }
 0x47d   :  { %6113 = vmatpush1.bf16.msra.mxu1 %v13738_v43  ;;  %6140 = vmatprep.mubr.bf16.mxu1 %v14712_v5  ;;  %v13838_v43 = vld [vmem:[%s18846_s7 + $0x500] ss:$16 sps:$4 sm:$0xff]  }
 0x47e   :  { %6114 = vmatprep.subr.bf16.mxu1 %v13743_v50  ;;  %v13839_v50 = vld [vmem:[%s18846_s7 + $0x524] ss:$16 sps:$4 sm:$0xff]   ;;  %8133 = vmatpush1.bf16.msra.mxu0 %v13838_v43 }
 0x47f   :  { %8134 = vmatprep.subr.bf16.mxu0 %v13839_v50 }
 0x481   :  { %6115 = vmatpush1.bf16.msra.mxu1 %v13741_v46  ;;  %v13843_v46 = vld [vmem:[%s18846_s7 + $0x304] ss:$16 sps:$4 sm:$0xff]  }
 0x482   :  { %6116 = vmatprep.subr.bf16.mxu1 %v13746_v36  ;;  %v13844_v36 = vld [vmem:[%s18846_s7 + $0x520] ss:$16 sps:$4 sm:$0xff]  }
 0x483   :  { %8135 = vmatpush1.bf16.msra.mxu0 %v13844_v36 }
 0x485   :  { %6117 = vmatpush1.bf16.msra.mxu1 %v13744_v17  ;;  %v13841_v17 = vld [vmem:[%s18846_s7 + $0x300] ss:$16 sps:$4 sm:$0xff]  }
 0x486   :  { %6118 = vmatprep.subr.bf16.mxu1 %v13749_v49  ;;  %v13845_v49 = vld [vmem:[%s18846_s7 + $0x544] ss:$16 sps:$4 sm:$0xff]  }
 0x487   :  { %8136 = vmatprep.subr.bf16.mxu0 %v13845_v49 }
 0x489   :  { %6119 = vmatpush1.bf16.msra.mxu1 %v13747_v35  ;;  %v13849_v35 = vld [vmem:[%s18846_s7 + $0x324] ss:$16 sps:$4 sm:$0xff]  }
 0x48a   :  { %6120 = vmatprep.subr.bf16.mxu1 %v13752_v40  ;;  %v13850_v40 = vld [vmem:[%s18846_s7 + $0x540] ss:$16 sps:$4 sm:$0xff]  }
 0x48b   :  { %8137 = vmatpush1.bf16.msra.mxu0 %v13850_v40 }
 0x48d   :  { %6121 = vmatpush1.bf16.msra.mxu1 %v13750_v48  ;;  %v13847_v48 = vld [vmem:[%s18846_s7 + $0x320] ss:$16 sps:$4 sm:$0xff]  }
 0x48e   :  { %6122 = vmatprep.subr.bf16.mxu1 %v13755_v62  ;;  %v13851_v62 = vld [vmem:[%s18846_s7 + $0x564] ss:$16 sps:$4 sm:$0xff]  }
 0x48f   :  { %8138 = vmatprep.subr.bf16.mxu0 %v13851_v62 }
 0x491   :  { %6123 = vmatpush1.bf16.msra.mxu1 %v13753_v53  ;;  %v18859_v53 = vlaneseq }
 0x492   :  { %6291 = vmatprep.subr.bf16.mxu1 %v13760_v20  ;;  %v13856_v20 = vld [vmem:[%s18846_s7 + $0x560] ss:$16 sps:$4 sm:$0xff]  }
 0x493   :  { %vm6501_vm12 = vcmp.lt.s32.totalorder %v18859_v53, 256  ;;  %8139 = vmatpush1.bf16.msra.mxu0 %v13856_v20 }
 0x494   :  { %6141 = vmatmul.mubr.bf16.vlgmr.msra.gmra.mrb[144].mxu1 %v6010_v9  ;;  %6511 = vst.msk [vmem:[#allocation5 + $0xb] ss:$4 sm:$0x3] %vm6501_vm12, %v14684_v21  ;;  %6515 = vst.msk [vmem:[#allocation5 + $0x2b] ss:$4 sm:$0x3] %vm6501_vm12, %v14684_v21 }
 0x495   :  { %6292 = vmatpush1.bf16.msra.mxu1 %v13758_v7  ;;  %6150 = vmatprep.mubr.bf16.mxu1 %v14712_v5  ;;  %6503 = vst.msk [vmem:[#allocation5 + $0x8] ss:$4 sm:$0x3] %vm6501_vm12, %v14684_v21  ;;  %6505 = vst.msk [vmem:[#allocation5 + $0x10] ss:$4 sm:$0x3] %vm6501_vm12, %v14684_v21 }
 0x496   :  { %6293 = vmatprep.subr.bf16.mxu1 %v13763_v27  ;;  %6507 = vst.msk [vmem:[#allocation5 + $0x28] ss:$4 sm:$0x3] %vm6501_vm12, %v14684_v21  ;;  %6509 = vst.msk [vmem:[#allocation5 + $0x30] ss:$4 sm:$0x3] %vm6501_vm12, %v14684_v21 }
 0x497   :  { %6513 = vst.msk [vmem:[#allocation5 + $0x13] ss:$4 sm:$0x3] %vm6501_vm12, %v14684_v21  ;;  %6517 = vst.msk [vmem:[#allocation5 + $0x33] ss:$4 sm:$0x3] %vm6501_vm12, %v14684_v21 }
 0x498   :  { %v13853_v7 = vld [vmem:[%s18846_s7 + $0x340] ss:$16 sps:$4 sm:$0xff]   ;;  %v13857_v9 = vld [vmem:[%s18846_s7 + $0x584] ss:$16 sps:$4 sm:$0xff]  }
 0x499   :  { %6294 = vmatpush1.bf16.msra.mxu1 %v13761_v28  ;;  %v13861_v27 = vld [vmem:[%s18846_s7 + $0x364] ss:$16 sps:$4 sm:$0xff]   ;;  %v13862_v28 = vld [vmem:[%s18846_s7 + $0x580] ss:$16 sps:$4 sm:$0xff]   ;;  %8140 = vmatprep.subr.bf16.mxu0 %v13857_v9 }
 0x49a   :  { %6295 = vmatprep.subr.bf16.mxu1 %v13768_v38  ;;  %v13867_v38 = vld [vmem:[%s18846_s7 + $0x384] ss:$16 sps:$4 sm:$0xff]   ;;  %8141 = vmatpush1.bf16.msra.mxu0 %v13862_v28 }
 0x49b   :  { %8142 = vmatprep.subr.bf16.mxu0 %v13863_v33 }
 0x49c   :  { %6151 = vmatmul.mubr.bf16.gmra.mrb[148].mxu1 %v6011_v54  ;;  %v13865_v54 = vld [vmem:[%s18846_s7 + $0x380] ss:$16 sps:$4 sm:$0xff]  }
 0x49d   :  { %6296 = vmatpush1.bf16.msra.mxu1 %v13766_v32  ;;  %6323 = vmatprep.mubr.bf16.mxu1 %v14712_v5  ;;  %v13868_v32 = vld [vmem:[%s18846_s7 + $0x5a0] ss:$16 sps:$4 sm:$0xff]  }
 0x49e   :  { %6297 = vmatprep.subr.bf16.mxu1 %v13771_v25  ;;  %v13869_v25 = vld [vmem:[%s18846_s7 + $0x5c4] ss:$16 sps:$4 sm:$0xff]   ;;  %8143 = vmatpush1.bf16.msra.mxu0 %v13868_v32 }
 0x49f   :  { %8144 = vmatprep.subr.bf16.mxu0 %v13869_v25 }
 0x4a1   :  { %6298 = vmatpush1.bf16.msra.mxu1 %v13769_v4  ;;  %v13873_v4 = vld [vmem:[%s18846_s7 + $0x3a4] ss:$16 sps:$4 sm:$0xff]  }
 0x4a2   :  { %6299 = vmatprep.subr.bf16.mxu1 %v13774_v3  ;;  %v13874_v3 = vld [vmem:[%s18846_s7 + $0x5c0] ss:$16 sps:$4 sm:$0xff]  }
 0x4a3   :  { %8145 = vmatpush1.bf16.msra.mxu0 %v13874_v3 }
 0x4a5   :  { %6300 = vmatpush1.bf16.msra.mxu1 %v13772_v29  ;;  %v13871_v29 = vld [vmem:[%s18846_s7 + $0x3a0] ss:$16 sps:$4 sm:$0xff]  }
 0x4a6   :  { %6301 = vmatprep.subr.bf16.mxu1 %v13777_v58  ;;  %v13875_v58 = vld [vmem:[%s18846_s7 + $0x5e4] ss:$16 sps:$4 sm:$0xff]  }
 0x4a7   :  { %8146 = vmatprep.subr.bf16.mxu0 %v13875_v58 }
 0x4a9   :  { %6302 = vmatpush1.bf16.msra.mxu1 %v13775_v44  ;;  %v13879_v44 = vld [vmem:[%s18846_s7 + $0x3c4] ss:$16 sps:$4 sm:$0xff]  }
 0x4aa   :  { %6303 = vmatprep.subr.bf16.mxu1 %v13780_v30  ;;  %v13880_v30 = vld [vmem:[%s18846_s7 + $0x5e0] ss:$16 sps:$4 sm:$0xff]  }
 0x4ab   :  { %8147 = vmatpush1.bf16.msra.mxu0 %v13880_v30 }
 0x4ad   :  { %6304 = vmatpush1.bf16.msra.mxu1 %v13778_v31  ;;  %v13877_v31 = vld [vmem:[%s18846_s7 + $0x3c0] ss:$16 sps:$4 sm:$0xff]  }
 0x4ae   :  { %6305 = vmatprep.subr.bf16.mxu1 %v13783_v16  ;;  %v13883_v16 = vld [vmem:[%s18846_s7 + $0x40c] ss:$16 sps:$4 sm:$0xff]  }
 0x4af   :  { %8157 = vmatprep.subr.bf16.mxu0 %v13883_v16 }
 0x4b1   :  { %6306 = vmatpush1.bf16.msra.mxu1 %v13781_v51  ;;  %v13886_v51 = vld [vmem:[%s18846_s7 + $0x3e4] ss:$16 sps:$4 sm:$0xff]  }
 0x4b2   :  { %7186 = vmatprep.subr.bf16.mxu1 %v13795_v24  ;;  %v18860_v24 = vld [vmem:[#allocation9_spill] sm:$0xff] }
 0x4b4   :  { %6324 = vmatmul.mubr.bf16.vlgmr.msra.gmra.mrb[144].mxu1 %v6193_v26  ;;  %v6352_v26 = vld [vmem:[%s18845_s6] sm:$0x3] }
 0x4b5   :  { %6333 = vmatprep.mubr.bf16.mxu1 %v14712_v5  ;;  %7187 = vmatpush1.bf16.msra.mxu1 %v13793_v37  ;;  %v13813_v5 = vld [vmem:[%s18846_s7 + $0x264] ss:$16 sps:$4 sm:$0xff]   ;;  %v6464_v37 = vsub.s32 1, %v18860_v24 }
 0x4b6   :  { %7188 = vmatprep.subr.bf16.mxu1 %v13801_v10  ;;  %v6461_v10 = vrot.slane %v6352_v26, %v15041_v57 }
 0x4b9   :  { %7189 = vmatpush1.bf16.msra.mxu1 %v13799_v19  ;;  %v6465_v19 = vrot.slane %v6352_v26, %v6464_v37 }
 0x4ba   :  { %7190 = vmatprep.subr.bf16.mxu1 %v13807_v18 }
 0x4bb   :  { %v6466_v18 = vcombine.low %v6461_v10, %v6465_v19 }
 0x4bc   :  { %6334 = vmatmul.mubr.bf16.gmra.mrb[148].mxu1 %v6194_v63 }
 0x4bd   :  { %7191 = vmatpush1.bf16.msra.mxu1 %v13805_v42  ;;  %v6473_v52 = vrot.slane %v6466_v18, %v15017_v41 }
 0x4be   :  { %7192 = vmatprep.subr.bf16.mxu1 %v13813_v5 }
 0x4bf   :  { %v6474_v55 = vrot.slane %v6473_v52, 1 }
 0x4c1   :  { %7193 = vmatpush1.bf16.msra.mxu1 %v13811_v47 }
 0x4c2   :  { %7194 = vmatprep.subr.bf16.mxu1 %v13819_v45 }
 0x4c5   :  { %7195 = vmatpush1.bf16.msra.mxu1 %v13817_v23 }
 0x4c6   :  { %7196 = vmatprep.subr.bf16.mxu1 %v13825_v59  ;;  %v6527_v59 = vunpack.c.l.s4 %v14713_v60 }
 0x4c9   :  { %7197 = vmatpush1.bf16.msra.mxu1 %v13823_v39 }
 0x4ca   :  { %7198 = vmatprep.subr.bf16.mxu1 %v13831_v1 }
 0x4cd   :  { %7199 = vmatpush1.bf16.msra.mxu1 %v13829_v22 }
 0x4ce   :  { %7200 = vmatprep.subr.bf16.mxu1 %v13837_v12  ;;  %v6528_v12 = vunpack.c.0.s8 %v6527_v59 }
 0x4d0   :  { %v6531_v21 = vsub.s32 %v6528_v12, %v18860_v24 }
 0x4d1   :  { %7201 = vmatpush1.bf16.msra.mxu1 %v13835_v61 }
 0x4d2   :  { %7202 = vmatprep.subr.bf16.mxu1 %v13843_v46 }
 0x4d5   :  { %7203 = vmatpush1.bf16.msra.mxu1 %v13841_v17 }
 0x4d6   :  { %7204 = vmatprep.subr.bf16.mxu1 %v13849_v35 }
 0x4d9   :  { %7205 = vmatpush1.bf16.msra.mxu1 %v13847_v48 }
 0x4da   :  { %7206 = vmatprep.subr.bf16.mxu1 %v13855_v6 }
 0x4dd   :  { %7207 = vmatpush1.bf16.msra.mxu1 %v13853_v7 }
 0x4de   :  { %7208 = vmatprep.subr.bf16.mxu1 %v13861_v27 }
 0x4e1   :  { %7209 = vmatpush1.bf16.msra.mxu1 %v13859_v14 }
 0x4e2   :  { %7210 = vmatprep.subr.bf16.mxu1 %v13867_v38 }
 0x4e5   :  { %7211 = vmatpush1.bf16.msra.mxu1 %v13865_v54 }
 0x4e6   :  { %7212 = vmatprep.subr.bf16.mxu1 %v13873_v4 }
 0x4e9   :  { %7213 = vmatpush1.bf16.msra.mxu1 %v13871_v29 }
 0x4ea   :  { %7214 = vmatprep.subr.bf16.mxu1 %v13879_v44 }
 0x4ed   :  { %7215 = vmatpush1.bf16.msra.mxu1 %v13877_v31 }
 0x4ee   :  { %7216 = vmatprep.subr.bf16.mxu1 %v13886_v51 }
 0x4f1   :  { %7217 = vmatpush1.bf16.msra.mxu1 %v13884_v2 }
 0x4f2   :  { %7227 = vmatprep.subr.bf16.mxu1 %v13892_v13 }
 0x587   :  { %v6325_v8 = vpop.f32.mrb[144].mxu1 }
 0x588   :  { %v6327_v15 = vpop.f32.mrb[145].mxu1 }
 0x589   :  { %v6361_v42 = vcombine.low %v6325_v8, %v6327_v15  ;;  %v6362_v63 = vcombine.high %v6325_v8, %v6327_v15  ;;  %v6329_v5 = vpop.f32.mrb[146].mxu1 }
 0x58a   :  { %v6331_v47 = vpop.f32.mrb[147].mxu1 }
 0x58b   :  { %v6377_v56 = vmax.f32 %v6361_v42, %v6362_v63  ;;  %v6363_v23 = vcombine.low %v6329_v5, %v6331_v47  ;;  %v6364_v45 = vcombine.high %v6329_v5, %v6331_v47 }
 0x58d   :  { %v6391_v34 = vrot.slane %v6377_v56, %v15017_v41  ;;  %v6378_v39 = vmax.f32 %v6363_v23, %v6364_v45 }
 0x58f   :  { %v6392_v0 = vcombine.high %v6391_v34, %v6391_v34  ;;  %v12352_v22 = vrot.slane %v6391_v34, 9  ;;  %v6399_v1 = vrot.slane %v6378_v39, %v15017_v41  ;;  %v6335_v11 = vpop.f32.mrb[148].mxu1 }
 0x590   :  { %v6337_v43 = vpop.f32.mrb[149].mxu1 }
 0x591   :  { %v12353_v61 = vrot.slane %v6392_v0, 9  ;;  %v6449_v50 = vmax.f32 %v6391_v34, %v12352_v22  ;;  %v6400_v46 = vcombine.high %v6399_v1, %v6399_v1  ;;  %v12354_v36 = vrot.slane %v6399_v1, 9  ;;  %v6339_v17 = vpop.f32.mrb[150].mxu1 }
 0x592   :  { %v6365_v49 = vcombine.low %v6335_v11, %v6337_v43  ;;  %v6366_v35 = vcombine.high %v6335_v11, %v6337_v43  ;;  %v6341_v40 = vpop.f32.mrb[151].mxu1  ;;  %v12366_v11 = vld.sshfl [vmem:[#allocation5 + $0x20] sm:$0x5a pattern:$0x76325410] }
 0x593   :  { %v6450_v48 = vmax.f32 %v6392_v0, %v12353_v61  ;;  %v6477_v62 = vadd.f32 %v6473_v52, %v6449_v50  ;;  %v12355_v53 = vrot.slane %v6400_v46, 9  ;;  %v6451_v6 = vmax.f32 %v6399_v1, %v12354_v36  ;;  %v12364_v1 = vld.sshfl [vmem:[#allocation5] sm:$0x5a pattern:$0x76325410] }
 0x594   :  { %v6379_v20 = vmax.f32 %v6365_v49, %v6366_v35  ;;  %v6367_v7 = vcombine.low %v6339_v17, %v6341_v40  ;;  %v6368_v9 = vcombine.high %v6339_v17, %v6341_v40  ;;  %v6735_v36 = vcombine.high %v12364_v1, %v12364_v1 }
 0x595   :  { %v6478_v27 = vadd.f32 %v6474_v55, %v6450_v48  ;;  %v6485_v28 = vmax.f32 %v6477_v62, 0.0  ;;  %v6452_v14 = vmax.f32 %v6400_v46, %v12355_v53  ;;  %v6479_v33 = vadd.f32 %v6473_v52, %v6451_v6  ;;  %v12360_v48 = vld.sshfl [vmem:[#allocation5] sm:$0xf pattern:$0x76325410] }
 0x596   :  { %v6407_v38 = vrot.slane %v6379_v20, %v15017_v41  ;;  %v6380_v32 = vmax.f32 %v6367_v7, %v6368_v9  ;;  %v6751_v17 = vcombine.high %v12366_v11, %v12366_v11  ;;  %v12502_v53 = vld.sshfl [vmem:[#allocation5 + $0x20] sm:$0xf0 pattern:$0x76325410]  ;;  %v6766_v20 = vrot.slane %v6735_v36, 7 }
 0x597   :  { %v6486_v54 = vmax.f32 %v6478_v27, 0.0  ;;  %v6480_v25 = vadd.f32 %v6474_v55, %v6452_v14  ;;  %v6487_v4 = vmax.f32 %v6479_v33, 0.0  ;;  %v6532_v44 = vrot.slane %v6485_v28, %v6531_v21  ;;  %v12362_v33 = vld.sshfl [vmem:[#allocation5 + $0x20] sm:$0xf pattern:$0x76325410] }
 0x598   :  { %v6408_v3 = vcombine.high %v6407_v38, %v6407_v38  ;;  %v12356_v29 = vrot.slane %v6407_v38, 9  ;;  %v6415_v58 = vrot.slane %v6380_v32, %v15017_v41  ;;  %v12370_v7 = vrot.slane %v12366_v11, 9  ;;  %v13914_v28 = vld [vmem:[%s18846_s7 + $0x288] ss:$16 sps:$4 sm:$0xff]  }
 0x599   :  { %v6539_v30 = vrot.slane %v6486_v54, %v6531_v21  ;;  %v6488_v31 = vmax.f32 %v6480_v25, 0.0  ;;  %v6546_v26 = vrot.slane %v6487_v4, %v6531_v21  ;;  %v6774_v9 = vrot.slane %v6751_v17, 7  ;;  %v17009_v17 = vld.sshfl [vmem:[#allocation5 + $0x18] sm:$0x5a pattern:$0x76325410] }
 0x59a   :  { %v12357_v16 = vrot.slane %v6408_v3, 9  ;;  %v6453_v51 = vmax.f32 %v6407_v38, %v12356_v29  ;;  %v6416_v2 = vcombine.high %v6415_v58, %v6415_v58  ;;  %v12358_v13 = vrot.slane %v6415_v58, 9 }
 0x59b   :  { %v6582_v37 = vsel %vm2892_vm5, %v6539_v30, %v6532_v44  ;;  %v6553_v10 = vrot.slane %v6488_v31, %v6531_v21  ;;  %v6775_v31 = vsel %vm16965_vm0, %v12370_v7, %v6774_v9 }
 0x59c   :  { %v6583_v19 = vsel %vm2900_vm9, %v6539_v30, %v6582_v37  ;;  %v6454_v8 = vmax.f32 %v6408_v3, %v12357_v16  ;;  %v6481_v15 = vadd.f32 %v6473_v52, %v6453_v51  ;;  %v12359_v18 = vrot.slane %v6416_v2, 9 }
 0x59d   :  { %6594 = vst [vmem:[#allocation5 + $0x8] sm:$0x66] %v6583_v19  ;;  %v6584_v42 = vsel %vm2892_vm5, %v6553_v10, %v6546_v26  ;;  %v6455_v63 = vmax.f32 %v6415_v58, %v12358_v13 }
 0x59e   :  { %v6585_v5 = vsel %vm2900_vm9, %v6553_v10, %v6584_v42  ;;  %v6482_v47 = vadd.f32 %v6474_v55, %v6454_v8  ;;  %v6489_v56 = vmax.f32 %v6481_v15, 0.0  ;;  %v6456_v23 = vmax.f32 %v6416_v2, %v12359_v18 }
 0x59f   :  { %6595 = vst [vmem:[#allocation5 + $0x10] sm:$0x66] %v6585_v5  ;;  %v6483_v45 = vadd.f32 %v6473_v52, %v6455_v63 }
 0x5a0   :  { %v6490_v60 = vmax.f32 %v6482_v47, 0.0  ;;  %v6484_v59 = vadd.f32 %v6474_v55, %v6456_v23  ;;  %v6560_v39 = vrot.slane %v6489_v56, %v6531_v21  ;;  %v12500_v55 = vld.sshfl [vmem:[#allocation5] sm:$0xf0 pattern:$0x76325410] }
 0x5a1   :  { %v6491_v34 = vmax.f32 %v6483_v45, 0.0  ;;  %v13881_v56 = vld [vmem:[%s18846_s7 + $0x408] ss:$16 sps:$4 sm:$0xff]  }
 0x5a2   :  { %v6567_v0 = vrot.slane %v6490_v60, %v6531_v21  ;;  %v6492_v22 = vmax.f32 %v6484_v59, 0.0 }
 0x5a3   :  { %v6574_v43 = vrot.slane %v6491_v34, %v6531_v21 }
 0x5a4   :  { %v6586_v12 = vsel %vm2892_vm5, %v6567_v0, %v6560_v39  ;;  %v6581_v61 = vrot.slane %v6492_v22, %v6531_v21  ;;  %v12365_v46 = vld.sshfl [vmem:[#allocation5 + $0x8] sm:$0x5a pattern:$0x76325410]  ;;  %v12368_v21 = vrot.slane %v12364_v1, 9 }
 0x5a5   :  { %v6587_v50 = vsel %vm2900_vm9, %v6567_v0, %v6586_v12  ;;  %v12501_v35 = vld.sshfl [vmem:[#allocation5 + $0x8] sm:$0xf0 pattern:$0x76325410]  ;;  %v6743_v40 = vcombine.high %v12365_v46, %v12365_v46  ;;  %v12369_v3 = vrot.slane %v12365_v46, 9 }
 0x5a6   :  { %6596 = vst [vmem:[#allocation5 + $0x28] sm:$0x66] %v6587_v50  ;;  %v6588_v52 = vsel %vm2892_vm5, %v6581_v61, %v6574_v43  ;;  %v12570_v62 = vld.sshfl [vmem:[#allocation5 + $0x8] sm:$0xf pattern:$0x76325410]  ;;  %v12504_v27 = vcombine.high %v12500_v55, %v12501_v35  ;;  %v6767_v30 = vsel %vm16965_vm0, %v12368_v21, %v6766_v20 }
 0x5a7   :  { %v6589_v49 = vsel %vm2900_vm9, %v6581_v61, %v6588_v52  ;;  %v12571_v6 = vld.sshfl [vmem:[#allocation5 + $0x10] sm:$0xf pattern:$0x76325410]  ;;  %v6770_v14 = vrot.slane %v6743_v40, 7  ;;  %v6634_v54 = vcombine.low %v12360_v48, %v12570_v62 }
 0x5a8   :  { %6597 = vst [vmem:[#allocation5 + $0x30] sm:$0x66] %v6589_v49  ;;  %v12639_v38 = vld.sshfl [vmem:[#allocation5 + $0x10] sm:$0x5a pattern:$0x76325410]  ;;  %v8238_v32 = vcombine.low %v12570_v62, %v12571_v6  ;;  %v7718_v16 = vrot.slane %v12504_v27, %v15017_v41 }
 0x5a9   :  { %v12638_v25 = vld.sshfl [vmem:[#allocation5 + $0x8] sm:$0x5a pattern:$0x76325410]  ;;  %v8753_v29 = vcombine.high %v12639_v38, %v12639_v38  ;;  %v6771_v2 = vsel %vm16965_vm0, %v12369_v3, %v6770_v14  ;;  %v16981_v15 = vrot.slane %v6634_v54, %v15017_v41  ;;  %v12643_v22 = vrot.slane %v12639_v38, 9 }
 0x5aa   :  { %v8745_v37 = vcombine.high %v12638_v25, %v12638_v25  ;;  %v16978_v19 = vrot.slane %v8238_v32, %v15017_v41  ;;  %v6780_v45 = vcombine.low %v6767_v30, %v6771_v2  ;;  %v12642_v61 = vrot.slane %v12638_v25, 9  ;;  %v13889_v50 = vld [vmem:[%s18846_s7 + $0x42c] ss:$16 sps:$4 sm:$0xff]   ;;  %v13887_v62 = vld [vmem:[%s18846_s7 + $0x428] ss:$16 sps:$4 sm:$0xff]  }
 0x5ab   :  { %v8776_v5 = vrot.slane %v8753_v29, 7  ;;  %v12711_v48 = vld.sshfl [vmem:[#allocation5 + $0x10] sm:$0xf0 pattern:$0x76325410] }
 0x5ac   :  { %v8772_v0 = vrot.slane %v8745_v37, 7  ;;  %v6788_v49 = vrot.slane %v6780_v45, %v15017_v41  ;;  %v17019_v6 = vld.sshfl [vmem:[#allocation5 + $0x38] sm:$0x5a pattern:$0x76325410] }
 0x5ad   :  { %v12503_v4 = vld.sshfl [vmem:[#allocation5 + $0x28] sm:$0xf0 pattern:$0x76325410]  ;;  %v8777_v36 = vsel %vm16965_vm0, %v12643_v22, %v8776_v5  ;;  %v12853_v5 = vrot.slane %v17009_v17, 9 }
 0x5ae   :  { %v12505_v58 = vcombine.high %v12502_v53, %v12503_v4  ;;  %v12367_v44 = vld.sshfl [vmem:[#allocation5 + $0x28] sm:$0x5a pattern:$0x76325410]  ;;  %v8773_v53 = vsel %vm16965_vm0, %v12642_v61, %v8772_v0 }
 0x5af   :  { %v6759_v51 = vcombine.high %v12367_v44, %v12367_v44  ;;  %v12572_v13 = vld.sshfl [vmem:[#allocation5 + $0x28] sm:$0xf pattern:$0x76325410]  ;;  %v12371_v18 = vrot.slane %v12367_v44, 9  ;;  %v8786_v9 = vcombine.low %v8773_v53, %v8777_v36  ;;  %v10362_v44 = vcombine.high %v17009_v17, %v17009_v17 }
 0x5b0   :  { %v7725_v26 = vrot.slane %v12505_v58, %v15017_v41  ;;  %v12573_v10 = vld.sshfl [vmem:[#allocation5 + $0x30] sm:$0xf pattern:$0x76325410]  ;;  %v6635_v8 = vcombine.low %v12362_v33, %v12572_v13  ;;  %v13895_v14 = vld [vmem:[%s18846_s7 + $0x44c] ss:$16 sps:$4 sm:$0xff]  }
 0x5b1   :  { %v6778_v42 = vrot.slane %v6759_v51, 7  ;;  %v8239_v63 = vcombine.low %v12572_v13, %v12573_v10  ;;  %v12640_v39 = vld.sshfl [vmem:[#allocation5 + $0x28] sm:$0x5a pattern:$0x76325410]  ;;  %v10378_v10 = vcombine.high %v17019_v6, %v17019_v6 }
 0x5b2   :  { %v7727_v47 = vcombine.high %v7718_v16, %v7725_v26  ;;  %v7726_v23 = vcombine.low %v7718_v16, %v7725_v26  ;;  %v16987_v60 = vrot.slane %v6635_v8, %v15017_v41  ;;  %v12641_v43 = vld.sshfl [vmem:[#allocation5 + $0x30] sm:$0x5a pattern:$0x76325410]  ;;  %v8761_v55 = vcombine.high %v12640_v39, %v12640_v39  ;;  %v13890_v29 = vld [vmem:[%s18846_s7 + $0x208] ss:$16 sps:$4 sm:$0xff]  }
 0x5b3   :  { %v6779_v59 = vsel %vm16965_vm0, %v12371_v18, %v6778_v42  ;;  %v16992_v34 = vrot.slane %v8239_v63, %v15017_v41  ;;  %v8769_v40 = vcombine.high %v12641_v43, %v12641_v43  ;;  %v12710_v27 = vld.sshfl [vmem:[#allocation5 + $0x8] sm:$0xf0 pattern:$0x76325410]  ;;  %v12644_v33 = vrot.slane %v12640_v39, 9 }
 0x5b4   :  { %v7731_v1 = vpack.c.bf16 %v7727_v47, %v7727_v47  ;;  %v16994_v11 = vpack.c.bf16 %v7726_v23, %v7726_v23  ;;  %v6781_v12 = vcombine.low %v6775_v31, %v6779_v59  ;;  %v17005_v52 = vcombine.low %v16981_v15, %v16987_v60  ;;  %v12781_v25 = vld.sshfl [vmem:[#allocation5 + $0x18] sm:$0xf pattern:$0x76325410] }
 0x5b5   :  { %v17001_v46 = vcombine.low %v16978_v19, %v16992_v34  ;;  %v8780_v7 = vrot.slane %v8761_v55, 7  ;;  %v12645_v38 = vrot.slane %v12641_v43, 9  ;;  %v8784_v32 = vrot.slane %v8769_v40, 7  ;;  %v13898_v30 = vld [vmem:[%s18846_s7 + $0x22c] ss:$16 sps:$4 sm:$0xff]  }
 0x5b6   :  { %8148 = vmatprep.mubr.bf16.mxu0 %v7731_v1  ;;  %v6795_v35 = vrot.slane %v6781_v12, %v15017_v41  ;;  %v12714_v54 = vcombine.high %v12710_v27, %v12711_v48  ;;  %v12712_v58 = vld.sshfl [vmem:[#allocation5 + $0x28] sm:$0xf0 pattern:$0x76325410]  ;;  %v17051_v42 = vrot.slane %v8786_v9, %v15017_v41  ;;  %v10385_v39 = vrot.slane %v10362_v44, 7 }
 0x5b7   :  { %8149 = vmatmul.mubr.bf16.vlgmr.msra.gmra.mrb[0].mxu0 %v16994_v11  ;;  %v8781_v31 = vsel %vm16965_vm0, %v12644_v33, %v8780_v7  ;;  %v8785_v16 = vsel %vm16965_vm0, %v12645_v38, %v8784_v32  ;;  %v12713_v51 = vld.sshfl [vmem:[#allocation5 + $0x30] sm:$0xf0 pattern:$0x76325410]  ;;  %v13893_v2 = vld [vmem:[%s18846_s7 + $0x448] ss:$16 sps:$4 sm:$0xff]  }
 0x5b8   :  { %8158 = vmatpush1.bf16.msra.mxu0 %v13881_v56  ;;  %8189 = vmatprep.mubr.bf16.mxu0 %v7731_v1  ;;  %v6796_v21 = vcombine.low %v6788_v49, %v6795_v35  ;;  %v6797_v20 = vcombine.high %v6788_v49, %v6795_v35  ;;  %v8787_v13 = vcombine.low %v8781_v31, %v8785_v16  ;;  %v12780_v26 = vld.sshfl [vmem:[#allocation5 + $0x10] sm:$0xf pattern:$0x76325410]  ;;  %v13896_v8 = vld [vmem:[%s18846_s7 + $0x228] ss:$16 sps:$4 sm:$0xff]  }
 0x5b9   :  { %8159 = vmatprep.subr.bf16.mxu0 %v13889_v50  ;;  %v12715_v37 = vcombine.high %v12712_v58, %v12713_v51  ;;  %v13901_v18 = vld [vmem:[%s18846_s7 + $0x46c] ss:$16 sps:$4 sm:$0xff]   ;;  %v17054_v63 = vrot.slane %v12714_v54, %v15017_v41  ;;  %v13899_v47 = vld [vmem:[%s18846_s7 + $0x468] ss:$16 sps:$4 sm:$0xff]   ;;  %v9847_v59 = vcombine.low %v12780_v26, %v12781_v25  ;;  %v12855_v50 = vrot.slane %v17019_v6, 9 }
 0x5ba   :  { %v17024_v4 = vpack.c.bf16 %v6796_v21, %v6796_v21  ;;  %v6801_v3 = vpack.c.bf16 %v6797_v20, %v6797_v20  ;;  %v17061_v56 = vrot.slane %v8787_v13, %v15017_v41  ;;  %v12783_v45 = vld.sshfl [vmem:[#allocation5 + $0x38] sm:$0xf pattern:$0x76325410]  ;;  %v10393_v55 = vrot.slane %v10378_v10, 7 }
 0x5bb   :  { %v17064_v23 = vrot.slane %v12715_v37, %v15017_v41  ;;  %v13904_v0 = vld [vmem:[%s18846_s7 + $0x24c] ss:$16 sps:$4 sm:$0xff]   ;;  %v12782_v22 = vld.sshfl [vmem:[#allocation5 + $0x30] sm:$0xf pattern:$0x76325410]  ;;  %v10386_v53 = vsel %vm16965_vm0, %v12853_v5, %v10385_v39 }
 0x5bc   :  { %7218 = vmatprep.mubr.bf16.mxu1 %v6801_v3  ;;  %8160 = vmatpush1.bf16.msra.mxu0 %v13887_v62  ;;  %v13902_v1 = vld [vmem:[%s18846_s7 + $0x248] ss:$16 sps:$4 sm:$0xff]   ;;  %v17074_v12 = vcombine.low %v17051_v42, %v17061_v56  ;;  %v12848_v61 = vld.sshfl [vmem:[#allocation5 + $0x10] sm:$0x5a pattern:$0x76325410]  ;;  %v9848_v17 = vcombine.low %v12782_v22, %v12783_v45  ;;  %v17091_v62 = vrot.slane %v9847_v59, %v15017_v41 }
 0x5bd   :  { %7219 = vmatmul.mubr.bf16.vlgmr.msra.gmra.mrb[152].mxu1 %v17024_v4  ;;  %8161 = vmatprep.subr.bf16.mxu0 %v13895_v14  ;;  %v17078_v43 = vcombine.low %v17054_v63, %v17064_v23  ;;  %v13907_v36 = vld [vmem:[%s18846_s7 + $0x48c] ss:$16 sps:$4 sm:$0xff]   ;;  %v12850_v49 = vld.sshfl [vmem:[#allocation5 + $0x30] sm:$0x5a pattern:$0x76325410]  ;;  %v10354_v35 = vcombine.high %v12848_v61, %v12848_v61  ;;  %v10394_v33 = vsel %vm16965_vm0, %v12855_v50, %v10393_v55 }
 0x5be   :  { %7228 = vmatpush1.bf16.msra.mxu1 %v13890_v29  ;;  %7259 = vmatprep.mubr.bf16.mxu1 %v6801_v3  ;;  %v13905_v40 = vld [vmem:[%s18846_s7 + $0x488] ss:$16 sps:$4 sm:$0xff]   ;;  %v13910_v48 = vld [vmem:[%s18846_s7 + $0x26c] ss:$16 sps:$4 sm:$0xff]   ;;  %v17096_v21 = vrot.slane %v9848_v17, %v15017_v41  ;;  %v10370_v20 = vcombine.high %v12850_v49, %v12850_v49  ;;  %v12852_v7 = vrot.slane %v12848_v61, 9  ;;  %v12854_v25 = vrot.slane %v12850_v49, 9 }
 0x5bf   :  { %7229 = vmatprep.subr.bf16.mxu1 %v13898_v30  ;;  %v12921_v6 = vld.sshfl [vmem:[#allocation5 + $0x18] sm:$0xf0 pattern:$0x76325410]  ;;  %v10381_v9 = vrot.slane %v10354_v35, 7 }
 0x5c0   :  { %8162 = vmatpush1.bf16.msra.mxu0 %v13893_v2  ;;  %v12923_v27 = vld.sshfl [vmem:[#allocation5 + $0x38] sm:$0xf0 pattern:$0x76325410]  ;;  %v17105_v32 = vcombine.low %v17091_v62, %v17096_v21  ;;  %v10389_v3 = vrot.slane %v10370_v20, 7 }
 0x5c1   :  { %8163 = vmatprep.subr.bf16.mxu0 %v13901_v18  ;;  %v13913_v14 = vld [vmem:[%s18846_s7 + $0x4ac] ss:$16 sps:$4 sm:$0xff]   ;;  %v12920_v38 = vld.sshfl [vmem:[#allocation5 + $0x10] sm:$0xf0 pattern:$0x76325410]  ;;  %v10382_v54 = vsel %vm16965_vm0, %v12852_v7, %v10381_v9 }
 0x5c2   :  { %7230 = vmatpush1.bf16.msra.mxu1 %v13896_v8  ;;  %v12922_v29 = vld.sshfl [vmem:[#allocation5 + $0x30] sm:$0xf0 pattern:$0x76325410]  ;;  %v13908_v58 = vld [vmem:[%s18846_s7 + $0x268] ss:$16 sps:$4 sm:$0xff]   ;;  %v10395_v44 = vcombine.low %v10382_v54, %v10386_v53  ;;  %v12924_v30 = vcombine.high %v12920_v38, %v12921_v6  ;;  %v10390_v51 = vsel %vm16965_vm0, %v12854_v25, %v10389_v3 }
 0x5c3   :  { %7231 = vmatprep.subr.bf16.mxu1 %v13904_v0  ;;  %v12925_v31 = vcombine.high %v12922_v29, %v12923_v27  ;;  %v13916_v16 = vld [vmem:[%s18846_s7 + $0x28c] ss:$16 sps:$4 sm:$0xff]   ;;  %v13911_v2 = vld [vmem:[%s18846_s7 + $0x4a8] ss:$16 sps:$4 sm:$0xff]   ;;  %v10396_v13 = vcombine.low %v10390_v51, %v10394_v33 }
 0x5c4   :  { %8164 = vmatpush1.bf16.msra.mxu0 %v13899_v47  ;;  %v17121_v37 = vrot.slane %v12924_v30, %v15017_v41  ;;  %v13919_v10 = vld [vmem:[%s18846_s7 + $0x4cc] ss:$16 sps:$4 sm:$0xff]   ;;  %v17133_v8 = vrot.slane %v10395_v44, %v15017_v41  ;;  %v13917_v45 = vld [vmem:[%s18846_s7 + $0x4c8] ss:$16 sps:$4 sm:$0xff]  }
 0x5c5   :  { %8165 = vmatprep.subr.bf16.mxu0 %v13907_v36  ;;  %v17124_v26 = vrot.slane %v12925_v31, %v15017_v41  ;;  %v17136_v18 = vrot.slane %v10396_v13, %v15017_v41  ;;  %v13922_v47 = vld [vmem:[%s18846_s7 + $0x2ac] ss:$16 sps:$4 sm:$0xff]   ;;  %v13920_v0 = vld [vmem:[%s18846_s7 + $0x2a8] ss:$16 sps:$4 sm:$0xff]  }
 0x5c6   :  { %7232 = vmatpush1.bf16.msra.mxu1 %v13902_v1  ;;  %v13925_v39 = vld [vmem:[%s18846_s7 + $0x4ec] ss:$16 sps:$4 sm:$0xff]   ;;  %v13923_v1 = vld [vmem:[%s18846_s7 + $0x4e8] ss:$16 sps:$4 sm:$0xff]  }
 0x5c7   :  { %7233 = vmatprep.subr.bf16.mxu1 %v13910_v48  ;;  %v17140_v5 = vcombine.low %v17121_v37, %v17124_v26  ;;  %v17150_v59 = vcombine.low %v17133_v8, %v17136_v18  ;;  %v13928_v22 = vld [vmem:[%s18846_s7 + $0x2cc] ss:$16 sps:$4 sm:$0xff]   ;;  %v13926_v50 = vld [vmem:[%s18846_s7 + $0x2c8] ss:$16 sps:$4 sm:$0xff]  }
 0x5c8   :  { %8166 = vmatpush1.bf16.msra.mxu0 %v13905_v40  ;;  %v13931_v61 = vld [vmem:[%s18846_s7 + $0x50c] ss:$16 sps:$4 sm:$0xff]   ;;  %v13929_v36 = vld [vmem:[%s18846_s7 + $0x508] ss:$16 sps:$4 sm:$0xff]  }
 0x5c9   :  { %8167 = vmatprep.subr.bf16.mxu0 %v13913_v14  ;;  %v13934_v55 = vld [vmem:[%s18846_s7 + $0x2ec] ss:$16 sps:$4 sm:$0xff]   ;;  %v13932_v49 = vld [vmem:[%s18846_s7 + $0x2e8] ss:$16 sps:$4 sm:$0xff]  }
 0x5ca   :  { %7234 = vmatpush1.bf16.msra.mxu1 %v13908_v58  ;;  %v13937_v17 = vld [vmem:[%s18846_s7 + $0x52c] ss:$16 sps:$4 sm:$0xff]   ;;  %v13935_v40 = vld [vmem:[%s18846_s7 + $0x528] ss:$16 sps:$4 sm:$0xff]  }
 0x5cb   :  { %7235 = vmatprep.subr.bf16.mxu1 %v13916_v16  ;;  %v13940_v35 = vld [vmem:[%s18846_s7 + $0x30c] ss:$16 sps:$4 sm:$0xff]   ;;  %v13938_v53 = vld [vmem:[%s18846_s7 + $0x308] ss:$16 sps:$4 sm:$0xff]  }
 0x5cc   :  { %8168 = vmatpush1.bf16.msra.mxu0 %v13911_v2  ;;  %v13943_v48 = vld [vmem:[%s18846_s7 + $0x54c] ss:$16 sps:$4 sm:$0xff]   ;;  %v13941_v20 = vld [vmem:[%s18846_s7 + $0x548] ss:$16 sps:$4 sm:$0xff]  }
 0x5cd   :  { %8169 = vmatprep.subr.bf16.mxu0 %v13919_v10  ;;  %v13946_v6 = vld [vmem:[%s18846_s7 + $0x32c] ss:$16 sps:$4 sm:$0xff]   ;;  %v13944_v9 = vld [vmem:[%s18846_s7 + $0x328] ss:$16 sps:$4 sm:$0xff]  }
 0x5ce   :  { %7236 = vmatpush1.bf16.msra.mxu1 %v13914_v28  ;;  %v13949_v7 = vld [vmem:[%s18846_s7 + $0x56c] ss:$16 sps:$4 sm:$0xff]   ;;  %v13947_v14 = vld [vmem:[%s18846_s7 + $0x568] ss:$16 sps:$4 sm:$0xff]  }
 0x5cf   :  { %7237 = vmatprep.subr.bf16.mxu1 %v13922_v47  ;;  %v13952_v27 = vld [vmem:[%s18846_s7 + $0x34c] ss:$16 sps:$4 sm:$0xff]   ;;  %v13950_v38 = vld [vmem:[%s18846_s7 + $0x348] ss:$16 sps:$4 sm:$0xff]   ;;  %v13979_v47 = vld [vmem:[%s18846_s7 + $0x604] ss:$16 sps:$4 sm:$0xff]  }
 0x5d0   :  { %8170 = vmatpush1.bf16.msra.mxu0 %v13917_v45  ;;  %v13955_v33 = vld [vmem:[%s18846_s7 + $0x58c] ss:$16 sps:$4 sm:$0xff]   ;;  %v13953_v25 = vld [vmem:[%s18846_s7 + $0x588] ss:$16 sps:$4 sm:$0xff]  }
 0x5d1   :  { %8171 = vmatprep.subr.bf16.mxu0 %v13925_v39  ;;  %v13958_v54 = vld [vmem:[%s18846_s7 + $0x36c] ss:$16 sps:$4 sm:$0xff]   ;;  %v13956_v29 = vld [vmem:[%s18846_s7 + $0x368] ss:$16 sps:$4 sm:$0xff]   ;;  %v8255_v39 = vcombine.high %v16978_v19, %v16992_v34 }
 0x5d2   :  { %7238 = vmatpush1.bf16.msra.mxu1 %v13920_v0  ;;  %v13961_v3 = vld [vmem:[%s18846_s7 + $0x5ac] ss:$16 sps:$4 sm:$0xff]   ;;  %v13959_v44 = vld [vmem:[%s18846_s7 + $0x5a8] ss:$16 sps:$4 sm:$0xff]  }
 0x5d3   :  { %7239 = vmatprep.subr.bf16.mxu1 %v13928_v22  ;;  %v13964_v58 = vld [vmem:[%s18846_s7 + $0x38c] ss:$16 sps:$4 sm:$0xff]   ;;  %v13962_v31 = vld [vmem:[%s18846_s7 + $0x388] ss:$16 sps:$4 sm:$0xff]   ;;  %v13977_v22 = vld [vmem:[%s18846_s7 + $0x600] ss:$16 sps:$4 sm:$0xff]   ;;  %v17280_v34 = vpack.c.bf16 %v8255_v39, %v8255_v39 }
 0x5d4   :  { %8172 = vmatpush1.bf16.msra.mxu0 %v13923_v1  ;;  %v13967_v30 = vld [vmem:[%s18846_s7 + $0x5cc] ss:$16 sps:$4 sm:$0xff]   ;;  %v13965_v51 = vld [vmem:[%s18846_s7 + $0x5c8] ss:$16 sps:$4 sm:$0xff]   ;;  %v13985_v1 = vld [vmem:[%s18846_s7 + $0x624] ss:$16 sps:$4 sm:$0xff]  }
 0x5d5   :  { %8173 = vmatprep.subr.bf16.mxu0 %v13931_v61  ;;  %v13970_v16 = vld [vmem:[%s18846_s7 + $0x3ac] ss:$16 sps:$4 sm:$0xff]   ;;  %v13968_v13 = vld [vmem:[%s18846_s7 + $0x3a8] ss:$16 sps:$4 sm:$0xff]   ;;  %v13988_v61 = vld [vmem:[%s18846_s7 + $0x4] ss:$16 sps:$4 sm:$0xff]  }
 0x5d6   :  { %7240 = vmatpush1.bf16.msra.mxu1 %v13926_v50  ;;  %v13973_v2 = vld [vmem:[%s18846_s7 + $0x5ec] ss:$16 sps:$4 sm:$0xff]   ;;  %v13971_v28 = vld [vmem:[%s18846_s7 + $0x5e8] ss:$16 sps:$4 sm:$0xff]   ;;  %v13983_v50 = vld [vmem:[%s18846_s7 + $0x620] ss:$16 sps:$4 sm:$0xff]  }
 0x5d7   :  { %7241 = vmatprep.subr.bf16.mxu1 %v13934_v55  ;;  %v13976_v10 = vld [vmem:[%s18846_s7 + $0x3cc] ss:$16 sps:$4 sm:$0xff]   ;;  %v13974_v45 = vld [vmem:[%s18846_s7 + $0x3c8] ss:$16 sps:$4 sm:$0xff]   ;;  %v6651_v55 = vcombine.high %v16981_v15, %v16987_v60  ;;  %v13989_v15 = vld [vmem:[%s18846_s7 + $0x640] ss:$16 sps:$4 sm:$0xff]  }
 0x5d8   :  { %8174 = vmatpush1.bf16.msra.mxu0 %v13929_v36  ;;  %v13982_v0 = vld [vmem:[%s18846_s7 + $0x3ec] ss:$16 sps:$4 sm:$0xff]   ;;  %v13980_v19 = vld [vmem:[%s18846_s7 + $0x3e8] ss:$16 sps:$4 sm:$0xff]   ;;  %v13986_v36 = vld [vmem:[%s18846_s7] ss:$16 sps:$4 sm:$0xff]  }
 0x5d9   :  { %8175 = vmatprep.subr.bf16.mxu0 %v13937_v17  ;;  %v13994_v17 = vld [vmem:[%s18846_s7 + $0x24] ss:$16 sps:$4 sm:$0xff]  }
 0x5da   :  { %7242 = vmatpush1.bf16.msra.mxu1 %v13932_v49  ;;  %v17301_v49 = vpack.c.bf16 %v6651_v55, %v6651_v55  ;;  %v13997_v60 = vld [vmem:[%s18846_s7 + $0x664] ss:$16 sps:$4 sm:$0xff]   ;;  %v14046_v55 = vld [vmem:[%s18846_s7 + $0x140] ss:$16 sps:$4 sm:$0xff]  }
 0x5db   :  { %7243 = vmatprep.subr.bf16.mxu1 %v13940_v35  ;;  %v13992_v35 = vld [vmem:[%s18846_s7 + $0x20] ss:$16 sps:$4 sm:$0xff]   ;;  %v14042_v39 = vld [vmem:[%s18846_s7 + $0x124] ss:$16 sps:$4 sm:$0xff]  }
 0x5dc   :  { %8176 = vmatpush1.bf16.msra.mxu0 %v13935_v40  ;;  %v14000_v40 = vld [vmem:[%s18846_s7 + $0x44] ss:$16 sps:$4 sm:$0xff]  }
 0x5dd   :  { %8177 = vmatprep.subr.bf16.mxu0 %v13943_v48  ;;  %v14003_v48 = vld [vmem:[%s18846_s7 + $0x684] ss:$16 sps:$4 sm:$0xff]  }
 0x5de   :  { %7244 = vmatpush1.bf16.msra.mxu1 %v13938_v53  ;;  %v13998_v53 = vld [vmem:[%s18846_s7 + $0x40] ss:$16 sps:$4 sm:$0xff]  }
 0x5df   :  { %7245 = vmatprep.subr.bf16.mxu1 %v13946_v6  ;;  %v14006_v6 = vld [vmem:[%s18846_s7 + $0x64] ss:$16 sps:$4 sm:$0xff]  }
 0x5e0   :  { %8178 = vmatpush1.bf16.msra.mxu0 %v13941_v20  ;;  %v14001_v20 = vld [vmem:[%s18846_s7 + $0x680] ss:$16 sps:$4 sm:$0xff]  }
 0x5e1   :  { %8179 = vmatprep.subr.bf16.mxu0 %v13949_v7  ;;  %v14009_v7 = vld [vmem:[%s18846_s7 + $0x6a4] ss:$16 sps:$4 sm:$0xff]  }
 0x5e2   :  { %7246 = vmatpush1.bf16.msra.mxu1 %v13944_v9  ;;  %v14004_v9 = vld [vmem:[%s18846_s7 + $0x60] ss:$16 sps:$4 sm:$0xff]  }
 0x5e3   :  { %7247 = vmatprep.subr.bf16.mxu1 %v13952_v27  ;;  %v14012_v27 = vld [vmem:[%s18846_s7 + $0x84] ss:$16 sps:$4 sm:$0xff]  }
 0x5e4   :  { %8180 = vmatpush1.bf16.msra.mxu0 %v13947_v14  ;;  %v14007_v14 = vld [vmem:[%s18846_s7 + $0x6a0] ss:$16 sps:$4 sm:$0xff]  }
 0x5e5   :  { %8181 = vmatprep.subr.bf16.mxu0 %v13955_v33  ;;  %v14015_v33 = vld [vmem:[%s18846_s7 + $0x6c4] ss:$16 sps:$4 sm:$0xff]  }
 0x5e6   :  { %7248 = vmatpush1.bf16.msra.mxu1 %v13950_v38  ;;  %v14010_v38 = vld [vmem:[%s18846_s7 + $0x80] ss:$16 sps:$4 sm:$0xff]  }
 0x5e7   :  { %7249 = vmatprep.subr.bf16.mxu1 %v13958_v54  ;;  %v14018_v54 = vld [vmem:[%s18846_s7 + $0xa4] ss:$16 sps:$4 sm:$0xff]  }
 0x5e8   :  { %8182 = vmatpush1.bf16.msra.mxu0 %v13953_v25  ;;  %v14013_v25 = vld [vmem:[%s18846_s7 + $0x6c0] ss:$16 sps:$4 sm:$0xff]  }
 0x5e9   :  { %8183 = vmatprep.subr.bf16.mxu0 %v13961_v3  ;;  %v14021_v3 = vld [vmem:[%s18846_s7 + $0x6e4] ss:$16 sps:$4 sm:$0xff]  }
 0x5ea   :  { %7250 = vmatpush1.bf16.msra.mxu1 %v13956_v29  ;;  %v14016_v29 = vld [vmem:[%s18846_s7 + $0xa0] ss:$16 sps:$4 sm:$0xff]  }
 0x5eb   :  { %7251 = vmatprep.subr.bf16.mxu1 %v13964_v58  ;;  %v14024_v58 = vld [vmem:[%s18846_s7 + $0xc4] ss:$16 sps:$4 sm:$0xff]  }
 0x5ec   :  { %8184 = vmatpush1.bf16.msra.mxu0 %v13959_v44  ;;  %v14019_v44 = vld [vmem:[%s18846_s7 + $0x6e0] ss:$16 sps:$4 sm:$0xff]  }
 0x5ed   :  { %8185 = vmatprep.subr.bf16.mxu0 %v13967_v30  ;;  %v14027_v30 = vld [vmem:[%s18846_s7 + $0x704] ss:$16 sps:$4 sm:$0xff]  }
 0x5ee   :  { %7252 = vmatpush1.bf16.msra.mxu1 %v13962_v31  ;;  %v14022_v31 = vld [vmem:[%s18846_s7 + $0xc0] ss:$16 sps:$4 sm:$0xff]  }
 0x5ef   :  { %7253 = vmatprep.subr.bf16.mxu1 %v13970_v16  ;;  %v14030_v16 = vld [vmem:[%s18846_s7 + $0xe4] ss:$16 sps:$4 sm:$0xff]  }
 0x5f0   :  { %8186 = vmatpush1.bf16.msra.mxu0 %v13965_v51  ;;  %v14025_v51 = vld [vmem:[%s18846_s7 + $0x700] ss:$16 sps:$4 sm:$0xff]  }
 0x5f1   :  { %8187 = vmatprep.subr.bf16.mxu0 %v13973_v2  ;;  %v14033_v2 = vld [vmem:[%s18846_s7 + $0x724] ss:$16 sps:$4 sm:$0xff]  }
 0x5f2   :  { %7254 = vmatpush1.bf16.msra.mxu1 %v13968_v13  ;;  %v14028_v13 = vld [vmem:[%s18846_s7 + $0xe0] ss:$16 sps:$4 sm:$0xff]  }
 0x5f3   :  { %7255 = vmatprep.subr.bf16.mxu1 %v13976_v10  ;;  %v14036_v10 = vld [vmem:[%s18846_s7 + $0x104] ss:$16 sps:$4 sm:$0xff]  }
 0x5f4   :  { %8188 = vmatpush1.bf16.msra.mxu0 %v13971_v28  ;;  %v14031_v28 = vld [vmem:[%s18846_s7 + $0x720] ss:$16 sps:$4 sm:$0xff]  }
 0x5f5   :  { %8644 = vmatprep.subr.bf16.mxu0 %v13979_v47  ;;  %v14039_v47 = vld [vmem:[%s18846_s7 + $0x744] ss:$16 sps:$4 sm:$0xff]  }
 0x5f6   :  { %7256 = vmatpush1.bf16.msra.mxu1 %v13974_v45  ;;  %v14034_v45 = vld [vmem:[%s18846_s7 + $0x100] ss:$16 sps:$4 sm:$0xff]  }
 0x5f7   :  { %8190 = vmatmul.mubr.bf16.vlgmr.msra.gmra.mrb[4].mxu0 %v16994_v11  ;;  %7257 = vmatprep.subr.bf16.mxu1 %v13982_v0  ;;  %v13991_v11 = vld [vmem:[%s18846_s7 + $0x644] ss:$16 sps:$4 sm:$0xff]   ;;  %v14037_v0 = vld [vmem:[%s18846_s7 + $0x740] ss:$16 sps:$4 sm:$0xff]  }
 0x5f8   :  { %8645 = vmatpush1.bf16.msra.mxu0 %v13977_v22  ;;  %8676 = vmatprep.mubr.bf16.mxu0 %v17280_v34  ;;  %v14045_v22 = vld [vmem:[%s18846_s7 + $0x764] ss:$16 sps:$4 sm:$0xff]  }
 0x5f9   :  { %8646 = vmatprep.subr.bf16.mxu0 %v13985_v1  ;;  %v14040_v1 = vld [vmem:[%s18846_s7 + $0x120] ss:$16 sps:$4 sm:$0xff]  }
 0x5fa   :  { %7258 = vmatpush1.bf16.msra.mxu1 %v13980_v19  ;;  %v14048_v19 = vld [vmem:[%s18846_s7 + $0x144] ss:$16 sps:$4 sm:$0xff]  }
 0x5fb   :  { %7588 = vmatprep.subr.bf16.mxu1 %v13988_v61  ;;  %v14043_v61 = vld [vmem:[%s18846_s7 + $0x760] ss:$16 sps:$4 sm:$0xff]  }
 0x5fc   :  { %8647 = vmatpush1.bf16.msra.mxu0 %v13983_v50  ;;  %v14051_v50 = vld [vmem:[%s18846_s7 + $0x784] ss:$16 sps:$4 sm:$0xff]  }
 0x5fd   :  { %7260 = vmatmul.mubr.bf16.vlgmr.msra.gmra.mrb[156].mxu1 %v17024_v4  ;;  %8648 = vmatprep.subr.bf16.mxu0 %v13991_v11  ;;  %v13995_v4 = vld [vmem:[%s18846_s7 + $0x660] ss:$16 sps:$4 sm:$0xff]   ;;  %v14054_v11 = vld [vmem:[%s18846_s7 + $0x164] ss:$16 sps:$4 sm:$0xff]  }
 0x5fe   :  { %7589 = vmatpush1.bf16.msra.mxu1 %v13986_v36  ;;  %7620 = vmatprep.mubr.bf16.mxu1 %v17301_v49  ;;  %v14049_v36 = vld [vmem:[%s18846_s7 + $0x780] ss:$16 sps:$4 sm:$0xff]  }
 0x5ff   :  { %7590 = vmatprep.subr.bf16.mxu1 %v13994_v17  ;;  %v14057_v17 = vld [vmem:[%s18846_s7 + $0x7a4] ss:$16 sps:$4 sm:$0xff]  }
 0x600   :  { %8649 = vmatpush1.bf16.msra.mxu0 %v13989_v15  ;;  %v14052_v15 = vld [vmem:[%s18846_s7 + $0x160] ss:$16 sps:$4 sm:$0xff]  }
 0x601   :  { %8650 = vmatprep.subr.bf16.mxu0 %v13997_v60  ;;  %v14060_v60 = vld [vmem:[%s18846_s7 + $0x184] ss:$16 sps:$4 sm:$0xff]  }
 0x602   :  { %7591 = vmatpush1.bf16.msra.mxu1 %v13992_v35  ;;  %v14055_v35 = vld [vmem:[%s18846_s7 + $0x7a0] ss:$16 sps:$4 sm:$0xff]  }
 0x603   :  { %7592 = vmatprep.subr.bf16.mxu1 %v14000_v40  ;;  %v14063_v40 = vld [vmem:[%s18846_s7 + $0x7c4] ss:$16 sps:$4 sm:$0xff]  }
 0x604   :  { %8651 = vmatpush1.bf16.msra.mxu0 %v13995_v4  ;;  %v14058_v4 = vld [vmem:[%s18846_s7 + $0x180] ss:$16 sps:$4 sm:$0xff]  }
 0x605   :  { %8652 = vmatprep.subr.bf16.mxu0 %v14003_v48  ;;  %v14066_v48 = vld [vmem:[%s18846_s7 + $0x1a4] ss:$16 sps:$4 sm:$0xff]  }
 0x606   :  { %7593 = vmatpush1.bf16.msra.mxu1 %v13998_v53  ;;  %v14061_v53 = vld [vmem:[%s18846_s7 + $0x7c0] ss:$16 sps:$4 sm:$0xff]  }
 0x607   :  { %7594 = vmatprep.subr.bf16.mxu1 %v14006_v6  ;;  %v14069_v6 = vld [vmem:[%s18846_s7 + $0x7e4] ss:$16 sps:$4 sm:$0xff]  }
 0x608   :  { %8653 = vmatpush1.bf16.msra.mxu0 %v14001_v20  ;;  %v14064_v20 = vld [vmem:[%s18846_s7 + $0x1a0] ss:$16 sps:$4 sm:$0xff]  }
 0x609   :  { %8654 = vmatprep.subr.bf16.mxu0 %v14009_v7  ;;  %v14072_v7 = vld [vmem:[%s18846_s7 + $0x1c4] ss:$16 sps:$4 sm:$0xff]  }
 0x60a   :  { %7595 = vmatpush1.bf16.msra.mxu1 %v14004_v9  ;;  %v14067_v9 = vld [vmem:[%s18846_s7 + $0x7e0] ss:$16 sps:$4 sm:$0xff]  }
 0x60b   :  { %7596 = vmatprep.subr.bf16.mxu1 %v14012_v27  ;;  %v14075_v27 = vld [vmem:[%s18846_s7 + $0x60c] ss:$16 sps:$4 sm:$0xff]  }
 0x60c   :  { %8655 = vmatpush1.bf16.msra.mxu0 %v14007_v14  ;;  %v14070_v14 = vld [vmem:[%s18846_s7 + $0x1c0] ss:$16 sps:$4 sm:$0xff]  }
 0x60d   :  { %8656 = vmatprep.subr.bf16.mxu0 %v14015_v33  ;;  %v14078_v33 = vld [vmem:[%s18846_s7 + $0x1e4] ss:$16 sps:$4 sm:$0xff]  }
 0x60e   :  { %7597 = vmatpush1.bf16.msra.mxu1 %v14010_v38  ;;  %v14073_v38 = vld [vmem:[%s18846_s7 + $0x608] ss:$16 sps:$4 sm:$0xff]  }
 0x60f   :  { %7598 = vmatprep.subr.bf16.mxu1 %v14018_v54  ;;  %v17478_v54 = vpack.c.bf16 %v17001_v46, %v17001_v46  ;;  %v14079_v46 = vld [vmem:[%s18846_s7 + $0x628] ss:$16 sps:$4 sm:$0xff]  }
 0x610   :  { %8657 = vmatpush1.bf16.msra.mxu0 %v14013_v25  ;;  %v14081_v25 = vld [vmem:[%s18846_s7 + $0x62c] ss:$16 sps:$4 sm:$0xff]  }
 0x611   :  { %8658 = vmatprep.subr.bf16.mxu0 %v14021_v3  ;;  %v14076_v3 = vld [vmem:[%s18846_s7 + $0x1e0] ss:$16 sps:$4 sm:$0xff]  }
 0x612   :  { %7599 = vmatpush1.bf16.msra.mxu1 %v14016_v29  ;;  %v14084_v29 = vld [vmem:[%s18846_s7 + $0xc] ss:$16 sps:$4 sm:$0xff]  }
 0x613   :  { %7600 = vmatprep.subr.bf16.mxu1 %v14024_v58  ;;  %v14087_v58 = vld [vmem:[%s18846_s7 + $0x64c] ss:$16 sps:$4 sm:$0xff]  }
 0x614   :  { %8659 = vmatpush1.bf16.msra.mxu0 %v14019_v44  ;;  %v14082_v44 = vld [vmem:[%s18846_s7 + $0x8] ss:$16 sps:$4 sm:$0xff]  }
 0x615   :  { %8660 = vmatprep.subr.bf16.mxu0 %v14027_v30  ;;  %v17502_v30 = vpack.c.bf16 %v17005_v52, %v17005_v52  ;;  %v14088_v52 = vld [vmem:[%s18846_s7 + $0x28] ss:$16 sps:$4 sm:$0xff]  }
 0x616   :  { %7601 = vmatpush1.bf16.msra.mxu1 %v14022_v31  ;;  %v14085_v31 = vld [vmem:[%s18846_s7 + $0x648] ss:$16 sps:$4 sm:$0xff]  }
 0x617   :  { %7602 = vmatprep.subr.bf16.mxu1 %v14030_v16  ;;  %v14093_v16 = vld [vmem:[%s18846_s7 + $0x66c] ss:$16 sps:$4 sm:$0xff]  }
 0x618   :  { %8661 = vmatpush1.bf16.msra.mxu0 %v14025_v51  ;;  %v14096_v51 = vld [vmem:[%s18846_s7 + $0x4c] ss:$16 sps:$4 sm:$0xff]  }
 0x619   :  { %8662 = vmatprep.subr.bf16.mxu0 %v14033_v2  ;;  %v14091_v2 = vld [vmem:[%s18846_s7 + $0x668] ss:$16 sps:$4 sm:$0xff]  }
 0x61a   :  { %7603 = vmatpush1.bf16.msra.mxu1 %v14028_v13  ;;  %v14099_v13 = vld [vmem:[%s18846_s7 + $0x68c] ss:$16 sps:$4 sm:$0xff]  }
 0x61b   :  { %7604 = vmatprep.subr.bf16.mxu1 %v14036_v10  ;;  %v14102_v10 = vld [vmem:[%s18846_s7 + $0x6c] ss:$16 sps:$4 sm:$0xff]  }
 0x61c   :  { %8663 = vmatpush1.bf16.msra.mxu0 %v14031_v28  ;;  %v14097_v28 = vld [vmem:[%s18846_s7 + $0x688] ss:$16 sps:$4 sm:$0xff]  }
 0x61d   :  { %8664 = vmatprep.subr.bf16.mxu0 %v14039_v47  ;;  %v14105_v47 = vld [vmem:[%s18846_s7 + $0x6ac] ss:$16 sps:$4 sm:$0xff]  }
 0x61e   :  { %7605 = vmatpush1.bf16.msra.mxu1 %v14034_v45  ;;  %v14100_v45 = vld [vmem:[%s18846_s7 + $0x68] ss:$16 sps:$4 sm:$0xff]  }
 0x61f   :  { %7606 = vmatprep.subr.bf16.mxu1 %v14042_v39  ;;  %v14108_v39 = vld [vmem:[%s18846_s7 + $0x8c] ss:$16 sps:$4 sm:$0xff]  }
 0x620   :  { %8665 = vmatpush1.bf16.msra.mxu0 %v14037_v0  ;;  %v14103_v0 = vld [vmem:[%s18846_s7 + $0x6a8] ss:$16 sps:$4 sm:$0xff]  }
 0x621   :  { %8666 = vmatprep.subr.bf16.mxu0 %v14045_v22  ;;  %v14111_v22 = vld [vmem:[%s18846_s7 + $0x6cc] ss:$16 sps:$4 sm:$0xff]  }
 0x622   :  { %7607 = vmatpush1.bf16.msra.mxu1 %v14040_v1  ;;  %v14106_v1 = vld [vmem:[%s18846_s7 + $0x88] ss:$16 sps:$4 sm:$0xff]  }
 0x623   :  { %7608 = vmatprep.subr.bf16.mxu1 %v14048_v19  ;;  %v14114_v19 = vld [vmem:[%s18846_s7 + $0xac] ss:$16 sps:$4 sm:$0xff]  }
 0x624   :  { %8667 = vmatpush1.bf16.msra.mxu0 %v14043_v61  ;;  %v14109_v61 = vld [vmem:[%s18846_s7 + $0x6c8] ss:$16 sps:$4 sm:$0xff]  }
 0x625   :  { %8668 = vmatprep.subr.bf16.mxu0 %v14051_v50  ;;  %v14117_v50 = vld [vmem:[%s18846_s7 + $0x6ec] ss:$16 sps:$4 sm:$0xff]  }
 0x626   :  { %7609 = vmatpush1.bf16.msra.mxu1 %v14046_v55  ;;  %v14112_v55 = vld [vmem:[%s18846_s7 + $0xa8] ss:$16 sps:$4 sm:$0xff]  }
 0x627   :  { %7610 = vmatprep.subr.bf16.mxu1 %v14054_v11  ;;  %v14120_v11 = vld [vmem:[%s18846_s7 + $0xcc] ss:$16 sps:$4 sm:$0xff]  }
 0x628   :  { %8669 = vmatpush1.bf16.msra.mxu0 %v14049_v36  ;;  %v14115_v36 = vld [vmem:[%s18846_s7 + $0x6e8] ss:$16 sps:$4 sm:$0xff]  }
 0x629   :  { %8670 = vmatprep.subr.bf16.mxu0 %v14057_v17  ;;  %v14123_v17 = vld [vmem:[%s18846_s7 + $0x70c] ss:$16 sps:$4 sm:$0xff]  }
 0x62a   :  { %7611 = vmatpush1.bf16.msra.mxu1 %v14052_v15  ;;  %v14118_v15 = vld [vmem:[%s18846_s7 + $0xc8] ss:$16 sps:$4 sm:$0xff]  }
 0x62b   :  { %7612 = vmatprep.subr.bf16.mxu1 %v14060_v60  ;;  %v14126_v60 = vld [vmem:[%s18846_s7 + $0xec] ss:$16 sps:$4 sm:$0xff]  }
 0x62c   :  { %8671 = vmatpush1.bf16.msra.mxu0 %v14055_v35  ;;  %v14121_v35 = vld [vmem:[%s18846_s7 + $0x708] ss:$16 sps:$4 sm:$0xff]  }
 0x62d   :  { %8672 = vmatprep.subr.bf16.mxu0 %v14063_v40  ;;  %v14129_v40 = vld [vmem:[%s18846_s7 + $0x72c] ss:$16 sps:$4 sm:$0xff]  }
 0x62e   :  { %7613 = vmatpush1.bf16.msra.mxu1 %v14058_v4  ;;  %v14124_v4 = vld [vmem:[%s18846_s7 + $0xe8] ss:$16 sps:$4 sm:$0xff]  }
 0x62f   :  { %7614 = vmatprep.subr.bf16.mxu1 %v14066_v48  ;;  %v14132_v48 = vld [vmem:[%s18846_s7 + $0x10c] ss:$16 sps:$4 sm:$0xff]  }
 0x630   :  { %8673 = vmatpush1.bf16.msra.mxu0 %v14061_v53  ;;  %v14127_v53 = vld [vmem:[%s18846_s7 + $0x728] ss:$16 sps:$4 sm:$0xff]  }
 0x631   :  { %8674 = vmatprep.subr.bf16.mxu0 %v14069_v6  ;;  %v14135_v6 = vld [vmem:[%s18846_s7 + $0x74c] ss:$16 sps:$4 sm:$0xff]  }
 0x632   :  { %7615 = vmatpush1.bf16.msra.mxu1 %v14064_v20  ;;  %v14130_v20 = vld [vmem:[%s18846_s7 + $0x108] ss:$16 sps:$4 sm:$0xff]  }
 0x633   :  { %7616 = vmatprep.subr.bf16.mxu1 %v14072_v7  ;;  %v14138_v7 = vld [vmem:[%s18846_s7 + $0x12c] ss:$16 sps:$4 sm:$0xff]  }
 0x634   :  { %8675 = vmatpush1.bf16.msra.mxu0 %v14067_v9  ;;  %v14133_v9 = vld [vmem:[%s18846_s7 + $0x748] ss:$16 sps:$4 sm:$0xff]  }
 0x635   :  { %8685 = vmatprep.subr.bf16.mxu0 %v14075_v27  ;;  %v14141_v27 = vld [vmem:[%s18846_s7 + $0x76c] ss:$16 sps:$4 sm:$0xff]  }
 0x636   :  { %7617 = vmatpush1.bf16.msra.mxu1 %v14070_v14  ;;  %v14136_v14 = vld [vmem:[%s18846_s7 + $0x128] ss:$16 sps:$4 sm:$0xff]  }
 0x637   :  { %8677 = vmatmul.mubr.bf16.vlgmr.msra.gmra.mrb[0].mxu0 %v17478_v54  ;;  %7618 = vmatprep.subr.bf16.mxu1 %v14078_v33  ;;  %v14144_v33 = vld [vmem:[%s18846_s7 + $0x14c] ss:$16 sps:$4 sm:$0xff]  }
 0x638   :  { %8686 = vmatpush1.bf16.msra.mxu0 %v14073_v38  ;;  %8717 = vmatprep.mubr.bf16.mxu0 %v17280_v34  ;;  %v14090_v34 = vld [vmem:[%s18846_s7 + $0x2c] ss:$16 sps:$4 sm:$0xff]   ;;  %v14139_v38 = vld [vmem:[%s18846_s7 + $0x768] ss:$16 sps:$4 sm:$0xff]  }
 0x639   :  { %8687 = vmatprep.subr.bf16.mxu0 %v14081_v25  ;;  %v14147_v25 = vld [vmem:[%s18846_s7 + $0x78c] ss:$16 sps:$4 sm:$0xff]  }
 0x63a   :  { %7619 = vmatpush1.bf16.msra.mxu1 %v14076_v3  ;;  %v14142_v3 = vld [vmem:[%s18846_s7 + $0x148] ss:$16 sps:$4 sm:$0xff]  }
 0x63b   :  { %7629 = vmatprep.subr.bf16.mxu1 %v14084_v29  ;;  %v14150_v29 = vld [vmem:[%s18846_s7 + $0x16c] ss:$16 sps:$4 sm:$0xff]  }
 0x63c   :  { %8688 = vmatpush1.bf16.msra.mxu0 %v14079_v46  ;;  %v14145_v46 = vld [vmem:[%s18846_s7 + $0x788] ss:$16 sps:$4 sm:$0xff]  }
 0x63d   :  { %7621 = vmatmul.mubr.bf16.vlgmr.msra.gmra.mrb[152].mxu1 %v17502_v30  ;;  %8689 = vmatprep.subr.bf16.mxu0 %v14087_v58  ;;  %v14153_v58 = vld [vmem:[%s18846_s7 + $0x7ac] ss:$16 sps:$4 sm:$0xff]  }
 0x63e   :  { %7630 = vmatpush1.bf16.msra.mxu1 %v14082_v44  ;;  %7661 = vmatprep.mubr.bf16.mxu1 %v17301_v49  ;;  %v14094_v49 = vld [vmem:[%s18846_s7 + $0x48] ss:$16 sps:$4 sm:$0xff]  }
 0x63f   :  { %7631 = vmatprep.subr.bf16.mxu1 %v14090_v34  ;;  %v14148_v44 = vld [vmem:[%s18846_s7 + $0x168] ss:$16 sps:$4 sm:$0xff]   ;;  %v14156_v34 = vld [vmem:[%s18846_s7 + $0x18c] ss:$16 sps:$4 sm:$0xff]  }
 0x640   :  { %8690 = vmatpush1.bf16.msra.mxu0 %v14085_v31  ;;  %v14151_v31 = vld [vmem:[%s18846_s7 + $0x7a8] ss:$16 sps:$4 sm:$0xff]  }
 0x641   :  { %8691 = vmatprep.subr.bf16.mxu0 %v14093_v16  ;;  %v14159_v16 = vld [vmem:[%s18846_s7 + $0x7cc] ss:$16 sps:$4 sm:$0xff]  }
 0x642   :  { %7632 = vmatpush1.bf16.msra.mxu1 %v14088_v52  ;;  %v14154_v52 = vld [vmem:[%s18846_s7 + $0x188] ss:$16 sps:$4 sm:$0xff]  }
 0x643   :  { %7633 = vmatprep.subr.bf16.mxu1 %v14096_v51  ;;  %v14162_v51 = vld [vmem:[%s18846_s7 + $0x1ac] ss:$16 sps:$4 sm:$0xff]  }
 0x644   :  { %8692 = vmatpush1.bf16.msra.mxu0 %v14091_v2  ;;  %v14157_v2 = vld [vmem:[%s18846_s7 + $0x7c8] ss:$16 sps:$4 sm:$0xff]  }
 0x645   :  { %8693 = vmatprep.subr.bf16.mxu0 %v14099_v13  ;;  %v14165_v13 = vld [vmem:[%s18846_s7 + $0x7ec] ss:$16 sps:$4 sm:$0xff]  }
 0x646   :  { %7634 = vmatpush1.bf16.msra.mxu1 %v14094_v49  ;;  %v14160_v49 = vld [vmem:[%s18846_s7 + $0x1a8] ss:$16 sps:$4 sm:$0xff]  }
 0x647   :  { %7635 = vmatprep.subr.bf16.mxu1 %v14102_v10  ;;  %v14168_v10 = vld [vmem:[%s18846_s7 + $0x1cc] ss:$16 sps:$4 sm:$0xff]  }
 0x648   :  { %8694 = vmatpush1.bf16.msra.mxu0 %v14097_v28  ;;  %v14163_v28 = vld [vmem:[%s18846_s7 + $0x7e8] ss:$16 sps:$4 sm:$0xff]  }
 0x649   :  { %8695 = vmatprep.subr.bf16.mxu0 %v14105_v47  ;;  %v14171_v47 = vld [vmem:[%s18846_s7 + $0x804] ss:$16 sps:$4 sm:$0xff]  }
 0x64a   :  { %7636 = vmatpush1.bf16.msra.mxu1 %v14100_v45  ;;  %v14166_v45 = vld [vmem:[%s18846_s7 + $0x1c8] ss:$16 sps:$4 sm:$0xff]  }
 0x64b   :  { %7637 = vmatprep.subr.bf16.mxu1 %v14108_v39  ;;  %v8803_v39 = vcombine.high %v17051_v42, %v17061_v56  ;;  %v14172_v42 = vld [vmem:[%s18846_s7 + $0x1e8] ss:$16 sps:$4 sm:$0xff]  }
 0x64c   :  { %8696 = vmatpush1.bf16.msra.mxu0 %v14103_v0  ;;  %v14174_v0 = vld [vmem:[%s18846_s7 + $0x1ec] ss:$16 sps:$4 sm:$0xff]  }
 0x64d   :  { %8697 = vmatprep.subr.bf16.mxu0 %v14111_v22  ;;  %v14169_v22 = vld [vmem:[%s18846_s7 + $0x800] ss:$16 sps:$4 sm:$0xff]   ;;  %v17688_v56 = vpack.c.bf16 %v8803_v39, %v8803_v39  ;;  %v14238_v39 = vld [vmem:[%s18846_s7 + $0x8c8] ss:$16 sps:$4 sm:$0xff]  }
 0x64e   :  { %7638 = vmatpush1.bf16.msra.mxu1 %v14106_v1  ;;  %v14177_v1 = vld [vmem:[%s18846_s7 + $0x824] ss:$16 sps:$4 sm:$0xff]  }
 0x64f   :  { %7639 = vmatprep.subr.bf16.mxu1 %v14114_v19  ;;  %v14175_v19 = vld [vmem:[%s18846_s7 + $0x820] ss:$16 sps:$4 sm:$0xff]  }
 0x650   :  { %8698 = vmatpush1.bf16.msra.mxu0 %v14109_v61  ;;  %v14180_v61 = vld [vmem:[%s18846_s7 + $0x844] ss:$16 sps:$4 sm:$0xff]  }
 0x651   :  { %8699 = vmatprep.subr.bf16.mxu0 %v14117_v50  ;;  %v14178_v50 = vld [vmem:[%s18846_s7 + $0x840] ss:$16 sps:$4 sm:$0xff]  }
 0x652   :  { %7640 = vmatpush1.bf16.msra.mxu1 %v14112_v55  ;;  %v14181_v55 = vld [vmem:[%s18846_s7 + $0x860] ss:$16 sps:$4 sm:$0xff]  }
 0x653   :  { %7641 = vmatprep.subr.bf16.mxu1 %v14120_v11  ;;  %v14186_v11 = vld [vmem:[%s18846_s7 + $0x884] ss:$16 sps:$4 sm:$0xff]  }
 0x654   :  { %8700 = vmatpush1.bf16.msra.mxu0 %v14115_v36  ;;  %v14189_v36 = vld [vmem:[%s18846_s7 + $0x8a4] ss:$16 sps:$4 sm:$0xff]  }
 0x655   :  { %8701 = vmatprep.subr.bf16.mxu0 %v14123_v17  ;;  %v14187_v17 = vld [vmem:[%s18846_s7 + $0x8a0] ss:$16 sps:$4 sm:$0xff]  }
 0x656   :  { %7642 = vmatpush1.bf16.msra.mxu1 %v14118_v15  ;;  %v14192_v15 = vld [vmem:[%s18846_s7 + $0x8c4] ss:$16 sps:$4 sm:$0xff]  }
 0x657   :  { %7643 = vmatprep.subr.bf16.mxu1 %v14126_v60  ;;  %v14190_v60 = vld [vmem:[%s18846_s7 + $0x8c0] ss:$16 sps:$4 sm:$0xff]  }
 0x658   :  { %8702 = vmatpush1.bf16.msra.mxu0 %v14121_v35  ;;  %v14195_v35 = vld [vmem:[%s18846_s7 + $0x8e4] ss:$16 sps:$4 sm:$0xff]  }
 0x659   :  { %8703 = vmatprep.subr.bf16.mxu0 %v14129_v40  ;;  %v14193_v40 = vld [vmem:[%s18846_s7 + $0x8e0] ss:$16 sps:$4 sm:$0xff]  }
 0x65a   :  { %7644 = vmatpush1.bf16.msra.mxu1 %v14124_v4  ;;  %v14198_v4 = vld [vmem:[%s18846_s7 + $0x904] ss:$16 sps:$4 sm:$0xff]  }
 0x65b   :  { %7645 = vmatprep.subr.bf16.mxu1 %v14132_v48  ;;  %v14196_v48 = vld [vmem:[%s18846_s7 + $0x900] ss:$16 sps:$4 sm:$0xff]  }
 0x65c   :  { %8704 = vmatpush1.bf16.msra.mxu0 %v14127_v53  ;;  %v14201_v53 = vld [vmem:[%s18846_s7 + $0x924] ss:$16 sps:$4 sm:$0xff]  }
 0x65d   :  { %8705 = vmatprep.subr.bf16.mxu0 %v14135_v6  ;;  %v14199_v6 = vld [vmem:[%s18846_s7 + $0x920] ss:$16 sps:$4 sm:$0xff]  }
 0x65e   :  { %7646 = vmatpush1.bf16.msra.mxu1 %v14130_v20  ;;  %v14204_v20 = vld [vmem:[%s18846_s7 + $0x944] ss:$16 sps:$4 sm:$0xff]  }
 0x65f   :  { %7647 = vmatprep.subr.bf16.mxu1 %v14138_v7  ;;  %v14202_v7 = vld [vmem:[%s18846_s7 + $0x940] ss:$16 sps:$4 sm:$0xff]  }
 0x660   :  { %8706 = vmatpush1.bf16.msra.mxu0 %v14133_v9  ;;  %v14207_v9 = vld [vmem:[%s18846_s7 + $0x964] ss:$16 sps:$4 sm:$0xff]  }
 0x661   :  { %8707 = vmatprep.subr.bf16.mxu0 %v14141_v27  ;;  %v14205_v27 = vld [vmem:[%s18846_s7 + $0x960] ss:$16 sps:$4 sm:$0xff]  }
 0x662   :  { %7648 = vmatpush1.bf16.msra.mxu1 %v14136_v14  ;;  %v14210_v14 = vld [vmem:[%s18846_s7 + $0x984] ss:$16 sps:$4 sm:$0xff]  }
 0x663   :  { %7649 = vmatprep.subr.bf16.mxu1 %v14144_v33  ;;  %v14208_v33 = vld [vmem:[%s18846_s7 + $0x980] ss:$16 sps:$4 sm:$0xff]  }
 0x664   :  { %8708 = vmatpush1.bf16.msra.mxu0 %v14139_v38  ;;  %v14213_v38 = vld [vmem:[%s18846_s7 + $0x9a4] ss:$16 sps:$4 sm:$0xff]  }
 0x665   :  { %8709 = vmatprep.subr.bf16.mxu0 %v14147_v25  ;;  %v14211_v25 = vld [vmem:[%s18846_s7 + $0x9a0] ss:$16 sps:$4 sm:$0xff]  }
 0x666   :  { %7650 = vmatpush1.bf16.msra.mxu1 %v14142_v3  ;;  %v14216_v3 = vld [vmem:[%s18846_s7 + $0x9c4] ss:$16 sps:$4 sm:$0xff]  }
 0x667   :  { %7651 = vmatprep.subr.bf16.mxu1 %v14150_v29  ;;  %v14214_v29 = vld [vmem:[%s18846_s7 + $0x9c0] ss:$16 sps:$4 sm:$0xff]  }
 0x668   :  { %8710 = vmatpush1.bf16.msra.mxu0 %v14145_v46  ;;  %v14219_v46 = vld [vmem:[%s18846_s7 + $0x9e4] ss:$16 sps:$4 sm:$0xff]  }
 0x669   :  { %8711 = vmatprep.subr.bf16.mxu0 %v14153_v58  ;;  %v14217_v58 = vld [vmem:[%s18846_s7 + $0x9e0] ss:$16 sps:$4 sm:$0xff]  }
 0x66a   :  { %7652 = vmatpush1.bf16.msra.mxu1 %v14148_v44  ;;  %v14222_v44 = vld [vmem:[%s18846_s7 + $0x80c] ss:$16 sps:$4 sm:$0xff]  }
 0x66b   :  { %7653 = vmatprep.subr.bf16.mxu1 %v14156_v34  ;;  %v14220_v34 = vld [vmem:[%s18846_s7 + $0x808] ss:$16 sps:$4 sm:$0xff]  }
 0x66c   :  { %8712 = vmatpush1.bf16.msra.mxu0 %v14151_v31  ;;  %v17788_v31 = vpack.c.bf16 %v17074_v12, %v17074_v12  ;;  %v14228_v12 = vld [vmem:[%s18846_s7 + $0x84c] ss:$16 sps:$4 sm:$0xff]  }
 0x66d   :  { %8713 = vmatprep.subr.bf16.mxu0 %v14159_v16  ;;  %v14225_v16 = vld [vmem:[%s18846_s7 + $0x82c] ss:$16 sps:$4 sm:$0xff]  }
 0x66e   :  { %7654 = vmatpush1.bf16.msra.mxu1 %v14154_v52  ;;  %v14223_v52 = vld [vmem:[%s18846_s7 + $0x828] ss:$16 sps:$4 sm:$0xff]  }
 0x66f   :  { %7655 = vmatprep.subr.bf16.mxu1 %v14162_v51  ;;  %v14226_v51 = vld [vmem:[%s18846_s7 + $0x848] ss:$16 sps:$4 sm:$0xff]  }
 0x670   :  { %8714 = vmatpush1.bf16.msra.mxu0 %v14157_v2  ;;  %v14231_v2 = vld [vmem:[%s18846_s7 + $0x86c] ss:$16 sps:$4 sm:$0xff]  }
 0x671   :  { %8715 = vmatprep.subr.bf16.mxu0 %v14165_v13  ;;  %v14229_v13 = vld [vmem:[%s18846_s7 + $0x868] ss:$16 sps:$4 sm:$0xff]  }
 0x672   :  { %7656 = vmatpush1.bf16.msra.mxu1 %v14160_v49  ;;  %v14234_v49 = vld [vmem:[%s18846_s7 + $0x88c] ss:$16 sps:$4 sm:$0xff]  }
 0x673   :  { %7657 = vmatprep.subr.bf16.mxu1 %v14168_v10  ;;  %v14232_v10 = vld [vmem:[%s18846_s7 + $0x888] ss:$16 sps:$4 sm:$0xff]  }
 0x674   :  { %8716 = vmatpush1.bf16.msra.mxu0 %v14163_v28  ;;  %v14237_v28 = vld [vmem:[%s18846_s7 + $0x8ac] ss:$16 sps:$4 sm:$0xff]  }
 0x675   :  { %9192 = vmatprep.subr.bf16.mxu0 %v14171_v47  ;;  %v14235_v47 = vld [vmem:[%s18846_s7 + $0x8a8] ss:$16 sps:$4 sm:$0xff]  }
 0x676   :  { %7658 = vmatpush1.bf16.msra.mxu1 %v14166_v45  ;;  %v14240_v45 = vld [vmem:[%s18846_s7 + $0x8cc] ss:$16 sps:$4 sm:$0xff]  }
 0x677   :  { %8718 = vmatmul.mubr.bf16.vlgmr.msra.gmra.mrb[4].mxu0 %v17478_v54  ;;  %7659 = vmatprep.subr.bf16.mxu1 %v14174_v0  ;;  %v14183_v54 = vld [vmem:[%s18846_s7 + $0x864] ss:$16 sps:$4 sm:$0xff]   ;;  %v14243_v0 = vld [vmem:[%s18846_s7 + $0x8ec] ss:$16 sps:$4 sm:$0xff]  }
 0x678   :  { %9193 = vmatpush1.bf16.msra.mxu0 %v14169_v22  ;;  %9224 = vmatprep.mubr.bf16.mxu0 %v17688_v56  ;;  %v14241_v22 = vld [vmem:[%s18846_s7 + $0x8e8] ss:$16 sps:$4 sm:$0xff]  }
 0x679   :  { %9194 = vmatprep.subr.bf16.mxu0 %v14177_v1  ;;  %v14246_v1 = vld [vmem:[%s18846_s7 + $0x90c] ss:$16 sps:$4 sm:$0xff]  }
 0x67a   :  { %7660 = vmatpush1.bf16.msra.mxu1 %v14172_v42  ;;  %v14244_v42 = vld [vmem:[%s18846_s7 + $0x908] ss:$16 sps:$4 sm:$0xff]  }
 0x67c   :  { %9195 = vmatpush1.bf16.msra.mxu0 %v14175_v19  ;;  %v14247_v19 = vld [vmem:[%s18846_s7 + $0x928] ss:$16 sps:$4 sm:$0xff]  }
 0x67d   :  { %7662 = vmatmul.mubr.bf16.vlgmr.msra.gmra.mrb[156].mxu1 %v17502_v30  ;;  %9196 = vmatprep.subr.bf16.mxu0 %v14180_v61  ;;  %v14184_v30 = vld [vmem:[%s18846_s7 + $0x880] ss:$16 sps:$4 sm:$0xff]   ;;  %v14252_v61 = vld [vmem:[%s18846_s7 + $0x94c] ss:$16 sps:$4 sm:$0xff]  }
 0x680   :  { %9197 = vmatpush1.bf16.msra.mxu0 %v14178_v50  ;;  %v14250_v50 = vld [vmem:[%s18846_s7 + $0x948] ss:$16 sps:$4 sm:$0xff]  }
 0x681   :  { %9198 = vmatprep.subr.bf16.mxu0 %v14183_v54  ;;  %v14255_v54 = vld [vmem:[%s18846_s7 + $0x96c] ss:$16 sps:$4 sm:$0xff]  }
 0x684   :  { %9199 = vmatpush1.bf16.msra.mxu0 %v14181_v55  ;;  %v14253_v55 = vld [vmem:[%s18846_s7 + $0x968] ss:$16 sps:$4 sm:$0xff]  }
 0x685   :  { %9200 = vmatprep.subr.bf16.mxu0 %v14186_v11  ;;  %v14258_v11 = vld [vmem:[%s18846_s7 + $0x98c] ss:$16 sps:$4 sm:$0xff]  }
 0x688   :  { %9201 = vmatpush1.bf16.msra.mxu0 %v14184_v30  ;;  %v14256_v30 = vld [vmem:[%s18846_s7 + $0x988] ss:$16 sps:$4 sm:$0xff]  }
 0x689   :  { %9202 = vmatprep.subr.bf16.mxu0 %v14189_v36  ;;  %v14261_v36 = vld [vmem:[%s18846_s7 + $0x9ac] ss:$16 sps:$4 sm:$0xff]  }
 0x68c   :  { %9203 = vmatpush1.bf16.msra.mxu0 %v14187_v17  ;;  %v14259_v17 = vld [vmem:[%s18846_s7 + $0x9a8] ss:$16 sps:$4 sm:$0xff]  }
 0x68d   :  { %9204 = vmatprep.subr.bf16.mxu0 %v14192_v15  ;;  %v14264_v15 = vld [vmem:[%s18846_s7 + $0x9cc] ss:$16 sps:$4 sm:$0xff]  }
 0x690   :  { %9205 = vmatpush1.bf16.msra.mxu0 %v14190_v60  ;;  %v14262_v60 = vld [vmem:[%s18846_s7 + $0x9c8] ss:$16 sps:$4 sm:$0xff]  }
 0x691   :  { %9206 = vmatprep.subr.bf16.mxu0 %v14195_v35  ;;  %v14267_v35 = vld [vmem:[%s18846_s7 + $0x9ec] ss:$16 sps:$4 sm:$0xff]  }
 0x694   :  { %9207 = vmatpush1.bf16.msra.mxu0 %v14193_v40  ;;  %v14265_v40 = vld [vmem:[%s18846_s7 + $0x9e8] ss:$16 sps:$4 sm:$0xff]  }
 0x695   :  { %9208 = vmatprep.subr.bf16.mxu0 %v14198_v4  ;;  %v14270_v4 = vld [vmem:[%s18846_s7 + $0xa04] ss:$16 sps:$4 sm:$0xff]  }
 0x698   :  { %9209 = vmatpush1.bf16.msra.mxu0 %v14196_v48  ;;  %v9335_v48 = vcombine.high %v17054_v63, %v17064_v23  ;;  %v14271_v63 = vld [vmem:[%s18846_s7 + $0xa20] ss:$16 sps:$4 sm:$0xff]   ;;  %v14276_v23 = vld [vmem:[%s18846_s7 + $0xa44] ss:$16 sps:$4 sm:$0xff]  }
 0x699   :  { %9210 = vmatprep.subr.bf16.mxu0 %v14201_v53  ;;  %v14268_v53 = vld [vmem:[%s18846_s7 + $0xa00] ss:$16 sps:$4 sm:$0xff]  }
 0x69c   :  { %9211 = vmatpush1.bf16.msra.mxu0 %v14199_v6  ;;  %v14273_v6 = vld [vmem:[%s18846_s7 + $0xa24] ss:$16 sps:$4 sm:$0xff]  }
 0x69d   :  { %9212 = vmatprep.subr.bf16.mxu0 %v14204_v20  ;;  %v17893_v20 = vpack.c.bf16 %v9335_v48, %v9335_v48  ;;  %v14339_v48 = vld [vmem:[%s18846_s7 + $0xaec] ss:$16 sps:$4 sm:$0xff]  }
 0x6a0   :  { %9213 = vmatpush1.bf16.msra.mxu0 %v14202_v7  ;;  %v14274_v7 = vld [vmem:[%s18846_s7 + $0xa40] ss:$16 sps:$4 sm:$0xff]  }
 0x6a1   :  { %9214 = vmatprep.subr.bf16.mxu0 %v14207_v9  ;;  %v14279_v9 = vld [vmem:[%s18846_s7 + $0xa64] ss:$16 sps:$4 sm:$0xff]  }
 0x6a4   :  { %9215 = vmatpush1.bf16.msra.mxu0 %v14205_v27  ;;  %v14277_v27 = vld [vmem:[%s18846_s7 + $0xa60] ss:$16 sps:$4 sm:$0xff]  }
 0x6a5   :  { %9216 = vmatprep.subr.bf16.mxu0 %v14210_v14  ;;  %v14282_v14 = vld [vmem:[%s18846_s7 + $0xa84] ss:$16 sps:$4 sm:$0xff]  }
 0x6a8   :  { %9217 = vmatpush1.bf16.msra.mxu0 %v14208_v33  ;;  %v14280_v33 = vld [vmem:[%s18846_s7 + $0xa80] ss:$16 sps:$4 sm:$0xff]  }
 0x6a9   :  { %9218 = vmatprep.subr.bf16.mxu0 %v14213_v38  ;;  %v14285_v38 = vld [vmem:[%s18846_s7 + $0xaa4] ss:$16 sps:$4 sm:$0xff]  }
 0x6ac   :  { %9219 = vmatpush1.bf16.msra.mxu0 %v14211_v25  ;;  %v14283_v25 = vld [vmem:[%s18846_s7 + $0xaa0] ss:$16 sps:$4 sm:$0xff]  }
 0x6ad   :  { %9220 = vmatprep.subr.bf16.mxu0 %v14216_v3  ;;  %v14288_v3 = vld [vmem:[%s18846_s7 + $0xac4] ss:$16 sps:$4 sm:$0xff]  }
 0x6b0   :  { %9221 = vmatpush1.bf16.msra.mxu0 %v14214_v29  ;;  %v14286_v29 = vld [vmem:[%s18846_s7 + $0xac0] ss:$16 sps:$4 sm:$0xff]  }
 0x6b1   :  { %9222 = vmatprep.subr.bf16.mxu0 %v14219_v46  ;;  %v14291_v46 = vld [vmem:[%s18846_s7 + $0xae4] ss:$16 sps:$4 sm:$0xff]  }
 0x6b4   :  { %9223 = vmatpush1.bf16.msra.mxu0 %v14217_v58 }
 0x6b5   :  { %9233 = vmatprep.subr.bf16.mxu0 %v14222_v44  ;;  %v14289_v44 = vld [vmem:[%s18846_s7 + $0xae0] ss:$16 sps:$4 sm:$0xff]  }
 0x6b7   :  { %9225 = vmatmul.mubr.bf16.vlgmr.msra.gmra.mrb[0].mxu0 %v17788_v31 }
 0x6b8   :  { %9234 = vmatpush1.bf16.msra.mxu0 %v14220_v34  ;;  %9265 = vmatprep.mubr.bf16.mxu0 %v17688_v56  ;;  %v14249_v56 = vld [vmem:[%s18846_s7 + $0x92c] ss:$16 sps:$4 sm:$0xff]  }
 0x6b9   :  { %9235 = vmatprep.subr.bf16.mxu0 %v14225_v16 }
 0x6bc   :  { %9236 = vmatpush1.bf16.msra.mxu0 %v14223_v52 }
 0x6bd   :  { %9237 = vmatprep.subr.bf16.mxu0 %v14228_v12  ;;  %v14292_v12 = vld [vmem:[%s18846_s7 + $0xb00] ss:$16 sps:$4 sm:$0xff]  }
 0x6c0   :  { %9238 = vmatpush1.bf16.msra.mxu0 %v14226_v51  ;;  %v14297_v51 = vld [vmem:[%s18846_s7 + $0xb24] ss:$16 sps:$4 sm:$0xff]  }
 0x6c1   :  { %9239 = vmatprep.subr.bf16.mxu0 %v14231_v2  ;;  %v14295_v2 = vld [vmem:[%s18846_s7 + $0xb20] ss:$16 sps:$4 sm:$0xff]  }
 0x6c4   :  { %9240 = vmatpush1.bf16.msra.mxu0 %v14229_v13  ;;  %v14300_v13 = vld [vmem:[%s18846_s7 + $0xb44] ss:$16 sps:$4 sm:$0xff]  }
 0x6c5   :  { %9241 = vmatprep.subr.bf16.mxu0 %v14234_v49  ;;  %v14298_v49 = vld [vmem:[%s18846_s7 + $0xb40] ss:$16 sps:$4 sm:$0xff]  }
 0x6c8   :  { %9242 = vmatpush1.bf16.msra.mxu0 %v14232_v10  ;;  %v14303_v10 = vld [vmem:[%s18846_s7 + $0xb64] ss:$16 sps:$4 sm:$0xff]  }
 0x6c9   :  { %9243 = vmatprep.subr.bf16.mxu0 %v14237_v28  ;;  %v14301_v28 = vld [vmem:[%s18846_s7 + $0xb60] ss:$16 sps:$4 sm:$0xff]  }
 0x6cc   :  { %9244 = vmatpush1.bf16.msra.mxu0 %v14235_v47  ;;  %v14306_v47 = vld [vmem:[%s18846_s7 + $0xb84] ss:$16 sps:$4 sm:$0xff]  }
 0x6cd   :  { %9245 = vmatprep.subr.bf16.mxu0 %v14240_v45  ;;  %v14304_v45 = vld [vmem:[%s18846_s7 + $0xb80] ss:$16 sps:$4 sm:$0xff]  }
 0x6d0   :  { %9246 = vmatpush1.bf16.msra.mxu0 %v14238_v39  ;;  %v14309_v39 = vld [vmem:[%s18846_s7 + $0xba4] ss:$16 sps:$4 sm:$0xff]  }
 0x6d1   :  { %9247 = vmatprep.subr.bf16.mxu0 %v14243_v0  ;;  %v14307_v0 = vld [vmem:[%s18846_s7 + $0xba0] ss:$16 sps:$4 sm:$0xff]  }
 0x6d4   :  { %9248 = vmatpush1.bf16.msra.mxu0 %v14241_v22  ;;  %v14312_v22 = vld [vmem:[%s18846_s7 + $0xbc4] ss:$16 sps:$4 sm:$0xff]  }
 0x6d5   :  { %9249 = vmatprep.subr.bf16.mxu0 %v14246_v1  ;;  %v14310_v1 = vld [vmem:[%s18846_s7 + $0xbc0] ss:$16 sps:$4 sm:$0xff]  }
 0x6d8   :  { %9250 = vmatpush1.bf16.msra.mxu0 %v14244_v42  ;;  %v14315_v42 = vld [vmem:[%s18846_s7 + $0xbe4] ss:$16 sps:$4 sm:$0xff]  }
 0x6d9   :  { %9251 = vmatprep.subr.bf16.mxu0 %v14249_v56  ;;  %v14313_v56 = vld [vmem:[%s18846_s7 + $0xbe0] ss:$16 sps:$4 sm:$0xff]  }
 0x6dc   :  { %9252 = vmatpush1.bf16.msra.mxu0 %v14247_v19  ;;  %v14318_v19 = vld [vmem:[%s18846_s7 + $0xa0c] ss:$16 sps:$4 sm:$0xff]  }
 0x6dd   :  { %9253 = vmatprep.subr.bf16.mxu0 %v14252_v61  ;;  %v14316_v61 = vld [vmem:[%s18846_s7 + $0xa08] ss:$16 sps:$4 sm:$0xff]  }
 0x6e0   :  { %9254 = vmatpush1.bf16.msra.mxu0 %v14250_v50  ;;  %v17996_v50 = vpack.c.bf16 %v17078_v43, %v17078_v43  ;;  %v14324_v43 = vld [vmem:[%s18846_s7 + $0xa4c] ss:$16 sps:$4 sm:$0xff]  }
 0x6e1   :  { %9255 = vmatprep.subr.bf16.mxu0 %v14255_v54  ;;  %v14321_v54 = vld [vmem:[%s18846_s7 + $0xa2c] ss:$16 sps:$4 sm:$0xff]  }
 0x6e4   :  { %9256 = vmatpush1.bf16.msra.mxu0 %v14253_v55  ;;  %v14319_v55 = vld [vmem:[%s18846_s7 + $0xa28] ss:$16 sps:$4 sm:$0xff]  }
 0x6e5   :  { %9257 = vmatprep.subr.bf16.mxu0 %v14258_v11  ;;  %v14322_v11 = vld [vmem:[%s18846_s7 + $0xa48] ss:$16 sps:$4 sm:$0xff]  }
 0x6e8   :  { %9258 = vmatpush1.bf16.msra.mxu0 %v14256_v30  ;;  %v14327_v30 = vld [vmem:[%s18846_s7 + $0xa6c] ss:$16 sps:$4 sm:$0xff]  }
 0x6e9   :  { %9259 = vmatprep.subr.bf16.mxu0 %v14261_v36  ;;  %v14325_v36 = vld [vmem:[%s18846_s7 + $0xa68] ss:$16 sps:$4 sm:$0xff]  }
 0x6ec   :  { %9260 = vmatpush1.bf16.msra.mxu0 %v14259_v17  ;;  %v14330_v17 = vld [vmem:[%s18846_s7 + $0xa8c] ss:$16 sps:$4 sm:$0xff]  }
 0x6ed   :  { %9261 = vmatprep.subr.bf16.mxu0 %v14264_v15  ;;  %v14328_v15 = vld [vmem:[%s18846_s7 + $0xa88] ss:$16 sps:$4 sm:$0xff]  }
 0x6f0   :  { %9262 = vmatpush1.bf16.msra.mxu0 %v14262_v60  ;;  %v14333_v60 = vld [vmem:[%s18846_s7 + $0xaac] ss:$16 sps:$4 sm:$0xff]  }
 0x6f1   :  { %9263 = vmatprep.subr.bf16.mxu0 %v14267_v35  ;;  %v14331_v35 = vld [vmem:[%s18846_s7 + $0xaa8] ss:$16 sps:$4 sm:$0xff]  }
 0x6f4   :  { %9264 = vmatpush1.bf16.msra.mxu0 %v14265_v40  ;;  %v14336_v40 = vld [vmem:[%s18846_s7 + $0xacc] ss:$16 sps:$4 sm:$0xff]  }
 0x6f5   :  { %9724 = vmatprep.subr.bf16.mxu0 %v14270_v4  ;;  %v14334_v4 = vld [vmem:[%s18846_s7 + $0xac8] ss:$16 sps:$4 sm:$0xff]  }
 0x6f7   :  { %9266 = vmatmul.mubr.bf16.vlgmr.msra.gmra.mrb[4].mxu0 %v17788_v31  ;;  %v14294_v31 = vld [vmem:[%s18846_s7 + $0xb04] ss:$16 sps:$4 sm:$0xff]  }
 0x6f8   :  { %9725 = vmatpush1.bf16.msra.mxu0 %v14268_v53  ;;  %9756 = vmatprep.mubr.bf16.mxu0 %v17893_v20 }
 0x6f9   :  { %9726 = vmatprep.subr.bf16.mxu0 %v14273_v6  ;;  %v14337_v6 = vld [vmem:[%s18846_s7 + $0xae8] ss:$16 sps:$4 sm:$0xff]  }
 0x6fc   :  { %9727 = vmatpush1.bf16.msra.mxu0 %v14271_v63  ;;  %v14342_v63 = vld [vmem:[%s18846_s7 + $0xb0c] ss:$16 sps:$4 sm:$0xff]  }
 0x6fd   :  { %9728 = vmatprep.subr.bf16.mxu0 %v14276_v23 }
 0x700   :  { %9729 = vmatpush1.bf16.msra.mxu0 %v14274_v7 }
 0x701   :  { %9730 = vmatprep.subr.bf16.mxu0 %v14279_v9  ;;  %v14340_v9 = vld [vmem:[%s18846_s7 + $0xb08] ss:$16 sps:$4 sm:$0xff]  }
 0x704   :  { %9731 = vmatpush1.bf16.msra.mxu0 %v14277_v27  ;;  %v14345_v27 = vld [vmem:[%s18846_s7 + $0xb2c] ss:$16 sps:$4 sm:$0xff]  }
 0x705   :  { %9732 = vmatprep.subr.bf16.mxu0 %v14282_v14  ;;  %v14343_v14 = vld [vmem:[%s18846_s7 + $0xb28] ss:$16 sps:$4 sm:$0xff]  }
 0x708   :  { %9733 = vmatpush1.bf16.msra.mxu0 %v14280_v33  ;;  %v14348_v33 = vld [vmem:[%s18846_s7 + $0xb4c] ss:$16 sps:$4 sm:$0xff]  }
 0x709   :  { %9734 = vmatprep.subr.bf16.mxu0 %v14285_v38  ;;  %v14346_v38 = vld [vmem:[%s18846_s7 + $0xb48] ss:$16 sps:$4 sm:$0xff]  }
 0x70c   :  { %9735 = vmatpush1.bf16.msra.mxu0 %v14283_v25  ;;  %v14351_v25 = vld [vmem:[%s18846_s7 + $0xb6c] ss:$16 sps:$4 sm:$0xff]  }
 0x70d   :  { %9736 = vmatprep.subr.bf16.mxu0 %v14288_v3  ;;  %v14349_v3 = vld [vmem:[%s18846_s7 + $0xb68] ss:$16 sps:$4 sm:$0xff]  }
 0x710   :  { %v17933_v58 = vpop.f32.mrb[152].mxu1  ;;  %9737 = vmatpush1.bf16.msra.mxu0 %v14286_v29  ;;  %v14354_v29 = vld [vmem:[%s18846_s7 + $0xb8c] ss:$16 sps:$4 sm:$0xff]  }
 0x711   :  { %v17938_v34 = vpop.f32.mrb[153].mxu1  ;;  %9738 = vmatprep.subr.bf16.mxu0 %v14291_v46  ;;  %v14352_v46 = vld [vmem:[%s18846_s7 + $0xb88] ss:$16 sps:$4 sm:$0xff]  }
 0x712   :  { %v7626_v16 = vpop.f32.mrb[154].mxu1 }
 0x713   :  { %v7627_v52 = vpop.f32.mrb[155].mxu1  ;;  %v14360_v16 = vld [vmem:[%s18846_s7 + $0xbcc] ss:$16 sps:$4 sm:$0xff]  }
 0x714   :  { %9739 = vmatpush1.bf16.msra.mxu0 %v14289_v44  ;;  %v14357_v44 = vld [vmem:[%s18846_s7 + $0xbac] ss:$16 sps:$4 sm:$0xff]   ;;  %v14358_v52 = vld [vmem:[%s18846_s7 + $0xbc8] ss:$16 sps:$4 sm:$0xff]  }
 0x715   :  { %9740 = vmatprep.subr.bf16.mxu0 %v14294_v31  ;;  %v14355_v31 = vld [vmem:[%s18846_s7 + $0xba8] ss:$16 sps:$4 sm:$0xff]  }
 0x718   :  { %9741 = vmatpush1.bf16.msra.mxu0 %v14292_v12  ;;  %v14363_v12 = vld [vmem:[%s18846_s7 + $0xbec] ss:$16 sps:$4 sm:$0xff]  }
 0x719   :  { %9742 = vmatprep.subr.bf16.mxu0 %v14297_v51  ;;  %v14361_v51 = vld [vmem:[%s18846_s7 + $0xbe8] ss:$16 sps:$4 sm:$0xff]  }
 0x71c   :  { %9743 = vmatpush1.bf16.msra.mxu0 %v14295_v2  ;;  %v14366_v2 = vld [vmem:[%s18846_s7 + $0xc04] ss:$16 sps:$4 sm:$0xff]  }
 0x71d   :  { %9744 = vmatprep.subr.bf16.mxu0 %v14300_v13  ;;  %v9864_v13 = vcombine.high %v17091_v62, %v17096_v21  ;;  %v14367_v62 = vld [vmem:[%s18846_s7 + $0xc20] ss:$16 sps:$4 sm:$0xff]   ;;  %v14372_v21 = vld [vmem:[%s18846_s7 + $0xc44] ss:$16 sps:$4 sm:$0xff]  }
 0x720   :  { %9745 = vmatpush1.bf16.msra.mxu0 %v14298_v49  ;;  %v14364_v49 = vld [vmem:[%s18846_s7 + $0xc00] ss:$16 sps:$4 sm:$0xff]  }
 0x721   :  { %9746 = vmatprep.subr.bf16.mxu0 %v14303_v10  ;;  %v14369_v10 = vld [vmem:[%s18846_s7 + $0xc24] ss:$16 sps:$4 sm:$0xff]  }
 0x724   :  { %9747 = vmatpush1.bf16.msra.mxu0 %v14301_v28  ;;  %v18105_v28 = vpack.c.bf16 %v9864_v13, %v9864_v13  ;;  %v14436_v13 = vld [vmem:[%s18846_s7 + $0xd08] ss:$16 sps:$4 sm:$0xff]  }
 0x725   :  { %9748 = vmatprep.subr.bf16.mxu0 %v14306_v47  ;;  %v14370_v47 = vld [vmem:[%s18846_s7 + $0xc40] ss:$16 sps:$4 sm:$0xff]  }
 0x728   :  { %9749 = vmatpush1.bf16.msra.mxu0 %v14304_v45  ;;  %v14375_v45 = vld [vmem:[%s18846_s7 + $0xc64] ss:$16 sps:$4 sm:$0xff]  }
 0x729   :  { %9750 = vmatprep.subr.bf16.mxu0 %v14309_v39  ;;  %v14373_v39 = vld [vmem:[%s18846_s7 + $0xc60] ss:$16 sps:$4 sm:$0xff]  }
 0x72c   :  { %9751 = vmatpush1.bf16.msra.mxu0 %v14307_v0  ;;  %v14378_v0 = vld [vmem:[%s18846_s7 + $0xc84] ss:$16 sps:$4 sm:$0xff]  }
 0x72d   :  { %9752 = vmatprep.subr.bf16.mxu0 %v14312_v22  ;;  %v14376_v22 = vld [vmem:[%s18846_s7 + $0xc80] ss:$16 sps:$4 sm:$0xff]  }
 0x730   :  { %9753 = vmatpush1.bf16.msra.mxu0 %v14310_v1  ;;  %v14381_v1 = vld [vmem:[%s18846_s7 + $0xca4] ss:$16 sps:$4 sm:$0xff]  }
 0x731   :  { %9754 = vmatprep.subr.bf16.mxu0 %v14315_v42  ;;  %v14379_v42 = vld [vmem:[%s18846_s7 + $0xca0] ss:$16 sps:$4 sm:$0xff]  }
 0x734   :  { %9755 = vmatpush1.bf16.msra.mxu0 %v14313_v56  ;;  %v14384_v56 = vld [vmem:[%s18846_s7 + $0xcc4] ss:$16 sps:$4 sm:$0xff]  }
 0x735   :  { %9765 = vmatprep.subr.bf16.mxu0 %v14318_v19  ;;  %v14382_v19 = vld [vmem:[%s18846_s7 + $0xcc0] ss:$16 sps:$4 sm:$0xff]  }
 0x737   :  { %9757 = vmatmul.mubr.bf16.vlgmr.msra.gmra.mrb[0].mxu0 %v17996_v50 }
 0x738   :  { %9766 = vmatpush1.bf16.msra.mxu0 %v14316_v61  ;;  %9797 = vmatprep.mubr.bf16.mxu0 %v17893_v20  ;;  %v14387_v61 = vld [vmem:[%s18846_s7 + $0xce4] ss:$16 sps:$4 sm:$0xff]  }
 0x739   :  { %9767 = vmatprep.subr.bf16.mxu0 %v14321_v54  ;;  %v14390_v54 = vld [vmem:[%s18846_s7 + $0xd04] ss:$16 sps:$4 sm:$0xff]  }
 0x73c   :  { %9768 = vmatpush1.bf16.msra.mxu0 %v14319_v55  ;;  %v14388_v55 = vld [vmem:[%s18846_s7 + $0xd00] ss:$16 sps:$4 sm:$0xff]  }
 0x73d   :  { %9769 = vmatprep.subr.bf16.mxu0 %v14324_v43  ;;  %v14393_v43 = vld [vmem:[%s18846_s7 + $0xd24] ss:$16 sps:$4 sm:$0xff]  }
 0x740   :  { %9770 = vmatpush1.bf16.msra.mxu0 %v14322_v11  ;;  %v14391_v11 = vld [vmem:[%s18846_s7 + $0xd20] ss:$16 sps:$4 sm:$0xff]  }
 0x741   :  { %9771 = vmatprep.subr.bf16.mxu0 %v14327_v30  ;;  %v14396_v30 = vld [vmem:[%s18846_s7 + $0xd44] ss:$16 sps:$4 sm:$0xff]  }
 0x744   :  { %9772 = vmatpush1.bf16.msra.mxu0 %v14325_v36  ;;  %v14394_v36 = vld [vmem:[%s18846_s7 + $0xd40] ss:$16 sps:$4 sm:$0xff]  }
 0x745   :  { %9773 = vmatprep.subr.bf16.mxu0 %v14330_v17  ;;  %v14399_v17 = vld [vmem:[%s18846_s7 + $0xd64] ss:$16 sps:$4 sm:$0xff]  }
 0x748   :  { %9774 = vmatpush1.bf16.msra.mxu0 %v14328_v15  ;;  %v14397_v15 = vld [vmem:[%s18846_s7 + $0xd60] ss:$16 sps:$4 sm:$0xff]  }
 0x749   :  { %9775 = vmatprep.subr.bf16.mxu0 %v14333_v60  ;;  %v14402_v60 = vld [vmem:[%s18846_s7 + $0xd84] ss:$16 sps:$4 sm:$0xff]  }
 0x74c   :  { %9776 = vmatpush1.bf16.msra.mxu0 %v14331_v35  ;;  %v14400_v35 = vld [vmem:[%s18846_s7 + $0xd80] ss:$16 sps:$4 sm:$0xff]  }
 0x74d   :  { %9777 = vmatprep.subr.bf16.mxu0 %v14336_v40  ;;  %v14405_v40 = vld [vmem:[%s18846_s7 + $0xda4] ss:$16 sps:$4 sm:$0xff]  }
 0x750   :  { %v18039_v53 = vpop.f32.mrb[156].mxu1  ;;  %9778 = vmatpush1.bf16.msra.mxu0 %v14334_v4  ;;  %v14403_v4 = vld [vmem:[%s18846_s7 + $0xda0] ss:$16 sps:$4 sm:$0xff]  }
 0x751   :  { %v18044_v20 = vpop.f32.mrb[157].mxu1  ;;  %9779 = vmatprep.subr.bf16.mxu0 %v14339_v48  ;;  %v14408_v48 = vld [vmem:[%s18846_s7 + $0xdc4] ss:$16 sps:$4 sm:$0xff]  }
 0x752   :  { %v7667_v23 = vpop.f32.mrb[158].mxu1 }
 0x753   :  { %v7668_v7 = vpop.f32.mrb[159].mxu1  ;;  %v14409_v23 = vld [vmem:[%s18846_s7 + $0xde0] ss:$16 sps:$4 sm:$0xff]  }
 0x754   :  { %9780 = vmatpush1.bf16.msra.mxu0 %v14337_v6  ;;  %v14406_v6 = vld [vmem:[%s18846_s7 + $0xdc0] ss:$16 sps:$4 sm:$0xff]   ;;  %v14414_v7 = vld [vmem:[%s18846_s7 + $0xc0c] ss:$16 sps:$4 sm:$0xff]  }
 0x755   :  { %9781 = vmatprep.subr.bf16.mxu0 %v14342_v63  ;;  %v14411_v63 = vld [vmem:[%s18846_s7 + $0xde4] ss:$16 sps:$4 sm:$0xff]  }
 0x758   :  { %9782 = vmatpush1.bf16.msra.mxu0 %v14340_v9  ;;  %v14412_v9 = vld [vmem:[%s18846_s7 + $0xc08] ss:$16 sps:$4 sm:$0xff]  }
 0x759   :  { %9783 = vmatprep.subr.bf16.mxu0 %v14345_v27  ;;  %v18204_v27 = vpack.c.bf16 %v17105_v32, %v17105_v32  ;;  %v14420_v32 = vld [vmem:[%s18846_s7 + $0xc4c] ss:$16 sps:$4 sm:$0xff]  }
 0x75c   :  { %9784 = vmatpush1.bf16.msra.mxu0 %v14343_v14  ;;  %v14417_v14 = vld [vmem:[%s18846_s7 + $0xc2c] ss:$16 sps:$4 sm:$0xff]  }
 0x75d   :  { %9785 = vmatprep.subr.bf16.mxu0 %v14348_v33  ;;  %v14415_v33 = vld [vmem:[%s18846_s7 + $0xc28] ss:$16 sps:$4 sm:$0xff]  }
 0x760   :  { %9786 = vmatpush1.bf16.msra.mxu0 %v14346_v38  ;;  %v14418_v38 = vld [vmem:[%s18846_s7 + $0xc48] ss:$16 sps:$4 sm:$0xff]  }
 0x761   :  { %9787 = vmatprep.subr.bf16.mxu0 %v14351_v25  ;;  %v14423_v25 = vld [vmem:[%s18846_s7 + $0xc6c] ss:$16 sps:$4 sm:$0xff]  }
 0x764   :  { %9788 = vmatpush1.bf16.msra.mxu0 %v14349_v3  ;;  %v14421_v3 = vld [vmem:[%s18846_s7 + $0xc68] ss:$16 sps:$4 sm:$0xff]  }
 0x765   :  { %9789 = vmatprep.subr.bf16.mxu0 %v14354_v29  ;;  %v14426_v29 = vld [vmem:[%s18846_s7 + $0xc8c] ss:$16 sps:$4 sm:$0xff]  }
 0x768   :  { %9790 = vmatpush1.bf16.msra.mxu0 %v14352_v46  ;;  %v14424_v46 = vld [vmem:[%s18846_s7 + $0xc88] ss:$16 sps:$4 sm:$0xff]  }
 0x769   :  { %9791 = vmatprep.subr.bf16.mxu0 %v14357_v44  ;;  %v14429_v44 = vld [vmem:[%s18846_s7 + $0xcac] ss:$16 sps:$4 sm:$0xff]  }
 0x76c   :  { %9792 = vmatpush1.bf16.msra.mxu0 %v14355_v31  ;;  %v14427_v31 = vld [vmem:[%s18846_s7 + $0xca8] ss:$16 sps:$4 sm:$0xff]  }
 0x76d   :  { %9793 = vmatprep.subr.bf16.mxu0 %v14360_v16  ;;  %v14432_v16 = vld [vmem:[%s18846_s7 + $0xccc] ss:$16 sps:$4 sm:$0xff]  }
 0x770   :  { %9794 = vmatpush1.bf16.msra.mxu0 %v14358_v52  ;;  %v14430_v52 = vld [vmem:[%s18846_s7 + $0xcc8] ss:$16 sps:$4 sm:$0xff]  }
 0x771   :  { %9795 = vmatprep.subr.bf16.mxu0 %v14363_v12  ;;  %v14435_v12 = vld [vmem:[%s18846_s7 + $0xcec] ss:$16 sps:$4 sm:$0xff]  }
 0x774   :  { %9796 = vmatpush1.bf16.msra.mxu0 %v14361_v51  ;;  %v14433_v51 = vld [vmem:[%s18846_s7 + $0xce8] ss:$16 sps:$4 sm:$0xff]  }
 0x775   :  { %10253 = vmatprep.subr.bf16.mxu0 %v14366_v2  ;;  %v14438_v2 = vld [vmem:[%s18846_s7 + $0xd0c] ss:$16 sps:$4 sm:$0xff]  }
 0x777   :  { %9798 = vmatmul.mubr.bf16.vlgmr.msra.gmra.mrb[4].mxu0 %v17996_v50  ;;  %v14385_v50 = vld [vmem:[%s18846_s7 + $0xce0] ss:$16 sps:$4 sm:$0xff]  }
 0x778   :  { %10254 = vmatpush1.bf16.msra.mxu0 %v14364_v49  ;;  %10285 = vmatprep.mubr.bf16.mxu0 %v18105_v28  ;;  %v14441_v49 = vld [vmem:[%s18846_s7 + $0xd2c] ss:$16 sps:$4 sm:$0xff]  }
 0x779   :  { %10255 = vmatprep.subr.bf16.mxu0 %v14369_v10  ;;  %v14439_v10 = vld [vmem:[%s18846_s7 + $0xd28] ss:$16 sps:$4 sm:$0xff]  }
 0x77c   :  { %10256 = vmatpush1.bf16.msra.mxu0 %v14367_v62  ;;  %v14442_v62 = vld [vmem:[%s18846_s7 + $0xd48] ss:$16 sps:$4 sm:$0xff]  }
 0x77d   :  { %10257 = vmatprep.subr.bf16.mxu0 %v14372_v21  ;;  %v14447_v21 = vld [vmem:[%s18846_s7 + $0xd6c] ss:$16 sps:$4 sm:$0xff]  }
 0x780   :  { %10258 = vmatpush1.bf16.msra.mxu0 %v14370_v47  ;;  %v14445_v47 = vld [vmem:[%s18846_s7 + $0xd68] ss:$16 sps:$4 sm:$0xff]  }
 0x781   :  { %10259 = vmatprep.subr.bf16.mxu0 %v14375_v45  ;;  %v14450_v45 = vld [vmem:[%s18846_s7 + $0xd8c] ss:$16 sps:$4 sm:$0xff]  }
 0x784   :  { %10260 = vmatpush1.bf16.msra.mxu0 %v14373_v39  ;;  %v14448_v39 = vld [vmem:[%s18846_s7 + $0xd88] ss:$16 sps:$4 sm:$0xff]  }
 0x785   :  { %10261 = vmatprep.subr.bf16.mxu0 %v14378_v0  ;;  %v14453_v0 = vld [vmem:[%s18846_s7 + $0xdac] ss:$16 sps:$4 sm:$0xff]  }
 0x788   :  { %10262 = vmatpush1.bf16.msra.mxu0 %v14376_v22  ;;  %v14451_v22 = vld [vmem:[%s18846_s7 + $0xda8] ss:$16 sps:$4 sm:$0xff]  }
 0x789   :  { %10263 = vmatprep.subr.bf16.mxu0 %v14381_v1  ;;  %v14456_v1 = vld [vmem:[%s18846_s7 + $0xdcc] ss:$16 sps:$4 sm:$0xff]  }
 0x78c   :  { %10264 = vmatpush1.bf16.msra.mxu0 %v14379_v42  ;;  %v14454_v42 = vld [vmem:[%s18846_s7 + $0xdc8] ss:$16 sps:$4 sm:$0xff]  }
 0x78d   :  { %10265 = vmatprep.subr.bf16.mxu0 %v14384_v56  ;;  %v14459_v56 = vld [vmem:[%s18846_s7 + $0xdec] ss:$16 sps:$4 sm:$0xff]  }
 0x790   :  { %10266 = vmatpush1.bf16.msra.mxu0 %v14382_v19  ;;  %v14457_v19 = vld [vmem:[%s18846_s7 + $0xde8] ss:$16 sps:$4 sm:$0xff]  }
 0x791   :  { %10267 = vmatprep.subr.bf16.mxu0 %v14387_v61  ;;  %v14462_v61 = vld [vmem:[%s18846_s7 + $0xe04] ss:$16 sps:$4 sm:$0xff]  }
 0x794   :  { %10268 = vmatpush1.bf16.msra.mxu0 %v14385_v50  ;;  %v10412_v50 = vcombine.high %v17133_v8, %v17136_v18  ;;  %v14463_v8 = vld [vmem:[%s18846_s7 + $0xe20] ss:$16 sps:$4 sm:$0xff]   ;;  %v14468_v18 = vld [vmem:[%s18846_s7 + $0xe44] ss:$16 sps:$4 sm:$0xff]  }
 0x795   :  { %10269 = vmatprep.subr.bf16.mxu0 %v14390_v54  ;;  %v14460_v54 = vld [vmem:[%s18846_s7 + $0xe00] ss:$16 sps:$4 sm:$0xff]  }
 0x798   :  { %10270 = vmatpush1.bf16.msra.mxu0 %v14388_v55  ;;  %v14465_v55 = vld [vmem:[%s18846_s7 + $0xe24] ss:$16 sps:$4 sm:$0xff]  }
 0x799   :  { %10271 = vmatprep.subr.bf16.mxu0 %v14393_v43  ;;  %v18309_v43 = vpack.c.bf16 %v10412_v50, %v10412_v50  ;;  %v14540_v50 = vld [vmem:[%s18846_s7 + $0xf4c] ss:$16 sps:$4 sm:$0xff]  }
 0x79c   :  { %10272 = vmatpush1.bf16.msra.mxu0 %v14391_v11  ;;  %v14466_v11 = vld [vmem:[%s18846_s7 + $0xe40] ss:$16 sps:$4 sm:$0xff]  }
 0x79d   :  { %10273 = vmatprep.subr.bf16.mxu0 %v14396_v30  ;;  %v14471_v30 = vld [vmem:[%s18846_s7 + $0xe64] ss:$16 sps:$4 sm:$0xff]  }
 0x7a0   :  { %10274 = vmatpush1.bf16.msra.mxu0 %v14394_v36  ;;  %v14469_v36 = vld [vmem:[%s18846_s7 + $0xe60] ss:$16 sps:$4 sm:$0xff]  }
 0x7a1   :  { %10275 = vmatprep.subr.bf16.mxu0 %v14399_v17  ;;  %v14474_v17 = vld [vmem:[%s18846_s7 + $0xe84] ss:$16 sps:$4 sm:$0xff]  }
 0x7a4   :  { %10276 = vmatpush1.bf16.msra.mxu0 %v14397_v15  ;;  %v14472_v15 = vld [vmem:[%s18846_s7 + $0xe80] ss:$16 sps:$4 sm:$0xff]  }
 0x7a5   :  { %10277 = vmatprep.subr.bf16.mxu0 %v14402_v60  ;;  %v14477_v60 = vld [vmem:[%s18846_s7 + $0xea4] ss:$16 sps:$4 sm:$0xff]  }
 0x7a8   :  { %10278 = vmatpush1.bf16.msra.mxu0 %v14400_v35  ;;  %v14475_v35 = vld [vmem:[%s18846_s7 + $0xea0] ss:$16 sps:$4 sm:$0xff]  }
 0x7a9   :  { %10279 = vmatprep.subr.bf16.mxu0 %v14405_v40  ;;  %v14480_v40 = vld [vmem:[%s18846_s7 + $0xec4] ss:$16 sps:$4 sm:$0xff]  }
 0x7ac   :  { %10280 = vmatpush1.bf16.msra.mxu0 %v14403_v4  ;;  %v14478_v4 = vld [vmem:[%s18846_s7 + $0xec0] ss:$16 sps:$4 sm:$0xff]  }
 0x7ad   :  { %10281 = vmatprep.subr.bf16.mxu0 %v14408_v48  ;;  %v14483_v48 = vld [vmem:[%s18846_s7 + $0xee4] ss:$16 sps:$4 sm:$0xff]  }
 0x7b0   :  { %10282 = vmatpush1.bf16.msra.mxu0 %v14406_v6  ;;  %v14481_v6 = vld [vmem:[%s18846_s7 + $0xee0] ss:$16 sps:$4 sm:$0xff]  }
 0x7b1   :  { %10283 = vmatprep.subr.bf16.mxu0 %v14411_v63  ;;  %v14486_v63 = vld [vmem:[%s18846_s7 + $0xf04] ss:$16 sps:$4 sm:$0xff]  }
 0x7b4   :  { %10284 = vmatpush1.bf16.msra.mxu0 %v14409_v23  ;;  %v14484_v23 = vld [vmem:[%s18846_s7 + $0xf00] ss:$16 sps:$4 sm:$0xff]  }
 0x7b5   :  { %10294 = vmatprep.subr.bf16.mxu0 %v14414_v7  ;;  %v14489_v7 = vld [vmem:[%s18846_s7 + $0xf24] ss:$16 sps:$4 sm:$0xff]  }
 0x7b7   :  { %10286 = vmatmul.mubr.bf16.vlgmr.msra.gmra.mrb[0].mxu0 %v18204_v27 }
 0x7b8   :  { %10295 = vmatpush1.bf16.msra.mxu0 %v14412_v9  ;;  %10326 = vmatprep.mubr.bf16.mxu0 %v18105_v28  ;;  %v14444_v28 = vld [vmem:[%s18846_s7 + $0xd4c] ss:$16 sps:$4 sm:$0xff]   ;;  %v14487_v9 = vld [vmem:[%s18846_s7 + $0xf20] ss:$16 sps:$4 sm:$0xff]  }
 0x7b9   :  { %10296 = vmatprep.subr.bf16.mxu0 %v14417_v14  ;;  %v14490_v14 = vld [vmem:[%s18846_s7 + $0xf40] ss:$16 sps:$4 sm:$0xff]  }
 0x7bc   :  { %10297 = vmatpush1.bf16.msra.mxu0 %v14415_v33  ;;  %v14495_v33 = vld [vmem:[%s18846_s7 + $0xf64] ss:$16 sps:$4 sm:$0xff]  }
 0x7bd   :  { %10298 = vmatprep.subr.bf16.mxu0 %v14420_v32  ;;  %v14493_v32 = vld [vmem:[%s18846_s7 + $0xf60] ss:$16 sps:$4 sm:$0xff]  }
 0x7c0   :  { %10299 = vmatpush1.bf16.msra.mxu0 %v14418_v38  ;;  %v14498_v38 = vld [vmem:[%s18846_s7 + $0xf84] ss:$16 sps:$4 sm:$0xff]  }
 0x7c1   :  { %10300 = vmatprep.subr.bf16.mxu0 %v14423_v25  ;;  %v14496_v25 = vld [vmem:[%s18846_s7 + $0xf80] ss:$16 sps:$4 sm:$0xff]  }
 0x7c4   :  { %10301 = vmatpush1.bf16.msra.mxu0 %v14421_v3  ;;  %v14501_v3 = vld [vmem:[%s18846_s7 + $0xfa4] ss:$16 sps:$4 sm:$0xff]  }
 0x7c5   :  { %10302 = vmatprep.subr.bf16.mxu0 %v14426_v29  ;;  %v14499_v29 = vld [vmem:[%s18846_s7 + $0xfa0] ss:$16 sps:$4 sm:$0xff]  }
 0x7c8   :  { %10303 = vmatpush1.bf16.msra.mxu0 %v14424_v46  ;;  %v14504_v46 = vld [vmem:[%s18846_s7 + $0xfc4] ss:$16 sps:$4 sm:$0xff]  }
 0x7c9   :  { %10304 = vmatprep.subr.bf16.mxu0 %v14429_v44  ;;  %v14502_v44 = vld [vmem:[%s18846_s7 + $0xfc0] ss:$16 sps:$4 sm:$0xff]  }
 0x7cc   :  { %10305 = vmatpush1.bf16.msra.mxu0 %v14427_v31  ;;  %v14507_v31 = vld [vmem:[%s18846_s7 + $0xfe4] ss:$16 sps:$4 sm:$0xff]  }
 0x7cd   :  { %10306 = vmatprep.subr.bf16.mxu0 %v14432_v16  ;;  %v14505_v16 = vld [vmem:[%s18846_s7 + $0xfe0] ss:$16 sps:$4 sm:$0xff]  }
 0x7d0   :  { %10307 = vmatpush1.bf16.msra.mxu0 %v14430_v52  ;;  %v14510_v52 = vld [vmem:[%s18846_s7 + $0xe0c] ss:$16 sps:$4 sm:$0xff]  }
 0x7d1   :  { %10308 = vmatprep.subr.bf16.mxu0 %v14435_v12  ;;  %v14508_v12 = vld [vmem:[%s18846_s7 + $0xe08] ss:$16 sps:$4 sm:$0xff]  }
 0x7d4   :  { %10309 = vmatpush1.bf16.msra.mxu0 %v14433_v51  ;;  %v18408_v51 = vpack.c.bf16 %v17150_v59, %v17150_v59  ;;  %v14516_v59 = vld [vmem:[%s18846_s7 + $0xe4c] ss:$16 sps:$4 sm:$0xff]  }
 0x7d5   :  { %10310 = vmatprep.subr.bf16.mxu0 %v14438_v2  ;;  %v14513_v2 = vld [vmem:[%s18846_s7 + $0xe2c] ss:$16 sps:$4 sm:$0xff]  }
 0x7d8   :  { %10311 = vmatpush1.bf16.msra.mxu0 %v14436_v13  ;;  %v14511_v13 = vld [vmem:[%s18846_s7 + $0xe28] ss:$16 sps:$4 sm:$0xff]  }
 0x7d9   :  { %10312 = vmatprep.subr.bf16.mxu0 %v14441_v49  ;;  %v14514_v49 = vld [vmem:[%s18846_s7 + $0xe48] ss:$16 sps:$4 sm:$0xff]  }
 0x7dc   :  { %10313 = vmatpush1.bf16.msra.mxu0 %v14439_v10  ;;  %v14519_v10 = vld [vmem:[%s18846_s7 + $0xe6c] ss:$16 sps:$4 sm:$0xff]  }
 0x7dd   :  { %10314 = vmatprep.subr.bf16.mxu0 %v14444_v28  ;;  %v14517_v28 = vld [vmem:[%s18846_s7 + $0xe68] ss:$16 sps:$4 sm:$0xff]  }
 0x7e0   :  { %10315 = vmatpush1.bf16.msra.mxu0 %v14442_v62  ;;  %v14522_v62 = vld [vmem:[%s18846_s7 + $0xe8c] ss:$16 sps:$4 sm:$0xff]  }
 0x7e1   :  { %10316 = vmatprep.subr.bf16.mxu0 %v14447_v21  ;;  %v14520_v21 = vld [vmem:[%s18846_s7 + $0xe88] ss:$16 sps:$4 sm:$0xff]  }
 0x7e4   :  { %10317 = vmatpush1.bf16.msra.mxu0 %v14445_v47  ;;  %v14525_v47 = vld [vmem:[%s18846_s7 + $0xeac] ss:$16 sps:$4 sm:$0xff]  }
 0x7e5   :  { %10318 = vmatprep.subr.bf16.mxu0 %v14450_v45  ;;  %v14523_v45 = vld [vmem:[%s18846_s7 + $0xea8] ss:$16 sps:$4 sm:$0xff]  }
 0x7e8   :  { %10319 = vmatpush1.bf16.msra.mxu0 %v14448_v39  ;;  %v14528_v39 = vld [vmem:[%s18846_s7 + $0xecc] ss:$16 sps:$4 sm:$0xff]  }
 0x7e9   :  { %10320 = vmatprep.subr.bf16.mxu0 %v14453_v0  ;;  %v14526_v0 = vld [vmem:[%s18846_s7 + $0xec8] ss:$16 sps:$4 sm:$0xff]  }
 0x7ec   :  { %10321 = vmatpush1.bf16.msra.mxu0 %v14451_v22  ;;  %v14531_v22 = vld [vmem:[%s18846_s7 + $0xeec] ss:$16 sps:$4 sm:$0xff]  }
 0x7ed   :  { %10322 = vmatprep.subr.bf16.mxu0 %v14456_v1  ;;  %v14529_v1 = vld [vmem:[%s18846_s7 + $0xee8] ss:$16 sps:$4 sm:$0xff]  }
 0x7f0   :  { %10323 = vmatpush1.bf16.msra.mxu0 %v14454_v42  ;;  %v14534_v42 = vld [vmem:[%s18846_s7 + $0xf0c] ss:$16 sps:$4 sm:$0xff]  }
 0x7f1   :  { %10324 = vmatprep.subr.bf16.mxu0 %v14459_v56  ;;  %v14532_v56 = vld [vmem:[%s18846_s7 + $0xf08] ss:$16 sps:$4 sm:$0xff]  }
 0x7f4   :  { %10325 = vmatpush1.bf16.msra.mxu0 %v14457_v19  ;;  %v14537_v19 = vld [vmem:[%s18846_s7 + $0xf2c] ss:$16 sps:$4 sm:$0xff]  }
 0x7f5   :  { %10801 = vmatprep.subr.bf16.mxu0 %v14462_v61  ;;  %v14535_v61 = vld [vmem:[%s18846_s7 + $0xf28] ss:$16 sps:$4 sm:$0xff]  }
 0x7f7   :  { %10327 = vmatmul.mubr.bf16.vlgmr.msra.gmra.mrb[4].mxu0 %v18204_v27  ;;  %v14492_v27 = vld [vmem:[%s18846_s7 + $0xf44] ss:$16 sps:$4 sm:$0xff]  }
 0x7f8   :  { %10802 = vmatpush1.bf16.msra.mxu0 %v14460_v54  ;;  %10833 = vmatprep.mubr.bf16.mxu0 %v18309_v43  ;;  %v14538_v54 = vld [vmem:[%s18846_s7 + $0xf48] ss:$16 sps:$4 sm:$0xff]  }
 0x7f9   :  { %10803 = vmatprep.subr.bf16.mxu0 %v14465_v55  ;;  %v14543_v55 = vld [vmem:[%s18846_s7 + $0xf6c] ss:$16 sps:$4 sm:$0xff]  }
 0x7fc   :  { %10804 = vmatpush1.bf16.msra.mxu0 %v14463_v8  ;;  %v14546_v8 = vld [vmem:[%s18846_s7 + $0xf8c] ss:$16 sps:$4 sm:$0xff]  }
 0x7fd   :  { %10805 = vmatprep.subr.bf16.mxu0 %v14468_v18  ;;  %v14544_v18 = vld [vmem:[%s18846_s7 + $0xf88] ss:$16 sps:$4 sm:$0xff]  }
 0x800   :  { %10806 = vmatpush1.bf16.msra.mxu0 %v14466_v11  ;;  %v14549_v11 = vld [vmem:[%s18846_s7 + $0xfac] ss:$16 sps:$4 sm:$0xff]  }
 0x801   :  { %10807 = vmatprep.subr.bf16.mxu0 %v14471_v30  ;;  %v14547_v30 = vld [vmem:[%s18846_s7 + $0xfa8] ss:$16 sps:$4 sm:$0xff]  }
 0x804   :  { %10808 = vmatpush1.bf16.msra.mxu0 %v14469_v36  ;;  %v14552_v36 = vld [vmem:[%s18846_s7 + $0xfcc] ss:$16 sps:$4 sm:$0xff]  }
 0x805   :  { %10809 = vmatprep.subr.bf16.mxu0 %v14474_v17  ;;  %v14550_v17 = vld [vmem:[%s18846_s7 + $0xfc8] ss:$16 sps:$4 sm:$0xff]  }
 0x808   :  { %10810 = vmatpush1.bf16.msra.mxu0 %v14472_v15  ;;  %v14555_v15 = vld [vmem:[%s18846_s7 + $0xfec] ss:$16 sps:$4 sm:$0xff]  }
 0x809   :  { %10811 = vmatprep.subr.bf16.mxu0 %v14477_v60  ;;  %v14553_v60 = vld [vmem:[%s18846_s7 + $0xfe8] ss:$16 sps:$4 sm:$0xff]  }
 0x80c   :  { %10812 = vmatpush1.bf16.msra.mxu0 %v14475_v35  ;;  %v14558_v35 = vld [vmem:[%s18846_s7 + $0x1004] ss:$16 sps:$4 sm:$0xff]  }
 0x80d   :  { %10813 = vmatprep.subr.bf16.mxu0 %v14480_v40  ;;  %v10944_v40 = vcombine.high %v17121_v37, %v17124_v26  ;;  %v14559_v37 = vld [vmem:[%s18846_s7 + $0x1020] ss:$16 sps:$4 sm:$0xff]   ;;  %v14564_v26 = vld [vmem:[%s18846_s7 + $0x1044] ss:$16 sps:$4 sm:$0xff]  }
 0x810   :  { %10814 = vmatpush1.bf16.msra.mxu0 %v14478_v4  ;;  %v14556_v4 = vld [vmem:[%s18846_s7 + $0x1000] ss:$16 sps:$4 sm:$0xff]  }
 0x811   :  { %10815 = vmatprep.subr.bf16.mxu0 %v14483_v48  ;;  %v14561_v48 = vld [vmem:[%s18846_s7 + $0x1024] ss:$16 sps:$4 sm:$0xff]  }
 0x814   :  { %10816 = vmatpush1.bf16.msra.mxu0 %v14481_v6  ;;  %v18513_v6 = vpack.c.bf16 %v10944_v40, %v10944_v40  ;;  %v14637_v40 = vld [vmem:[%s18846_s7 + $0x1168] ss:$16 sps:$4 sm:$0xff]  }
 0x815   :  { %10817 = vmatprep.subr.bf16.mxu0 %v14486_v63  ;;  %v14562_v63 = vld [vmem:[%s18846_s7 + $0x1040] ss:$16 sps:$4 sm:$0xff]  }
 0x818   :  { %10818 = vmatpush1.bf16.msra.mxu0 %v14484_v23  ;;  %v14567_v23 = vld [vmem:[%s18846_s7 + $0x1064] ss:$16 sps:$4 sm:$0xff]  }
 0x819   :  { %10819 = vmatprep.subr.bf16.mxu0 %v14489_v7  ;;  %v14565_v7 = vld [vmem:[%s18846_s7 + $0x1060] ss:$16 sps:$4 sm:$0xff]  }
 0x81c   :  { %10820 = vmatpush1.bf16.msra.mxu0 %v14487_v9  ;;  %v14570_v9 = vld [vmem:[%s18846_s7 + $0x1084] ss:$16 sps:$4 sm:$0xff]  }
 0x81d   :  { %10821 = vmatprep.subr.bf16.mxu0 %v14492_v27  ;;  %v14568_v27 = vld [vmem:[%s18846_s7 + $0x1080] ss:$16 sps:$4 sm:$0xff]  }
 0x820   :  { %10822 = vmatpush1.bf16.msra.mxu0 %v14490_v14  ;;  %v14573_v14 = vld [vmem:[%s18846_s7 + $0x10a4] ss:$16 sps:$4 sm:$0xff]  }
 0x821   :  { %10823 = vmatprep.subr.bf16.mxu0 %v14495_v33  ;;  %v14571_v33 = vld [vmem:[%s18846_s7 + $0x10a0] ss:$16 sps:$4 sm:$0xff]  }
 0x824   :  { %10824 = vmatpush1.bf16.msra.mxu0 %v14493_v32  ;;  %v14576_v32 = vld [vmem:[%s18846_s7 + $0x10c4] ss:$16 sps:$4 sm:$0xff]  }
 0x825   :  { %10825 = vmatprep.subr.bf16.mxu0 %v14498_v38  ;;  %v14574_v38 = vld [vmem:[%s18846_s7 + $0x10c0] ss:$16 sps:$4 sm:$0xff]  }
 0x828   :  { %10826 = vmatpush1.bf16.msra.mxu0 %v14496_v25  ;;  %v14579_v25 = vld [vmem:[%s18846_s7 + $0x10e4] ss:$16 sps:$4 sm:$0xff]  }
 0x829   :  { %10827 = vmatprep.subr.bf16.mxu0 %v14501_v3  ;;  %v14577_v3 = vld [vmem:[%s18846_s7 + $0x10e0] ss:$16 sps:$4 sm:$0xff]  }
 0x82c   :  { %10828 = vmatpush1.bf16.msra.mxu0 %v14499_v29  ;;  %v14582_v29 = vld [vmem:[%s18846_s7 + $0x1104] ss:$16 sps:$4 sm:$0xff]  }
 0x82d   :  { %10829 = vmatprep.subr.bf16.mxu0 %v14504_v46  ;;  %v14580_v46 = vld [vmem:[%s18846_s7 + $0x1100] ss:$16 sps:$4 sm:$0xff]  }
 0x830   :  { %10830 = vmatpush1.bf16.msra.mxu0 %v14502_v44  ;;  %v14585_v44 = vld [vmem:[%s18846_s7 + $0x1124] ss:$16 sps:$4 sm:$0xff]  }
 0x831   :  { %10831 = vmatprep.subr.bf16.mxu0 %v14507_v31  ;;  %v14583_v31 = vld [vmem:[%s18846_s7 + $0x1120] ss:$16 sps:$4 sm:$0xff]  }
 0x834   :  { %10832 = vmatpush1.bf16.msra.mxu0 %v14505_v16  ;;  %v14588_v16 = vld [vmem:[%s18846_s7 + $0x1144] ss:$16 sps:$4 sm:$0xff]  }
 0x835   :  { %10842 = vmatprep.subr.bf16.mxu0 %v14510_v52  ;;  %v14586_v52 = vld [vmem:[%s18846_s7 + $0x1140] ss:$16 sps:$4 sm:$0xff]  }
 0x837   :  { %10834 = vmatmul.mubr.bf16.vlgmr.msra.gmra.mrb[0].mxu0 %v18408_v51 }
 0x838   :  { %10843 = vmatpush1.bf16.msra.mxu0 %v14508_v12  ;;  %10874 = vmatprep.mubr.bf16.mxu0 %v18309_v43  ;;  %v14541_v43 = vld [vmem:[%s18846_s7 + $0xf68] ss:$16 sps:$4 sm:$0xff]   ;;  %v14591_v12 = vld [vmem:[%s18846_s7 + $0x1164] ss:$16 sps:$4 sm:$0xff]  }
 0x839   :  { %10844 = vmatprep.subr.bf16.mxu0 %v14513_v2  ;;  %v14594_v2 = vld [vmem:[%s18846_s7 + $0x1184] ss:$16 sps:$4 sm:$0xff]  }
 0x83c   :  { %10845 = vmatpush1.bf16.msra.mxu0 %v14511_v13  ;;  %v14592_v13 = vld [vmem:[%s18846_s7 + $0x1180] ss:$16 sps:$4 sm:$0xff]  }
 0x83d   :  { %10846 = vmatprep.subr.bf16.mxu0 %v14516_v59  ;;  %v14597_v59 = vld [vmem:[%s18846_s7 + $0x11a4] ss:$16 sps:$4 sm:$0xff]  }
 0x840   :  { %10847 = vmatpush1.bf16.msra.mxu0 %v14514_v49  ;;  %v14595_v49 = vld [vmem:[%s18846_s7 + $0x11a0] ss:$16 sps:$4 sm:$0xff]  }
 0x841   :  { %10848 = vmatprep.subr.bf16.mxu0 %v14519_v10  ;;  %v14600_v10 = vld [vmem:[%s18846_s7 + $0x11c4] ss:$16 sps:$4 sm:$0xff]  }
 0x844   :  { %10849 = vmatpush1.bf16.msra.mxu0 %v14517_v28  ;;  %v14598_v28 = vld [vmem:[%s18846_s7 + $0x11c0] ss:$16 sps:$4 sm:$0xff]  }
 0x845   :  { %10850 = vmatprep.subr.bf16.mxu0 %v14522_v62  ;;  %v14603_v62 = vld [vmem:[%s18846_s7 + $0x11e4] ss:$16 sps:$4 sm:$0xff]  }
 0x848   :  { %10851 = vmatpush1.bf16.msra.mxu0 %v14520_v21  ;;  %v14601_v21 = vld [vmem:[%s18846_s7 + $0x11e0] ss:$16 sps:$4 sm:$0xff]  }
 0x849   :  { %10852 = vmatprep.subr.bf16.mxu0 %v14525_v47  ;;  %v14606_v47 = vld [vmem:[%s18846_s7 + $0x100c] ss:$16 sps:$4 sm:$0xff]  }
 0x84c   :  { %10853 = vmatpush1.bf16.msra.mxu0 %v14523_v45  ;;  %v14604_v45 = vld [vmem:[%s18846_s7 + $0x1008] ss:$16 sps:$4 sm:$0xff]  }
 0x84d   :  { %10854 = vmatprep.subr.bf16.mxu0 %v14528_v39  ;;  %v18612_v39 = vpack.c.bf16 %v17140_v5, %v17140_v5  ;;  %v14612_v5 = vld [vmem:[%s18846_s7 + $0x104c] ss:$16 sps:$4 sm:$0xff]  }
 0x850   :  { %10855 = vmatpush1.bf16.msra.mxu0 %v14526_v0  ;;  %v14609_v0 = vld [vmem:[%s18846_s7 + $0x102c] ss:$16 sps:$4 sm:$0xff]  }
 0x851   :  { %10856 = vmatprep.subr.bf16.mxu0 %v14531_v22  ;;  %v14607_v22 = vld [vmem:[%s18846_s7 + $0x1028] ss:$16 sps:$4 sm:$0xff]  }
 0x854   :  { %10857 = vmatpush1.bf16.msra.mxu0 %v14529_v1  ;;  %v14610_v1 = vld [vmem:[%s18846_s7 + $0x1048] ss:$16 sps:$4 sm:$0xff]  }
 0x855   :  { %10858 = vmatprep.subr.bf16.mxu0 %v14534_v42  ;;  %v14615_v42 = vld [vmem:[%s18846_s7 + $0x106c] ss:$16 sps:$4 sm:$0xff]  }
 0x858   :  { %10859 = vmatpush1.bf16.msra.mxu0 %v14532_v56  ;;  %v14613_v56 = vld [vmem:[%s18846_s7 + $0x1068] ss:$16 sps:$4 sm:$0xff]  }
 0x859   :  { %10860 = vmatprep.subr.bf16.mxu0 %v14537_v19  ;;  %v14618_v19 = vld [vmem:[%s18846_s7 + $0x108c] ss:$16 sps:$4 sm:$0xff]  }
 0x85c   :  { %10861 = vmatpush1.bf16.msra.mxu0 %v14535_v61  ;;  %v14616_v61 = vld [vmem:[%s18846_s7 + $0x1088] ss:$16 sps:$4 sm:$0xff]  }
 0x85d   :  { %10862 = vmatprep.subr.bf16.mxu0 %v14540_v50  ;;  %v14621_v50 = vld [vmem:[%s18846_s7 + $0x10ac] ss:$16 sps:$4 sm:$0xff]  }
 0x860   :  { %10863 = vmatpush1.bf16.msra.mxu0 %v14538_v54  ;;  %v14619_v54 = vld [vmem:[%s18846_s7 + $0x10a8] ss:$16 sps:$4 sm:$0xff]  }
 0x861   :  { %10864 = vmatprep.subr.bf16.mxu0 %v14543_v55  ;;  %v14624_v55 = vld [vmem:[%s18846_s7 + $0x10cc] ss:$16 sps:$4 sm:$0xff]  }
 0x864   :  { %10865 = vmatpush1.bf16.msra.mxu0 %v14541_v43  ;;  %v14622_v43 = vld [vmem:[%s18846_s7 + $0x10c8] ss:$16 sps:$4 sm:$0xff]  }
 0x865   :  { %10866 = vmatprep.subr.bf16.mxu0 %v14546_v8  ;;  %v14627_v8 = vld [vmem:[%s18846_s7 + $0x10ec] ss:$16 sps:$4 sm:$0xff]  }
 0x868   :  { %10867 = vmatpush1.bf16.msra.mxu0 %v14544_v18  ;;  %v14625_v18 = vld [vmem:[%s18846_s7 + $0x10e8] ss:$16 sps:$4 sm:$0xff]  }
 0x869   :  { %10868 = vmatprep.subr.bf16.mxu0 %v14549_v11  ;;  %v14630_v11 = vld [vmem:[%s18846_s7 + $0x110c] ss:$16 sps:$4 sm:$0xff]  }
 0x86c   :  { %10869 = vmatpush1.bf16.msra.mxu0 %v14547_v30  ;;  %v14628_v30 = vld [vmem:[%s18846_s7 + $0x1108] ss:$16 sps:$4 sm:$0xff]  }
 0x86d   :  { %10870 = vmatprep.subr.bf16.mxu0 %v14552_v36  ;;  %v14633_v36 = vld [vmem:[%s18846_s7 + $0x112c] ss:$16 sps:$4 sm:$0xff]  }
 0x870   :  { %10871 = vmatpush1.bf16.msra.mxu0 %v14550_v17  ;;  %v14631_v17 = vld [vmem:[%s18846_s7 + $0x1128] ss:$16 sps:$4 sm:$0xff]  }
 0x871   :  { %10872 = vmatprep.subr.bf16.mxu0 %v14555_v15  ;;  %v14636_v15 = vld [vmem:[%s18846_s7 + $0x114c] ss:$16 sps:$4 sm:$0xff]  }
 0x874   :  { %10873 = vmatpush1.bf16.msra.mxu0 %v14553_v60  ;;  %v14634_v60 = vld [vmem:[%s18846_s7 + $0x1148] ss:$16 sps:$4 sm:$0xff]  }
 0x875   :  { %11333 = vmatprep.subr.bf16.mxu0 %v14558_v35  ;;  %v14639_v35 = vld [vmem:[%s18846_s7 + $0x116c] ss:$16 sps:$4 sm:$0xff]  }
 0x877   :  { %10875 = vmatmul.mubr.bf16.vlgmr.msra.gmra.mrb[4].mxu0 %v18408_v51  ;;  %v14589_v51 = vld [vmem:[%s18846_s7 + $0x1160] ss:$16 sps:$4 sm:$0xff]  }
 0x878   :  { %11334 = vmatpush1.bf16.msra.mxu0 %v14556_v4  ;;  %11365 = vmatprep.mubr.bf16.mxu0 %v18513_v6  ;;  %v14642_v4 = vld [vmem:[%s18846_s7 + $0x118c] ss:$16 sps:$4 sm:$0xff]  }
 0x879   :  { %11335 = vmatprep.subr.bf16.mxu0 %v14561_v48  ;;  %v14640_v48 = vld [vmem:[%s18846_s7 + $0x1188] ss:$16 sps:$4 sm:$0xff]  }
 0x87c   :  { %11336 = vmatpush1.bf16.msra.mxu0 %v14559_v37  ;;  %v14643_v37 = vld [vmem:[%s18846_s7 + $0x11a8] ss:$16 sps:$4 sm:$0xff]  }
 0x87d   :  { %11337 = vmatprep.subr.bf16.mxu0 %v14564_v26  ;;  %v14648_v26 = vld [vmem:[%s18846_s7 + $0x11cc] ss:$16 sps:$4 sm:$0xff]  }
 0x880   :  { %11338 = vmatpush1.bf16.msra.mxu0 %v14562_v63  ;;  %v14646_v63 = vld [vmem:[%s18846_s7 + $0x11c8] ss:$16 sps:$4 sm:$0xff]  }
 0x881   :  { %11339 = vmatprep.subr.bf16.mxu0 %v14567_v23  ;;  %v14651_v23 = vld [vmem:[%s18846_s7 + $0x11ec] ss:$16 sps:$4 sm:$0xff]  }
 0x884   :  { %11340 = vmatpush1.bf16.msra.mxu0 %v14565_v7  ;;  %v14649_v7 = vld [vmem:[%s18846_s7 + $0x11e8] ss:$16 sps:$4 sm:$0xff]  }
 0x885   :  { %11341 = vmatprep.subr.bf16.mxu0 %v14570_v9  ;;  %v14652_v9 = vld [vmem:[%s18848_s9 + $0x40] sm:$0xff]  }
 0x886   :  { %13199 = vmatprep.subr.bf16.mxu1 %v14652_v9 }
 0x888   :  { %11342 = vmatpush1.bf16.msra.mxu0 %v14568_v27  ;;  %v14653_v27 = vld [vmem:[%s18848_s9] sm:$0xff]  }
 0x889   :  { %11343 = vmatprep.subr.bf16.mxu0 %v14573_v14  ;;  %13200 = vmatpush3.bf16.msra.mxu1 %v14653_v27  ;;  %v14654_v14 = vld [vmem:[%s18848_s9 + $0x48] sm:$0xff]  }
 0x88a   :  { %13201 = vmatprep.subr.bf16.mxu1 %v14654_v14 }
 0x88c   :  { %11344 = vmatpush1.bf16.msra.mxu0 %v14571_v33  ;;  %v14655_v33 = vld [vmem:[%s18848_s9 + $0x8] sm:$0xff]  }
 0x88d   :  { %11345 = vmatprep.subr.bf16.mxu0 %v14576_v32  ;;  %v14656_v32 = vld [vmem:[%s18848_s9 + $0x50] sm:$0xff]   ;;  %13202 = vmatpush3.bf16.msra.mxu1 %v14655_v33 }
 0x88e   :  { %13203 = vmatprep.subr.bf16.mxu1 %v14656_v32 }
 0x890   :  { %11346 = vmatpush1.bf16.msra.mxu0 %v14574_v38  ;;  %v14657_v38 = vld [vmem:[%s18848_s9 + $0x10] sm:$0xff]  }
 0x891   :  { %11347 = vmatprep.subr.bf16.mxu0 %v14579_v25  ;;  %v14658_v25 = vld [vmem:[%s18848_s9 + $0x58] sm:$0xff]   ;;  %13204 = vmatpush3.bf16.msra.mxu1 %v14657_v38 }
 0x892   :  { %13205 = vmatprep.subr.bf16.mxu1 %v14658_v25 }
 0x894   :  { %11348 = vmatpush1.bf16.msra.mxu0 %v14577_v3  ;;  %v14659_v3 = vld [vmem:[%s18848_s9 + $0x18] sm:$0xff]  }
 0x895   :  { %11349 = vmatprep.subr.bf16.mxu0 %v14582_v29  ;;  %v14660_v29 = vld [vmem:[%s18848_s9 + $0x60] sm:$0xff]   ;;  %13206 = vmatpush3.bf16.msra.mxu1 %v14659_v3 }
 0x896   :  { %13207 = vmatprep.subr.bf16.mxu1 %v14660_v29 }
 0x898   :  { %11350 = vmatpush1.bf16.msra.mxu0 %v14580_v46  ;;  %v14661_v46 = vld [vmem:[%s18848_s9 + $0x20] sm:$0xff]  }
 0x899   :  { %11351 = vmatprep.subr.bf16.mxu0 %v14585_v44  ;;  %v14662_v44 = vld [vmem:[%s18848_s9 + $0x68] sm:$0xff]   ;;  %13208 = vmatpush3.bf16.msra.mxu1 %v14661_v46 }
 0x89a   :  { %13209 = vmatprep.subr.bf16.mxu1 %v14662_v44 }
 0x89c   :  { %11352 = vmatpush1.bf16.msra.mxu0 %v14583_v31  ;;  %v14663_v31 = vld [vmem:[%s18848_s9 + $0x28] sm:$0xff]  }
 0x89d   :  { %11353 = vmatprep.subr.bf16.mxu0 %v14588_v16  ;;  %v14664_v16 = vld [vmem:[%s18848_s9 + $0x70] sm:$0xff]   ;;  %13210 = vmatpush3.bf16.msra.mxu1 %v14663_v31 }
 0x89e   :  { %13211 = vmatprep.subr.bf16.mxu1 %v14664_v16 }
 0x8a0   :  { %11354 = vmatpush1.bf16.msra.mxu0 %v14586_v52  ;;  %v14665_v52 = vld [vmem:[%s18848_s9 + $0x30] sm:$0xff]  }
 0x8a1   :  { %11355 = vmatprep.subr.bf16.mxu0 %v14591_v12  ;;  %v14666_v12 = vld [vmem:[%s18848_s9 + $0x78] sm:$0xff]   ;;  %13212 = vmatpush3.bf16.msra.mxu1 %v14665_v52 }
 0x8a2   :  { %13213 = vmatprep.subr.bf16.mxu1 %v14666_v12 }
 0x8a4   :  { %11356 = vmatpush1.bf16.msra.mxu0 %v14589_v51  ;;  %v14667_v51 = vld [vmem:[%s18848_s9 + $0x38] sm:$0xff]  }
 0x8a5   :  { %11357 = vmatprep.subr.bf16.mxu0 %v14594_v2  ;;  %v14668_v2 = vld [vmem:[%s18848_s9 + $0xc0] sm:$0xff]   ;;  %13214 = vmatpush3.bf16.msra.mxu1 %v14667_v51 }
 0x8a6   :  { %13221 = vmatprep.subr.bf16.mxu1 %v14668_v2 }
 0x8a8   :  { %11358 = vmatpush1.bf16.msra.mxu0 %v14592_v13 }
 0x8a9   :  { %11359 = vmatprep.subr.bf16.mxu0 %v14597_v59 }
 0x8ac   :  { %11360 = vmatpush1.bf16.msra.mxu0 %v14595_v49 }
 0x8ad   :  { %11361 = vmatprep.subr.bf16.mxu0 %v14600_v10 }
 0x8b0   :  { %11362 = vmatpush1.bf16.msra.mxu0 %v14598_v28 }
 0x8b1   :  { %11363 = vmatprep.subr.bf16.mxu0 %v14603_v62 }
 0x8b4   :  { %11364 = vmatpush1.bf16.msra.mxu0 %v14601_v21 }
 0x8b5   :  { %11374 = vmatprep.subr.bf16.mxu0 %v14606_v47 }
 0x8b7   :  { %11366 = vmatmul.mubr.bf16.vlgmr.msra.gmra.mrb[0].mxu0 %v18612_v39 }
 0x8b8   :  { %11375 = vmatpush1.bf16.msra.mxu0 %v14604_v45  ;;  %11406 = vmatprep.mubr.bf16.mxu0 %v18513_v6  ;;  %v14645_v6 = vld [vmem:[%s18846_s7 + $0x11ac] ss:$16 sps:$4 sm:$0xff]   ;;  %v14714_v45 = vmov 857870592  }
 0x8b9   :  { %11376 = vmatprep.subr.bf16.mxu0 %v14609_v0 }
 0x8bc   :  { %11377 = vmatpush1.bf16.msra.mxu0 %v14607_v22 }
 0x8bd   :  { %11378 = vmatprep.subr.bf16.mxu0 %v14612_v5 }
 0x8c0   :  { %11379 = vmatpush1.bf16.msra.mxu0 %v14610_v1 }
 0x8c1   :  { %11380 = vmatprep.subr.bf16.mxu0 %v14615_v42 }
 0x8c4   :  { %11381 = vmatpush1.bf16.msra.mxu0 %v14613_v56 }
 0x8c5   :  { %11382 = vmatprep.subr.bf16.mxu0 %v14618_v19 }
 0x8c8   :  { %11383 = vmatpush1.bf16.msra.mxu0 %v14616_v61 }
 0x8c9   :  { %11384 = vmatprep.subr.bf16.mxu0 %v14621_v50 }
 0x8cc   :  { %11385 = vmatpush1.bf16.msra.mxu0 %v14619_v54 }
 0x8cd   :  { %11386 = vmatprep.subr.bf16.mxu0 %v14624_v55 }
 0x8d0   :  { %11387 = vmatpush1.bf16.msra.mxu0 %v14622_v43 }
 0x8d1   :  { %11388 = vmatprep.subr.bf16.mxu0 %v14627_v8 }
 0x8d4   :  { %11389 = vmatpush1.bf16.msra.mxu0 %v14625_v18 }
 0x8d5   :  { %11390 = vmatprep.subr.bf16.mxu0 %v14630_v11 }
 0x8d8   :  { %11391 = vmatpush1.bf16.msra.mxu0 %v14628_v30 }
 0x8d9   :  { %11392 = vmatprep.subr.bf16.mxu0 %v14633_v36 }
 0x8dc   :  { %11393 = vmatpush1.bf16.msra.mxu0 %v14631_v17 }
 0x8dd   :  { %11394 = vmatprep.subr.bf16.mxu0 %v14636_v15 }
 0x8e0   :  { %11395 = vmatpush1.bf16.msra.mxu0 %v14634_v60 }
 0x8e1   :  { %11396 = vmatprep.subr.bf16.mxu0 %v14639_v35 }
 0x8e4   :  { %11397 = vmatpush1.bf16.msra.mxu0 %v14637_v40 }
 0x8e5   :  { %11398 = vmatprep.subr.bf16.mxu0 %v14642_v4 }
 0x8e8   :  { %11399 = vmatpush1.bf16.msra.mxu0 %v14640_v48 }
 0x8e9   :  { %11400 = vmatprep.subr.bf16.mxu0 %v14645_v6  ;;  %v11505_v6 = vsub.s32 6, %v18860_v24 }
 0x8ec   :  { %11401 = vmatpush1.bf16.msra.mxu0 %v14643_v37  ;;  %v11501_v37 = vsub.s32 4, %v18860_v24 }
 0x8ed   :  { %11402 = vmatprep.subr.bf16.mxu0 %v14648_v26 }
 0x8f0   :  { %11403 = vmatpush1.bf16.msra.mxu0 %v14646_v63 }
 0x8f1   :  { %11404 = vmatprep.subr.bf16.mxu0 %v14651_v23 }
 0x8f4   :  { %11405 = vmatpush1.bf16.msra.mxu0 %v14649_v7 }
 0x8f7   :  { %11407 = vmatmul.mubr.bf16.vlgmr.msra.gmra.mrb[4].mxu0 %v18612_v39  ;;  %v11478_v39 = vunpack.c.l.s4 %v14714_v45 }
 0x8f9   :  { %v11479_v56 = vunpack.c.0.s8 %v11478_v39 }
 0x8fb   :  { %v11482_v43 = vsub.s32 %v11479_v56, %v18860_v24 }
 0x98a   :  { %v11367_v13 = vpop.f32.mrb[0].mxu0 }
 0x98b   :  { %v13335_v59 = vadd.f32 %v11367_v13, %v17933_v58  ;;  %v11369_v49 = vpop.f32.mrb[1].mxu0 }
 0x98c   :  { %v13336_v10 = vadd.f32 %v11369_v49, %v17938_v34  ;;  %v11371_v28 = vpop.f32.mrb[2].mxu0 }
 0x98d   :  { %v11372_v62 = vpop.f32.mrb[3].mxu0 }
 0x98e   :  { %v11424_v21 = vcombine.low %v13335_v59, %v13336_v10  ;;  %v11425_v47 = vcombine.high %v13335_v59, %v13336_v10 }
 0x990   :  { %v11434_v50 = vrot.slane %v11424_v21, %v15017_v41  ;;  %v11441_v34 = vrot.slane %v11425_v47, %v15017_v41 }
 0x9ca   :  { %v11408_v0 = vpop.f32.mrb[4].mxu0 }
 0x9cb   :  { %v13337_v22 = vadd.f32 %v11408_v0, %v18039_v53  ;;  %v11410_v5 = vpop.f32.mrb[5].mxu0 }
 0x9cc   :  { %v13338_v1 = vadd.f32 %v11410_v5, %v18044_v20  ;;  %v11412_v42 = vpop.f32.mrb[6].mxu0  ;;  %v11419_v20 = vld [vmem:[%s18847_s8] sm:$0xf] }
 0x9cd   :  { %v11413_v19 = vpop.f32.mrb[7].mxu0  ;;  %v11483_v60 = vrot.slane %v11419_v20, %v11482_v43  ;;  %v14670_v42 = vld [vmem:[%s18848_s9 + $0xc8] sm:$0xff]   ;;  %v14683_v20 = vld [vmem:[%s18848_s9 + $0xb8] sm:$0xff]  }
 0x9ce   :  { %v11426_v61 = vcombine.low %v13337_v22, %v13338_v1  ;;  %v11427_v58 = vcombine.high %v13337_v22, %v13338_v1  ;;  %v14669_v22 = vld [vmem:[%s18848_s9 + $0x80] sm:$0xff]   ;;  %v14671_v19 = vld [vmem:[%s18848_s9 + $0x88] sm:$0xff]  }
 0x9cf   :  { %v14678_v43 = vld [vmem:[%s18848_s9 + $0xe8] sm:$0xff]  }
 0x9d0   :  { %v11448_v54 = vrot.slane %v11426_v61, %v15017_v41  ;;  %v11455_v55 = vrot.slane %v11427_v58, %v15017_v41  ;;  %v11497_v41 = vsub.s32 2, %v18860_v24  ;;  %v14672_v61 = vld [vmem:[%s18848_s9 + $0xd0] sm:$0xff]  }
 0x9d1   :  { %v14673_v58 = vld [vmem:[%s18848_s9 + $0x90] sm:$0xff]  }
 0x9d2   :  { %v11456_v8 = vcombine.low %v11434_v50, %v11448_v54  ;;  %v11457_v53 = vcombine.high %v11434_v50, %v11448_v54  ;;  %v11458_v18 = vcombine.low %v11441_v34, %v11455_v55  ;;  %v11459_v11 = vcombine.high %v11441_v34, %v11455_v55  ;;  %v14674_v50 = vld [vmem:[%s18848_s9 + $0xd8] sm:$0xff]   ;;  %v14676_v54 = vld [vmem:[%s18848_s9 + $0xe0] sm:$0xff]  }
 0x9d3   :  { %v14675_v34 = vld [vmem:[%s18848_s9 + $0x98] sm:$0xff]   ;;  %v14677_v55 = vld [vmem:[%s18848_s9 + $0xa0] sm:$0xff]  }
 0x9d4   :  { %v11464_v30 = vmax.f32 %v11456_v8, %v11457_v53  ;;  %v11465_v36 = vmax.f32 %v11458_v18, %v11459_v11  ;;  %v14679_v8 = vld [vmem:[%s18848_s9 + $0xa8] sm:$0xff]   ;;  %v14680_v53 = vld [vmem:[%s18848_s9 + $0xf0] sm:$0xff]   ;;  %v14682_v11 = vld [vmem:[%s18848_s9 + $0xf8] sm:$0xff]  }
 0x9d5   :  { %v14681_v18 = vld [vmem:[%s18848_s9 + $0xb0] sm:$0xff]   ;;  %s14685_s9 = scalar_lea.vmem %s11922_s5, 32 }
 0x9d6   :  { %v12990_v17 = vrot.slane %v11464_v30, 9  ;;  %v12991_v15 = vrot.slane %v11465_v36, 9  ;;  %p14686_p0 = scmp.ne.s32.totalorder %s11922_s5, %s14685_s9  ;;  %p14691_p2 = scmp.lt.s32.totalorder %s14685_s9, %s14685_s9 }
 0x9d8   :  { %v11474_v35 = vmax.f32 %v11464_v30, %v12990_v17  ;;  %v11475_v40 = vmax.f32 %v11465_v36, %v12991_v15  ;;  %p14692_p3 = por %p14691_p2, %p14690_p1 }
 0x9da   :  { %v11485_v4 = vadd.f32 %v11483_v60, %v11474_v35  ;;  %v11486_v48 = vadd.f32 %v11483_v60, %v11475_v40  ;;  %v12992_v40 = vld [vmem:[%s18849_s10] ss:$0 sm:$0xff]  ;;  %p14693_p4 = pnand %p14692_p3, %p14686_p0 }
 0x9dc   :  { %v11487_v26 = vmax.f32 %v11485_v4, 0.0  ;;  %v11488_v63 = vmax.f32 %v11486_v48, 0.0 }
 0x9de   :  { %v11498_v23 = vrot.slane %v11487_v26, %v11497_v41  ;;  %v11514_v7 = vrot.slane %v11488_v63, %v11497_v41  ;;  %v11494_v9 = vrot.slane %v11487_v26, %v15041_v57  ;;  %v11510_v27 = vrot.slane %v11488_v63, %v15041_v57 }
 0x9df   :  { %v11506_v14 = vrot.slane %v11487_v26, %v11505_v6  ;;  %v11522_v33 = vrot.slane %v11488_v63, %v11505_v6  ;;  %v11502_v32 = vrot.slane %v11487_v26, %v11501_v37  ;;  %v11518_v38 = vrot.slane %v11488_v63, %v11501_v37 }
 0x9e0   :  { %v11532_v25 = vpack.c.bf16 %v11498_v23, %v11498_v23  ;;  %v11536_v3 = vpack.c.bf16 %v11514_v7, %v11514_v7  ;;  %v11531_v29 = vpack.c.bf16 %v11494_v9, %v11494_v9  ;;  %v11535_v46 = vpack.c.bf16 %v11510_v27, %v11510_v27 }
 0x9e1   :  { %v11534_v44 = vpack.c.bf16 %v11506_v14, %v11506_v14  ;;  %v11538_v31 = vpack.c.bf16 %v11522_v33, %v11522_v33  ;;  %v11533_v16 = vpack.c.bf16 %v11502_v32, %v11502_v32  ;;  %v11537_v24 = vpack.c.bf16 %v11518_v38, %v11518_v38 }
 0x9e2   :  { %v11623_v52 = vunpack.c.l.b16 %v11536_v3  ;;  %v11622_v12 = vunpack.c.l.b16 %v11535_v46  ;;  %v11619_v13 = vunpack.c.l.b16 %v11532_v25  ;;  %v11618_v49 = vunpack.c.l.b16 %v11531_v29 }
 0x9e3   :  { %v11625_v51 = vunpack.c.l.b16 %v11538_v31  ;;  %v11624_v2 = vunpack.c.l.b16 %v11537_v24  ;;  %v11621_v10 = vunpack.c.l.b16 %v11534_v44  ;;  %v11620_v62 = vunpack.c.l.b16 %v11533_v16 }
 0x9e4   :  { %v11628_v59 = vrot.slane %v11623_v52, 7  ;;  %v11626_v57 = vrot.slane %v11622_v12, 7 }
 0x9e5   :  { %v11632_v28 = vrot.slane %v11625_v51, 7  ;;  %v11630_v21 = vrot.slane %v11624_v2, 7 }
 0x9e6   :  { %v11629_v47 = vsel %vm2890_vm4, %v11628_v59, %v11619_v13  ;;  %v11627_v45 = vsel %vm2890_vm4, %v11626_v57, %v11618_v49 }
 0x9e7   :  { %v11635_v39 = vpack.c.b16 %v11629_v47, %v11629_v47  ;;  %v11634_v0 = vpack.c.b16 %v11627_v45, %v11627_v45  ;;  %v11633_v5 = vsel %vm2890_vm4, %v11632_v28, %v11621_v10  ;;  %v11631_v1 = vsel %vm2890_vm4, %v11630_v21, %v11620_v62 }
 0x9e8   :  { %v11637_v56 = vpack.c.b16 %v11633_v5, %v11633_v5  ;;  %v11636_v30 = vpack.c.b16 %v11631_v1, %v11631_v1 }
 0x9e9   :  { %11866 = vmatprep.mubr.bf16.mxu1 %v11635_v39 }
 0x9ea   :  { %11867 = vmatmul.mubr.bf16.vlgmr.msra.gmra.mrb[160].mxu1 %v11634_v0 }
 0x9eb   :  { %13222 = vmatpush3.bf16.msra.mxu1 %v14669_v22  ;;  %11906 = vmatprep.mubr.bf16.mxu1 %v11637_v56 }
 0x9ec   :  { %13223 = vmatprep.subr.bf16.mxu1 %v14670_v42 }
 0x9ef   :  { %13224 = vmatpush3.bf16.msra.mxu1 %v14671_v19 }
 0x9f0   :  { %13225 = vmatprep.subr.bf16.mxu1 %v14672_v61 }
 0x9f3   :  { %13226 = vmatpush3.bf16.msra.mxu1 %v14673_v58 }
 0x9f4   :  { %13227 = vmatprep.subr.bf16.mxu1 %v14674_v50 }
 0x9f7   :  { %13228 = vmatpush3.bf16.msra.mxu1 %v14675_v34 }
 0x9f8   :  { %13229 = vmatprep.subr.bf16.mxu1 %v14676_v54 }
 0x9fb   :  { %13230 = vmatpush3.bf16.msra.mxu1 %v14677_v55 }
 0x9fc   :  { %13231 = vmatprep.subr.bf16.mxu1 %v14678_v43 }
 0x9ff   :  { %13232 = vmatpush3.bf16.msra.mxu1 %v14679_v8 }
 0xa00   :  { %13233 = vmatprep.subr.bf16.mxu1 %v14680_v53 }
 0xa03   :  { %13234 = vmatpush3.bf16.msra.mxu1 %v14681_v18 }
 0xa04   :  { %13235 = vmatprep.subr.bf16.mxu1 %v14682_v11 }
 0xa07   :  { %13236 = vmatpush3.bf16.msra.mxu1 %v14683_v20 }
 0xa0a   :  { %11907 = vmatmul.mubr.bf16.vlgmr.msra.gmra.mrb[164].mxu1 %v11636_v30 }
 0xabd   :  { %v13215_v36 = vpop.f32.mrb[160].mxu1 }
 0xabe   :  { %v13216_v17 = vpop.f32.mrb[161].mxu1 }
 0xabf   :  { %v13217_v15 = vadd.f32 %v13216_v17, %v13215_v36  ;;  %v13218_v60 = vpop.f32.mrb[162].mxu1 }
 0xac0   :  { %v13219_v35 = vpop.f32.mrb[163].mxu1 }
 0xac1   :  { %v11869_v41 = vadd.f32 %v13217_v15, %v12992_v40 }
 0xadd   :  { %v13237_v4 = vpop.f32.mrb[164].mxu1 }
 0xade   :  { %v13238_v48 = vpop.f32.mrb[165].mxu1 }
 0xadf   :  { %v13239_v6 = vadd.f32 %v13238_v48, %v13237_v4  ;;  %v13240_v37 = vpop.f32.mrb[166].mxu1 }
 0xae0   :  { %v13241_v26 = vpop.f32.mrb[167].mxu1 }
 0xae1   :  { %v11909_v63 = vadd.f32 %v13239_v6, %v11869_v41 }
 0xae3   :  { %11914 = vst [vmem:[#allocation6] sm:$0x3] %v11909_v63 }
 0xae4   :  { %14696 = shalt.err (!%p14693_p4)
}
 0xae5   :  { %s14697_s19 = scalar_lea.hbm %s18850_s11, 32 }
 0xae6   :  { %p14698_p5 = scmp.ne.s32.totalorder %s18850_s11, %s14697_s19  ;;  %p14701_p6 = scmp.lt.u32.totalorder %s14697_s19, %s18850_s11 }
 0xae8   :  { %p14703_p7 = pnand %p14701_p6, %p14698_p5 }
 0xaea   :  { %14706 = shalt.err (!%p14703_p7)
}
 0xaeb   :  { %11924 = dma.vmem_to_hbm [thread:$0]  %s11922_s5, 32, %s18850_s11, [#allocation7]  }
 0xaec   :  { %14707 = dma.done.wait [#allocation7], 32  }
 0xaed   :  { %14708 = vsyncadd [#allocation7], 4294967264 }
 0xaee   :  { %11928 = vsyncpa [#allocation7], 1 }

</bundles_post_ra>
